<compile_context>
chip_gen: v7x
topology: tpu7x:2x2x1
jax: 0.10.0
libtpu: 0.0.40
codegen_flags: <defaults>
</compile_context>

<pallas_src>
import functools

import jax
import jax.numpy as jnp
from jax.experimental import pallas as pl
from jax.experimental.pallas import tpu as pltpu


def _round_up(x, m):
    return (x + m - 1) // m * m


# ----------------------------------------------------------------------------
# Fused kernel: one full ResidualBlock forward for one batch image.
# ----------------------------------------------------------------------------
def _make_resblock_kernel(H, W, Cin_p, Cout_p, cdt, pad_rows, c_max):
    Wp = W + 2
    M = H * Wp                      # flat rows per image (row = i*Wp + jj)
    inv_hw = 1.0 / float(H * W)     # spatial factor applied here, not in prep
    eps = 1e-5

    def kernel(x_ref, temb_ref, mask_ref,
               gm1_ref, gg1_ref, gb1_ref, w1_ref,
               gm2_ref, gg2_ref, gb2_ref, w2_ref, cb2_ref,
               ws_ref, bs_ref,
               o_ref, pad_ref):
        mask = mask_ref[...]                                    # (M, 1) f32

        def gn_silu(v, gm_ref, g_ref, b_ref):
            # GroupNorm(32) + SiLU on the flat W-padded layout.  Statistics in
            # f32, two-pass variance; the group reduction is a (1,C)@(C,C) MXU
            # matmul against the block-diagonal 1/group_size matrix.
            vm = v * mask
            mean = jnp.dot(jnp.sum(vm, axis=0, keepdims=True), gm_ref[...],
                           preferred_element_type=jnp.float32) * inv_hw
            cen = (vm - mean) * mask
            var = jnp.dot(jnp.sum(cen * cen, axis=0, keepdims=True), gm_ref[...],
                          preferred_element_type=jnp.float32) * inv_hw
            y = cen * jax.lax.rsqrt(var + eps) * g_ref[...] + b_ref[...]
            return (y * jax.nn.sigmoid(y)) * mask               # SiLU; ghost cols -> 0

        def conv3x3(width, w_ref, cout):
            # 3 matmuls (one per kernel row), each K = 3*width: the three
            # kw-shifted taps are contiguous row slices of the halo scratch,
            # lane-concatenated and fed to the MXU; accumulation stays f32.
            acc = jnp.zeros((M, cout), jnp.float32)
            for kh in range(3):
                taps = [pad_ref[pl.ds(kh * Wp + kw, M), :width] for kw in range(3)]
                patch = jnp.concatenate(taps, axis=-1)          # (M, 3*width)
                acc = acc + jnp.dot(patch, w_ref[kh],
                                    preferred_element_type=jnp.float32)
            return acc

        # Border-only zeroing: top strip (lead row + padded row 0) and bottom
        # strip (padded row H+1 + tail).  Interior rows are fully overwritten
        # below and already carry zero left/right ghost columns (mask).
        pad_ref[pl.ds(0, Wp + 1), :] = jnp.zeros((Wp + 1, c_max), cdt)
        tail = pad_rows - (Wp + 1 + M)
        pad_ref[pl.ds(Wp + 1 + M, tail), :] = jnp.zeros((tail, c_max), cdt)

        # ---- conv1 path: GN -> SiLU -> 3x3 conv, + (time emb + conv1 bias) --
        a1 = gn_silu(x_ref[0].astype(jnp.float32), gm1_ref, gg1_ref, gb1_ref)
        pad_ref[pl.ds(Wp + 1, M), :Cin_p] = a1.astype(cdt)      # one contiguous store
        h = conv3x3(Cin_p, w1_ref, Cout_p) + temb_ref[0]        # (M, Cout_p) f32

        # ---- attention = Identity (cbam=False); Dropout(p=0) = Identity -----

        # ---- conv2 path: GN -> SiLU -> 3x3 conv + bias -----------------------
        a2 = gn_silu(h, gm2_ref, gg2_ref, gb2_ref)
        pad_ref[pl.ds(Wp + 1, M), :Cout_p] = a2.astype(cdt)
        h2 = conv3x3(Cout_p, w2_ref, Cout_p) + cb2_ref[...]

        # ---- 1x1-conv skip on the original input (re-read x_ref; no value
        #      kept live across both conv paths) -------------------------------
        skip = jnp.dot(x_ref[0].astype(cdt), ws_ref[...],
                       preferred_element_type=jnp.float32) + bs_ref[...]

        o_ref[0] = (h2 + skip).astype(o_ref.dtype)

    return kernel


# ----------------------------------------------------------------------------
# One-time parameter preprocessing (hoisted out of the per-forward path).
# ----------------------------------------------------------------------------
def prepare_params(p, *, compute_dtype=jnp.bfloat16, groups=32):
    """Relayout / pad params once.

    * Channels zero-padded to multiples of 128 (lane-dense vregs & stores).
    * Conv kernels -> (3, 3*Cin_p, Cout_p) so each kernel row is one K=3*Cin_p
      MXU matmul (taps concatenated along K in the kernel).
    * MXU operands stored in `compute_dtype` (bf16 default); GN/affine params
      and biases stay f32 (statistics & accumulation are f32 in-kernel).
    * Group-average matrices carry only 1/group_size -> prep is independent of
      the spatial resolution.
    """
    Cout, Cin = p["conv1_w"].shape[0], p["conv1_w"].shape[1]
    Cin_p, Cout_p = _round_up(Cin, 128), _round_up(Cout, 128)

    def padc(a, axis, target):
        cfg = [(0, 0)] * a.ndim
        cfg[axis] = (0, target - a.shape[axis])
        return jnp.pad(a, cfg)

    def gmat(c, c_p):
        gs = c // groups
        gid = jnp.arange(c) // gs
        m = (gid[:, None] == gid[None, :]).astype(jnp.float32) / float(gs)
        return padc(padc(m, 0, c_p), 1, c_p)

    def conv_w(w, c_in_p, c_out_p):                  # OIHW -> (3, 3*Cin_p, Cout_p)
        w = jnp.transpose(w, (2, 3, 1, 0))           # (3, 3, Cin, Cout)
        w = padc(padc(w, 2, c_in_p), 3, c_out_p)
        return w.reshape(3, 3 * c_in_p, c_out_p).astype(compute_dtype)

    def row(v, c_p):
        return padc(v.reshape(1, -1).astype(jnp.float32), 1, c_p)

    return {
        "gm1": gmat(Cin, Cin_p),
        "gn1_g": row(p["gn1_g"], Cin_p),
        "gn1_b": row(p["gn1_b"], Cin_p),
        "w1": conv_w(p["conv1_w"], Cin_p, Cout_p),
        "gm2": gmat(Cout, Cout_p),
        "gn2_g": row(p["gn2_g"], Cout_p),
        "gn2_b": row(p["gn2_b"], Cout_p),
        "w2": conv_w(p["conv2_w"], Cout_p, Cout_p),
        "conv2_b": row(p["conv2_b"], Cout_p),
        "time_w": padc(p["time_w"].T.astype(jnp.float32), 1, Cout_p),  # (Tc, Cout_p)
        "time_bias": row(p["time_b"] + p["conv1_b"], Cout_p),          # fold conv1 bias
        "skip_w": padc(padc(p["skip_w"][:, :, 0, 0].T, 0, Cin_p),
                       1, Cout_p).astype(compute_dtype),
        "skip_b": row(p["skip_b"], Cout_p),
    }


# ----------------------------------------------------------------------------
# Forward wrapper
# ----------------------------------------------------------------------------
@functools.partial(jax.jit, static_argnames=("cout",))
def residual_block_forward(x_nchw, t, prep, *, cout):
    B, Cin, H, W = x_nchw.shape
    Wp = W + 2
    M = H * Wp
    Cin_p = prep["gm1"].shape[0]
    Cout_p = prep["gm2"].shape[0]
    c_max = max(Cin_p, Cout_p)
    cdt = prep["w1"].dtype
    dt = x_nchw.dtype
    # halo scratch rows: 1 lead zero row + (H+2)*(W+2) padded image rows + tail
    pad_rows = _round_up((H + 2) * Wp + 2, 8)

    # --- layout glue: NCHW -> flat W-padded NHWC, lane padding to 128 --------
    # TODO(synk): at real UNet sizes keep the surrounding network NHWC so this
    # transpose/pad fuses into a neighbouring op instead of extra HBM traffic.
    x = jnp.transpose(x_nchw, (0, 2, 3, 1))                      # (B, H, W, Cin)
    x = jnp.pad(x, ((0, 0), (0, 0), (1, 1), (0, Cin_p - Cin)))   # ghost cols + lanes
    x = x.reshape(B, M, Cin_p)

    # Time embedding (+ folded conv1 bias): tiny XLA op, hidden behind the call.
    temb = (jax.nn.silu(t.astype(jnp.float32)) @ prep["time_w"]
            + prep["time_bias"]).reshape(B, 1, Cout_p)

    # Validity mask of the flat layout (row = i*(W+2) + jj; jj in [1, W] valid).
    col = jnp.arange(M, dtype=jnp.int32) % Wp
    mask = ((col >= 1) & (col <= W)).astype(jnp.float32).reshape(M, 1)

    kernel = _make_resblock_kernel(H, W, Cin_p, Cout_p, cdt, pad_rows, c_max)

    def _full(a):
        return pl.BlockSpec(a.shape, lambda b, _n=a.ndim: (0,) * _n)

    grid_spec = pltpu.PrefetchScalarGridSpec(
        num_scalar_prefetch=0,
        # TODO(synk): add a row-tile grid axis for v7x so both TensorCores get
        # multiple pipelined steps at real (H, C) sizes.
        grid=(B,),
        in_specs=[
            pl.BlockSpec((1, M, Cin_p), lambda b: (b, 0, 0)),    # x (flat, padded)
            pl.BlockSpec((1, 1, Cout_p), lambda b: (b, 0, 0)),   # temb + conv1 bias
            _full(mask),
            _full(prep["gm1"]), _full(prep["gn1_g"]), _full(prep["gn1_b"]),
            _full(prep["w1"]),
            _full(prep["gm2"]), _full(prep["gn2_g"]), _full(prep["gn2_b"]),
            _full(prep["w2"]), _full(prep["conv2_b"]),
            _full(prep["skip_w"]), _full(prep["skip_b"]),
        ],
        out_specs=pl.BlockSpec((1, M, Cout_p), lambda b: (b, 0, 0)),
        scratch_shapes=[pltpu.VMEM((pad_rows, c_max), cdt)],     # ONE shared halo
    )

    try:
        vmem_cap = pltpu.get_tpu_info().vmem_capacity_bytes
    except Exception:
        vmem_cap = 64 * 1024 * 1024
    vmem_limit = int(min(vmem_cap * 3 // 4, 100 * 1024 * 1024))

    out = pl.pallas_call(
        kernel,
        out_shape=jax.ShapeDtypeStruct((B, M, Cout_p), dt),
        grid_spec=grid_spec,
        compiler_params=pltpu.CompilerParams(
            dimension_semantics=("parallel",),      # megacore: split batch over TCs
            vmem_limit_bytes=vmem_limit),
    )(x, temb, mask,
      prep["gm1"], prep["gn1_g"], prep["gn1_b"], prep["w1"],
      prep["gm2"], prep["gn2_g"], prep["gn2_b"], prep["w2"], prep["conv2_b"],
      prep["skip_w"], prep["skip_b"])

    # Crop ghost columns / padded lanes, back to NCHW.
    out = out.reshape(B, H, Wp, Cout_p)[:, :, 1:W + 1, :cout]
    return jnp.transpose(out, (0, 3, 1, 2))


# ----------------------------------------------------------------------------
# Pure-JAX reference (mirrors the PyTorch module exactly)
# ----------------------------------------------------------------------------
def reference_forward(x, t, p):
    def gn(x, gamma, beta, groups=32, eps=1e-5):
        B, C, H, W = x.shape
        xr = x.reshape(B, groups, -1)
        mean = xr.mean(axis=2, keepdims=True)
        var = xr.var(axis=2, keepdims=True)
        xn = ((xr - mean) / jnp.sqrt(var + eps)).reshape(B, C, H, W)
        return xn * gamma[None, :, None, None] + beta[None, :, None, None]

    def conv(x, w, b):
        y = jax.lax.conv_general_dilated(
            x, w, (1, 1), "SAME", dimension_numbers=("NCHW", "OIHW", "NCHW"))
        return y + b[None, :, None, None]

    silu = jax.nn.silu
    h = conv(silu(gn(x, p["gn1_g"], p["gn1_b"])), p["conv1_w"], p["conv1_b"])
    temb = silu(t) @ p["time_w"].T + p["time_b"]
    h = h + temb[:, :, None, None]
    h = conv(silu(gn(h, p["gn2_g"], p["gn2_b"])), p["conv2_w"], p["conv2_b"])
    skip = conv(x, p["skip_w"], p["skip_b"])
    return skip + h


# ----------------------------------------------------------------------------
if __name__ == "__main__":
    B, Cin, Cout, H, W, Tc = 2, 32, 64, 16, 16, 32   # GroupNorm(32, C): C % 32 == 0

    key = jax.random.PRNGKey(0)
    ks = jax.random.split(key, 14)

    x = jax.random.normal(ks[0], (B, Cin, H, W), jnp.float32)
    t = jax.random.normal(ks[1], (B, Tc), jnp.float32)

    params = {
        "gn1_g": 1.0 + 0.1 * jax.random.normal(ks[2], (Cin,), jnp.float32),
        "gn1_b": 0.1 * jax.random.normal(ks[3], (Cin,), jnp.float32),
        "conv1_w": 0.05 * jax.random.normal(ks[4], (Cout, Cin, 3, 3), jnp.float32),
        "conv1_b": 0.05 * jax.random.normal(ks[5], (Cout,), jnp.float32),
        "time_w": 0.05 * jax.random.normal(ks[6], (Cout, Tc), jnp.float32),
        "time_b": 0.05 * jax.random.normal(ks[7], (Cout,), jnp.float32),
        "gn2_g": 1.0 + 0.1 * jax.random.normal(ks[8], (Cout,), jnp.float32),
        "gn2_b": 0.1 * jax.random.normal(ks[9], (Cout,), jnp.float32),
        "conv2_w": 0.05 * jax.random.normal(ks[10], (Cout, Cout, 3, 3), jnp.float32),
        "conv2_b": 0.05 * jax.random.normal(ks[11], (Cout,), jnp.float32),
        "skip_w": 0.05 * jax.random.normal(ks[12], (Cout, Cin, 1, 1), jnp.float32),
        "skip_b": 0.05 * jax.random.normal(ks[13], (Cout,), jnp.float32),
    }

    ref = reference_forward(x, t, params)

    # (a) f32 MXU operands: structural correctness check.
    prep32 = prepare_params(params, compute_dtype=jnp.float32)
    out32 = jax.block_until_ready(residual_block_forward(x, t, prep32, cout=Cout))
    assert out32.shape == (B, Cout, H, W), out32.shape
    err32 = float(jnp.max(jnp.abs(out32 - ref)))
    assert jnp.allclose(out32, ref, atol=3e-2, rtol=3e-2), err32

    # (b) bf16 MXU operands / f32 accumulation: recommended production path
    #     (accepted accuracy tradeoff -> looser tolerance).
    prep16 = prepare_params(params, compute_dtype=jnp.bfloat16)
    out16 = jax.block_until_ready(residual_block_forward(x, t, prep16, cout=Cout))
    assert out16.shape == (B, Cout, H, W), out16.shape
    err16 = float(jnp.max(jnp.abs(out16 - ref)))
    assert jnp.allclose(out16, ref, atol=1.5e-1, rtol=1.5e-1), err16

    print("KERNEL_OK")
</pallas_src>

<mosaic_0001>
module attributes {stable_mosaic.version = 11 : i64} {
  func.func @kernel(%arg0: i32, %arg1: memref<1x288x128xf32, #tpu.memory_space<vmem>>, %arg2: memref<1x1x128xf32, #tpu.memory_space<vmem>>, %arg3: memref<288x1xf32, #tpu.memory_space<vmem>>, %arg4: memref<128x128xf32, #tpu.memory_space<vmem>>, %arg5: memref<1x128xf32, #tpu.memory_space<vmem>>, %arg6: memref<1x128xf32, #tpu.memory_space<vmem>>, %arg7: memref<3x384x128xf32, #tpu.memory_space<vmem>>, %arg8: memref<128x128xf32, #tpu.memory_space<vmem>>, %arg9: memref<1x128xf32, #tpu.memory_space<vmem>>, %arg10: memref<1x128xf32, #tpu.memory_space<vmem>>, %arg11: memref<3x384x128xf32, #tpu.memory_space<vmem>>, %arg12: memref<1x128xf32, #tpu.memory_space<vmem>>, %arg13: memref<128x128xf32, #tpu.memory_space<vmem>>, %arg14: memref<1x128xf32, #tpu.memory_space<vmem>>, %arg15: memref<1x288x128xf32, #tpu.memory_space<vmem>>, %arg16: memref<328x128xf32, #tpu.memory_space<vmem>>) attributes {dimension_semantics = [#tpu.dimension_semantics<parallel>], iteration_bounds = array<i64: 2>, scalar_prefetch = 0 : i64, scratch_operands = 1 : i64, tpu.core_type = #tpu.core_type<tc>, window_params = [{transform_indices = @transform_0, window_bounds = array<i64: 1, 288, 128>}, {transform_indices = @transform_1, window_bounds = array<i64: 1, 1, 128>}, {pipeline_mode = #tpu.pipeline_mode<synchronous>, transform_indices = @transform_2, window_bounds = array<i64: 288, 1>}, {pipeline_mode = #tpu.pipeline_mode<synchronous>, transform_indices = @transform_3, window_bounds = array<i64: 128, 128>}, {pipeline_mode = #tpu.pipeline_mode<synchronous>, transform_indices = @transform_4, window_bounds = array<i64: 1, 128>}, {pipeline_mode = #tpu.pipeline_mode<synchronous>, transform_indices = @transform_5, window_bounds = array<i64: 1, 128>}, {pipeline_mode = #tpu.pipeline_mode<synchronous>, transform_indices = @transform_6, window_bounds = array<i64: 3, 384, 128>}, {pipeline_mode = #tpu.pipeline_mode<synchronous>, transform_indices = @transform_7, window_bounds = array<i64: 128, 128>}, {pipeline_mode = #tpu.pipeline_mode<synchronous>, transform_indices = @transform_8, window_bounds = array<i64: 1, 128>}, {pipeline_mode = #tpu.pipeline_mode<synchronous>, transform_indices = @transform_9, window_bounds = array<i64: 1, 128>}, {pipeline_mode = #tpu.pipeline_mode<synchronous>, transform_indices = @transform_10, window_bounds = array<i64: 3, 384, 128>}, {pipeline_mode = #tpu.pipeline_mode<synchronous>, transform_indices = @transform_11, window_bounds = array<i64: 1, 128>}, {pipeline_mode = #tpu.pipeline_mode<synchronous>, transform_indices = @transform_12, window_bounds = array<i64: 128, 128>}, {pipeline_mode = #tpu.pipeline_mode<synchronous>, transform_indices = @transform_13, window_bounds = array<i64: 1, 128>}, {transform_indices = @transform_14, window_bounds = array<i64: 1, 288, 128>}]} {
    %c0 = arith.constant 0 : index
    %c0_0 = arith.constant 0 : index
    %0 = vector.load %arg3[%c0, %c0_0] : memref<288x1xf32, #tpu.memory_space<vmem>>, vector<288x1xf32>
    %cst = arith.constant 0.000000e+00 : f32
    %1 = vector.broadcast %cst : f32 to vector<19x128xf32>
    %c0_1 = arith.constant 0 : index
    %c0_2 = arith.constant 0 : index
    %2 = vector.load %arg16[%c0_1, %c0_2] : memref<328x128xf32, #tpu.memory_space<vmem>>, vector<19x128xf32>
    tpu.vector_store %arg16[%c0_1, %c0_2], %1 {strides = array<i32>} : memref<328x128xf32, #tpu.memory_space<vmem>>, vector<19x128xf32>,
    %cst_3 = arith.constant 0.000000e+00 : f32
    %3 = vector.broadcast %cst_3 : f32 to vector<21x128xf32>
    %c307 = arith.constant 307 : index
    %c0_4 = arith.constant 0 : index
    %4 = vector.load %arg16[%c307, %c0_4] : memref<328x128xf32, #tpu.memory_space<vmem>>, vector<21x128xf32>
    tpu.vector_store %arg16[%c307, %c0_4], %3 {strides = array<i32>} : memref<328x128xf32, #tpu.memory_space<vmem>>, vector<21x128xf32>,
    %c0_5 = arith.constant 0 : index
    %c0_6 = arith.constant 0 : index
    %c0_7 = arith.constant 0 : index
    %5 = vector.load %arg1[%c0_5, %c0_6, %c0_7] : memref<1x288x128xf32, #tpu.memory_space<vmem>>, vector<1x288x128xf32>
    %6 = vector.shape_cast %5 : vector<1x288x128xf32> to vector<288x128xf32>
    %7 = vector.broadcast %0 : vector<288x1xf32> to vector<288x128xf32>
    %8 = arith.mulf %6, %7 : vector<288x128xf32>
    %cst_8 = arith.constant dense<0.000000e+00> : vector<128xf32>
    %9 = vector.multi_reduction <add>, %8, %cst_8 [0] : vector<288x128xf32> to vector<128xf32>
    %10 = vector.shape_cast %9 : vector<128xf32> to vector<1x128xf32>
    %c0_9 = arith.constant 0 : index
    %c0_10 = arith.constant 0 : index
    %11 = vector.load %arg4[%c0_9, %c0_10] : memref<128x128xf32, #tpu.memory_space<vmem>>, vector<128x128xf32>
    %cst_11 = arith.constant dense<0.000000e+00> : vector<1x128xf32>
    %12 = tpu.matmul %10, %11, %cst_11 {dimension_numbers = #tpu.dot_dimension_numbers<[1], [0], [0], [1], [0, 0, 1, 1], [], []>} : vector<1x128xf32>, vector<128x128xf32>, vector<1x128xf32> -> vector<1x128xf32>
    %cst_12 = arith.constant 3.906250e-03 : f32
    %13 = vector.broadcast %cst_12 : f32 to vector<1x128xf32>
    %14 = arith.mulf %12, %13 : vector<1x128xf32>
    %15 = vector.broadcast %14 : vector<1x128xf32> to vector<288x128xf32>
    %16 = arith.subf %8, %15 : vector<288x128xf32>
    %17 = vector.broadcast %0 : vector<288x1xf32> to vector<288x128xf32>
    %18 = arith.mulf %16, %17 : vector<288x128xf32>
    %19 = arith.mulf %18, %18 : vector<288x128xf32>
    %cst_13 = arith.constant dense<0.000000e+00> : vector<128xf32>
    %20 = vector.multi_reduction <add>, %19, %cst_13 [0] : vector<288x128xf32> to vector<128xf32>
    %21 = vector.shape_cast %20 : vector<128xf32> to vector<1x128xf32>
    %c0_14 = arith.constant 0 : index
    %c0_15 = arith.constant 0 : index
    %22 = vector.load %arg4[%c0_14, %c0_15] : memref<128x128xf32, #tpu.memory_space<vmem>>, vector<128x128xf32>
    %cst_16 = arith.constant dense<0.000000e+00> : vector<1x128xf32>
    %23 = tpu.matmul %21, %22, %cst_16 {dimension_numbers = #tpu.dot_dimension_numbers<[1], [0], [0], [1], [0, 0, 1, 1], [], []>} : vector<1x128xf32>, vector<128x128xf32>, vector<1x128xf32> -> vector<1x128xf32>
    %cst_17 = arith.constant 3.906250e-03 : f32
    %24 = vector.broadcast %cst_17 : f32 to vector<1x128xf32>
    %25 = arith.mulf %23, %24 : vector<1x128xf32>
    %cst_18 = arith.constant 9.99999974E-6 : f32
    %26 = vector.broadcast %cst_18 : f32 to vector<1x128xf32>
    %27 = arith.addf %25, %26 : vector<1x128xf32>
    %28 = math.rsqrt %27 : vector<1x128xf32>
    %29 = vector.broadcast %28 : vector<1x128xf32> to vector<288x128xf32>
    %30 = arith.mulf %18, %29 : vector<288x128xf32>
    %c0_19 = arith.constant 0 : index
    %c0_20 = arith.constant 0 : index
    %31 = vector.load %arg5[%c0_19, %c0_20] : memref<1x128xf32, #tpu.memory_space<vmem>>, vector<1x128xf32>
    %32 = vector.broadcast %31 : vector<1x128xf32> to vector<288x128xf32>
    %33 = arith.mulf %30, %32 : vector<288x128xf32>
    %c0_21 = arith.constant 0 : index
    %c0_22 = arith.constant 0 : index
    %34 = vector.load %arg6[%c0_21, %c0_22] : memref<1x128xf32, #tpu.memory_space<vmem>>, vector<1x128xf32>
    %35 = vector.broadcast %34 : vector<1x128xf32> to vector<288x128xf32>
    %36 = arith.addf %33, %35 : vector<288x128xf32>
    %37 = arith.negf %36 : vector<288x128xf32>
    %38 = math.exp %37 : vector<288x128xf32>
    %cst_23 = arith.constant 1.000000e+00 : f32
    %39 = vector.broadcast %cst_23 : f32 to vector<288x128xf32>
    %40 = arith.addf %39, %38 : vector<288x128xf32>
    %41 = arith.divf %39, %40 : vector<288x128xf32>
    %42 = arith.mulf %36, %41 : vector<288x128xf32>
    %43 = vector.broadcast %0 : vector<288x1xf32> to vector<288x128xf32>
    %44 = arith.mulf %42, %43 : vector<288x128xf32>
    %c19 = arith.constant 19 : index
    %c0_24 = arith.constant 0 : index
    %45 = vector.load %arg16[%c19, %c0_24] : memref<328x128xf32, #tpu.memory_space<vmem>>, vector<288x128xf32>
    tpu.vector_store %arg16[%c19, %c0_24], %44 {strides = array<i32>} : memref<328x128xf32, #tpu.memory_space<vmem>>, vector<288x128xf32>,
    %cst_25 = arith.constant 0.000000e+00 : f32
    %46 = vector.broadcast %cst_25 : f32 to vector<288x128xf32>
    %c0_26 = arith.constant 0 : index
    %c0_27 = arith.constant 0 : index
    %47 = vector.load %arg16[%c0_26, %c0_27] : memref<328x128xf32, #tpu.memory_space<vmem>>, vector<288x128xf32>
    %c1 = arith.constant 1 : index
    %c0_28 = arith.constant 0 : index
    %48 = vector.load %arg16[%c1, %c0_28] : memref<328x128xf32, #tpu.memory_space<vmem>>, vector<288x128xf32>
    %c2 = arith.constant 2 : index
    %c0_29 = arith.constant 0 : index
    %49 = vector.load %arg16[%c2, %c0_29] : memref<328x128xf32, #tpu.memory_space<vmem>>, vector<288x128xf32>
    %50 = tpu.concatenate %47, %48, %49 in 1 : vector<288x128xf32>, vector<288x128xf32>, vector<288x128xf32> -> vector<288x384xf32>
    %c0_30 = arith.constant 0 : index
    %c0_31 = arith.constant 0 : index
    %c0_32 = arith.constant 0 : index
    %51 = vector.load %arg7[%c0_30, %c0_31, %c0_32] : memref<3x384x128xf32, #tpu.memory_space<vmem>>, vector<1x384x128xf32>
    %52 = vector.shape_cast %51 : vector<1x384x128xf32> to vector<384x128xf32>
    %cst_33 = arith.constant dense<0.000000e+00> : vector<288x128xf32>
    %53 = tpu.matmul %50, %52, %cst_33 {dimension_numbers = #tpu.dot_dimension_numbers<[1], [0], [0], [1], [0, 0, 1, 1], [], []>} : vector<288x384xf32>, vector<384x128xf32>, vector<288x128xf32> -> vector<288x128xf32>
    %54 = arith.addf %46, %53 : vector<288x128xf32>
    %c18 = arith.constant 18 : index
    %c0_34 = arith.constant 0 : index
    %55 = vector.load %arg16[%c18, %c0_34] : memref<328x128xf32, #tpu.memory_space<vmem>>, vector<288x128xf32>
    %c19_35 = arith.constant 19 : index
    %c0_36 = arith.constant 0 : index
    %56 = vector.load %arg16[%c19_35, %c0_36] : memref<328x128xf32, #tpu.memory_space<vmem>>, vector<288x128xf32>
    %c20 = arith.constant 20 : index
    %c0_37 = arith.constant 0 : index
    %57 = vector.load %arg16[%c20, %c0_37] : memref<328x128xf32, #tpu.memory_space<vmem>>, vector<288x128xf32>
    %58 = tpu.concatenate %55, %56, %57 in 1 : vector<288x128xf32>, vector<288x128xf32>, vector<288x128xf32> -> vector<288x384xf32>
    %c1_38 = arith.constant 1 : index
    %c0_39 = arith.constant 0 : index
    %c0_40 = arith.constant 0 : index
    %59 = vector.load %arg7[%c1_38, %c0_39, %c0_40] : memref<3x384x128xf32, #tpu.memory_space<vmem>>, vector<1x384x128xf32>
    %60 = vector.shape_cast %59 : vector<1x384x128xf32> to vector<384x128xf32>
    %cst_41 = arith.constant dense<0.000000e+00> : vector<288x128xf32>
    %61 = tpu.matmul %58, %60, %cst_41 {dimension_numbers = #tpu.dot_dimension_numbers<[1], [0], [0], [1], [0, 0, 1, 1], [], []>} : vector<288x384xf32>, vector<384x128xf32>, vector<288x128xf32> -> vector<288x128xf32>
    %62 = arith.addf %54, %61 : vector<288x128xf32>
    %c36 = arith.constant 36 : index
    %c0_42 = arith.constant 0 : index
    %63 = vector.load %arg16[%c36, %c0_42] : memref<328x128xf32, #tpu.memory_space<vmem>>, vector<288x128xf32>
    %c37 = arith.constant 37 : index
    %c0_43 = arith.constant 0 : index
    %64 = vector.load %arg16[%c37, %c0_43] : memref<328x128xf32, #tpu.memory_space<vmem>>, vector<288x128xf32>
    %c38 = arith.constant 38 : index
    %c0_44 = arith.constant 0 : index
    %65 = vector.load %arg16[%c38, %c0_44] : memref<328x128xf32, #tpu.memory_space<vmem>>, vector<288x128xf32>
    %66 = tpu.concatenate %63, %64, %65 in 1 : vector<288x128xf32>, vector<288x128xf32>, vector<288x128xf32> -> vector<288x384xf32>
    %c2_45 = arith.constant 2 : index
    %c0_46 = arith.constant 0 : index
    %c0_47 = arith.constant 0 : index
    %67 = vector.load %arg7[%c2_45, %c0_46, %c0_47] : memref<3x384x128xf32, #tpu.memory_space<vmem>>, vector<1x384x128xf32>
    %68 = vector.shape_cast %67 : vector<1x384x128xf32> to vector<384x128xf32>
    %cst_48 = arith.constant dense<0.000000e+00> : vector<288x128xf32>
    %69 = tpu.matmul %66, %68, %cst_48 {dimension_numbers = #tpu.dot_dimension_numbers<[1], [0], [0], [1], [0, 0, 1, 1], [], []>} : vector<288x384xf32>, vector<384x128xf32>, vector<288x128xf32> -> vector<288x128xf32>
    %70 = arith.addf %62, %69 : vector<288x128xf32>
    %c0_49 = arith.constant 0 : index
    %c0_50 = arith.constant 0 : index
    %c0_51 = arith.constant 0 : index
    %71 = vector.load %arg2[%c0_49, %c0_50, %c0_51] : memref<1x1x128xf32, #tpu.memory_space<vmem>>, vector<1x1x128xf32>
    %72 = vector.shape_cast %71 : vector<1x1x128xf32> to vector<1x128xf32>
    %73 = vector.broadcast %72 : vector<1x128xf32> to vector<288x128xf32>
    %74 = arith.addf %70, %73 : vector<288x128xf32>
    %75 = vector.broadcast %0 : vector<288x1xf32> to vector<288x128xf32>
    %76 = arith.mulf %74, %75 : vector<288x128xf32>
    %cst_52 = arith.constant dense<0.000000e+00> : vector<128xf32>
    %77 = vector.multi_reduction <add>, %76, %cst_52 [0] : vector<288x128xf32> to vector<128xf32>
    %78 = vector.shape_cast %77 : vector<128xf32> to vector<1x128xf32>
    %c0_53 = arith.constant 0 : index
    %c0_54 = arith.constant 0 : index
    %79 = vector.load %arg8[%c0_53, %c0_54] : memref<128x128xf32, #tpu.memory_space<vmem>>, vector<128x128xf32>
    %cst_55 = arith.constant dense<0.000000e+00> : vector<1x128xf32>
    %80 = tpu.matmul %78, %79, %cst_55 {dimension_numbers = #tpu.dot_dimension_numbers<[1], [0], [0], [1], [0, 0, 1, 1], [], []>} : vector<1x128xf32>, vector<128x128xf32>, vector<1x128xf32> -> vector<1x128xf32>
    %cst_56 = arith.constant 3.906250e-03 : f32
    %81 = vector.broadcast %cst_56 : f32 to vector<1x128xf32>
    %82 = arith.mulf %80, %81 : vector<1x128xf32>
    %83 = vector.broadcast %82 : vector<1x128xf32> to vector<288x128xf32>
    %84 = arith.subf %76, %83 : vector<288x128xf32>
    %85 = vector.broadcast %0 : vector<288x1xf32> to vector<288x128xf32>
    %86 = arith.mulf %84, %85 : vector<288x128xf32>
    %87 = arith.mulf %86, %86 : vector<288x128xf32>
    %cst_57 = arith.constant dense<0.000000e+00> : vector<128xf32>
    %88 = vector.multi_reduction <add>, %87, %cst_57 [0] : vector<288x128xf32> to vector<128xf32>
    %89 = vector.shape_cast %88 : vector<128xf32> to vector<1x128xf32>
    %c0_58 = arith.constant 0 : index
    %c0_59 = arith.constant 0 : index
    %90 = vector.load %arg8[%c0_58, %c0_59] : memref<128x128xf32, #tpu.memory_space<vmem>>, vector<128x128xf32>
    %cst_60 = arith.constant dense<0.000000e+00> : vector<1x128xf32>
    %91 = tpu.matmul %89, %90, %cst_60 {dimension_numbers = #tpu.dot_dimension_numbers<[1], [0], [0], [1], [0, 0, 1, 1], [], []>} : vector<1x128xf32>, vector<128x128xf32>, vector<1x128xf32> -> vector<1x128xf32>
    %cst_61 = arith.constant 3.906250e-03 : f32
    %92 = vector.broadcast %cst_61 : f32 to vector<1x128xf32>
    %93 = arith.mulf %91, %92 : vector<1x128xf32>
    %cst_62 = arith.constant 9.99999974E-6 : f32
    %94 = vector.broadcast %cst_62 : f32 to vector<1x128xf32>
    %95 = arith.addf %93, %94 : vector<1x128xf32>
    %96 = math.rsqrt %95 : vector<1x128xf32>
    %97 = vector.broadcast %96 : vector<1x128xf32> to vector<288x128xf32>
    %98 = arith.mulf %86, %97 : vector<288x128xf32>
    %c0_63 = arith.constant 0 : index
    %c0_64 = arith.constant 0 : index
    %99 = vector.load %arg9[%c0_63, %c0_64] : memref<1x128xf32, #tpu.memory_space<vmem>>, vector<1x128xf32>
    %100 = vector.broadcast %99 : vector<1x128xf32> to vector<288x128xf32>
    %101 = arith.mulf %98, %100 : vector<288x128xf32>
    %c0_65 = arith.constant 0 : index
    %c0_66 = arith.constant 0 : index
    %102 = vector.load %arg10[%c0_65, %c0_66] : memref<1x128xf32, #tpu.memory_space<vmem>>, vector<1x128xf32>
    %103 = vector.broadcast %102 : vector<1x128xf32> to vector<288x128xf32>
    %104 = arith.addf %101, %103 : vector<288x128xf32>
    %105 = arith.negf %104 : vector<288x128xf32>
    %106 = math.exp %105 : vector<288x128xf32>
    %cst_67 = arith.constant 1.000000e+00 : f32
    %107 = vector.broadcast %cst_67 : f32 to vector<288x128xf32>
    %108 = arith.addf %107, %106 : vector<288x128xf32>
    %109 = arith.divf %107, %108 : vector<288x128xf32>
    %110 = arith.mulf %104, %109 : vector<288x128xf32>
    %111 = vector.broadcast %0 : vector<288x1xf32> to vector<288x128xf32>
    %112 = arith.mulf %110, %111 : vector<288x128xf32>
    %c19_68 = arith.constant 19 : index
    %c0_69 = arith.constant 0 : index
    %113 = vector.load %arg16[%c19_68, %c0_69] : memref<328x128xf32, #tpu.memory_space<vmem>>, vector<288x128xf32>
    tpu.vector_store %arg16[%c19_68, %c0_69], %112 {strides = array<i32>} : memref<328x128xf32, #tpu.memory_space<vmem>>, vector<288x128xf32>,
    %cst_70 = arith.constant 0.000000e+00 : f32
    %114 = vector.broadcast %cst_70 : f32 to vector<288x128xf32>
    %c0_71 = arith.constant 0 : index
    %c0_72 = arith.constant 0 : index
    %115 = vector.load %arg16[%c0_71, %c0_72] : memref<328x128xf32, #tpu.memory_space<vmem>>, vector<288x128xf32>
    %c1_73 = arith.constant 1 : index
    %c0_74 = arith.constant 0 : index
    %116 = vector.load %arg16[%c1_73, %c0_74] : memref<328x128xf32, #tpu.memory_space<vmem>>, vector<288x128xf32>
    %c2_75 = arith.constant 2 : index
    %c0_76 = arith.constant 0 : index
    %117 = vector.load %arg16[%c2_75, %c0_76] : memref<328x128xf32, #tpu.memory_space<vmem>>, vector<288x128xf32>
    %118 = tpu.concatenate %115, %116, %117 in 1 : vector<288x128xf32>, vector<288x128xf32>, vector<288x128xf32> -> vector<288x384xf32>
    %c0_77 = arith.constant 0 : index
    %c0_78 = arith.constant 0 : index
    %c0_79 = arith.constant 0 : index
    %119 = vector.load %arg11[%c0_77, %c0_78, %c0_79] : memref<3x384x128xf32, #tpu.memory_space<vmem>>, vector<1x384x128xf32>
    %120 = vector.shape_cast %119 : vector<1x384x128xf32> to vector<384x128xf32>
    %cst_80 = arith.constant dense<0.000000e+00> : vector<288x128xf32>
    %121 = tpu.matmul %118, %120, %cst_80 {dimension_numbers = #tpu.dot_dimension_numbers<[1], [0], [0], [1], [0, 0, 1, 1], [], []>} : vector<288x384xf32>, vector<384x128xf32>, vector<288x128xf32> -> vector<288x128xf32>
    %122 = arith.addf %114, %121 : vector<288x128xf32>
    %c18_81 = arith.constant 18 : index
    %c0_82 = arith.constant 0 : index
    %123 = vector.load %arg16[%c18_81, %c0_82] : memref<328x128xf32, #tpu.memory_space<vmem>>, vector<288x128xf32>
    %c19_83 = arith.constant 19 : index
    %c0_84 = arith.constant 0 : index
    %124 = vector.load %arg16[%c19_83, %c0_84] : memref<328x128xf32, #tpu.memory_space<vmem>>, vector<288x128xf32>
    %c20_85 = arith.constant 20 : index
    %c0_86 = arith.constant 0 : index
    %125 = vector.load %arg16[%c20_85, %c0_86] : memref<328x128xf32, #tpu.memory_space<vmem>>, vector<288x128xf32>
    %126 = tpu.concatenate %123, %124, %125 in 1 : vector<288x128xf32>, vector<288x128xf32>, vector<288x128xf32> -> vector<288x384xf32>
    %c1_87 = arith.constant 1 : index
    %c0_88 = arith.constant 0 : index
    %c0_89 = arith.constant 0 : index
    %127 = vector.load %arg11[%c1_87, %c0_88, %c0_89] : memref<3x384x128xf32, #tpu.memory_space<vmem>>, vector<1x384x128xf32>
    %128 = vector.shape_cast %127 : vector<1x384x128xf32> to vector<384x128xf32>
    %cst_90 = arith.constant dense<0.000000e+00> : vector<288x128xf32>
    %129 = tpu.matmul %126, %128, %cst_90 {dimension_numbers = #tpu.dot_dimension_numbers<[1], [0], [0], [1], [0, 0, 1, 1], [], []>} : vector<288x384xf32>, vector<384x128xf32>, vector<288x128xf32> -> vector<288x128xf32>
    %130 = arith.addf %122, %129 : vector<288x128xf32>
    %c36_91 = arith.constant 36 : index
    %c0_92 = arith.constant 0 : index
    %131 = vector.load %arg16[%c36_91, %c0_92] : memref<328x128xf32, #tpu.memory_space<vmem>>, vector<288x128xf32>
    %c37_93 = arith.constant 37 : index
    %c0_94 = arith.constant 0 : index
    %132 = vector.load %arg16[%c37_93, %c0_94] : memref<328x128xf32, #tpu.memory_space<vmem>>, vector<288x128xf32>
    %c38_95 = arith.constant 38 : index
    %c0_96 = arith.constant 0 : index
    %133 = vector.load %arg16[%c38_95, %c0_96] : memref<328x128xf32, #tpu.memory_space<vmem>>, vector<288x128xf32>
    %134 = tpu.concatenate %131, %132, %133 in 1 : vector<288x128xf32>, vector<288x128xf32>, vector<288x128xf32> -> vector<288x384xf32>
    %c2_97 = arith.constant 2 : index
    %c0_98 = arith.constant 0 : index
    %c0_99 = arith.constant 0 : index
    %135 = vector.load %arg11[%c2_97, %c0_98, %c0_99] : memref<3x384x128xf32, #tpu.memory_space<vmem>>, vector<1x384x128xf32>
    %136 = vector.shape_cast %135 : vector<1x384x128xf32> to vector<384x128xf32>
    %cst_100 = arith.constant dense<0.000000e+00> : vector<288x128xf32>
    %137 = tpu.matmul %134, %136, %cst_100 {dimension_numbers = #tpu.dot_dimension_numbers<[1], [0], [0], [1], [0, 0, 1, 1], [], []>} : vector<288x384xf32>, vector<384x128xf32>, vector<288x128xf32> -> vector<288x128xf32>
    %138 = arith.addf %130, %137 : vector<288x128xf32>
    %c0_101 = arith.constant 0 : index
    %c0_102 = arith.constant 0 : index
    %139 = vector.load %arg12[%c0_101, %c0_102] : memref<1x128xf32, #tpu.memory_space<vmem>>, vector<1x128xf32>
    %140 = vector.broadcast %139 : vector<1x128xf32> to vector<288x128xf32>
    %141 = arith.addf %138, %140 : vector<288x128xf32>
    %c0_103 = arith.constant 0 : index
    %c0_104 = arith.constant 0 : index
    %c0_105 = arith.constant 0 : index
    %142 = vector.load %arg1[%c0_103, %c0_104, %c0_105] : memref<1x288x128xf32, #tpu.memory_space<vmem>>, vector<1x288x128xf32>
    %143 = vector.shape_cast %142 : vector<1x288x128xf32> to vector<288x128xf32>
    %c0_106 = arith.constant 0 : index
    %c0_107 = arith.constant 0 : index
    %144 = vector.load %arg13[%c0_106, %c0_107] : memref<128x128xf32, #tpu.memory_space<vmem>>, vector<128x128xf32>
    %cst_108 = arith.constant dense<0.000000e+00> : vector<288x128xf32>
    %145 = tpu.matmul %143, %144, %cst_108 {dimension_numbers = #tpu.dot_dimension_numbers<[1], [0], [0], [1], [0, 0, 1, 1], [], []>} : vector<288x128xf32>, vector<128x128xf32>, vector<288x128xf32> -> vector<288x128xf32>
    %c0_109 = arith.constant 0 : index
    %c0_110 = arith.constant 0 : index
    %146 = vector.load %arg14[%c0_109, %c0_110] : memref<1x128xf32, #tpu.memory_space<vmem>>, vector<1x128xf32>
    %147 = vector.broadcast %146 : vector<1x128xf32> to vector<288x128xf32>
    %148 = arith.addf %145, %147 : vector<288x128xf32>
    %149 = arith.addf %141, %148 : vector<288x128xf32>
    %c0_111 = arith.constant 0 : index
    %c0_112 = arith.constant 0 : index
    %c0_113 = arith.constant 0 : index
    %150 = vector.load %arg15[%c0_111, %c0_112, %c0_113] : memref<1x288x128xf32, #tpu.memory_space<vmem>>, vector<1x288x128xf32>
    %151 = vector.shape_cast %150 : vector<1x288x128xf32> to vector<288x128xf32>
    %152 = vector.shape_cast %149 : vector<288x128xf32> to vector<1x288x128xf32>
    tpu.vector_store %arg15[%c0_111, %c0_112, %c0_113], %152 {strides = array<i32>} : memref<1x288x128xf32, #tpu.memory_space<vmem>>, vector<1x288x128xf32>,
    return
  }
  func.func @transform_0(%arg0: i32) -> (i32, i32, i32) {
    %c0_i32 = arith.constant 0 : i32
    %c0_i32_0 = arith.constant 0 : i32
    %c0_i32_1 = arith.constant 0 : i32
    return %arg0, %c0_i32, %c0_i32_0 : i32, i32, i32
  }
  func.func @transform_1(%arg0: i32) -> (i32, i32, i32) {
    %c0_i32 = arith.constant 0 : i32
    %c0_i32_0 = arith.constant 0 : i32
    %c0_i32_1 = arith.constant 0 : i32
    return %arg0, %c0_i32, %c0_i32_0 : i32, i32, i32
  }
  func.func @transform_2(%arg0: i32) -> (i32, i32) {
    %c0_i32 = arith.constant 0 : i32
    %c0_i32_0 = arith.constant 0 : i32
    %c0_i32_1 = arith.constant 0 : i32
    return %c0_i32, %c0_i32_0 : i32, i32
  }
  func.func @transform_3(%arg0: i32) -> (i32, i32) {
    %c0_i32 = arith.constant 0 : i32
    %c0_i32_0 = arith.constant 0 : i32
    %c0_i32_1 = arith.constant 0 : i32
    return %c0_i32, %c0_i32_0 : i32, i32
  }
  func.func @transform_4(%arg0: i32) -> (i32, i32) {
    %c0_i32 = arith.constant 0 : i32
    %c0_i32_0 = arith.constant 0 : i32
    %c0_i32_1 = arith.constant 0 : i32
    return %c0_i32, %c0_i32_0 : i32, i32
  }
  func.func @transform_5(%arg0: i32) -> (i32, i32) {
    %c0_i32 = arith.constant 0 : i32
    %c0_i32_0 = arith.constant 0 : i32
    %c0_i32_1 = arith.constant 0 : i32
    return %c0_i32, %c0_i32_0 : i32, i32
  }
  func.func @transform_6(%arg0: i32) -> (i32, i32, i32) {
    %c0_i32 = arith.constant 0 : i32
    %c0_i32_0 = arith.constant 0 : i32
    %c0_i32_1 = arith.constant 0 : i32
    %c0_i32_2 = arith.constant 0 : i32
    return %c0_i32, %c0_i32_0, %c0_i32_1 : i32, i32, i32
  }
  func.func @transform_7(%arg0: i32) -> (i32, i32) {
    %c0_i32 = arith.constant 0 : i32
    %c0_i32_0 = arith.constant 0 : i32
    %c0_i32_1 = arith.constant 0 : i32
    return %c0_i32, %c0_i32_0 : i32, i32
  }
  func.func @transform_8(%arg0: i32) -> (i32, i32) {
    %c0_i32 = arith.constant 0 : i32
    %c0_i32_0 = arith.constant 0 : i32
    %c0_i32_1 = arith.constant 0 : i32
    return %c0_i32, %c0_i32_0 : i32, i32
  }
  func.func @transform_9(%arg0: i32) -> (i32, i32) {
    %c0_i32 = arith.constant 0 : i32
    %c0_i32_0 = arith.constant 0 : i32
    %c0_i32_1 = arith.constant 0 : i32
    return %c0_i32, %c0_i32_0 : i32, i32
  }
  func.func @transform_10(%arg0: i32) -> (i32, i32, i32) {
    %c0_i32 = arith.constant 0 : i32
    %c0_i32_0 = arith.constant 0 : i32
    %c0_i32_1 = arith.constant 0 : i32
    %c0_i32_2 = arith.constant 0 : i32
    return %c0_i32, %c0_i32_0, %c0_i32_1 : i32, i32, i32
  }
  func.func @transform_11(%arg0: i32) -> (i32, i32) {
    %c0_i32 = arith.constant 0 : i32
    %c0_i32_0 = arith.constant 0 : i32
    %c0_i32_1 = arith.constant 0 : i32
    return %c0_i32, %c0_i32_0 : i32, i32
  }
  func.func @transform_12(%arg0: i32) -> (i32, i32) {
    %c0_i32 = arith.constant 0 : i32
    %c0_i32_0 = arith.constant 0 : i32
    %c0_i32_1 = arith.constant 0 : i32
    return %c0_i32, %c0_i32_0 : i32, i32
  }
  func.func @transform_13(%arg0: i32) -> (i32, i32) {
    %c0_i32 = arith.constant 0 : i32
    %c0_i32_0 = arith.constant 0 : i32
    %c0_i32_1 = arith.constant 0 : i32
    return %c0_i32, %c0_i32_0 : i32, i32
  }
  func.func @transform_14(%arg0: i32) -> (i32, i32, i32) {
    %c0_i32 = arith.constant 0 : i32
    %c0_i32_0 = arith.constant 0 : i32
    %c0_i32_1 = arith.constant 0 : i32
    return %arg0, %c0_i32, %c0_i32_0 : i32, i32, i32
  }
}

</mosaic_0001>

<bundles_post_ra>
// kernel: residual_block_forward.1
= control target key start
LH: loop header
LB: loop body
LE: loop exit
PB: predicated region body
PF: predicated region fallthrough
CT: control target
= control target key end

     0   :  { %s9309_s29 = smov 0   ;;  %s14236_s0 = inlined_call_operand.vmem [shape: f32[2,288,128], index: 0, kind: input, shape index: {}]   ;;  %s14237_s1 = inlined_call_operand.vmem [shape: f32[2,1,128], index: 1, kind: input, shape index: {}]   ;;  %s14238_s2 = inlined_call_operand.vmem [shape: f32[288,1], index: 2, kind: input, shape index: {}]   ;;  %s14239_s3 = inlined_call_operand.vmem [shape: f32[128,128], index: 3, kind: input, shape index: {}]   ;;  %s14240_s4 = inlined_call_operand.vmem [shape: f32[1,128], index: 4, kind: input, shape index: {}]   ;;  %s14241_s5 = inlined_call_operand.vmem [shape: f32[1,128], index: 5, kind: input, shape index: {}]   ;;  %s14242_s6 = inlined_call_operand.vmem [shape: f32[3,384,128], index: 6, kind: input, shape index: {}]   ;;  %s14243_s7 = inlined_call_operand.vmem [shape: f32[128,128], index: 7, kind: input, shape index: {}]   ;;  %s14244_s8 = inlined_call_operand.vmem [shape: f32[1,128], index: 8, kind: input, shape index: {}]   ;;  %s14245_s9 = inlined_call_operand.vmem [shape: f32[1,128], index: 9, kind: input, shape index: {}]   ;;  %s14246_s10 = inlined_call_operand.vmem [shape: f32[3,384,128], index: 10, kind: input, shape index: {}]   ;;  %s14247_s11 = inlined_call_operand.vmem [shape: f32[1,128], index: 11, kind: input, shape index: {}]   ;;  %s14248_s12 = inlined_call_operand.vmem [shape: f32[128,128], index: 12, kind: input, shape index: {}]   ;;  %s14249_s13 = inlined_call_operand.vmem [shape: f32[1,128], index: 13, kind: input, shape index: {}]   ;;  %s14250_s14 = inlined_call_operand.vmem [shape: f32[2,288,128], index: 14, kind: output, shape index: {}]  }
   0x1 LB: > { %s6830_s30 = sadd.s32 4294967295, %s9228_s29   ;;  %p6834_p0 = scmp.ge.s32.totalorder %s9228_s29, 1  ;;  %s9228_s29 = sphi %s9309_s29, %s24_s29  }
   0x2   : > { %p420_p1 = scmp.lt.s32.totalorder %s9228_s29, 3 }
   0x4   : > { %p421_p2 = pnand %p6834_p0, %p420_p1 }
   0x6   : > { %424 = sbr.rel (%p421_p2) target bundleno = 2637 (0xa4d), region = 76 }
   0xd   : > { %v484_v0 = vld [vmem:[%s14238_s2 + $0x10] sm:$0xff]  ;;  %v482_v1 = vld [vmem:[%s14238_s2] sm:$0xff]  ;;  %v9230_v2 = vmov 0   ;;  %v485_v3 = vld [vmem:[%s14238_s2 + $0x18] sm:$0xff]  ;;  %v14251_v36 = vmov 0.0|0.0   ;;  %vm9232_vm0 = vmmov 0  }
   0xe   : > { %8922 = vset.pattern.permute.xlu1 %v9230_v2  ;;  %8921 = vset.pattern.permute.xlu0 %v9230_v2  ;;  %v483_v4 = vld [vmem:[%s14238_s2 + $0x8] sm:$0xff]  ;;  %v486_v6 = vld [vmem:[%s14238_s2 + $0x20] sm:$0xff]  ;;  %v489_v7 = vld [vmem:[%s14238_s2 + $0x38] sm:$0xff]  ;;  %v9233_v55 = vmov 0.0   ;;  %p469_p3 = scmp.lt.s32.totalorder %s6830_s30, 1 }
   0xf   : > { %572 = vperm.xlu1 %8922, %v484_v0   ;;  %562 = vperm.xlu0 %8921, %v482_v1   ;;  %v487_v5 = vld [vmem:[%s14238_s2 + $0x28] sm:$0xff]  ;;  %v488_v8 = vld [vmem:[%s14238_s2 + $0x30] sm:$0xff]  ;;  %v490_v10 = vld [vmem:[%s14238_s2 + $0x40] sm:$0xff]  ;;  %518 = vst [vmem:[#allocation2] sm:$0xff] %v9233_v55 }
  0x10   : > { %v491_v9 = vld [vmem:[%s14238_s2 + $0x48] sm:$0xff]  ;;  %v493_v11 = vld [vmem:[%s14238_s2 + $0x58] sm:$0xff]  ;;  %v492_v12 = vld [vmem:[%s14238_s2 + $0x50] sm:$0xff]  ;;  %8284 = vmatprep.subr.bf16.mxu0 %v14251_v36  ;;  %8308 = vmatprep.subr.bf16.mxu1 %v14251_v36  ;;  %519 = vst [vmem:[#allocation2 + $0x8] sm:$0xff] %v9233_v55  ;;  %s14722_s30 = smov (!%p469_p3, %s6830_s30), 1 }
  0x11   : > { %v495_v13 = vld [vmem:[%s14238_s2 + $0x68] sm:$0xff]  ;;  %v494_v14 = vld [vmem:[%s14238_s2 + $0x60] sm:$0xff]  ;;  %v497_v15 = vld [vmem:[%s14238_s2 + $0x78] sm:$0xff]  ;;  %7574 = vmatprep.mubr.msk.f32.mxu0 %vm9232_vm0, %v9233_v55  ;;  %520 = vst [vmem:[#allocation2 + $0x10] sm:$0x7] %v9233_v55  ;;  %7609 = vmatprep.mubr.msk.f32.mxu1 %vm9232_vm0, %v9233_v55  ;;  %s8908_s21 = smul.u32 288, %s14722_s30  ;;  %s476_s27 = scalar_lea.vmem %s14237_s1, %s14722_s30 }
  0x12   : > { %v496_v16 = vld [vmem:[%s14238_s2 + $0x70] sm:$0xff]  ;;  %v499_v17 = vld [vmem:[%s14238_s2 + $0x88] sm:$0xff]  ;;  %v498_v18 = vld [vmem:[%s14238_s2 + $0x80] sm:$0xff]  ;;  %521 = vst [vmem:[#allocation2 + $0x133] sm:$0xff] %v9233_v55 }
  0x13   : > { %577 = vperm.xlu1 %8922, %v485_v3   ;;  %567 = vperm.xlu0 %8921, %v483_v4   ;;  %v501_v19 = vld [vmem:[%s14238_s2 + $0x98] sm:$0xff]  ;;  %v500_v20 = vld [vmem:[%s14238_s2 + $0x90] sm:$0xff]  ;;  %v503_v21 = vld [vmem:[%s14238_s2 + $0xa8] sm:$0xff]  ;;  %522 = vst [vmem:[#allocation2 + $0x13b] sm:$0xff] %v9233_v55  ;;  %s9504_s24 = scalar_lea.vmem %s14236_s0, %s8908_s21  ;;  %s14062_s19 = scalar_lea.vmem %s14250_s14, %s8908_s21 }
  0x14   : > { %v502_v22 = vld [vmem:[%s14238_s2 + $0xa0] sm:$0xff]  ;;  %v505_v23 = vld [vmem:[%s14238_s2 + $0xb8] sm:$0xff]  ;;  %v504_v24 = vld [vmem:[%s14238_s2 + $0xb0] sm:$0xff]  ;;  %523 = vst [vmem:[#allocation2 + $0x143] sm:$0x1f] %v9233_v55 }
  0x15   : > { %v507_v25 = vld [vmem:[%s14238_s2 + $0xc8] sm:$0xff]  ;;  %v506_v26 = vld [vmem:[%s14238_s2 + $0xc0] sm:$0xff]  ;;  %v509_v27 = vld [vmem:[%s14238_s2 + $0xd8] sm:$0xff] }
  0x16   : > { %v508_v28 = vld [vmem:[%s14238_s2 + $0xd0] sm:$0xff]  ;;  %v511_v29 = vld [vmem:[%s14238_s2 + $0xe8] sm:$0xff]  ;;  %v510_v30 = vld [vmem:[%s14238_s2 + $0xe0] sm:$0xff] }
  0x17   : > { %587 = vperm.xlu1 %8922, %v487_v5   ;;  %582 = vperm.xlu0 %8921, %v486_v6   ;;  %v817_v31 = vld [vmem:[%s14239_s3] sm:$0xff]  ;;  %v818_v32 = vld [vmem:[%s14239_s3 + $0x8] sm:$0xff]  ;;  %v513_v34 = vld [vmem:[%s14238_s2 + $0xf8] sm:$0xff] }
  0x18   : > { %v8285_v33 = vpack.c.bf16 %v818_v32, %v817_v31  ;;  %v512_v35 = vld [vmem:[%s14238_s2 + $0xf0] sm:$0xff]  ;;  %v820_v38 = vld [vmem:[%s14239_s3 + $0x18] sm:$0xff]  ;;  %v515_v40 = vld [vmem:[%s14238_s2 + $0x108] sm:$0xff] }
  0x19   : > { %v819_v37 = vld [vmem:[%s14239_s3 + $0x10] sm:$0xff]  ;;  %v514_v41 = vld [vmem:[%s14238_s2 + $0x100] sm:$0xff]  ;;  %v822_v43 = vld [vmem:[%s14239_s3 + $0x28] sm:$0xff] }
  0x1a   : > { %8286 = vmatpush3.bf16.msra.mxu0 %v8285_v33  ;;  %8310 = vmatpush3.bf16.msra.mxu1 %v8285_v33  ;;  %v8288_v39 = vpack.c.bf16 %v820_v38, %v819_v37  ;;  %v821_v42 = vld [vmem:[%s14239_s3 + $0x20] sm:$0xff]  ;;  %v517_v45 = vld [vmem:[%s14238_s2 + $0x118] sm:$0xff]  ;;  %v516_v46 = vld [vmem:[%s14238_s2 + $0x110] sm:$0xff] }
  0x1b   : > { %597 = vperm.xlu1 %8922, %v489_v7   ;;  %592 = vperm.xlu0 %8921, %v488_v8   ;;  %v8291_v44 = vpack.c.bf16 %v822_v43, %v821_v42  ;;  %v823_v47 = vld [vmem:[%s14239_s3 + $0x30] sm:$0xff]  ;;  %v824_v48 = vld [vmem:[%s14239_s3 + $0x38] sm:$0xff]  ;;  %v825_v50 = vld [vmem:[%s14239_s3 + $0x40] sm:$0xff] }
  0x1c   : > { %8287 = vmatprep.subr.bf16.mxu0 %v14251_v36  ;;  %8311 = vmatprep.subr.bf16.mxu1 %v14251_v36  ;;  %v8294_v49 = vpack.c.bf16 %v824_v48, %v823_v47  ;;  %v826_v51 = vld [vmem:[%s14239_s3 + $0x48] sm:$0xff]  ;;  %v827_v53 = vld [vmem:[%s14239_s3 + $0x50] sm:$0xff]  ;;  %v828_v54 = vld [vmem:[%s14239_s3 + $0x58] sm:$0xff] }
  0x1d   : > { %v8297_v52 = vpack.c.bf16 %v826_v51, %v825_v50  ;;  %v8300_v56 = vpack.c.bf16 %v828_v54, %v827_v53  ;;  %v829_v57 = vld [vmem:[%s14239_s3 + $0x60] sm:$0xff]  ;;  %v830_v58 = vld [vmem:[%s14239_s3 + $0x68] sm:$0xff]  ;;  %v831_v60 = vld [vmem:[%s14239_s3 + $0x70] sm:$0xff] }
  0x1e   : > { %8289 = vmatpush3.bf16.msra.mxu0 %v8288_v39  ;;  %8313 = vmatpush3.bf16.msra.mxu1 %v8288_v39  ;;  %v8303_v59 = vpack.c.bf16 %v830_v58, %v829_v57  ;;  %v832_v61 = vld [vmem:[%s14239_s3 + $0x78] sm:$0xff]  ;;  %v524_v1 = vld [vmem:[%s9504_s24] sm:$0xff]  ;;  %v525_v2 = vld [vmem:[%s9504_s24 + $0x8] sm:$0xff] }
  0x1f   : > { %607 = vperm.xlu1 %8922, %v491_v9   ;;  %602 = vperm.xlu0 %8921, %v490_v10   ;;  %v8306_v62 = vpack.c.bf16 %v832_v61, %v831_v60  ;;  %v526_v3 = vld [vmem:[%s9504_s24 + $0x10] sm:$0xff]  ;;  %v527_v8 = vld [vmem:[%s9504_s24 + $0x18] sm:$0xff]  ;;  %v533_v32 = vld [vmem:[%s9504_s24 + $0x48] sm:$0xff] }
  0x20   : > { %8290 = vmatprep.subr.bf16.mxu0 %v14251_v36  ;;  %8314 = vmatprep.subr.bf16.mxu1 %v14251_v36  ;;  %v534_v38 = vld [vmem:[%s9504_s24 + $0x50] sm:$0xff]  ;;  %v539_v57 = vld [vmem:[%s9504_s24 + $0x78] sm:$0xff] }
  0x21   : > { %v538_v54 = vld [vmem:[%s9504_s24 + $0x70] sm:$0xff] }
  0x22   : > { %8292 = vmatpush3.bf16.msra.mxu0 %v8291_v44  ;;  %8316 = vmatpush3.bf16.msra.mxu1 %v8291_v44 }
  0x23   : > { %617 = vperm.xlu1 %8922, %v493_v11   ;;  %612 = vperm.xlu0 %8921, %v492_v12  }
  0x24   : > { %8293 = vmatprep.subr.bf16.mxu0 %v14251_v36  ;;  %8317 = vmatprep.subr.bf16.mxu1 %v14251_v36 }
  0x26   : > { %8295 = vmatpush3.bf16.msra.mxu0 %v8294_v49  ;;  %8319 = vmatpush3.bf16.msra.mxu1 %v8294_v49  ;;  %v537_v49 = vld [vmem:[%s9504_s24 + $0x68] sm:$0xff] }
  0x27   : > { %627 = vperm.xlu1 %8922, %v495_v13   ;;  %622 = vperm.xlu0 %8921, %v494_v14   ;;  %v528_v13 = vld [vmem:[%s9504_s24 + $0x20] sm:$0xff] }
  0x28   : > { %8296 = vmatprep.subr.bf16.mxu0 %v14251_v36  ;;  %8320 = vmatprep.subr.bf16.mxu1 %v14251_v36 }
  0x2a   : > { %8298 = vmatpush3.bf16.msra.mxu0 %v8297_v52  ;;  %8322 = vmatpush3.bf16.msra.mxu1 %v8297_v52 }
  0x2b   : > { %637 = vperm.xlu1 %8922, %v497_v15   ;;  %632 = vperm.xlu0 %8921, %v496_v16   ;;  %v529_v16 = vld [vmem:[%s9504_s24 + $0x28] sm:$0xff] }
  0x2c   : > { %8299 = vmatprep.subr.bf16.mxu0 %v14251_v36  ;;  %8323 = vmatprep.subr.bf16.mxu1 %v14251_v36 }
  0x2e   : > { %8301 = vmatpush3.bf16.msra.mxu0 %v8300_v56  ;;  %8325 = vmatpush3.bf16.msra.mxu1 %v8300_v56 }
  0x2f   : > { %647 = vperm.xlu1 %8922, %v499_v17   ;;  %642 = vperm.xlu0 %8921, %v498_v18  }
  0x30   : > { %8302 = vmatprep.subr.bf16.mxu0 %v14251_v36  ;;  %8326 = vmatprep.subr.bf16.mxu1 %v14251_v36 }
  0x32   : > { %8304 = vmatpush3.bf16.msra.mxu0 %v8303_v59  ;;  %8328 = vmatpush3.bf16.msra.mxu1 %v8303_v59 }
  0x33   : > { %657 = vperm.xlu1 %8922, %v501_v19   ;;  %652 = vperm.xlu0 %8921, %v500_v20  }
  0x34   : > { %8305 = vmatprep.subr.bf16.mxu0 %v14251_v36  ;;  %8329 = vmatprep.subr.bf16.mxu1 %v14251_v36 }
  0x36   : > { %8307 = vmatpush3.bf16.msra.mxu0 %v8306_v62  ;;  %8331 = vmatpush3.bf16.msra.mxu1 %v8306_v62  ;;  %v540_v62 = vld [vmem:[%s9504_s24 + $0x80] sm:$0xff] }
  0x37   : > { %667 = vperm.xlu1 %8922, %v503_v21   ;;  %662 = vperm.xlu0 %8921, %v502_v22   ;;  %v530_v21 = vld [vmem:[%s9504_s24 + $0x30] sm:$0xff] }
  0x38   : > { %8332 = vmatprep.subr.bf16.mxu0 %v14251_v36  ;;  %v552_v36 = vld [vmem:[%s9504_s24 + $0xe0] sm:$0xff] }
  0x3b   : > { %677 = vperm.xlu1 %8922, %v505_v23   ;;  %672 = vperm.xlu0 %8921, %v504_v24   ;;  %v531_v24 = vld [vmem:[%s9504_s24 + $0x38] sm:$0xff] }
  0x3f   : > { %687 = vperm.xlu1 %8922, %v507_v25   ;;  %682 = vperm.xlu0 %8921, %v506_v26  }
  0x43   : > { %697 = vperm.xlu1 %8922, %v509_v27   ;;  %692 = vperm.xlu0 %8921, %v508_v28  }
  0x47   : > { %707 = vperm.xlu1 %8922, %v511_v29   ;;  %702 = vperm.xlu0 %8921, %v510_v30   ;;  %v532_v29 = vld [vmem:[%s9504_s24 + $0x40] sm:$0xff] }
  0x4b   : > { %717 = vperm.xlu1 %8922, %v513_v34   ;;  %712 = vperm.xlu0 %8921, %v512_v35  }
  0x4f   : > { %727 = vperm.xlu1 %8922, %v515_v40   ;;  %722 = vperm.xlu0 %8921, %v514_v41   ;;  %v535_v41 = vld [vmem:[%s9504_s24 + $0x58] sm:$0xff] }
  0x53   : > { %737 = vperm.xlu1 %8922, %v517_v45   ;;  %732 = vperm.xlu0 %8921, %v516_v46   ;;  %v536_v46 = vld [vmem:[%s9504_s24 + $0x60] sm:$0xff] }
  0x8e   : > { %v9506_v63 = vpop.permute.xlu1 %572  ;;  %v9508_v0 = vpop.permute.xlu0 %562 }
  0x8f   : > { %v9518_v6 = vmul.f32 %v9508_v0, %v524_v1  ;;  %v9525_v9 = vmul.f32 %v9506_v63, %v526_v3  ;;  %v541_v3 = vld [vmem:[%s9504_s24 + $0x88] sm:$0xff] }
  0x92   : > { %v9513_v4 = vpop.permute.xlu1 %577  ;;  %v9515_v5 = vpop.permute.xlu0 %567 }
  0x93   : > { %v9521_v7 = vmul.f32 %v9515_v5, %v525_v2  ;;  %v9535_v14 = vmul.f32 %v9513_v4, %v527_v8 }
  0x95   : > { %v776_v10 = vadd.f32 %v9521_v7, %v9518_v6 }
  0x96   : > { %v9529_v11 = vpop.permute.xlu1 %587  ;;  %v9531_v12 = vpop.permute.xlu0 %582 }
  0x97   : > { %v777_v15 = vadd.f32 %v776_v10, %v9525_v9  ;;  %v9540_v17 = vmul.f32 %v9531_v12, %v528_v13  ;;  %v9549_v22 = vmul.f32 %v9529_v11, %v529_v16  ;;  %v542_v16 = vld [vmem:[%s9504_s24 + $0x90] sm:$0xff] }
  0x99   : > { %v778_v18 = vadd.f32 %v777_v15, %v9535_v14 }
  0x9a   : > { %v9543_v19 = vpop.permute.xlu1 %597  ;;  %v9545_v20 = vpop.permute.xlu0 %592 }
  0x9b   : > { %v779_v23 = vadd.f32 %v778_v18, %v9540_v17  ;;  %v9554_v25 = vmul.f32 %v9545_v20, %v530_v21  ;;  %v9563_v30 = vmul.f32 %v9543_v19, %v531_v24 }
  0x9d   : > { %v780_v26 = vadd.f32 %v779_v23, %v9549_v22  ;;  %v543_v23 = vld [vmem:[%s9504_s24 + $0x98] sm:$0xff] }
  0x9e   : > { %v9557_v27 = vpop.permute.xlu1 %607  ;;  %v9559_v28 = vpop.permute.xlu0 %602 }
  0x9f   : > { %v781_v31 = vadd.f32 %v780_v26, %v9554_v25  ;;  %v9568_v33 = vmul.f32 %v9559_v28, %v532_v29  ;;  %v9577_v39 = vmul.f32 %v9557_v27, %v533_v32  ;;  %v544_v32 = vld [vmem:[%s9504_s24 + $0xa0] sm:$0xff] }
  0xa1   : > { %v782_v34 = vadd.f32 %v781_v31, %v9563_v30 }
  0xa2   : > { %v9571_v35 = vpop.permute.xlu1 %617  ;;  %v9573_v37 = vpop.permute.xlu0 %612 }
  0xa3   : > { %14383 = vst [vmem:[#allocation3_spill] sm:$0xff] %v9571_v35  ;;  %14384 = vst [vmem:[#allocation4_spill] sm:$0xff] %v9573_v37  ;;  %v783_v40 = vadd.f32 %v782_v34, %v9568_v33  ;;  %v9582_v42 = vmul.f32 %v9573_v37, %v534_v38  ;;  %v9591_v47 = vmul.f32 %v9571_v35, %v535_v41 }
  0xa5   : > { %v784_v43 = vadd.f32 %v783_v40, %v9577_v39  ;;  %v545_v40 = vld [vmem:[%s9504_s24 + $0xa8] sm:$0xff] }
  0xa6   : > { %v9585_v44 = vpop.permute.xlu1 %627  ;;  %v9587_v45 = vpop.permute.xlu0 %622 }
  0xa7   : > { %14385 = vst [vmem:[#allocation5_spill] sm:$0xff] %v9585_v44  ;;  %14386 = vst [vmem:[#allocation6_spill] sm:$0xff] %v9587_v45  ;;  %v785_v48 = vadd.f32 %v784_v43, %v9582_v42  ;;  %v9596_v50 = vmul.f32 %v9587_v45, %v536_v46  ;;  %v9605_v55 = vmul.f32 %v9585_v44, %v537_v49  ;;  %v546_v49 = vld [vmem:[%s9504_s24 + $0xb0] sm:$0xff] }
  0xa9   : > { %v786_v51 = vadd.f32 %v785_v48, %v9591_v47 }
  0xaa   : > { %v9599_v52 = vpop.permute.xlu1 %637  ;;  %v9601_v53 = vpop.permute.xlu0 %632 }
  0xab   : > { %14387 = vst [vmem:[#allocation7_spill] sm:$0xff] %v9599_v52  ;;  %14388 = vst [vmem:[#allocation8_spill] sm:$0xff] %v9601_v53  ;;  %v787_v56 = vadd.f32 %v786_v51, %v9596_v50  ;;  %v9610_v58 = vmul.f32 %v9601_v53, %v538_v54  ;;  %v9619_v1 = vmul.f32 %v9599_v52, %v539_v57 }
  0xad   : > { %v788_v59 = vadd.f32 %v787_v56, %v9605_v55  ;;  %v547_v56 = vld [vmem:[%s9504_s24 + $0xb8] sm:$0xff] }
  0xae   : > { %v9613_v60 = vpop.permute.xlu1 %647  ;;  %v9615_v61 = vpop.permute.xlu0 %642 }
  0xaf   : > { %14389 = vst [vmem:[#allocation9_spill] sm:$0xff] %v9613_v60  ;;  %14390 = vst [vmem:[#allocation10_spill] sm:$0xff] %v9615_v61  ;;  %v789_v2 = vadd.f32 %v788_v59, %v9610_v58  ;;  %v9624_v8 = vmul.f32 %v9615_v61, %v540_v62  ;;  %v9633_v18 = vmul.f32 %v9613_v60, %v541_v3  ;;  %v548_v3 = vld [vmem:[%s9504_s24 + $0xc0] sm:$0xff] }
  0xb1   : > { %v790_v10 = vadd.f32 %v789_v2, %v9619_v1 }
  0xb2   : > { %v9627_v13 = vpop.permute.xlu1 %657  ;;  %v9629_v15 = vpop.permute.xlu0 %652 }
  0xb3   : > { %14391 = vst [vmem:[#allocation11_spill] sm:$0xff] %v9627_v13  ;;  %14392 = vst [vmem:[#allocation12_spill] sm:$0xff] %v9629_v15  ;;  %v791_v21 = vadd.f32 %v790_v10, %v9624_v8  ;;  %v9638_v24 = vmul.f32 %v9629_v15, %v542_v16  ;;  %v9647_v34 = vmul.f32 %v9627_v13, %v543_v23 }
  0xb5   : > { %v792_v26 = vadd.f32 %v791_v21, %v9633_v18  ;;  %v549_v21 = vld [vmem:[%s9504_s24 + $0xc8] sm:$0xff] }
  0xb6   : > { %v9641_v29 = vpop.permute.xlu1 %667  ;;  %v9643_v31 = vpop.permute.xlu0 %662 }
  0xb7   : > { %14393 = vst [vmem:[#allocation13_spill] sm:$0xff] %v9641_v29  ;;  %14394 = vst [vmem:[#allocation14_spill] sm:$0xff] %v9643_v31  ;;  %v793_v38 = vadd.f32 %v792_v26, %v9638_v24  ;;  %v9652_v41 = vmul.f32 %v9643_v31, %v544_v32  ;;  %v9661_v51 = vmul.f32 %v9641_v29, %v545_v40  ;;  %v550_v40 = vld [vmem:[%s9504_s24 + $0xd0] sm:$0xff] }
  0xb9   : > { %v794_v43 = vadd.f32 %v793_v38, %v9647_v34 }
  0xba   : > { %v9655_v46 = vpop.permute.xlu1 %677  ;;  %v9657_v48 = vpop.permute.xlu0 %672 }
  0xbb   : > { %14395 = vst [vmem:[#allocation15_spill] sm:$0xff] %v9655_v46  ;;  %14396 = vst [vmem:[#allocation16_spill] sm:$0xff] %v9657_v48  ;;  %v795_v54 = vadd.f32 %v794_v43, %v9652_v41  ;;  %v9666_v57 = vmul.f32 %v9657_v48, %v546_v49  ;;  %v9675_v10 = vmul.f32 %v9655_v46, %v547_v56  ;;  %v554_v46 = vld [vmem:[%s9504_s24 + $0xf0] sm:$0xff] }
  0xbd   : > { %v796_v59 = vadd.f32 %v795_v54, %v9661_v51  ;;  %14399 = vst [vmem:[#allocation19_spill] sm:$0xff] %v9675_v10  ;;  %v551_v54 = vld [vmem:[%s9504_s24 + $0xd8] sm:$0xff] }
  0xbe   : > { %v9669_v62 = vpop.permute.xlu1 %687  ;;  %v9671_v2 = vpop.permute.xlu0 %682 }
  0xbf   : > { %14397 = vst [vmem:[#allocation17_spill] sm:$0xff] %v9669_v62  ;;  %14398 = vst [vmem:[#allocation18_spill] sm:$0xff] %v9671_v2  ;;  %v797_v16 = vadd.f32 %v796_v59, %v9666_v57  ;;  %v9680_v23 = vmul.f32 %v9671_v2, %v548_v3  ;;  %v9689_v43 = vmul.f32 %v9669_v62, %v549_v21  ;;  %v553_v62 = vld [vmem:[%s9504_s24 + $0xe8] sm:$0xff] }
  0xc1   : > { %14400 = vst [vmem:[#allocation20_spill] sm:$0xff] %v9680_v23  ;;  %v798_v26 = vadd.f32 %v797_v16, %v9675_v10  ;;  %14403 = vst [vmem:[#allocation23_spill] sm:$0xff] %v9689_v43 }
  0xc2   : > { %v9683_v32 = vpop.permute.xlu1 %697  ;;  %v9685_v38 = vpop.permute.xlu0 %692 }
  0xc3   : > { %14401 = vst [vmem:[#allocation21_spill] sm:$0xff] %v9683_v32  ;;  %14402 = vst [vmem:[#allocation22_spill] sm:$0xff] %v9685_v38  ;;  %v799_v49 = vadd.f32 %v798_v26, %v9680_v23  ;;  %v9694_v56 = vmul.f32 %v9685_v38, %v550_v40  ;;  %v9703_v2 = vmul.f32 %v9683_v32, %v551_v54  ;;  %v555_v32 = vld [vmem:[%s9504_s24 + $0xf8] sm:$0xff] }
  0xc5   : > { %14404 = vst [vmem:[#allocation24_spill] sm:$0xff] %v9694_v56  ;;  %v800_v59 = vadd.f32 %v799_v49, %v9689_v43  ;;  %14407 = vst [vmem:[#allocation27_spill] sm:$0xff] %v9703_v2 }
  0xc6   : > { %v9697_v3 = vpop.permute.xlu1 %707  ;;  %v9699_v16 = vpop.permute.xlu0 %702 }
  0xc7   : > { %14405 = vst [vmem:[#allocation25_spill] sm:$0xff] %v9697_v3  ;;  %14406 = vst [vmem:[#allocation26_spill] sm:$0xff] %v9699_v16  ;;  %v801_v21 = vadd.f32 %v800_v59, %v9694_v56  ;;  %v9708_v26 = vmul.f32 %v9699_v16, %v552_v36  ;;  %v9717_v43 = vmul.f32 %v9697_v3, %v553_v62  ;;  %v557_v3 = vld [vmem:[%s9504_s24 + $0x108] sm:$0xff] }
  0xc9   : > { %14408 = vst [vmem:[#allocation28_spill] sm:$0xff] %v9708_v26  ;;  %v802_v40 = vadd.f32 %v801_v21, %v9703_v2  ;;  %14411 = vst [vmem:[#allocation31_spill] sm:$0xff] %v9717_v43  ;;  %v556_v2 = vld [vmem:[%s9504_s24 + $0x100] sm:$0xff] }
  0xca   : > { %v9711_v38 = vpop.permute.xlu1 %717  ;;  %v9713_v49 = vpop.permute.xlu0 %712 }
  0xcb   : > { %14409 = vst [vmem:[#allocation29_spill] sm:$0xff] %v9711_v38  ;;  %14410 = vst [vmem:[#allocation30_spill] sm:$0xff] %v9713_v49  ;;  %v803_v54 = vadd.f32 %v802_v40, %v9708_v26  ;;  %v9722_v59 = vmul.f32 %v9713_v49, %v554_v46  ;;  %v9731_v56 = vmul.f32 %v9711_v38, %v555_v32  ;;  %v558_v49 = vld [vmem:[%s9504_s24 + $0x110] sm:$0xff]  ;;  %v559_v32 = vld [vmem:[%s9504_s24 + $0x118] sm:$0xff] }
  0xcd   : > { %14412 = vst [vmem:[#allocation32_spill] sm:$0xff] %v9722_v59  ;;  %v804_v36 = vadd.f32 %v803_v54, %v9717_v43  ;;  %14415 = vst [vmem:[#allocation35_spill] sm:$0xff] %v9731_v56 }
  0xce   : > { %v9725_v16 = vpop.permute.xlu1 %727  ;;  %v9727_v21 = vpop.permute.xlu0 %722 }
  0xcf   : > { %14413 = vst [vmem:[#allocation33_spill] sm:$0xff] %v9725_v16  ;;  %14414 = vst [vmem:[#allocation34_spill] sm:$0xff] %v9727_v21  ;;  %v805_v62 = vadd.f32 %v804_v36, %v9722_v59  ;;  %v9736_v40 = vmul.f32 %v9727_v21, %v556_v2  ;;  %v9743_v54 = vmul.f32 %v9725_v16, %v557_v3 }
  0xd1   : > { %14416 = vst [vmem:[#allocation36_spill] sm:$0xff] %v9736_v40  ;;  %v806_v26 = vadd.f32 %v805_v62, %v9731_v56 }
  0xd2   : > { %v9739_v46 = vpop.permute.xlu0 %732  ;;  %v9746_v48 = vpop.permute.xlu1 %737 }
  0xd3   : > { %14417 = vst [vmem:[#allocation37_spill] sm:$0xff] %v9739_v46  ;;  %v807_v43 = vadd.f32 %v806_v26, %v9736_v40  ;;  %14418 = vst [vmem:[#allocation38_spill] sm:$0xff] %v9746_v48  ;;  %v9750_v38 = vmul.f32 %v9739_v46, %v558_v49  ;;  %v9754_v2 = vmul.f32 %v9746_v48, %v559_v32  ;;  %v904_v49 = vlaneseq }
  0xd5   : > { %v808_v36 = vadd.f32 %v807_v43, %v9743_v54  ;;  %v905_v46 = vshrl.u32 %v904_v49, 7 }
  0xd7   : > { %v809_v62 = vadd.f32 %v808_v36, %v9750_v38  ;;  %v9758_v43 = vsub.s32 0, %v905_v46 }
  0xd9   : > { %v810_v21 = vadd.f32 %v809_v62, %v9754_v2  ;;  %14419 = vst [vmem:[#allocation39_spill] sm:$0xff] %v9758_v43 }
  0xdb   : > { %v811_v56 = vrot.slane %v810_v21, 4 }
  0xdd   : > { %v812_v3 = vadd.f32 %v811_v56, %v810_v21 }
  0xdf   : > { %v813_v16 = vrot.slane %v812_v3, 2 }
  0xe1   : > { %v814_v59 = vadd.f32 %v813_v16, %v812_v3 }
  0xe3   : > { %v815_v26 = vrot.slane %v814_v59, 1 }
  0xe5   : > { %v816_v40 = vadd.f32 %v815_v26, %v814_v59 }
  0xe7   : > { %7575 = vmatmul.mubr.f32.vlgmr.msra.gmra.mrb[0].mxu0 %v816_v40 }
 0x1ba   : > { %v899_v23 = vpop.f32.mrb[0].mxu0 }
 0x1bb   : > { %v7576_v29 = vpop.f32.mrb[1].mxu0  ;;  %v903_v10 = vmul.f32 0.00390625, %v899_v23 }
 0x1bd   : > { %v9761_v32 = vrot.slane %v903_v10, %v9758_v43 }
 0x1bf   : > { %v908_v36 = vsub.f32 %v9518_v6, %v9761_v32  ;;  %v909_v56 = vsub.f32 %v9521_v7, %v9761_v32  ;;  %v910_v16 = vsub.f32 %v9525_v9, %v9761_v32  ;;  %v911_v23 = vsub.f32 %v9535_v14, %v9761_v32 }
 0x1c0   : > { %v912_v10 = vsub.f32 %v9540_v17, %v9761_v32  ;;  %v913_v21 = vsub.f32 %v9549_v22, %v9761_v32  ;;  %v914_v14 = vsub.f32 %v9554_v25, %v9761_v32  ;;  %v915_v3 = vsub.f32 %v9563_v30, %v9761_v32 }
 0x1c1   : > { %v9770_v59 = vmul.f32 %v908_v36, %v9508_v0  ;;  %v9773_v29 = vmul.f32 %v909_v56, %v9515_v5  ;;  %v9780_v6 = vmul.f32 %v910_v16, %v9506_v63  ;;  %v9789_v40 = vmul.f32 %v911_v23, %v9513_v4 }
 0x1c2   : > { %v9794_v17 = vmul.f32 %v912_v10, %v9531_v12  ;;  %v9801_v26 = vmul.f32 %v913_v21, %v9529_v11  ;;  %v916_v25 = vsub.f32 %v9568_v33, %v9761_v32  ;;  %v9808_v36 = vmul.f32 %v914_v14, %v9545_v20 }
 0x1c3   : > { %v980_v7 = vmul.f32 %v9770_v59, %v9770_v59  ;;  %v981_v9 = vmul.f32 %v9773_v29, %v9773_v29  ;;  %v982_v46 = vmul.f32 %v9780_v6, %v9780_v6  ;;  %v983_v22 = vmul.f32 %v9789_v40, %v9789_v40 }
 0x1c4   : > { %v984_v56 = vmul.f32 %v9794_v17, %v9794_v17  ;;  %v917_v30 = vsub.f32 %v9577_v39, %v9761_v32  ;;  %v9815_v23 = vmul.f32 %v915_v3, %v9543_v19  ;;  %v985_v10 = vmul.f32 %v9801_v26, %v9801_v26 }
 0x1c5   : > { %v1016_v62 = vadd.f32 %v981_v9, %v980_v7  ;;  %v918_v33 = vsub.f32 %v9582_v42, %v9761_v32  ;;  %v9822_v9 = vmul.f32 %v916_v25, %v9559_v28  ;;  %v986_v21 = vmul.f32 %v9808_v36, %v9808_v36 }
 0x1c6   : > { %v919_v39 = vsub.f32 %v9591_v47, %v9761_v32  ;;  %v920_v42 = vsub.f32 %v9596_v50, %v9761_v32  ;;  %v921_v47 = vsub.f32 %v9605_v55, %v9761_v32  ;;  %v922_v50 = vsub.f32 %v9610_v58, %v9761_v32 }
 0x1c7   : > { %v1017_v49 = vadd.f32 %v1016_v62, %v982_v46  ;;  %v9829_v46 = vmul.f32 %v917_v30, %v9557_v27  ;;  %v987_v62 = vmul.f32 %v9815_v23, %v9815_v23  ;;  %v923_v55 = vsub.f32 %v9619_v1, %v9761_v32 }
 0x1c8   : > { %v924_v58 = vsub.f32 %v9624_v8, %v9761_v32  ;;  %v925_v1 = vsub.f32 %v9633_v18, %v9761_v32  ;;  %v926_v8 = vsub.f32 %v9638_v24, %v9761_v32  ;;  %v927_v18 = vsub.f32 %v9647_v34, %v9761_v32 }
 0x1c9   : > { %v1018_v16 = vadd.f32 %v1017_v49, %v983_v22  ;;  %v9836_v22 = vmul.f32 %v918_v33, %v9573_v37  ;;  %v988_v49 = vmul.f32 %v9822_v9, %v9822_v9  ;;  %v928_v24 = vsub.f32 %v9652_v41, %v9761_v32 }
 0x1ca   : > { %v929_v34 = vsub.f32 %v9661_v51, %v9761_v32  ;;  %v930_v41 = vsub.f32 %v9666_v57, %v9761_v32 }
 0x1cb   : > { %v1019_v7 = vadd.f32 %v1018_v16, %v984_v56  ;;  %v9843_v56 = vmul.f32 %v919_v39, %v9571_v35  ;;  %v989_v16 = vmul.f32 %v9829_v46, %v9829_v46 }
 0x1cd   : > { %v1020_v14 = vadd.f32 %v1019_v7, %v985_v10  ;;  %v9850_v10 = vmul.f32 %v920_v42, %v9587_v45  ;;  %v990_v7 = vmul.f32 %v9836_v22, %v9836_v22  ;;  %v14439_v45 = vld [vmem:[#allocation30_spill] sm:$0xff] }
 0x1cf   : > { %v1021_v3 = vadd.f32 %v1020_v14, %v986_v21  ;;  %v9857_v21 = vmul.f32 %v921_v47, %v9585_v44  ;;  %v991_v14 = vmul.f32 %v9843_v56, %v9843_v56  ;;  %v14437_v44 = vld [vmem:[#allocation25_spill] sm:$0xff] }
 0x1d1   : > { %v1022_v25 = vadd.f32 %v1021_v3, %v987_v62  ;;  %v9864_v62 = vmul.f32 %v922_v50, %v9601_v53  ;;  %v992_v3 = vmul.f32 %v9850_v10, %v9850_v10  ;;  %v14435_v53 = vld [vmem:[#allocation26_spill] sm:$0xff] }
 0x1d3   : > { %v1023_v30 = vadd.f32 %v1022_v25, %v988_v49  ;;  %v9871_v49 = vmul.f32 %v923_v55, %v9599_v52  ;;  %v993_v25 = vmul.f32 %v9857_v21, %v9857_v21  ;;  %v14433_v52 = vld [vmem:[#allocation21_spill] sm:$0xff] }
 0x1d5   : > { %v1024_v33 = vadd.f32 %v1023_v30, %v989_v16  ;;  %v9878_v16 = vmul.f32 %v924_v58, %v9615_v61  ;;  %v994_v30 = vmul.f32 %v9864_v62, %v9864_v62  ;;  %v14431_v61 = vld [vmem:[#allocation22_spill] sm:$0xff] }
 0x1d7   : > { %v1025_v39 = vadd.f32 %v1024_v33, %v990_v7  ;;  %v9885_v7 = vmul.f32 %v925_v1, %v9613_v60  ;;  %v995_v33 = vmul.f32 %v9871_v49, %v9871_v49  ;;  %v14429_v60 = vld [vmem:[#allocation17_spill] sm:$0xff] }
 0x1d9   : > { %v1026_v42 = vadd.f32 %v1025_v39, %v991_v14  ;;  %v9892_v14 = vmul.f32 %v926_v8, %v9629_v15  ;;  %v996_v39 = vmul.f32 %v9878_v16, %v9878_v16  ;;  %v14427_v15 = vld [vmem:[#allocation18_spill] sm:$0xff] }
 0x1db   : > { %v1027_v47 = vadd.f32 %v1026_v42, %v992_v3  ;;  %v9899_v3 = vmul.f32 %v927_v18, %v9627_v13  ;;  %v997_v42 = vmul.f32 %v9885_v7, %v9885_v7  ;;  %v14425_v13 = vld [vmem:[#allocation15_spill] sm:$0xff] }
 0x1dd   : > { %v1028_v50 = vadd.f32 %v1027_v47, %v993_v25  ;;  %v9906_v25 = vmul.f32 %v928_v24, %v9643_v31  ;;  %v998_v47 = vmul.f32 %v9892_v14, %v9892_v14 }
 0x1df   : > { %v1029_v55 = vadd.f32 %v1028_v50, %v994_v30  ;;  %v14420_v30 = vld [vmem:[#allocation19_spill] sm:$0xff]  ;;  %v14421_v50 = vld [vmem:[#allocation13_spill] sm:$0xff]  ;;  %v1000_v31 = vmul.f32 %v9906_v25, %v9906_v25 }
 0x1e0   : > { %v931_v51 = vsub.f32 %v14420_v30, %v9761_v32  ;;  %v9913_v18 = vmul.f32 %v929_v34, %v14421_v50 }
 0x1e1   : > { %v1030_v58 = vadd.f32 %v1029_v55, %v995_v33  ;;  %v999_v33 = vmul.f32 %v9899_v3, %v9899_v3 }
 0x1e2   : > { %v9927_v34 = vmul.f32 %v931_v51, %v14425_v13  ;;  %v1001_v50 = vmul.f32 %v9913_v18, %v9913_v18 }
 0x1e3   : > { %v1031_v1 = vadd.f32 %v1030_v58, %v996_v39  ;;  %v14422_v39 = vld [vmem:[#allocation20_spill] sm:$0xff] }
 0x1e4   : > { %v932_v57 = vsub.f32 %v14422_v39, %v9761_v32  ;;  %v14423_v58 = vld [vmem:[#allocation16_spill] sm:$0xff]  ;;  %v1003_v13 = vmul.f32 %v9927_v34, %v9927_v34 }
 0x1e5   : > { %v1032_v8 = vadd.f32 %v1031_v1, %v997_v42  ;;  %v9920_v24 = vmul.f32 %v930_v41, %v14423_v58  ;;  %v14424_v1 = vld [vmem:[#allocation23_spill] sm:$0xff] }
 0x1e6   : > { %v933_v30 = vsub.f32 %v14424_v1, %v9761_v32  ;;  %v9934_v41 = vmul.f32 %v932_v57, %v14427_v15 }
 0x1e7   : > { %v1033_v55 = vadd.f32 %v1032_v8, %v998_v47  ;;  %v14426_v8 = vld [vmem:[#allocation24_spill] sm:$0xff]  ;;  %v1002_v58 = vmul.f32 %v9920_v24, %v9920_v24 }
 0x1e8   : > { %v934_v39 = vsub.f32 %v14426_v8, %v9761_v32  ;;  %v9941_v51 = vmul.f32 %v933_v30, %v14429_v60  ;;  %v1004_v15 = vmul.f32 %v9934_v41, %v9934_v41 }
 0x1e9   : > { %v1034_v42 = vadd.f32 %v1033_v55, %v999_v33  ;;  %v14428_v55 = vld [vmem:[#allocation27_spill] sm:$0xff] }
 0x1ea   : > { %v935_v1 = vsub.f32 %v14428_v55, %v9761_v32  ;;  %v9948_v57 = vmul.f32 %v934_v39, %v14431_v61  ;;  %v1005_v60 = vmul.f32 %v9941_v51, %v9941_v51 }
 0x1eb   : > { %v1035_v47 = vadd.f32 %v1034_v42, %v1000_v31  ;;  %v14430_v42 = vld [vmem:[#allocation28_spill] sm:$0xff] }
 0x1ec   : > { %v936_v8 = vsub.f32 %v14430_v42, %v9761_v32  ;;  %v9955_v30 = vmul.f32 %v935_v1, %v14433_v52  ;;  %v1006_v61 = vmul.f32 %v9948_v57, %v9948_v57 }
 0x1ed   : > { %v1036_v33 = vadd.f32 %v1035_v47, %v1001_v50  ;;  %v14432_v47 = vld [vmem:[#allocation31_spill] sm:$0xff] }
 0x1ee   : > { %v937_v55 = vsub.f32 %v14432_v47, %v9761_v32  ;;  %v9962_v39 = vmul.f32 %v936_v8, %v14435_v53  ;;  %v1007_v52 = vmul.f32 %v9955_v30, %v9955_v30 }
 0x1ef   : > { %v1037_v31 = vadd.f32 %v1036_v33, %v1002_v58  ;;  %v14434_v33 = vld [vmem:[#allocation32_spill] sm:$0xff] }
 0x1f0   : > { %v938_v42 = vsub.f32 %v14434_v33, %v9761_v32  ;;  %v9969_v1 = vmul.f32 %v937_v55, %v14437_v44  ;;  %v1008_v53 = vmul.f32 %v9962_v39, %v9962_v39 }
 0x1f1   : > { %v1038_v50 = vadd.f32 %v1037_v31, %v1003_v13  ;;  %v14436_v31 = vld [vmem:[#allocation35_spill] sm:$0xff] }
 0x1f2   : > { %v939_v47 = vsub.f32 %v14436_v31, %v9761_v32  ;;  %v9976_v8 = vmul.f32 %v938_v42, %v14439_v45  ;;  %v14440_v31 = vld [vmem:[#allocation29_spill] sm:$0xff]  ;;  %v1009_v44 = vmul.f32 %v9969_v1, %v9969_v1 }
 0x1f3   : > { %v1039_v58 = vadd.f32 %v1038_v50, %v1004_v15  ;;  %v14438_v50 = vld [vmem:[#allocation36_spill] sm:$0xff] }
 0x1f4   : > { %v940_v33 = vsub.f32 %v14438_v50, %v9761_v32  ;;  %v9983_v55 = vmul.f32 %v939_v47, %v14440_v31  ;;  %v14441_v50 = vld [vmem:[#allocation34_spill] sm:$0xff]  ;;  %v1010_v45 = vmul.f32 %v9976_v8, %v9976_v8 }
 0x1f5   : > { %v1040_v13 = vadd.f32 %v1039_v58, %v1005_v60  ;;  %v941_v58 = vsub.f32 %v9743_v54, %v9761_v32  ;;  %v943_v54 = vsub.f32 %v9754_v2, %v9761_v32 }
 0x1f6   : > { %v9990_v42 = vmul.f32 %v940_v33, %v14441_v50  ;;  %v1011_v31 = vmul.f32 %v9983_v55, %v9983_v55 }
 0x1f7   : > { %v1041_v15 = vadd.f32 %v1040_v13, %v1006_v61  ;;  %v942_v13 = vsub.f32 %v9750_v38, %v9761_v32  ;;  %v10007_v50 = vmul.f32 %v943_v54, %v9746_v48 }
 0x1f8   : > { %v1012_v38 = vmul.f32 %v9990_v42, %v9990_v42 }
 0x1f9   : > { %v1042_v60 = vadd.f32 %v1041_v15, %v1007_v52  ;;  %v14442_v15 = vld [vmem:[#allocation33_spill] sm:$0xff] }
 0x1fa   : > { %v9997_v47 = vmul.f32 %v941_v58, %v14442_v15 }
 0x1fb   : > { %v1043_v61 = vadd.f32 %v1042_v60, %v1008_v53  ;;  %v14443_v60 = vld [vmem:[#allocation37_spill] sm:$0xff] }
 0x1fc   : > { %v10002_v35 = vmul.f32 %v942_v13, %v14443_v60 }
 0x1fd   : > { %v1044_v52 = vadd.f32 %v1043_v61, %v1009_v44  ;;  %v1013_v44 = vmul.f32 %v9997_v47, %v9997_v47 }
 0x1fe   : > { %v1014_v32 = vmul.f32 %v10002_v35, %v10002_v35 }
 0x1ff   : > { %v1045_v53 = vadd.f32 %v1044_v52, %v1010_v45  ;;  %v1015_v45 = vmul.f32 %v10007_v50, %v10007_v50 }
 0x201   : > { %v1046_v33 = vadd.f32 %v1045_v53, %v1011_v31 }
 0x203   : > { %v1047_v2 = vadd.f32 %v1046_v33, %v1012_v38  ;;  %v6875_v38 = vld [vmem:[%s14242_s6 + $0x180] sm:$0xff]  ;;  %v6876_v33 = vld [vmem:[%s14242_s6 + $0x188] sm:$0xff] }
 0x205   : > { %v1048_v58 = vadd.f32 %v1047_v2, %v1013_v44  ;;  %v8333_v44 = vpack.c.bf16 %v6876_v33, %v6875_v38  ;;  %v14444_v2 = vmov 0.0|0.0   ;;  %v6885_v33 = vld [vmem:[%s14242_s6 + $0x1d0] sm:$0xff] }
 0x207   : > { %v1049_v61 = vadd.f32 %v1048_v58, %v1014_v32  ;;  %8334 = vmatpush1.bf16.msra.mxu0 %v8333_v44  ;;  %v6877_v32 = vld [vmem:[%s14242_s6 + $0x190] sm:$0xff]  ;;  %v6879_v58 = vld [vmem:[%s14242_s6 + $0x1a0] sm:$0xff]  ;;  %v6886_v44 = vld [vmem:[%s14242_s6 + $0x1d8] sm:$0xff] }
 0x208   : > { %8335 = vmatprep.subr.bf16.mxu0 %v14444_v2 }
 0x209   : > { %v1050_v13 = vadd.f32 %v1049_v61, %v1015_v45  ;;  %v6880_v45 = vld [vmem:[%s14242_s6 + $0x1a8] sm:$0xff] }
 0x20a   : > { %v8339_v61 = vpack.c.bf16 %v6880_v45, %v6879_v58  ;;  %v6889_v45 = vld [vmem:[%s14242_s6 + $0x1f0] sm:$0xff] }
 0x20b   : > { %v1051_v52 = vrot.slane %v1050_v13, 4 }
 0x20d   : > { %v1052_v60 = vadd.f32 %v1051_v52, %v1050_v13  ;;  %v6881_v13 = vld [vmem:[%s14242_s6 + $0x1b0] sm:$0xff]  ;;  %v6882_v52 = vld [vmem:[%s14242_s6 + $0x1b8] sm:$0xff] }
 0x20f   : > { %v1053_v15 = vrot.slane %v1052_v60, 2 }
 0x211   : > { %v1054_v31 = vadd.f32 %v1053_v15, %v1052_v60  ;;  %v6878_v15 = vld [vmem:[%s14242_s6 + $0x198] sm:$0xff] }
 0x212   : > { %v8336_v60 = vpack.c.bf16 %v6878_v15, %v6877_v32  ;;  %v8348_v32 = vpack.c.bf16 %v6886_v44, %v6885_v33  ;;  %v6887_v15 = vld [vmem:[%s14242_s6 + $0x1e0] sm:$0xff]  ;;  %v6909_v44 = vld [vmem:[%s14242_s6 + $0x290] sm:$0xff] }
 0x213   : > { %v1055_v53 = vrot.slane %v1054_v31, 1 }
 0x214   : > { %8337 = vmatpush1.bf16.msra.mxu0 %v8336_v60  ;;  %v6888_v60 = vld [vmem:[%s14242_s6 + $0x1e8] sm:$0xff] }
 0x215   : > { %v1056_v54 = vadd.f32 %v1055_v53, %v1054_v31  ;;  %8338 = vmatprep.subr.bf16.mxu0 %v14444_v2  ;;  %v8342_v31 = vpack.c.bf16 %v6882_v52, %v6881_v13  ;;  %v6883_v53 = vld [vmem:[%s14242_s6 + $0x1c0] sm:$0xff]  ;;  %v8351_v58 = vpack.c.bf16 %v6888_v60, %v6887_v15  ;;  %v6893_v15 = vld [vmem:[%s14242_s6 + $0x210] sm:$0xff] }
 0x216   : > { %v6907_v52 = vld [vmem:[%s14242_s6 + $0x280] sm:$0xff] }
 0x217   : > { %7610 = vmatmul.mubr.f32.vlgmr.msra.gmra.mrb[0].mxu1 %v1056_v54  ;;  %v6884_v54 = vld [vmem:[%s14242_s6 + $0x1c8] sm:$0xff] }
 0x218   : > { %8340 = vmatpush1.bf16.msra.mxu0 %v8339_v61  ;;  %v8345_v38 = vpack.c.bf16 %v6884_v54, %v6883_v53  ;;  %v6890_v61 = vld [vmem:[%s14242_s6 + $0x1f8] sm:$0xff]  ;;  %v6891_v53 = vld [vmem:[%s14242_s6 + $0x200] sm:$0xff] }
 0x219   : > { %8341 = vmatprep.subr.bf16.mxu0 %v14444_v2  ;;  %v8354_v13 = vpack.c.bf16 %v6890_v61, %v6889_v45  ;;  %v6911_v61 = vld [vmem:[%s14242_s6 + $0x2a0] sm:$0xff] }
 0x21c   : > { %8343 = vmatpush1.bf16.msra.mxu0 %v8342_v31  ;;  %v6908_v31 = vld [vmem:[%s14242_s6 + $0x288] sm:$0xff] }
 0x21d   : > { %8344 = vmatprep.subr.bf16.mxu0 %v14444_v2  ;;  %v8380_v54 = vpack.c.bf16 %v6908_v31, %v6907_v52  ;;  %v6895_v52 = vld [vmem:[%s14242_s6 + $0x220] sm:$0xff] }
 0x21f   : > { %8381 = vmatprep.subr.bf16.mxu1 %v8380_v54 }
 0x220   : > { %8346 = vmatpush1.bf16.msra.mxu0 %v8345_v38  ;;  %v6892_v38 = vld [vmem:[%s14242_s6 + $0x208] sm:$0xff]  ;;  %8383 = vmatpush3.bf16.msra.mxu1 %v8380_v54 }
 0x221   : > { %8347 = vmatprep.subr.bf16.mxu0 %v14444_v2  ;;  %v8357_v33 = vpack.c.bf16 %v6892_v38, %v6891_v53  ;;  %v6896_v53 = vld [vmem:[%s14242_s6 + $0x228] sm:$0xff]  ;;  %v6913_v38 = vld [vmem:[%s14242_s6 + $0x2b0] sm:$0xff] }
 0x222   : > { %v8363_v54 = vpack.c.bf16 %v6896_v53, %v6895_v52  ;;  %v6900_v52 = vld [vmem:[%s14242_s6 + $0x248] sm:$0xff]  ;;  %v6917_v53 = vld [vmem:[%s14242_s6 + $0x2d0] sm:$0xff] }
 0x224   : > { %8349 = vmatpush1.bf16.msra.mxu0 %v8348_v32  ;;  %v6910_v32 = vld [vmem:[%s14242_s6 + $0x298] sm:$0xff] }
 0x225   : > { %8350 = vmatprep.subr.bf16.mxu0 %v14444_v2  ;;  %v8384_v60 = vpack.c.bf16 %v6910_v32, %v6909_v44  ;;  %v6897_v44 = vld [vmem:[%s14242_s6 + $0x230] sm:$0xff] }
 0x227   : > { %8385 = vmatprep.subr.bf16.mxu1 %v8384_v60 }
 0x228   : > { %8352 = vmatpush1.bf16.msra.mxu0 %v8351_v58  ;;  %v6894_v58 = vld [vmem:[%s14242_s6 + $0x218] sm:$0xff]  ;;  %8387 = vmatpush3.bf16.msra.mxu1 %v8384_v60 }
 0x229   : > { %8353 = vmatprep.subr.bf16.mxu0 %v14444_v2  ;;  %v8360_v45 = vpack.c.bf16 %v6894_v58, %v6893_v15  ;;  %v6898_v15 = vld [vmem:[%s14242_s6 + $0x238] sm:$0xff]  ;;  %v6915_v58 = vld [vmem:[%s14242_s6 + $0x2c0] sm:$0xff] }
 0x22a   : > { %v8366_v60 = vpack.c.bf16 %v6898_v15, %v6897_v44 }
 0x22c   : > { %8355 = vmatpush1.bf16.msra.mxu0 %v8354_v13  ;;  %v6912_v13 = vld [vmem:[%s14242_s6 + $0x2a8] sm:$0xff] }
 0x22d   : > { %8356 = vmatprep.subr.bf16.mxu0 %v14444_v2  ;;  %v8388_v31 = vpack.c.bf16 %v6912_v13, %v6911_v61  ;;  %v6899_v61 = vld [vmem:[%s14242_s6 + $0x240] sm:$0xff] }
 0x22f   : > { %8389 = vmatprep.subr.bf16.mxu1 %v8388_v31 }
 0x230   : > { %8358 = vmatpush1.bf16.msra.mxu0 %v8357_v33  ;;  %8391 = vmatpush3.bf16.msra.mxu1 %v8388_v31  ;;  %v6914_v33 = vld [vmem:[%s14242_s6 + $0x2b8] sm:$0xff]  ;;  %v8369_v31 = vpack.c.bf16 %v6900_v52, %v6899_v61  ;;  %v6903_v61 = vld [vmem:[%s14242_s6 + $0x260] sm:$0xff]  ;;  %v6904_v52 = vld [vmem:[%s14242_s6 + $0x268] sm:$0xff] }
 0x231   : > { %8359 = vmatprep.subr.bf16.mxu0 %v14444_v2  ;;  %v8392_v32 = vpack.c.bf16 %v6914_v33, %v6913_v38  ;;  %v6901_v38 = vld [vmem:[%s14242_s6 + $0x250] sm:$0xff] }
 0x233   : > { %8393 = vmatprep.subr.bf16.mxu1 %v8392_v32 }
 0x234   : > { %8361 = vmatpush1.bf16.msra.mxu0 %v8360_v45  ;;  %8395 = vmatpush3.bf16.msra.mxu1 %v8392_v32  ;;  %v6916_v45 = vld [vmem:[%s14242_s6 + $0x2c8] sm:$0xff]  ;;  %v6902_v32 = vld [vmem:[%s14242_s6 + $0x258] sm:$0xff] }
 0x235   : > { %8362 = vmatprep.subr.bf16.mxu0 %v14444_v2  ;;  %v8396_v13 = vpack.c.bf16 %v6916_v45, %v6915_v58  ;;  %v6919_v58 = vld [vmem:[%s14242_s6 + $0x2e0] sm:$0xff]  ;;  %v6920_v45 = vld [vmem:[%s14242_s6 + $0x2e8] sm:$0xff] }
 0x237   : > { %8397 = vmatprep.subr.bf16.mxu1 %v8396_v13 }
 0x238   : > { %8364 = vmatpush1.bf16.msra.mxu0 %v8363_v54  ;;  %8399 = vmatpush3.bf16.msra.mxu1 %v8396_v13  ;;  %v6918_v54 = vld [vmem:[%s14242_s6 + $0x2d8] sm:$0xff]  ;;  %v8404_v13 = vpack.c.bf16 %v6920_v45, %v6919_v58 }
 0x239   : > { %8365 = vmatprep.subr.bf16.mxu0 %v14444_v2  ;;  %v8400_v44 = vpack.c.bf16 %v6918_v54, %v6917_v53  ;;  %v6921_v53 = vld [vmem:[%s14242_s6 + $0x2f0] sm:$0xff]  ;;  %v6922_v54 = vld [vmem:[%s14242_s6 + $0x2f8] sm:$0xff] }
 0x23b   : > { %8401 = vmatprep.subr.bf16.mxu1 %v8400_v44 }
 0x23c   : > { %8367 = vmatpush1.bf16.msra.mxu0 %v8366_v60  ;;  %v8372_v60 = vpack.c.bf16 %v6902_v32, %v6901_v38  ;;  %8403 = vmatpush3.bf16.msra.mxu1 %v8400_v44  ;;  %v6905_v38 = vld [vmem:[%s14242_s6 + $0x270] sm:$0xff]  ;;  %v8408_v32 = vpack.c.bf16 %v6922_v54, %v6921_v53 }
 0x23d   : > { %8368 = vmatprep.subr.bf16.mxu0 %v14444_v2  ;;  %8405 = vmatprep.subr.bf16.mxu1 %v8404_v13 }
 0x240   : > { %8370 = vmatpush1.bf16.msra.mxu0 %v8369_v31  ;;  %v8375_v31 = vpack.c.bf16 %v6904_v52, %v6903_v61  ;;  %8407 = vmatpush3.bf16.msra.mxu1 %v8404_v13 }
 0x241   : > { %8371 = vmatprep.subr.bf16.mxu0 %v14444_v2  ;;  %8409 = vmatprep.subr.bf16.mxu1 %v8408_v32 }
 0x244   : > { %8373 = vmatpush1.bf16.msra.mxu0 %v8372_v60  ;;  %8411 = vmatpush3.bf16.msra.mxu1 %v8408_v32 }
 0x245   : > { %8374 = vmatprep.subr.bf16.mxu0 %v14444_v2  ;;  %8412 = vmatprep.subr.bf16.mxu1 %v14444_v2 }
 0x248   : > { %8376 = vmatpush1.bf16.msra.mxu0 %v8375_v31 }
 0x249   : > { %8377 = vmatprep.subr.bf16.mxu0 %v14444_v2 }
 0x2ea   : > { %v1123_v33 = vpop.f32.mrb[0].mxu1 }
 0x2eb   : > { %v7611_v15 = vpop.f32.mrb[1].mxu1  ;;  %v1127_v44 = vmul.f32 0.00390625, %v1123_v33 }
 0x2ec   : > { %v6906_v15 = vld [vmem:[%s14242_s6 + $0x278] sm:$0xff] }
 0x2ed   : > { %v8378_v60 = vpack.c.bf16 %v6906_v15, %v6905_v38  ;;  %v1128_v58 = vadd.f32 1e-05, %v1127_v44 }
 0x2ef   : > { %8379 = vmatpush1.bf16.msra.mxu0 %v8378_v60  ;;  %8923 = vrsqrt.f32 %v1128_v58 }
 0x2f9   : > { %v8924_v45 = vpop.eup %8923 }
 0x2fa   : > { %v1133_v33 = vrot.slane %v8924_v45, %v9758_v43 }
 0x2fc   : > { %v1134_v61 = vmul.f32 %v1133_v33, %v9770_v59  ;;  %v1135_v52 = vmul.f32 %v1133_v33, %v9773_v29  ;;  %v1136_v13 = vmul.f32 %v1133_v33, %v9780_v6  ;;  %v1137_v31 = vmul.f32 %v1133_v33, %v9789_v40  ;;  %v10188_v59 = vld [vmem:[%s14240_s4] ss:$0 sm:$0xff] }
 0x2fd   : > { %v1138_v53 = vmul.f32 %v1133_v33, %v9794_v17  ;;  %v1139_v54 = vmul.f32 %v1133_v33, %v9801_v26  ;;  %v1140_v38 = vmul.f32 %v1133_v33, %v9808_v36  ;;  %v1141_v44 = vmul.f32 %v1133_v33, %v9815_v23 }
 0x2fe   : > { %v1142_v32 = vmul.f32 %v1133_v33, %v9822_v9  ;;  %v1143_v29 = vmul.f32 %v1133_v33, %v9829_v46  ;;  %v1144_v6 = vmul.f32 %v1133_v33, %v9836_v22  ;;  %v1145_v40 = vmul.f32 %v1133_v33, %v9843_v56 }
 0x2ff   : > { %v1146_v17 = vmul.f32 %v1133_v33, %v9850_v10  ;;  %v1147_v26 = vmul.f32 %v1133_v33, %v9857_v21  ;;  %v1148_v36 = vmul.f32 %v1133_v33, %v9864_v62  ;;  %v1149_v23 = vmul.f32 %v1133_v33, %v9871_v49  ;;  %v10217_v49 = vld [vmem:[%s14241_s5] ss:$0 sm:$0xff] }
 0x300   : > { %v1150_v9 = vmul.f32 %v1133_v33, %v9878_v16  ;;  %v1151_v15 = vmul.f32 %v1133_v33, %v9885_v7  ;;  %v10200_v60 = vmul.f32 %v1133_v33, %v9892_v14  ;;  %v10203_v46 = vmul.f32 %v1133_v33, %v9899_v3 }
 0x301   : > { %v10206_v22 = vmul.f32 %v1133_v33, %v9906_v25  ;;  %v10209_v56 = vmul.f32 %v1133_v33, %v9913_v18  ;;  %v1177_v10 = vmul.f32 %v10188_v59, %v1134_v61  ;;  %v1178_v21 = vmul.f32 %v10188_v59, %v1135_v52 }
 0x302   : > { %v1179_v62 = vmul.f32 %v10188_v59, %v1136_v13  ;;  %v10220_v16 = vmul.f32 %v1133_v33, %v9920_v24  ;;  %v10223_v7 = vmul.f32 %v1133_v33, %v9927_v34  ;;  %v10226_v14 = vmul.f32 %v1133_v33, %v9934_v41 }
 0x303   : > { %v1180_v3 = vmul.f32 %v10188_v59, %v1137_v31  ;;  %v10230_v25 = vmul.f32 %v1133_v33, %v9941_v51  ;;  %v10233_v18 = vmul.f32 %v1133_v33, %v9948_v57  ;;  %v10236_v58 = vmul.f32 %v1133_v33, %v9955_v30 }
 0x304   : > { %v1181_v24 = vmul.f32 %v10188_v59, %v1138_v53  ;;  %v10240_v45 = vmul.f32 %v1133_v33, %v9962_v39  ;;  %v10243_v34 = vmul.f32 %v1133_v33, %v9969_v1  ;;  %v10246_v41 = vmul.f32 %v1133_v33, %v9976_v8 }
 0x305   : > { %v1182_v51 = vmul.f32 %v10188_v59, %v1139_v54  ;;  %v1183_v61 = vmul.f32 %v10188_v59, %v1140_v38  ;;  %v10251_v57 = vadd.f32 %v10217_v49, %v1177_v10  ;;  %v10254_v30 = vadd.f32 %v10217_v49, %v1178_v21 }
 0x306   : > { %v10257_v52 = vadd.f32 %v10217_v49, %v1179_v62  ;;  %v10260_v39 = vmul.f32 %v1133_v33, %v9983_v55  ;;  %v10263_v1 = vmul.f32 %v1133_v33, %v9990_v42  ;;  %v1184_v8 = vmul.f32 %v10188_v59, %v1141_v44 }
 0x307   : > { %v10267_v13 = vadd.f32 %v10217_v49, %v1180_v3  ;;  %v10270_v31 = vmul.f32 %v1133_v33, %v9997_v47  ;;  %v10273_v53 = vmul.f32 %v1133_v33, %v10002_v35  ;;  %v1185_v54 = vmul.f32 %v10188_v59, %v1142_v32 }
 0x308   : > { %v10277_v38 = vadd.f32 %v10217_v49, %v1181_v24  ;;  %v10280_v55 = vmul.f32 %v1133_v33, %v10007_v50  ;;  %v1186_v42 = vmul.f32 %v10188_v59, %v1143_v29  ;;  %v1187_v44 = vmul.f32 %v10188_v59, %v1144_v6 }
 0x309   : > { %v10285_v10 = vadd.f32 %v10217_v49, %v1182_v51  ;;  %v10288_v47 = vadd.f32 %v10217_v49, %v1183_v61  ;;  %v6839_v35 = vmul.f32 -1.442695, %v10251_v57  ;;  %v6840_v32 = vmul.f32 -1.442695, %v10254_v30 }
 0x30a   : > { %v6841_v21 = vmul.f32 -1.442695, %v10257_v52  ;;  %v1188_v62 = vmul.f32 %v10188_v59, %v1145_v40  ;;  %v1189_v50 = vmul.f32 %v10188_v59, %v1146_v17  ;;  %v10296_v33 = vadd.f32 %v10217_v49, %v1184_v8 }
 0x30b   : > { %v6842_v29 = vmul.f32 -1.442695, %v10267_v13  ;;  %v1190_v6 = vmul.f32 %v10188_v59, %v1147_v26  ;;  %v10301_v3 = vadd.f32 %v10217_v49, %v1185_v54  ;;  %8925 = vpow2.f32 %v6839_v35 }
 0x30c   : > { %v6843_v24 = vmul.f32 -1.442695, %v10277_v38  ;;  %v1191_v51 = vmul.f32 %v10188_v59, %v1148_v36  ;;  %v10306_v61 = vadd.f32 %v10217_v49, %v1186_v42  ;;  %8927 = vpow2.f32 %v6840_v32 }
 0x30d   : > { %v6844_v40 = vmul.f32 -1.442695, %v10285_v10  ;;  %v1192_v17 = vmul.f32 %v10188_v59, %v1149_v23  ;;  %v10311_v8 = vadd.f32 %v10217_v49, %v1187_v44  ;;  %8929 = vpow2.f32 %v6841_v21 }
 0x30e   : > { %v6845_v26 = vmul.f32 -1.442695, %v10288_v47  ;;  %v1193_v54 = vmul.f32 %v10188_v59, %v1150_v9  ;;  %v10316_v35 = vadd.f32 %v10217_v49, %v1188_v62  ;;  %8931 = vpow2.f32 %v6842_v29 }
 0x30f   : > { %v6846_v36 = vmul.f32 -1.442695, %v10296_v33  ;;  %v1194_v42 = vmul.f32 %v10188_v59, %v1151_v15  ;;  %v10321_v32 = vadd.f32 %v10217_v49, %v1189_v50  ;;  %8933 = vpow2.f32 %v6843_v24 }
 0x310   : > { %v6847_v23 = vmul.f32 -1.442695, %v10301_v3  ;;  %v1195_v44 = vmul.f32 %v10188_v59, %v10200_v60  ;;  %v10327_v21 = vadd.f32 %v10217_v49, %v1190_v6  ;;  %8935 = vpow2.f32 %v6844_v40 }
 0x311   : > { %v6848_v9 = vmul.f32 -1.442695, %v10306_v61  ;;  %v1196_v62 = vmul.f32 %v10188_v59, %v10203_v46  ;;  %v10333_v15 = vadd.f32 %v10217_v49, %v1191_v51  ;;  %8937 = vpow2.f32 %v6845_v26 }
 0x312   : > { %v6849_v50 = vmul.f32 -1.442695, %v10311_v8  ;;  %v1197_v29 = vmul.f32 %v10188_v59, %v10206_v22  ;;  %v10339_v60 = vadd.f32 %v10217_v49, %v1192_v17  ;;  %8939 = vpow2.f32 %v6846_v36 }
 0x313   : > { %14445 = vst [vmem:[#allocation19_spill] sm:$0xff] %v10333_v15  ;;  %v6850_v6 = vmul.f32 -1.442695, %v10316_v35  ;;  %v1198_v24 = vmul.f32 %v10188_v59, %v10209_v56  ;;  %v10345_v46 = vadd.f32 %v10217_v49, %v1193_v54  ;;  %8941 = vpow2.f32 %v6847_v23 }
 0x314   : > { %14446 = vst [vmem:[#allocation20_spill] sm:$0xff] %v10339_v60  ;;  %v6851_v51 = vmul.f32 -1.442695, %v10321_v32  ;;  %v1199_v40 = vmul.f32 %v10188_v59, %v10220_v16  ;;  %v10351_v22 = vadd.f32 %v10217_v49, %v1194_v42  ;;  %8943 = vpow2.f32 %v6848_v9  ;;  %v1720_v16 = vld [vmem:[%s14242_s6 + $0x100] sm:$0xff] }
 0x315   : > { %14447 = vst [vmem:[#allocation23_spill] sm:$0xff] %v10345_v46  ;;  %v6852_v17 = vmul.f32 -1.442695, %v10327_v21  ;;  %v10354_v26 = vpop.eup %8925  ;;  %v1200_v56 = vmul.f32 %v10188_v59, %v10223_v7  ;;  %v10359_v54 = vadd.f32 %v10217_v49, %v1195_v44  ;;  %8945 = vpow2.f32 %v6849_v50  ;;  %v1721_v44 = vld [vmem:[%s14242_s6 + $0x108] sm:$0xff] }
 0x316   : > { %14448 = vst [vmem:[#allocation24_spill] sm:$0xff] %v10351_v22  ;;  %v6853_v36 = vmul.f32 -1.442695, %v10333_v15  ;;  %v10365_v42 = vpop.eup %8927  ;;  %v1201_v23 = vmul.f32 %v10188_v59, %v10226_v14  ;;  %v10370_v9 = vadd.f32 %v10217_v49, %v1196_v62  ;;  %8947 = vpow2.f32 %v6850_v6 }
 0x317   : > { %14449 = vst [vmem:[#allocation27_spill] sm:$0xff] %v10359_v54  ;;  %v6854_v7 = vmul.f32 -1.442695, %v10339_v60  ;;  %v10376_v50 = vpop.eup %8929  ;;  %v10379_v43 = vadd.f32 %v10217_v49, %v1197_v29  ;;  %8949 = vpow2.f32 %v6851_v51  ;;  %v6855_v48 = vmul.f32 -1.442695, %v10345_v46 }
 0x318   : > { %14450 = vst [vmem:[#allocation28_spill] sm:$0xff] %v10370_v9  ;;  %v10382_v2 = vpack.c.bf16 %v1721_v44, %v1720_v16  ;;  %v10384_v14 = vpop.eup %8931  ;;  %v1202_v62 = vmul.f32 %v10188_v59, %v10230_v25  ;;  %v10389_v6 = vadd.f32 %v10217_v49, %v1198_v24  ;;  %8951 = vpow2.f32 %v6852_v17 }
 0x319   : > { %14451 = vst [vmem:[#allocation31_spill] sm:$0xff] %v10379_v43  ;;  %v6856_v60 = vmul.f32 -1.442695, %v10351_v22  ;;  %v10392_v15 = vpop.eup %8933  ;;  %v1203_v29 = vmul.f32 %v10188_v59, %v10233_v18  ;;  %v10397_v51 = vadd.f32 %v10217_v49, %v1199_v40  ;;  %8953 = vpow2.f32 %v6853_v36 }
 0x31a   : > { %14452 = vst [vmem:[#allocation32_spill] sm:$0xff] %v10389_v6  ;;  %v6857_v16 = vmul.f32 -1.442695, %v10359_v54  ;;  %8461 = vmatprep.subr.bf16.mxu0 %v10382_v2  ;;  %v10401_v25 = vpop.eup %8935  ;;  %v1204_v24 = vmul.f32 %v10188_v59, %v10236_v58  ;;  %v10406_v17 = vadd.f32 %v10217_v49, %v1200_v56  ;;  %8955 = vpow2.f32 %v6854_v7 }
 0x31b   : > { %14453 = vst [vmem:[#allocation35_spill] sm:$0xff] %v10397_v51  ;;  %v6858_v44 = vmul.f32 -1.442695, %v10370_v9  ;;  %v10409_v18 = vpop.eup %8937  ;;  %v1205_v40 = vmul.f32 %v10188_v59, %v10240_v45  ;;  %v10414_v36 = vadd.f32 %v10217_v49, %v1201_v23  ;;  %8957 = vpow2.f32 %v6855_v48 }
 0x31c   : > { %14454 = vst [vmem:[#allocation36_spill] sm:$0xff] %v10406_v17  ;;  %v6859_v54 = vmul.f32 -1.442695, %v10379_v43  ;;  %v10417_v22 = vpop.eup %8939  ;;  %v1206_v58 = vmul.f32 %v10188_v59, %v10243_v34  ;;  %v10422_v56 = vadd.f32 %v10217_v49, %v1202_v62  ;;  %8959 = vpow2.f32 %v6856_v60 }
 0x31d   : > { %14455 = vst [vmem:[#allocation40_spill] sm:$0xff] %v10414_v36  ;;  %v6860_v7 = vmul.f32 -1.442695, %v10389_v6  ;;  %v10425_v9 = vpop.eup %8941  ;;  %v1207_v45 = vmul.f32 %v10188_v59, %v10246_v41  ;;  %v10430_v48 = vadd.f32 %v10217_v49, %v1203_v29  ;;  %8961 = vpow2.f32 %v6857_v16 }
 0x31e   : > { %14456 = vst [vmem:[#allocation41_spill] sm:$0xff] %v10422_v56  ;;  %v6861_v23 = vmul.f32 -1.442695, %v10397_v51  ;;  %v10433_v43 = vpop.eup %8943  ;;  %v1208_v34 = vmul.f32 %v10188_v59, %v10260_v39  ;;  %v10438_v60 = vadd.f32 %v10217_v49, %v1204_v24  ;;  %8963 = vpow2.f32 %v6858_v44 }
 0x31f   : > { %14457 = vst [vmem:[#allocation42_spill] sm:$0xff] %v10430_v48  ;;  %v6862_v62 = vmul.f32 -1.442695, %v10406_v17  ;;  %v10441_v6 = vpop.eup %8945  ;;  %v1209_v41 = vmul.f32 %v10188_v59, %v10263_v1  ;;  %v10446_v29 = vadd.f32 %v10217_v49, %v1205_v40  ;;  %8965 = vpow2.f32 %v6859_v54 }
 0x320   : > { %14458 = vst [vmem:[#allocation43_spill] sm:$0xff] %v10438_v60  ;;  %v6863_v16 = vmul.f32 -1.442695, %v10414_v36  ;;  %v10449_v51 = vpop.eup %8947  ;;  %v1210_v39 = vmul.f32 %v10188_v59, %v10270_v31  ;;  %v10454_v24 = vadd.f32 %v10217_v49, %v1206_v58  ;;  %8967 = vpow2.f32 %v6860_v7 }
 0x321   : > { %14459 = vst [vmem:[#allocation44_spill] sm:$0xff] %v10446_v29  ;;  %v6864_v44 = vmul.f32 -1.442695, %v10422_v56  ;;  %v10457_v17 = vpop.eup %8949  ;;  %v1211_v1 = vmul.f32 %v10188_v59, %v10273_v53  ;;  %v10462_v54 = vadd.f32 %v10217_v49, %v1207_v45  ;;  %8969 = vpow2.f32 %v6861_v23 }
 0x322   : > { %14460 = vst [vmem:[#allocation45_spill] sm:$0xff] %v10454_v24  ;;  %v6865_v40 = vmul.f32 -1.442695, %v10430_v48  ;;  %v10465_v36 = vpop.eup %8951  ;;  %v1212_v31 = vmul.f32 %v10188_v59, %v10280_v55  ;;  %v10470_v58 = vadd.f32 %v10217_v49, %v1208_v34  ;;  %8971 = vpow2.f32 %v6862_v62 }
 0x323   : > { %14461 = vst [vmem:[#allocation46_spill] sm:$0xff] %v10462_v54  ;;  %v6866_v7 = vmul.f32 -1.442695, %v10438_v60  ;;  %v10473_v56 = vpop.eup %8953  ;;  %v10476_v53 = vadd.f32 %v10217_v49, %v1209_v41  ;;  %8973 = vpow2.f32 %v6863_v16  ;;  %v6867_v45 = vmul.f32 -1.442695, %v10446_v29 }
 0x324   : > { %14462 = vst [vmem:[#allocation47_spill] sm:$0xff] %v10470_v58  ;;  %v10479_v23 = vpop.eup %8955  ;;  %v10482_v48 = vadd.f32 %v10217_v49, %v1210_v39  ;;  %8975 = vpow2.f32 %v6864_v44  ;;  %v6868_v59 = vmul.f32 -1.442695, %v10454_v24  ;;  %v10488_v34 = vadd.f32 %v10217_v49, %v1211_v1 }
 0x325   : > { %14463 = vst [vmem:[#allocation48_spill] sm:$0xff] %v10476_v53  ;;  %v10485_v55 = vpop.eup %8957  ;;  %8977 = vpow2.f32 %v6865_v40  ;;  %v6869_v62 = vmul.f32 -1.442695, %v10462_v54  ;;  %v10494_v16 = vadd.f32 %v10217_v49, %v1212_v31  ;;  %v6870_v39 = vmul.f32 -1.442695, %v10470_v58  ;;  %v1723_v58 = vld [vmem:[%s14242_s6 + $0x118] sm:$0xff] }
 0x326   : > { %14464 = vst [vmem:[#allocation49_spill] sm:$0xff] %v10482_v48  ;;  %14465 = vst [vmem:[#allocation50_spill] sm:$0xff] %v10488_v34  ;;  %v10491_v41 = vpop.eup %8959  ;;  %8979 = vpow2.f32 %v6866_v7  ;;  %v6871_v44 = vmul.f32 -1.442695, %v10476_v53  ;;  %v6872_v1 = vmul.f32 -1.442695, %v10482_v48 }
 0x327   : > { %14466 = vst [vmem:[#allocation51_spill] sm:$0xff] %v10494_v16  ;;  %v10497_v29 = vpop.eup %8961  ;;  %8981 = vpow2.f32 %v6867_v45  ;;  %v6873_v54 = vmul.f32 -1.442695, %v10488_v34  ;;  %v6874_v31 = vmul.f32 -1.442695, %v10494_v16  ;;  %v1364_v45 = vadd.f32 1.0, %v10354_v26 }
 0x328   : > { %v10500_v24 = vpop.eup %8963  ;;  %8983 = vpow2.f32 %v6868_v59  ;;  %v1365_v59 = vadd.f32 1.0, %v10365_v42 }
 0x329   : > { %v10503_v40 = vpop.eup %8965  ;;  %8985 = vpow2.f32 %v6869_v62  ;;  %v1366_v62 = vadd.f32 1.0, %v10376_v50 }
 0x32a   : > { %v10506_v49 = vpop.eup %8967  ;;  %8987 = vpow2.f32 %v6870_v39  ;;  %v1367_v39 = vadd.f32 1.0, %v10384_v14 }
 0x32b   : > { %v10509_v7 = vpop.eup %8969  ;;  %8989 = vpow2.f32 %v6871_v44  ;;  %v1368_v44 = vadd.f32 1.0, %v10392_v15  ;;  %v1372_v15 = vadd.f32 1.0, %v10425_v9  ;;  %v10550_v9 = vld [vmem:[%s14242_s6 + $0x8] sm:$0xff] }
 0x32c   : > { %v10512_v53 = vpop.eup %8971  ;;  %8991 = vpow2.f32 %v6872_v1  ;;  %v1369_v1 = vadd.f32 1.0, %v10401_v25  ;;  %v1373_v25 = vadd.f32 1.0, %v10433_v43  ;;  %v10555_v43 = vld [vmem:[%s14242_s6 + $0x10] sm:$0xff] }
 0x32d   : > { %v10515_v48 = vpop.eup %8973  ;;  %8993 = vpow2.f32 %v6873_v54  ;;  %v1370_v54 = vadd.f32 1.0, %v10409_v18  ;;  %v1374_v18 = vadd.f32 1.0, %v10441_v6  ;;  %14470 = vst [vmem:[#allocation55_spill] sm:$0xff] %v10555_v43  ;;  %v1375_v6 = vadd.f32 1.0, %v10449_v51 }
 0x32e   : > { %v10518_v34 = vpop.eup %8975  ;;  %8995 = vpow2.f32 %v6874_v31  ;;  %v1371_v31 = vadd.f32 1.0, %v10417_v22  ;;  %v10545_v22 = vld [vmem:[%s14242_s6] sm:$0xff]  ;;  %v1376_v51 = vadd.f32 1.0, %v10457_v17  ;;  %v1378_v17 = vadd.f32 1.0, %v10473_v56 }
 0x32f   : > { %v10521_v16 = vpop.eup %8977  ;;  %8997 = vrcp.f32 %v1364_v45  ;;  %v1381_v56 = vadd.f32 1.0, %v10491_v41  ;;  %v1382_v43 = vadd.f32 1.0, %v10497_v29 }
 0x330   : > { %v10524_v26 = vpop.eup %8979  ;;  %8999 = vrcp.f32 %v1365_v59 }
 0x331   : > { %v10527_v42 = vpop.eup %8981  ;;  %9001 = vrcp.f32 %v1366_v62 }
 0x332   : > { %v10530_v50 = vpop.eup %8983  ;;  %9003 = vrcp.f32 %v1367_v39  ;;  %v10563_v39 = vld [vmem:[%s14242_s6 + $0x18] sm:$0xff] }
 0x333   : > { %v10533_v14 = vpop.eup %8985  ;;  %9005 = vrcp.f32 %v1368_v44  ;;  %v10568_v44 = vld [vmem:[%s14242_s6 + $0x20] sm:$0xff] }
 0x334   : > { %14467 = vst [vmem:[#allocation52_spill] sm:$0xff] %v10533_v14  ;;  %v10536_v45 = vpop.eup %8987  ;;  %9007 = vrcp.f32 %v1369_v1  ;;  %v10573_v1 = vld [vmem:[%s14242_s6 + $0x28] sm:$0xff]  ;;  %v1379_v14 = vadd.f32 1.0, %v10479_v23 }
 0x335   : > { %14468 = vst [vmem:[#allocation53_spill] sm:$0xff] %v10536_v45  ;;  %v10539_v59 = vpop.eup %8989  ;;  %9009 = vrcp.f32 %v1370_v54 }
 0x336   : > { %14469 = vst [vmem:[#allocation54_spill] sm:$0xff] %v10539_v59  ;;  %v10557_v62 = vpop.eup %8991  ;;  %9011 = vrcp.f32 %v1371_v31  ;;  %v1722_v31 = vld [vmem:[%s14242_s6 + $0x110] sm:$0xff]  ;;  %v1380_v59 = vadd.f32 1.0, %v10485_v55 }
 0x337   : > { %14471 = vst [vmem:[#allocation56_spill] sm:$0xff] %v10557_v62  ;;  %v10575_v54 = vpop.eup %8993  ;;  %9013 = vrcp.f32 %v1372_v15  ;;  %v1377_v62 = vadd.f32 1.0, %v10465_v36 }
 0x338   : > { %14472 = vst [vmem:[#allocation57_spill] sm:$0xff] %v10575_v54  ;;  %v10584_v60 = vpop.eup %8995  ;;  %9015 = vrcp.f32 %v1373_v25  ;;  %v10596_v25 = vpack.c.bf16 %v1723_v58, %v1722_v31 }
 0x339   : > { %14473 = vst [vmem:[#allocation58_spill] sm:$0xff] %v10584_v60  ;;  %v8998_v54 = vpop.eup %8997  ;;  %9017 = vrcp.f32 %v1374_v18 }
 0x33a   : > { %v9000_v45 = vpop.eup %8999  ;;  %9019 = vrcp.f32 %v1375_v6  ;;  %v1472_v36 = vmul.f32 %v8998_v54, %v10251_v57  ;;  %v1383_v57 = vadd.f32 1.0, %v10500_v24  ;;  %v1388_v54 = vadd.f32 1.0, %v10515_v48  ;;  %v1725_v48 = vld [vmem:[%s14242_s6 + $0x128] sm:$0xff] }
 0x33b   : > { %v9002_v60 = vpop.eup %9001  ;;  %9021 = vrcp.f32 %v1376_v51  ;;  %v1473_v18 = vmul.f32 %v9000_v45, %v10254_v30  ;;  %v1384_v30 = vadd.f32 1.0, %v10503_v40 }
 0x33c   : > { %v9004_v15 = vpop.eup %9003  ;;  %9023 = vrcp.f32 %v1377_v62  ;;  %v1474_v46 = vmul.f32 %v9002_v60, %v10257_v52  ;;  %v1508_v23 = vmul.f32 %v1472_v36, %v9508_v0  ;;  %v1385_v60 = vadd.f32 1.0, %v10506_v49 }
 0x33d   : > { %v9006_v6 = vpop.eup %9005  ;;  %9025 = vrcp.f32 %v1378_v17  ;;  %v1475_v58 = vmul.f32 %v9004_v15, %v10267_v13  ;;  %v10607_v55 = vmul.f32 %v1473_v18, %v9515_v5  ;;  %v1390_v15 = vadd.f32 1.0, %v10521_v16 }
 0x33e   : > { %v9008_v41 = vpop.eup %9007  ;;  %9027 = vrcp.f32 %v1379_v14  ;;  %v1476_v29 = vmul.f32 %v9006_v6, %v10277_v38  ;;  %v10612_v45 = vmul.f32 %v1474_v46, %v9506_v63  ;;  %1544 = vst [vmem:[#allocation2 + $0x13] sm:$0xff] %v1508_v23  ;;  %1923 = vmatprep.mubr.f32.mxu0 %v1508_v23  ;;  %v1386_v14 = vadd.f32 1.0, %v10509_v7 }
 0x33f   : > { %v9010_v52 = vpop.eup %9009  ;;  %9029 = vrcp.f32 %v1380_v59  ;;  %v1477_v13 = vmul.f32 %v9008_v41, %v10285_v10  ;;  %v10617_v24 = vmul.f32 %v1475_v58, %v9513_v4  ;;  %1545 = vst [vmem:[#allocation2 + $0x1b] sm:$0xff] %v10607_v55  ;;  %v1387_v59 = vadd.f32 1.0, %v10512_v53 }
 0x340   : > { %v9012_v40 = vpop.eup %9011  ;;  %9031 = vrcp.f32 %v1381_v56  ;;  %v1478_v38 = vmul.f32 %v9010_v52, %v10288_v47  ;;  %v10623_v46 = vmul.f32 %v1476_v29, %v9531_v12  ;;  %1546 = vst [vmem:[#allocation2 + $0x23] sm:$0xff] %v10612_v45  ;;  %v1391_v56 = vadd.f32 1.0, %v10524_v26  ;;  %v14474_v29 = vld [vmem:[#allocation3_spill] sm:$0xff] }
 0x341   : > { %v9014_v49 = vpop.eup %9013  ;;  %9033 = vrcp.f32 %v1382_v43  ;;  %v1479_v10 = vmul.f32 %v9012_v40, %v10296_v33  ;;  %v10629_v62 = vmul.f32 %v1477_v13, %v9529_v11  ;;  %1547 = vst [vmem:[#allocation2 + $0x2b] sm:$0xff] %v10617_v24  ;;  %v1389_v43 = vadd.f32 1.0, %v10518_v34  ;;  %v14475_v40 = vld [vmem:[#allocation19_spill] sm:$0xff] }
 0x342   : > { %v9016_v7 = vpop.eup %9015  ;;  %9035 = vrcp.f32 %v1383_v57  ;;  %v1480_v47 = vmul.f32 %v9014_v49, %v10301_v3  ;;  %v10635_v51 = vmul.f32 %v1478_v38, %v9545_v20  ;;  %1548 = vst [vmem:[#allocation2 + $0x33] sm:$0xff] %v10623_v46  ;;  %v1724_v3 = vld [vmem:[%s14242_s6 + $0x120] sm:$0xff]  ;;  %v1392_v41 = vadd.f32 1.0, %v10527_v42 }
 0x343   : > { %v9018_v53 = vpop.eup %9017  ;;  %9037 = vrcp.f32 %v1384_v30  ;;  %v1481_v33 = vmul.f32 %v9016_v7, %v10306_v61  ;;  %v10641_v31 = vmul.f32 %v1479_v10, %v9543_v19  ;;  %1549 = vst [vmem:[#allocation2 + $0x3b] sm:$0xff] %v10629_v62  ;;  %v10667_v26 = vpack.c.bf16 %v1725_v48, %v1724_v3  ;;  %v14476_v38 = vld [vmem:[#allocation6_spill] sm:$0xff]  ;;  %v14482_v3 = vld [vmem:[#allocation23_spill] sm:$0xff] }
 0x344   : > { %v9020_v17 = vpop.eup %9019  ;;  %9039 = vrcp.f32 %v1385_v60  ;;  %v1482_v34 = vmul.f32 %v9018_v53, %v10311_v8  ;;  %v10653_v61 = vmul.f32 %v1480_v47, %v9559_v28  ;;  %1550 = vst [vmem:[#allocation2 + $0x43] sm:$0xff] %v10635_v51  ;;  %v1393_v13 = vadd.f32 1.0, %v10530_v50 }
 0x345   : > { %v9022_v36 = vpop.eup %9021  ;;  %9041 = vrcp.f32 %v1386_v14  ;;  %v1483_v18 = vmul.f32 %v9020_v17, %v10316_v35  ;;  %v10659_v23 = vmul.f32 %v1481_v33, %v9557_v27  ;;  %1551 = vst [vmem:[#allocation2 + $0x4b] sm:$0xff] %v10641_v31  ;;  %v1654_v16 = vld [vmem:[#allocation2 + $0x12] sm:$0xff]  ;;  %v14480_v47 = vpack.c.bf16 %v10550_v9, %v10545_v22 }
 0x346   : > { %v9024_v6 = vpop.eup %9023  ;;  %9043 = vrcp.f32 %v1387_v59  ;;  %v1484_v8 = vmul.f32 %v9022_v36, %v10321_v32  ;;  %v10664_v57 = vmul.f32 %v1482_v34, %v9573_v37  ;;  %1552 = vst [vmem:[#allocation2 + $0x53] sm:$0xff] %v10653_v61  ;;  %v1774_v58 = vld [vmem:[#allocation2 + $0x14] sm:$0xff]  ;;  %1924 = vmatmul.mubr.f32.vlgmr.msra.gmra.mrb[2].mxu0 %v1654_v16  ;;  %v14484_v34 = vmov 0.0|0.0  }
 0x347   : > { %v9026_v35 = vpop.eup %9025  ;;  %9045 = vrcp.f32 %v1388_v54  ;;  %v1485_v30 = vmul.f32 %v9024_v6, %v10327_v21  ;;  %v10672_v52 = vmul.f32 %v1483_v18, %v14474_v29  ;;  %1553 = vst [vmem:[#allocation2 + $0x5b] sm:$0xff] %v10659_v23  ;;  %7644 = vmatprep.mubr.f32.mxu1 %v1774_v58  ;;  %v1775_v32 = vld [vmem:[#allocation2 + $0x1c] sm:$0xff]  ;;  %1928 = vmatprep.mubr.f32.mxu0 %v10607_v55  ;;  %v14477_v59 = vld [vmem:[#allocation52_spill] sm:$0xff]  ;;  %v14487_v6 = vld [vmem:[#allocation7_spill] sm:$0xff] }
 0x348   : > { %v9028_v60 = vpop.eup %9027  ;;  %9047 = vrcp.f32 %v1389_v43  ;;  %v1486_v14 = vmul.f32 %v9026_v35, %v14475_v40  ;;  %v10679_v42 = vmul.f32 %v1484_v8, %v14476_v38  ;;  %1554 = vst [vmem:[#allocation2 + $0x63] sm:$0xff] %v10664_v57  ;;  %7645 = vmatmul.mubr.f32.vlgmr.msra.gmra.mrb[2].mxu1 %v1775_v32  ;;  %v1776_v21 = vld [vmem:[#allocation2 + $0x24] sm:$0xff]  ;;  %8463 = vmatpush3.bf16.msra.mxu0 %v10382_v2  ;;  %v1394_v10 = vadd.f32 1.0, %v14477_v59  ;;  %v14478_v55 = vld [vmem:[#allocation20_spill] sm:$0xff]  ;;  %v14479_v54 = vld [vmem:[#allocation5_spill] sm:$0xff] }
 0x349   : > { %v9030_v49 = vpop.eup %9029  ;;  %9049 = vrcp.f32 %v1390_v15  ;;  %v1487_v7 = vmul.f32 %v9028_v60, %v14478_v55  ;;  %v10686_v50 = vmul.f32 %v1485_v30, %v14479_v54  ;;  %1555 = vst [vmem:[#allocation2 + $0x6b] sm:$0xff] %v10672_v52  ;;  %8414 = vmatpush1.bf16.msra.mxu1 %v14480_v47  ;;  %7647 = vmatprep.mubr.f32.mxu1 %v1776_v21  ;;  %v1655_v53 = vld [vmem:[#allocation2 + $0x1a] sm:$0xff]  ;;  %v14483_v17 = vld [vmem:[#allocation8_spill] sm:$0xff]  ;;  %v14489_v32 = vld [vmem:[#allocation27_spill] sm:$0xff] }
 0x34a   : > { %v9032_v43 = vpop.eup %9031  ;;  %v14481_v33 = vld [vmem:[#allocation53_spill] sm:$0xff]  ;;  %9051 = vrcp.f32 %v1391_v56  ;;  %v1488_v48 = vmul.f32 %v9030_v49, %v14482_v3  ;;  %v10695_v15 = vmul.f32 %v1486_v14, %v14483_v17  ;;  %1556 = vst [vmem:[#allocation2 + $0x73] sm:$0xff] %v10679_v42  ;;  %1929 = vmatmul.mubr.f32.gmra.mrb[4].mxu0 %v1655_v53  ;;  %8415 = vmatprep.subr.bf16.mxu1 %v14484_v34  ;;  %v14485_v18 = vld [vmem:[#allocation54_spill] sm:$0xff]  ;;  %v14486_v9 = vld [vmem:[#allocation24_spill] sm:$0xff] }
 0x34b   : > { %v1395_v2 = vadd.f32 1.0, %v14481_v33  ;;  %v9034_v36 = vpop.eup %9033  ;;  %v1396_v22 = vadd.f32 1.0, %v14485_v18  ;;  %9053 = vrcp.f32 %v1392_v41  ;;  %v1489_v16 = vmul.f32 %v9032_v43, %v14486_v9  ;;  %1557 = vst [vmem:[#allocation2 + $0x7b] sm:$0xff] %v10686_v50  ;;  %v1777_v56 = vld [vmem:[#allocation2 + $0x2c] sm:$0xff]  ;;  %1933 = vmatprep.mubr.f32.mxu0 %v10612_v45  ;;  %8465 = vmatprep.subr.bf16.mxu0 %v10596_v25  ;;  %v14490_v40 = vld [vmem:[#allocation10_spill] sm:$0xff]  ;;  %v1778_v14 = vld [vmem:[#allocation2 + $0x34] sm:$0xff] }
 0x34c   : > { %v10702_v8 = vmul.f32 %v1487_v7, %v14487_v6  ;;  %v9036_v58 = vpop.eup %9035  ;;  %v14488_v35 = vld [vmem:[#allocation56_spill] sm:$0xff]  ;;  %9055 = vrcp.f32 %v1393_v13  ;;  %v1490_v60 = vmul.f32 %v9034_v36, %v14489_v32  ;;  %v10710_v41 = vmul.f32 %v1488_v48, %v14490_v40  ;;  %1558 = vst [vmem:[#allocation2 + $0x83] sm:$0xff] %v10695_v15  ;;  %7648 = vmatmul.mubr.f32.gmra.mrb[4].mxu1 %v1777_v56  ;;  %v1727_v21 = vld [vmem:[%s14242_s6 + $0x138] sm:$0xff]  ;;  %v10729_v33 = vld [vmem:[#allocation2 + $0x22] sm:$0xff] }
 0x34d   : > { %v1397_v30 = vadd.f32 1.0, %v14488_v35  ;;  %8467 = vmatpush3.bf16.msra.mxu0 %v10596_v25  ;;  %v1726_v45 = vld [vmem:[%s14242_s6 + $0x130] sm:$0xff]  ;;  %v9038_v13 = vpop.eup %9037  ;;  %v14491_v49 = vld [vmem:[#allocation57_spill] sm:$0xff]  ;;  %9057 = vrcp.f32 %v1394_v10  ;;  %7650 = vmatprep.mubr.f32.mxu1 %v1778_v14  ;;  %v14494_v25 = vld [vmem:[#allocation55_spill] sm:$0xff] }
 0x34e   : > { %v1398_v59 = vadd.f32 1.0, %v14491_v49  ;;  %v14492_v55 = vld [vmem:[#allocation28_spill] sm:$0xff]  ;;  %v14493_v47 = vld [vmem:[#allocation9_spill] sm:$0xff]  ;;  %1559 = vst [vmem:[#allocation2 + $0x8b] sm:$0xff] %v10702_v8  ;;  %v14495_v43 = vpack.c.bf16 %v10563_v39, %v14494_v25  ;;  %v9040_v3 = vpop.eup %9039  ;;  %v14496_v48 = vld [vmem:[#allocation58_spill] sm:$0xff]  ;;  %9059 = vrcp.f32 %v1395_v2  ;;  %1934 = vmatmul.mubr.f32.gmra.mrb[6].mxu0 %v10729_v33  ;;  %8469 = vmatprep.subr.bf16.mxu0 %v10667_v26 }
 0x34f   : > { %v1491_v7 = vmul.f32 %v9036_v58, %v14492_v55  ;;  %v10723_v53 = vmul.f32 %v1489_v16, %v14493_v47  ;;  %v1399_v36 = vadd.f32 1.0, %v14496_v48  ;;  %v14497_v18 = vld [vmem:[#allocation31_spill] sm:$0xff]  ;;  %v14498_v9 = vld [vmem:[#allocation12_spill] sm:$0xff]  ;;  %1560 = vst [vmem:[#allocation2 + $0x93] sm:$0xff] %v10710_v41  ;;  %v1695_v16 = vld [vmem:[%s14242_s6 + $0x38] sm:$0xff]  ;;  %v9042_v2 = vpop.eup %9041  ;;  %9061 = vrcp.f32 %v1396_v22  ;;  %1938 = vmatprep.mubr.f32.mxu0 %v10617_v24 }
 0x350   : > { %8417 = vmatpush1.bf16.msra.mxu1 %v14495_v43  ;;  %v1492_v10 = vmul.f32 %v9038_v13, %v14497_v18  ;;  %v10734_v56 = vmul.f32 %v1490_v60, %v14498_v9  ;;  %v1694_v39 = vld [vmem:[%s14242_s6 + $0x30] sm:$0xff]  ;;  %v14500_v32 = vld [vmem:[#allocation11_spill] sm:$0xff]  ;;  %v1779_v14 = vld [vmem:[#allocation2 + $0x3c] sm:$0xff]  ;;  %v8472_v13 = vpack.c.bf16 %v1727_v21, %v1726_v45  ;;  %v9044_v49 = vpop.eup %9043  ;;  %9063 = vrcp.f32 %v1397_v30 }
 0x351   : > { %8418 = vmatprep.subr.bf16.mxu1 %v14484_v34  ;;  %v14499_v58 = vld [vmem:[#allocation32_spill] sm:$0xff]  ;;  %v10747_v60 = vmul.f32 %v1491_v7, %v14500_v32  ;;  %1561 = vst [vmem:[#allocation2 + $0x9b] sm:$0xff] %v10723_v53  ;;  %v14501_v55 = vld [vmem:[#allocation35_spill] sm:$0xff]  ;;  %v14502_v43 = vld [vmem:[#allocation14_spill] sm:$0xff]  ;;  %7651 = vmatmul.mubr.f32.gmra.mrb[6].mxu1 %v1779_v14  ;;  %v9046_v7 = vpop.eup %9045  ;;  %9065 = vrcp.f32 %v1398_v59  ;;  %v14505_v30 = vpack.c.bf16 %v10573_v1, %v10568_v44 }
 0x352   : > { %v1493_v35 = vmul.f32 %v9040_v3, %v14499_v58  ;;  %v1494_v25 = vmul.f32 %v9042_v2, %v14501_v55  ;;  %v10754_v48 = vmul.f32 %v1492_v10, %v14502_v43  ;;  %1562 = vst [vmem:[#allocation2 + $0xa3] sm:$0xff] %v10734_v56  ;;  %v1780_v22 = vld [vmem:[#allocation2 + $0x44] sm:$0xff]  ;;  %8471 = vmatpush3.bf16.msra.mxu0 %v10667_v26  ;;  %v14503_v3 = vld [vmem:[#allocation36_spill] sm:$0xff]  ;;  %v14504_v18 = vld [vmem:[#allocation13_spill] sm:$0xff]  ;;  %v9048_v10 = vpop.eup %9047  ;;  %9067 = vrcp.f32 %v1399_v36 }
 0x353   : > { %v1495_v24 = vmul.f32 %v9044_v49, %v14503_v3  ;;  %1563 = vst [vmem:[#allocation2 + $0xab] sm:$0xff] %v10747_v60  ;;  %7653 = vmatprep.mubr.f32.mxu1 %v1780_v22  ;;  %v10766_v45 = vld [vmem:[#allocation2 + $0x2a] sm:$0xff]  ;;  %v8422_v21 = vpack.c.bf16 %v1695_v16, %v1694_v39  ;;  %v1696_v44 = vld [vmem:[%s14242_s6 + $0x40] sm:$0xff]  ;;  %v9050_v36 = vpop.eup %9049  ;;  %v14508_v39 = vld [vmem:[#allocation41_spill] sm:$0xff]  ;;  %8473 = vmatprep.subr.bf16.mxu0 %v8472_v13 }
 0x354   : > { %v10760_v58 = vmul.f32 %v1493_v35, %v14504_v18  ;;  %8420 = vmatpush1.bf16.msra.mxu1 %v14505_v30  ;;  %v14506_v26 = vld [vmem:[#allocation40_spill] sm:$0xff]  ;;  %1564 = vst [vmem:[#allocation2 + $0xb3] sm:$0xff] %v10754_v48  ;;  %1939 = vmatmul.mubr.f32.gmra.mrb[8].mxu0 %v10766_v45  ;;  %v1697_v1 = vld [vmem:[%s14242_s6 + $0x48] sm:$0xff]  ;;  %v1497_v16 = vmul.f32 %v9048_v10, %v14508_v39  ;;  %v14510_v22 = vld [vmem:[#allocation42_spill] sm:$0xff] }
 0x355   : > { %v1496_v2 = vmul.f32 %v9046_v7, %v14506_v26  ;;  %v14507_v59 = vld [vmem:[#allocation16_spill] sm:$0xff]  ;;  %8421 = vmatprep.subr.bf16.mxu1 %v14484_v34  ;;  %v14509_v35 = vld [vmem:[#allocation15_spill] sm:$0xff]  ;;  %1943 = vmatprep.mubr.f32.mxu0 %v10623_v46  ;;  %v1498_v7 = vmul.f32 %v9050_v36, %v14510_v22  ;;  %v14511_v3 = vld [vmem:[#allocation18_spill] sm:$0xff]  ;;  %v8425_v36 = vpack.c.bf16 %v1697_v1, %v1696_v44 }
 0x356   : > { %v10770_v14 = vmul.f32 %v1494_v25, %v14507_v59  ;;  %v10783_v49 = vmul.f32 %v1495_v24, %v14509_v35  ;;  %1565 = vst [vmem:[#allocation2 + $0xbb] sm:$0xff] %v10760_v58  ;;  %v1781_v55 = vld [vmem:[#allocation2 + $0x4c] sm:$0xff]  ;;  %v9052_v25 = vpop.eup %9051  ;;  %v1782_v26 = vld [vmem:[#allocation2 + $0x54] sm:$0xff]  ;;  %8475 = vmatpush3.bf16.msra.mxu0 %v8472_v13  ;;  %v14515_v18 = vld [vmem:[#allocation22_spill] sm:$0xff] }
 0x357   : > { %v10789_v30 = vmul.f32 %v1496_v2, %v14511_v3  ;;  %7654 = vmatmul.mubr.f32.gmra.mrb[8].mxu1 %v1781_v55  ;;  %v9054_v10 = vpop.eup %9053  ;;  %v14512_v24 = vld [vmem:[#allocation43_spill] sm:$0xff]  ;;  %v14513_v35 = vld [vmem:[#allocation17_spill] sm:$0xff]  ;;  %v14514_v22 = vld [vmem:[#allocation44_spill] sm:$0xff]  ;;  %v10801_v55 = vmul.f32 %v1498_v7, %v14515_v18 }
 0x358   : > { %1566 = vst [vmem:[#allocation2 + $0xc3] sm:$0xff] %v10770_v14  ;;  %v1499_v39 = vmul.f32 %v9052_v25, %v14512_v24  ;;  %v10794_v59 = vmul.f32 %v1497_v16, %v14513_v35  ;;  %1567 = vst [vmem:[#allocation2 + $0xcb] sm:$0xff] %v10783_v49  ;;  %7656 = vmatprep.mubr.f32.mxu1 %v1782_v26  ;;  %8423 = vmatpush1.bf16.msra.mxu1 %v8422_v21  ;;  %v10797_v46 = vld [vmem:[#allocation2 + $0x32] sm:$0xff]  ;;  %v9056_v2 = vpop.eup %9055  ;;  %v1783_v26 = vld [vmem:[#allocation2 + $0x5c] sm:$0xff] }
 0x359   : > { %v1500_v3 = vmul.f32 %v9054_v10, %v14514_v22  ;;  %1568 = vst [vmem:[#allocation2 + $0xd3] sm:$0xff] %v10789_v30  ;;  %1944 = vmatmul.mubr.f32.gmra.mrb[10].mxu0 %v10797_v46  ;;  %8424 = vmatprep.subr.bf16.mxu1 %v14484_v34  ;;  %v1698_v13 = vld [vmem:[%s14242_s6 + $0x50] sm:$0xff]  ;;  %v1699_v21 = vld [vmem:[%s14242_s6 + $0x58] sm:$0xff]  ;;  %v9058_v44 = vpop.eup %9057  ;;  %v14518_v24 = vld [vmem:[#allocation46_spill] sm:$0xff] }
 0x35a   : > { %v14516_v1 = vld [vmem:[#allocation45_spill] sm:$0xff]  ;;  %1569 = vst [vmem:[#allocation2 + $0xdb] sm:$0xff] %v10794_v59  ;;  %1948 = vmatprep.mubr.f32.mxu0 %v10629_v62  ;;  %v9060_v10 = vpop.eup %9059  ;;  %v1502_v22 = vmul.f32 %v9058_v44, %v14518_v24  ;;  %v14519_v18 = vld [vmem:[#allocation26_spill] sm:$0xff]  ;;  %1570 = vst [vmem:[#allocation2 + $0xe3] sm:$0xff] %v10801_v55  ;;  %v8428_v44 = vpack.c.bf16 %v1699_v21, %v1698_v13 }
 0x35b   : > { %v1501_v16 = vmul.f32 %v9056_v2, %v14516_v1  ;;  %v14517_v25 = vld [vmem:[#allocation21_spill] sm:$0xff]  ;;  %v10820_v35 = vmul.f32 %v1500_v3, %v14519_v18  ;;  %7657 = vmatmul.mubr.f32.gmra.mrb[10].mxu1 %v1783_v26  ;;  %v1784_v43 = vld [vmem:[#allocation2 + $0x64] sm:$0xff]  ;;  %v9062_v32 = vpop.eup %9061  ;;  %v14522_v3 = vld [vmem:[#allocation48_spill] sm:$0xff] }
 0x35c   : > { %v10814_v7 = vmul.f32 %v1499_v39, %v14517_v25  ;;  %v14520_v2 = vld [vmem:[#allocation47_spill] sm:$0xff]  ;;  %v14521_v39 = vld [vmem:[#allocation25_spill] sm:$0xff]  ;;  %7659 = vmatprep.mubr.f32.mxu1 %v1784_v43  ;;  %8426 = vmatpush1.bf16.msra.mxu1 %v8425_v36  ;;  %v9064_v24 = vpop.eup %9063  ;;  %v1504_v18 = vmul.f32 %v9062_v32, %v14522_v3  ;;  %v14523_v9 = vld [vmem:[#allocation30_spill] sm:$0xff] }
 0x35d   : > { %v1503_v1 = vmul.f32 %v9060_v10, %v14520_v2  ;;  %v10825_v25 = vmul.f32 %v1501_v16, %v14521_v39  ;;  %v10828_v62 = vld [vmem:[#allocation2 + $0x3a] sm:$0xff]  ;;  %v10832_v47 = vmul.f32 %v1502_v22, %v14523_v9  ;;  %1572 = vst [vmem:[#allocation2 + $0xf3] sm:$0xff] %v10820_v35  ;;  %8427 = vmatprep.subr.bf16.mxu1 %v14484_v34  ;;  %v1701_v36 = vld [vmem:[%s14242_s6 + $0x68] sm:$0xff]  ;;  %v9066_v13 = vpop.eup %9065 }
 0x35e   : > { %1571 = vst [vmem:[#allocation2 + $0xeb] sm:$0xff] %v10814_v7  ;;  %1949 = vmatmul.mubr.f32.gmra.mrb[12].mxu0 %v10828_v62  ;;  %v1700_v43 = vld [vmem:[%s14242_s6 + $0x60] sm:$0xff]  ;;  %v14524_v21 = vld [vmem:[#allocation49_spill] sm:$0xff]  ;;  %v1785_v10 = vld [vmem:[#allocation2 + $0x6c] sm:$0xff]  ;;  %v9068_v22 = vpop.eup %9067 }
 0x35f   : > { %v1505_v32 = vmul.f32 %v9064_v24, %v14524_v21  ;;  %v14525_v16 = vld [vmem:[#allocation29_spill] sm:$0xff]  ;;  %1573 = vst [vmem:[#allocation2 + $0xfb] sm:$0xff] %v10825_v25  ;;  %1953 = vmatprep.mubr.f32.mxu0 %v10635_v51  ;;  %v14526_v2 = vld [vmem:[#allocation50_spill] sm:$0xff]  ;;  %1574 = vst [vmem:[#allocation2 + $0x103] sm:$0xff] %v10832_v47  ;;  %7660 = vmatmul.mubr.f32.gmra.mrb[12].mxu1 %v1785_v10  ;;  %v8431_v51 = vpack.c.bf16 %v1701_v36, %v1700_v43 }
 0x360   : > { %v10845_v26 = vmul.f32 %v1503_v1, %v14525_v16  ;;  %v1506_v3 = vmul.f32 %v9066_v13, %v14526_v2  ;;  %v14527_v9 = vld [vmem:[#allocation34_spill] sm:$0xff]  ;;  %v1786_v40 = vld [vmem:[#allocation2 + $0x74] sm:$0xff]  ;;  %v14528_v6 = vld [vmem:[#allocation51_spill] sm:$0xff]  ;;  %8429 = vmatpush1.bf16.msra.mxu1 %v8428_v44 }
 0x361   : > { %v10851_v39 = vmul.f32 %v1504_v18, %v14527_v9  ;;  %v1507_v24 = vmul.f32 %v9068_v22, %v14528_v6  ;;  %v14529_v21 = vld [vmem:[#allocation33_spill] sm:$0xff]  ;;  %7662 = vmatprep.mubr.f32.mxu1 %v1786_v40  ;;  %v10857_v16 = vld [vmem:[#allocation2 + $0x42] sm:$0xff]  ;;  %8430 = vmatprep.subr.bf16.mxu1 %v14484_v34  ;;  %v1702_v6 = vld [vmem:[%s14242_s6 + $0x70] sm:$0xff] }
 0x362   : > { %v1541_v1 = vmul.f32 %v1505_v32, %v14529_v21  ;;  %1575 = vst [vmem:[#allocation2 + $0x10b] sm:$0xff] %v10845_v26  ;;  %v14530_v17 = vld [vmem:[#allocation37_spill] sm:$0xff]  ;;  %1954 = vmatmul.mubr.f32.gmra.mrb[14].mxu0 %v10857_v16  ;;  %v14531_v18 = vld [vmem:[#allocation38_spill] sm:$0xff]  ;;  %v10874_v10 = vld [vmem:[#allocation2 + $0x4a] sm:$0xff] }
 0x363   : > { %v1542_v13 = vmul.f32 %v1506_v3, %v14530_v17  ;;  %1576 = vst [vmem:[#allocation2 + $0x113] sm:$0xff] %v10851_v39  ;;  %v1703_v40 = vld [vmem:[%s14242_s6 + $0x78] sm:$0xff]  ;;  %v1543_v44 = vmul.f32 %v1507_v24, %v14531_v18  ;;  %1958 = vmatprep.mubr.f32.mxu0 %v10641_v31  ;;  %v1788_v36 = vld [vmem:[#allocation2 + $0x84] sm:$0xff] }
 0x364   : > { %1577 = vst [vmem:[#allocation2 + $0x11b] sm:$0xff] %v1541_v1  ;;  %v1787_v43 = vld [vmem:[#allocation2 + $0x7c] sm:$0xff]  ;;  %8432 = vmatpush1.bf16.msra.mxu1 %v8431_v51  ;;  %v8434_v22 = vpack.c.bf16 %v1703_v40, %v1702_v6  ;;  %v1729_v2 = vld [vmem:[%s14242_s6 + $0x148] sm:$0xff]  ;;  %v1790_v51 = vld [vmem:[#allocation2 + $0x94] sm:$0xff] }
 0x365   : > { %1578 = vst [vmem:[#allocation2 + $0x123] sm:$0xff] %v1542_v13  ;;  %7663 = vmatmul.mubr.f32.gmra.mrb[14].mxu1 %v1787_v43  ;;  %v1728_v32 = vld [vmem:[%s14242_s6 + $0x140] sm:$0xff]  ;;  %1579 = vst [vmem:[#allocation2 + $0x12b] sm:$0xff] %v1543_v44  ;;  %8433 = vmatprep.subr.bf16.mxu1 %v14484_v34  ;;  %v1705_v3 = vld [vmem:[%s14242_s6 + $0x88] sm:$0xff] }
 0x366   : > { %7665 = vmatprep.mubr.f32.mxu1 %v1788_v36  ;;  %1959 = vmatmul.mubr.f32.gmra.mrb[16].mxu0 %v10874_v10  ;;  %v1704_v31 = vld [vmem:[%s14242_s6 + $0x80] sm:$0xff]  ;;  %v8476_v24 = vpack.c.bf16 %v1729_v2, %v1728_v32  ;;  %v1789_v1 = vld [vmem:[#allocation2 + $0x8c] sm:$0xff]  ;;  %v1731_v44 = vld [vmem:[%s14242_s6 + $0x158] sm:$0xff] }
 0x367   : > { %1963 = vmatprep.mubr.f32.mxu0 %v10653_v61  ;;  %v1730_v13 = vld [vmem:[%s14242_s6 + $0x150] sm:$0xff]  ;;  %v8437_v40 = vpack.c.bf16 %v1705_v3, %v1704_v31  ;;  %v1707_v43 = vld [vmem:[%s14242_s6 + $0x98] sm:$0xff]  ;;  %v1708_v3 = vld [vmem:[%s14242_s6 + $0xa0] sm:$0xff] }
 0x368   : > { %8477 = vmatprep.subr.bf16.mxu0 %v8476_v24  ;;  %v10891_v6 = vld [vmem:[#allocation2 + $0x52] sm:$0xff]  ;;  %8435 = vmatpush1.bf16.msra.mxu1 %v8434_v22  ;;  %v8480_v36 = vpack.c.bf16 %v1731_v44, %v1730_v13  ;;  %v1791_v32 = vld [vmem:[#allocation2 + $0x9c] sm:$0xff]  ;;  %v1792_v22 = vld [vmem:[#allocation2 + $0xa4] sm:$0xff] }
 0x369   : > { %7666 = vmatmul.mubr.f32.gmra.mrb[16].mxu1 %v1789_v1  ;;  %8436 = vmatprep.subr.bf16.mxu1 %v14484_v34  ;;  %v1706_v61 = vld [vmem:[%s14242_s6 + $0x90] sm:$0xff]  ;;  %v10905_v2 = vld [vmem:[#allocation2 + $0x5a] sm:$0xff]  ;;  %v1733_v1 = vld [vmem:[%s14242_s6 + $0x168] sm:$0xff] }
 0x36a   : > { %7668 = vmatprep.mubr.f32.mxu1 %v1790_v51  ;;  %1964 = vmatmul.mubr.f32.gmra.mrb[18].mxu0 %v10891_v6  ;;  %v8440_v31 = vpack.c.bf16 %v1707_v43, %v1706_v61  ;;  %v1793_v51 = vld [vmem:[#allocation2 + $0xac] sm:$0xff]  ;;  %v1735_v61 = vld [vmem:[%s14242_s6 + $0x178] sm:$0xff]  ;;  %v10928_v43 = vld [vmem:[#allocation2 + $0x62] sm:$0xff] }
 0x36b   : > { %1968 = vmatprep.mubr.f32.mxu0 %v10659_v23  ;;  %8479 = vmatpush3.bf16.msra.mxu0 %v8476_v24  ;;  %v1709_v23 = vld [vmem:[%s14242_s6 + $0xa8] sm:$0xff]  ;;  %v1732_v24 = vld [vmem:[%s14242_s6 + $0x160] sm:$0xff]  ;;  %v1734_v44 = vld [vmem:[%s14242_s6 + $0x170] sm:$0xff] }
 0x36c   : > { %8481 = vmatprep.subr.bf16.mxu0 %v8480_v36  ;;  %8438 = vmatpush1.bf16.msra.mxu1 %v8437_v40  ;;  %v8484_v13 = vpack.c.bf16 %v1733_v1, %v1732_v24  ;;  %v1794_v40 = vld [vmem:[#allocation2 + $0xb4] sm:$0xff]  ;;  %v8488_v24 = vpack.c.bf16 %v1735_v61, %v1734_v44  ;;  %v1712_v1 = vld [vmem:[%s14242_s6 + $0xc0] sm:$0xff] }
 0x36d   : > { %7669 = vmatmul.mubr.f32.gmra.mrb[18].mxu1 %v1791_v32  ;;  %8439 = vmatprep.subr.bf16.mxu1 %v14484_v34  ;;  %v8443_v32 = vpack.c.bf16 %v1709_v23, %v1708_v3  ;;  %v10939_v3 = vld [vmem:[#allocation2 + $0x6a] sm:$0xff]  ;;  %v2894_v9 = vld [vmem:[#allocation2 + $0xbd] sm:$0xff] }
 0x36e   : > { %7671 = vmatprep.mubr.f32.mxu1 %v1792_v22  ;;  %1969 = vmatmul.mubr.f32.gmra.mrb[20].mxu0 %v10905_v2  ;;  %v1795_v22 = vld [vmem:[#allocation2 + $0xbc] sm:$0xff]  ;;  %v1714_v61 = vld [vmem:[%s14242_s6 + $0xd0] sm:$0xff] }
 0x36f   : > { %1973 = vmatprep.mubr.f32.mxu0 %v10664_v57  ;;  %8483 = vmatpush3.bf16.msra.mxu0 %v8480_v36  ;;  %v1710_v57 = vld [vmem:[%s14242_s6 + $0xb0] sm:$0xff]  ;;  %v1711_v36 = vld [vmem:[%s14242_s6 + $0xb8] sm:$0xff] }
 0x370   : > { %8441 = vmatpush1.bf16.msra.mxu1 %v8440_v31  ;;  %8485 = vmatprep.subr.bf16.mxu0 %v8484_v13  ;;  %v1796_v31 = vld [vmem:[#allocation2 + $0xc4] sm:$0xff]  ;;  %v8446_v23 = vpack.c.bf16 %v1711_v36, %v1710_v57  ;;  %v10961_v36 = vld [vmem:[#allocation2 + $0x7a] sm:$0xff] }
 0x371   : > { %7672 = vmatmul.mubr.f32.gmra.mrb[20].mxu1 %v1793_v51  ;;  %8442 = vmatprep.subr.bf16.mxu1 %v14484_v34  ;;  %v1797_v51 = vld [vmem:[#allocation2 + $0xcc] sm:$0xff]  ;;  %v1800_v57 = vld [vmem:[#allocation2 + $0xe4] sm:$0xff] }
 0x372   : > { %7674 = vmatprep.mubr.f32.mxu1 %v1794_v40  ;;  %1974 = vmatmul.mubr.f32.gmra.mrb[22].mxu0 %v10928_v43  ;;  %v10950_v40 = vld [vmem:[#allocation2 + $0x72] sm:$0xff] }
 0x373   : > { %1978 = vmatprep.mubr.f32.mxu0 %v10672_v52  ;;  %8487 = vmatpush3.bf16.msra.mxu0 %v8484_v13  ;;  %v1713_v52 = vld [vmem:[%s14242_s6 + $0xc8] sm:$0xff]  ;;  %v1798_v13 = vld [vmem:[#allocation2 + $0xd4] sm:$0xff] }
 0x374   : > { %8444 = vmatpush1.bf16.msra.mxu1 %v8443_v32  ;;  %8489 = vmatprep.subr.bf16.mxu0 %v8488_v24  ;;  %v8449_v44 = vpack.c.bf16 %v1713_v52, %v1712_v1  ;;  %v1799_v32 = vld [vmem:[#allocation2 + $0xdc] sm:$0xff] }
 0x375   : > { %7675 = vmatmul.mubr.f32.gmra.mrb[22].mxu1 %v1795_v22  ;;  %8445 = vmatprep.subr.bf16.mxu1 %v14484_v34  ;;  %v10972_v1 = vld [vmem:[#allocation2 + $0x82] sm:$0xff] }
 0x376   : > { %7677 = vmatprep.mubr.f32.mxu1 %v1796_v31  ;;  %1979 = vmatmul.mubr.f32.gmra.mrb[24].mxu0 %v10939_v3  ;;  %v1717_v31 = vld [vmem:[%s14242_s6 + $0xe8] sm:$0xff] }
 0x377   : > { %1983 = vmatprep.mubr.f32.mxu0 %v10679_v42  ;;  %8491 = vmatpush3.bf16.msra.mxu0 %v8488_v24  ;;  %v1715_v42 = vld [vmem:[%s14242_s6 + $0xd8] sm:$0xff]  ;;  %v1716_v24 = vld [vmem:[%s14242_s6 + $0xe0] sm:$0xff] }
 0x378   : > { %8447 = vmatpush1.bf16.msra.mxu1 %v8446_v23  ;;  %v8452_v22 = vpack.c.bf16 %v1715_v42, %v1714_v61  ;;  %v1802_v23 = vld [vmem:[#allocation2 + $0xf4] sm:$0xff]  ;;  %v8455_v52 = vpack.c.bf16 %v1717_v31, %v1716_v24  ;;  %v6955_v61 = vld [vmem:[%s14242_s6 + $0x400] sm:$0xff]  ;;  %v6956_v42 = vld [vmem:[%s14242_s6 + $0x408] sm:$0xff] }
 0x379   : > { %7678 = vmatmul.mubr.f32.gmra.mrb[24].mxu1 %v1797_v51  ;;  %8448 = vmatprep.subr.bf16.mxu1 %v14484_v34  ;;  %v1718_v51 = vld [vmem:[%s14242_s6 + $0xf0] sm:$0xff] }
 0x37a   : > { %7680 = vmatprep.mubr.f32.mxu1 %v1798_v13  ;;  %1984 = vmatmul.mubr.f32.gmra.mrb[26].mxu0 %v10950_v40  ;;  %v1719_v13 = vld [vmem:[%s14242_s6 + $0xf8] sm:$0xff] }
 0x37b   : > { %1988 = vmatprep.mubr.f32.mxu0 %v10686_v50  ;;  %v1801_v50 = vld [vmem:[#allocation2 + $0xec] sm:$0xff]  ;;  %v1806_v24 = vld [vmem:[#allocation2 + $0x114] sm:$0xff] }
 0x37c   : > { %8450 = vmatpush1.bf16.msra.mxu1 %v8449_v44  ;;  %v1804_v44 = vld [vmem:[#allocation2 + $0x104] sm:$0xff]  ;;  %v10997_v31 = vld [vmem:[#allocation2 + $0x92] sm:$0xff] }
 0x37d   : > { %7681 = vmatmul.mubr.f32.gmra.mrb[26].mxu1 %v1799_v32  ;;  %8451 = vmatprep.subr.bf16.mxu1 %v14484_v34  ;;  %v10989_v32 = vld [vmem:[#allocation2 + $0x8a] sm:$0xff] }
 0x37e   : > { %7683 = vmatprep.mubr.f32.mxu1 %v1800_v57  ;;  %1989 = vmatmul.mubr.f32.gmra.mrb[28].mxu0 %v10961_v36  ;;  %v8458_v57 = vpack.c.bf16 %v1719_v13, %v1718_v51  ;;  %v6923_v51 = vld [vmem:[%s14242_s6 + $0x300] sm:$0xff]  ;;  %v6924_v13 = vld [vmem:[%s14242_s6 + $0x308] sm:$0xff] }
 0x37f   : > { %1993 = vmatprep.mubr.f32.mxu0 %v10695_v15  ;;  %v1803_v15 = vld [vmem:[#allocation2 + $0xfc] sm:$0xff] }
 0x380   : > { %8453 = vmatpush1.bf16.msra.mxu1 %v8452_v22  ;;  %v10991_v22 = vpack.c.bf16 %v6956_v42, %v6955_v61  ;;  %v1617_v61 = vld [vmem:[#allocation2 + $0x9] sm:$0xff] }
 0x381   : > { %7684 = vmatmul.mubr.f32.gmra.mrb[28].mxu1 %v1801_v50  ;;  %8454 = vmatprep.subr.bf16.mxu1 %v14484_v34  ;;  %v1807_v50 = vld [vmem:[#allocation2 + $0x11c] sm:$0xff]  ;;  %v6925_v42 = vld [vmem:[%s14242_s6 + $0x310] sm:$0xff] }
 0x382   : > { %7686 = vmatprep.mubr.f32.mxu1 %v1802_v23  ;;  %1994 = vmatmul.mubr.f32.gmra.mrb[30].mxu0 %v10972_v1  ;;  %v1808_v23 = vld [vmem:[#allocation2 + $0x124] sm:$0xff] }
 0x383   : > { %1998 = vmatprep.mubr.f32.mxu0 %v10702_v8  ;;  %v1805_v8 = vld [vmem:[#allocation2 + $0x10c] sm:$0xff]  ;;  %8541 = vmatprep.subr.bf16.mxu0 %v10991_v22 }
 0x384   : > { %8456 = vmatpush1.bf16.msra.mxu1 %v8455_v52  ;;  %v11002_v52 = vld [vmem:[#allocation2 + $0x9a] sm:$0xff] }
 0x385   : > { %7687 = vmatmul.mubr.f32.gmra.mrb[30].mxu1 %v1803_v15  ;;  %8457 = vmatprep.subr.bf16.mxu1 %v14484_v34  ;;  %v1809_v15 = vld [vmem:[#allocation2 + $0x12c] sm:$0xff] }
 0x386   : > { %7689 = vmatprep.mubr.f32.mxu1 %v1804_v44  ;;  %1999 = vmatmul.mubr.f32.gmra.mrb[32].mxu0 %v10989_v32  ;;  %v8493_v44 = vpack.c.bf16 %v6924_v13, %v6923_v51  ;;  %v6929_v13 = vld [vmem:[%s14242_s6 + $0x330] sm:$0xff] }
 0x387   : > { %2003 = vmatprep.mubr.f32.mxu0 %v10710_v41  ;;  %v1616_v41 = vld [vmem:[#allocation2 + $0x1] sm:$0xff] }
 0x388   : > { %8459 = vmatpush1.bf16.msra.mxu1 %v8458_v57  ;;  %v6926_v57 = vld [vmem:[%s14242_s6 + $0x318] sm:$0xff] }
 0x389   : > { %7690 = vmatmul.mubr.f32.gmra.mrb[32].mxu1 %v1805_v8  ;;  %8492 = vmatprep.subr.bf16.mxu1 %v14484_v34  ;;  %v9215_v8 = vld [vmem:[#allocation2] sm:$0xff] }
 0x38a   : > { %7692 = vmatprep.mubr.f32.mxu1 %v1806_v24  ;;  %2004 = vmatmul.mubr.f32.gmra.mrb[34].mxu0 %v10997_v31  ;;  %v8496_v24 = vpack.c.bf16 %v6926_v57, %v6925_v42  ;;  %v6931_v57 = vld [vmem:[%s14242_s6 + $0x340] sm:$0xff] }
 0x38b   : > { %2008 = vmatprep.mubr.f32.mxu0 %v10723_v53  ;;  %v11012_v53 = vld [vmem:[#allocation2 + $0xa2] sm:$0xff] }
 0x38d   : > { %7693 = vmatmul.mubr.f32.gmra.mrb[34].mxu1 %v1807_v50  ;;  %v6927_v50 = vld [vmem:[%s14242_s6 + $0x320] sm:$0xff] }
 0x38e   : > { %7695 = vmatprep.mubr.f32.mxu1 %v1808_v23  ;;  %2009 = vmatmul.mubr.f32.gmra.mrb[36].mxu0 %v11002_v52  ;;  %v6928_v23 = vld [vmem:[%s14242_s6 + $0x328] sm:$0xff] }
 0x38f   : > { %2013 = vmatprep.mubr.f32.mxu0 %v10734_v56  ;;  %v11022_v56 = vld [vmem:[#allocation2 + $0xaa] sm:$0xff]  ;;  %v8499_v51 = vpack.c.bf16 %v6928_v23, %v6927_v50  ;;  %v11055_v50 = vld [vmem:[#allocation2 + $0xc2] sm:$0xff] }
 0x391   : > { %7696 = vmatmul.mubr.f32.gmra.mrb[36].mxu1 %v1809_v15  ;;  %v6930_v15 = vld [vmem:[%s14242_s6 + $0x338] sm:$0xff] }
 0x392   : > { %2413 = vmatprep.mubr.f32.mxu1 %v1616_v41  ;;  %2014 = vmatmul.mubr.f32.gmra.mrb[38].mxu0 %v11012_v53  ;;  %v11033_v41 = vld [vmem:[#allocation2 + $0xb2] sm:$0xff]  ;;  %v8502_v42 = vpack.c.bf16 %v6930_v15, %v6929_v13  ;;  %v1621_v13 = vld [vmem:[#allocation2 + $0x29] sm:$0xff] }
 0x393   : > { %2018 = vmatprep.mubr.f32.mxu0 %v10747_v60  ;;  %v1618_v60 = vld [vmem:[#allocation2 + $0x11] sm:$0xff] }
 0x394   : > { %v11066_v15 = vld [vmem:[#allocation2 + $0xca] sm:$0xff] }
 0x395   : > { %2414 = vmatmul.mubr.f32.vlgmr.msra.gmra.mrb[38].mxu1 %v9215_v8 }
 0x396   : > { %8494 = vmatpush1.bf16.msra.mxu1 %v8493_v44  ;;  %2418 = vmatprep.mubr.f32.mxu1 %v1617_v61  ;;  %v1619_v44 = vld [vmem:[#allocation2 + $0x19] sm:$0xff] }
 0x397   : > { %2019 = vmatmul.mubr.f32.gmra.mrb[40].mxu0 %v11022_v56  ;;  %8495 = vmatprep.subr.bf16.mxu1 %v14484_v34  ;;  %v11044_v61 = vld [vmem:[#allocation2 + $0xba] sm:$0xff] }
 0x398   : > { %2023 = vmatprep.mubr.f32.mxu0 %v10754_v48  ;;  %v1582_v48 = vld [vmem:[#allocation2 + $0x10] sm:$0xff] }
 0x399   : > { %2419 = vmatmul.mubr.f32.gmra.mrb[40].mxu1 %v9215_v8  ;;  %v6932_v8 = vld [vmem:[%s14242_s6 + $0x348] sm:$0xff] }
 0x39a   : > { %2423 = vmatprep.mubr.f32.mxu1 %v1618_v60  ;;  %8497 = vmatpush1.bf16.msra.mxu1 %v8496_v24  ;;  %v1620_v24 = vld [vmem:[#allocation2 + $0x21] sm:$0xff]  ;;  %v8505_v23 = vpack.c.bf16 %v6932_v8, %v6931_v57  ;;  %v6933_v60 = vld [vmem:[%s14242_s6 + $0x350] sm:$0xff] }
 0x39b   : > { %2024 = vmatmul.mubr.f32.gmra.mrb[42].mxu0 %v11033_v41  ;;  %8498 = vmatprep.subr.bf16.mxu1 %v14484_v34  ;;  %v1622_v57 = vld [vmem:[#allocation2 + $0x31] sm:$0xff] }
 0x39c   : > { %2028 = vmatprep.mubr.f32.mxu0 %v10760_v58  ;;  %v1583_v58 = vld [vmem:[#allocation2 + $0x18] sm:$0xff] }
 0x39d   : > { %2424 = vmatmul.mubr.f32.gmra.mrb[42].mxu1 %v1582_v48  ;;  %v11077_v8 = vld [vmem:[#allocation2 + $0xd2] sm:$0xff] }
 0x39e   : > { %2428 = vmatprep.mubr.f32.mxu1 %v1619_v44  ;;  %8500 = vmatpush1.bf16.msra.mxu1 %v8499_v51  ;;  %v6934_v51 = vld [vmem:[%s14242_s6 + $0x358] sm:$0xff]  ;;  %v6935_v44 = vld [vmem:[%s14242_s6 + $0x360] sm:$0xff] }
 0x39f   : > { %2029 = vmatmul.mubr.f32.gmra.mrb[44].mxu0 %v11044_v61  ;;  %8501 = vmatprep.subr.bf16.mxu1 %v14484_v34  ;;  %v8508_v48 = vpack.c.bf16 %v6934_v51, %v6933_v60  ;;  %v1623_v60 = vld [vmem:[#allocation2 + $0x39] sm:$0xff] }
 0x3a0   : > { %2033 = vmatprep.mubr.f32.mxu0 %v10770_v14  ;;  %v1584_v14 = vld [vmem:[#allocation2 + $0x20] sm:$0xff] }
 0x3a1   : > { %2429 = vmatmul.mubr.f32.gmra.mrb[44].mxu1 %v1583_v58  ;;  %v11088_v51 = vld [vmem:[#allocation2 + $0xda] sm:$0xff] }
 0x3a2   : > { %2433 = vmatprep.mubr.f32.mxu1 %v1620_v24  ;;  %8503 = vmatpush1.bf16.msra.mxu1 %v8502_v42  ;;  %v6936_v42 = vld [vmem:[%s14242_s6 + $0x368] sm:$0xff]  ;;  %v6937_v24 = vld [vmem:[%s14242_s6 + $0x370] sm:$0xff] }
 0x3a3   : > { %2034 = vmatmul.mubr.f32.gmra.mrb[46].mxu0 %v11055_v50  ;;  %8504 = vmatprep.subr.bf16.mxu1 %v14484_v34  ;;  %v8511_v58 = vpack.c.bf16 %v6936_v42, %v6935_v44  ;;  %v1624_v44 = vld [vmem:[#allocation2 + $0x41] sm:$0xff] }
 0x3a4   : > { %2038 = vmatprep.mubr.f32.mxu0 %v10783_v49  ;;  %v1585_v49 = vld [vmem:[#allocation2 + $0x28] sm:$0xff] }
 0x3a5   : > { %2434 = vmatmul.mubr.f32.gmra.mrb[46].mxu1 %v1584_v14  ;;  %v11099_v42 = vld [vmem:[#allocation2 + $0xe2] sm:$0xff] }
 0x3a6   : > { %2438 = vmatprep.mubr.f32.mxu1 %v1621_v13  ;;  %8506 = vmatpush1.bf16.msra.mxu1 %v8505_v23  ;;  %v6938_v23 = vld [vmem:[%s14242_s6 + $0x378] sm:$0xff]  ;;  %v6939_v13 = vld [vmem:[%s14242_s6 + $0x380] sm:$0xff] }
 0x3a7   : > { %2039 = vmatmul.mubr.f32.gmra.mrb[48].mxu0 %v11066_v15  ;;  %8507 = vmatprep.subr.bf16.mxu1 %v14484_v34  ;;  %v8514_v14 = vpack.c.bf16 %v6938_v23, %v6937_v24  ;;  %v1625_v24 = vld [vmem:[#allocation2 + $0x49] sm:$0xff] }
 0x3a8   : > { %2043 = vmatprep.mubr.f32.mxu0 %v10789_v30  ;;  %v1586_v30 = vld [vmem:[#allocation2 + $0x30] sm:$0xff] }
 0x3a9   : > { %2439 = vmatmul.mubr.f32.gmra.mrb[48].mxu1 %v1585_v49  ;;  %v11110_v23 = vld [vmem:[#allocation2 + $0xea] sm:$0xff] }
 0x3aa   : > { %2443 = vmatprep.mubr.f32.mxu1 %v1622_v57  ;;  %8509 = vmatpush1.bf16.msra.mxu1 %v8508_v48  ;;  %v6940_v48 = vld [vmem:[%s14242_s6 + $0x388] sm:$0xff]  ;;  %v6941_v57 = vld [vmem:[%s14242_s6 + $0x390] sm:$0xff] }
 0x3ab   : > { %2044 = vmatmul.mubr.f32.gmra.mrb[50].mxu0 %v11077_v8  ;;  %8510 = vmatprep.subr.bf16.mxu1 %v14484_v34  ;;  %v8517_v49 = vpack.c.bf16 %v6940_v48, %v6939_v13  ;;  %v1626_v13 = vld [vmem:[#allocation2 + $0x51] sm:$0xff] }
 0x3ac   : > { %2048 = vmatprep.mubr.f32.mxu0 %v10794_v59  ;;  %v1587_v59 = vld [vmem:[#allocation2 + $0x38] sm:$0xff] }
 0x3ad   : > { %2444 = vmatmul.mubr.f32.gmra.mrb[50].mxu1 %v1586_v30  ;;  %v11121_v48 = vld [vmem:[#allocation2 + $0xf2] sm:$0xff] }
 0x3ae   : > { %2448 = vmatprep.mubr.f32.mxu1 %v1623_v60  ;;  %8512 = vmatpush1.bf16.msra.mxu1 %v8511_v58  ;;  %v6942_v58 = vld [vmem:[%s14242_s6 + $0x398] sm:$0xff]  ;;  %v6943_v60 = vld [vmem:[%s14242_s6 + $0x3a0] sm:$0xff] }
 0x3af   : > { %2049 = vmatmul.mubr.f32.gmra.mrb[52].mxu0 %v11088_v51  ;;  %8513 = vmatprep.subr.bf16.mxu1 %v14484_v34  ;;  %v8520_v30 = vpack.c.bf16 %v6942_v58, %v6941_v57  ;;  %v1627_v57 = vld [vmem:[#allocation2 + $0x59] sm:$0xff] }
 0x3b0   : > { %2053 = vmatprep.mubr.f32.mxu0 %v10801_v55  ;;  %v1588_v55 = vld [vmem:[#allocation2 + $0x40] sm:$0xff] }
 0x3b1   : > { %2449 = vmatmul.mubr.f32.gmra.mrb[52].mxu1 %v1587_v59  ;;  %v11132_v58 = vld [vmem:[#allocation2 + $0xfa] sm:$0xff] }
 0x3b2   : > { %2453 = vmatprep.mubr.f32.mxu1 %v1624_v44  ;;  %8515 = vmatpush1.bf16.msra.mxu1 %v8514_v14  ;;  %v6944_v14 = vld [vmem:[%s14242_s6 + $0x3a8] sm:$0xff]  ;;  %v6945_v44 = vld [vmem:[%s14242_s6 + $0x3b0] sm:$0xff] }
 0x3b3   : > { %2054 = vmatmul.mubr.f32.gmra.mrb[54].mxu0 %v11099_v42  ;;  %8516 = vmatprep.subr.bf16.mxu1 %v14484_v34  ;;  %v8523_v59 = vpack.c.bf16 %v6944_v14, %v6943_v60  ;;  %v1628_v60 = vld [vmem:[#allocation2 + $0x61] sm:$0xff] }
 0x3b4   : > { %2058 = vmatprep.mubr.f32.mxu0 %v10814_v7  ;;  %v1589_v7 = vld [vmem:[#allocation2 + $0x48] sm:$0xff] }
 0x3b5   : > { %2454 = vmatmul.mubr.f32.gmra.mrb[54].mxu1 %v1588_v55  ;;  %v11143_v14 = vld [vmem:[#allocation2 + $0x102] sm:$0xff] }
 0x3b6   : > { %2458 = vmatprep.mubr.f32.mxu1 %v1625_v24  ;;  %8518 = vmatpush1.bf16.msra.mxu1 %v8517_v49  ;;  %v6946_v49 = vld [vmem:[%s14242_s6 + $0x3b8] sm:$0xff]  ;;  %v6947_v24 = vld [vmem:[%s14242_s6 + $0x3c0] sm:$0xff] }
 0x3b7   : > { %2059 = vmatmul.mubr.f32.gmra.mrb[56].mxu0 %v11110_v23  ;;  %8519 = vmatprep.subr.bf16.mxu1 %v14484_v34  ;;  %v8526_v55 = vpack.c.bf16 %v6946_v49, %v6945_v44  ;;  %v1629_v44 = vld [vmem:[#allocation2 + $0x69] sm:$0xff] }
 0x3b8   : > { %2063 = vmatprep.mubr.f32.mxu0 %v10820_v35  ;;  %v1590_v35 = vld [vmem:[#allocation2 + $0x50] sm:$0xff] }
 0x3b9   : > { %2459 = vmatmul.mubr.f32.gmra.mrb[56].mxu1 %v1589_v7  ;;  %v11154_v49 = vld [vmem:[#allocation2 + $0x10a] sm:$0xff] }
 0x3ba   : > { %2463 = vmatprep.mubr.f32.mxu1 %v1626_v13  ;;  %8521 = vmatpush1.bf16.msra.mxu1 %v8520_v30  ;;  %v6948_v30 = vld [vmem:[%s14242_s6 + $0x3c8] sm:$0xff]  ;;  %v6949_v13 = vld [vmem:[%s14242_s6 + $0x3d0] sm:$0xff] }
 0x3bb   : > { %2064 = vmatmul.mubr.f32.gmra.mrb[58].mxu0 %v11121_v48  ;;  %8522 = vmatprep.subr.bf16.mxu1 %v14484_v34  ;;  %v8529_v7 = vpack.c.bf16 %v6948_v30, %v6947_v24  ;;  %v1630_v24 = vld [vmem:[#allocation2 + $0x71] sm:$0xff] }
 0x3bc   : > { %2068 = vmatprep.mubr.f32.mxu0 %v10825_v25  ;;  %v1591_v25 = vld [vmem:[#allocation2 + $0x58] sm:$0xff] }
 0x3bd   : > { %2464 = vmatmul.mubr.f32.gmra.mrb[58].mxu1 %v1590_v35  ;;  %v11165_v30 = vld [vmem:[#allocation2 + $0x112] sm:$0xff] }
 0x3be   : > { %2468 = vmatprep.mubr.f32.mxu1 %v1627_v57  ;;  %8524 = vmatpush1.bf16.msra.mxu1 %v8523_v59  ;;  %v6950_v59 = vld [vmem:[%s14242_s6 + $0x3d8] sm:$0xff]  ;;  %v6951_v57 = vld [vmem:[%s14242_s6 + $0x3e0] sm:$0xff] }
 0x3bf   : > { %2069 = vmatmul.mubr.f32.gmra.mrb[60].mxu0 %v11132_v58  ;;  %8525 = vmatprep.subr.bf16.mxu1 %v14484_v34  ;;  %v8532_v35 = vpack.c.bf16 %v6950_v59, %v6949_v13  ;;  %v1594_v13 = vld [vmem:[#allocation2 + $0x70] sm:$0xff]  ;;  %v1631_v59 = vld [vmem:[#allocation2 + $0x79] sm:$0xff] }
 0x3c0   : > { %2073 = vmatprep.mubr.f32.mxu0 %v10832_v47  ;;  %v1592_v47 = vld [vmem:[#allocation2 + $0x60] sm:$0xff] }
 0x3c1   : > { %2469 = vmatmul.mubr.f32.gmra.mrb[60].mxu1 %v1591_v25 }
 0x3c2   : > { %2473 = vmatprep.mubr.f32.mxu1 %v1628_v60  ;;  %8527 = vmatpush1.bf16.msra.mxu1 %v8526_v55  ;;  %v6952_v55 = vld [vmem:[%s14242_s6 + $0x3e8] sm:$0xff]  ;;  %v1771_v60 = vld [vmem:[#allocation2 + $0x11b] sm:$0xff] }
 0x3c3   : > { %2074 = vmatmul.mubr.f32.gmra.mrb[62].mxu0 %v11143_v14  ;;  %8528 = vmatprep.subr.bf16.mxu1 %v14484_v34  ;;  %v8535_v25 = vpack.c.bf16 %v6952_v55, %v6951_v57  ;;  %v1595_v57 = vld [vmem:[#allocation2 + $0x78] sm:$0xff]  ;;  %v1632_v55 = vld [vmem:[#allocation2 + $0x81] sm:$0xff] }
 0x3c4   : > { %2078 = vmatprep.mubr.f32.mxu0 %v10845_v26  ;;  %v1593_v26 = vld [vmem:[#allocation2 + $0x68] sm:$0xff] }
 0x3c5   : > { %2474 = vmatmul.mubr.f32.gmra.mrb[62].mxu1 %v1592_v47  ;;  %v11175_v47 = vld [vmem:[#allocation2 + $0x11a] sm:$0xff] }
 0x3c6   : > { %2478 = vmatprep.mubr.f32.mxu1 %v1629_v44  ;;  %8530 = vmatpush1.bf16.msra.mxu1 %v8529_v7  ;;  %v6953_v7 = vld [vmem:[%s14242_s6 + $0x3f0] sm:$0xff] }
 0x3c7   : > { %2079 = vmatmul.mubr.f32.gmra.mrb[64].mxu0 %v11154_v49  ;;  %8531 = vmatprep.subr.bf16.mxu1 %v14484_v34 }
 0x3c8   : > { %2083 = vmatprep.mubr.f32.mxu0 %v10851_v39  ;;  %v6954_v39 = vld [vmem:[%s14242_s6 + $0x3f8] sm:$0xff] }
 0x3c9   : > { %2479 = vmatmul.mubr.f32.gmra.mrb[64].mxu1 %v1593_v26  ;;  %v8538_v44 = vpack.c.bf16 %v6954_v39, %v6953_v7  ;;  %v1736_v26 = vld [vmem:[#allocation2 + $0x122] sm:$0xff]  ;;  %v1737_v39 = vld [vmem:[#allocation2 + $0x12a] sm:$0xff] }
 0x3ca   : > { %2483 = vmatprep.mubr.f32.mxu1 %v1630_v24  ;;  %8533 = vmatpush1.bf16.msra.mxu1 %v8532_v35  ;;  %v1772_v35 = vld [vmem:[#allocation2 + $0x123] sm:$0xff]  ;;  %v1773_v24 = vld [vmem:[#allocation2 + $0x12b] sm:$0xff] }
 0x3cb   : > { %2084 = vmatmul.mubr.f32.gmra.mrb[66].mxu0 %v11165_v30  ;;  %8534 = vmatprep.subr.bf16.mxu1 %v14484_v34  ;;  %v1652_v7 = vld [vmem:[#allocation2 + $0x2] sm:$0xff] }
 0x3cc   : > { %2088 = vmatprep.mubr.f32.mxu0 %v1771_v60  ;;  %v1596_v60 = vld [vmem:[#allocation2 + $0x80] sm:$0xff] }
 0x3cd   : > { %2484 = vmatmul.mubr.f32.gmra.mrb[66].mxu1 %v1594_v13  ;;  %v6957_v13 = vld [vmem:[%s14242_s6 + $0x410] sm:$0xff] }
 0x3ce   : > { %2488 = vmatprep.mubr.f32.mxu1 %v1631_v59  ;;  %8536 = vmatpush1.bf16.msra.mxu1 %v8535_v25  ;;  %v1633_v25 = vld [vmem:[#allocation2 + $0x89] sm:$0xff]  ;;  %v6958_v59 = vld [vmem:[%s14242_s6 + $0x418] sm:$0xff] }
 0x3cf   : > { %2089 = vmatmul.mubr.f32.gmra.mrb[68].mxu0 %v11175_v47  ;;  %8537 = vmatprep.subr.bf16.mxu1 %v14484_v34 }
 0x3d0   : > { %2093 = vmatprep.mubr.f32.mxu0 %v1772_v35  ;;  %v1653_v35 = vld [vmem:[#allocation2 + $0xa] sm:$0xff] }
 0x3d1   : > { %2489 = vmatmul.mubr.f32.gmra.mrb[68].mxu1 %v1595_v57  ;;  %v1634_v57 = vld [vmem:[#allocation2 + $0x91] sm:$0xff] }
 0x3d2   : > { %2493 = vmatprep.mubr.f32.mxu1 %v1632_v55  ;;  %8539 = vmatpush1.bf16.msra.mxu1 %v8538_v44  ;;  %v1597_v44 = vld [vmem:[#allocation2 + $0x88] sm:$0xff]  ;;  %v8544_v55 = vpack.c.bf16 %v6958_v59, %v6957_v13  ;;  %v6961_v13 = vld [vmem:[%s14242_s6 + $0x430] sm:$0xff]  ;;  %v6962_v59 = vld [vmem:[%s14242_s6 + $0x438] sm:$0xff] }
 0x3d3   : > { %2094 = vmatmul.mubr.f32.gmra.mrb[70].mxu0 %v1736_v26  ;;  %8620 = vmatprep.subr.bf16.mxu1 %v14484_v34  ;;  %v6959_v26 = vld [vmem:[%s14242_s6 + $0x420] sm:$0xff] }
 0x3d4   : > { %2098 = vmatprep.mubr.f32.mxu0 %v1773_v24  ;;  %v6960_v24 = vld [vmem:[%s14242_s6 + $0x428] sm:$0xff] }
 0x3d5   : > { %2494 = vmatmul.mubr.f32.gmra.mrb[70].mxu1 %v1596_v60  ;;  %v1598_v60 = vld [vmem:[#allocation2 + $0x90] sm:$0xff] }
 0x3d6   : > { %2498 = vmatprep.mubr.f32.mxu1 %v1633_v25  ;;  %v9216_v25 = vld [vmem:[#allocation2 + $0x12] sm:$0xff] }
 0x3d7   : > { %2099 = vmatmul.mubr.f32.gmra.mrb[72].mxu0 %v1737_v39  ;;  %v8548_v39 = vpack.c.bf16 %v6960_v24, %v6959_v26  ;;  %v6963_v26 = vld [vmem:[%s14242_s6 + $0x440] sm:$0xff]  ;;  %v6964_v24 = vld [vmem:[%s14242_s6 + $0x448] sm:$0xff] }
 0x3d8   : > { %7730 = vmatprep.mubr.f32.mxu0 %v1652_v7  ;;  %v1635_v7 = vld [vmem:[#allocation2 + $0x99] sm:$0xff] }
 0x3d9   : > { %2499 = vmatmul.mubr.f32.gmra.mrb[72].mxu1 %v1597_v44  ;;  %v9217_v44 = vld [vmem:[#allocation2 + $0x1a] sm:$0xff] }
 0x3da   : > { %2503 = vmatprep.mubr.f32.mxu1 %v1634_v57  ;;  %v8552_v57 = vpack.c.bf16 %v6962_v59, %v6961_v13  ;;  %v6967_v13 = vld [vmem:[%s14242_s6 + $0x460] sm:$0xff]  ;;  %v6968_v59 = vld [vmem:[%s14242_s6 + $0x468] sm:$0xff] }
 0x3db   : > { %7731 = vmatmul.mubr.f32.vlgmr.msra.gmra.mrb[74].mxu0 %v1653_v35  ;;  %v1599_v35 = vld [vmem:[#allocation2 + $0x98] sm:$0xff] }
 0x3dc   : > { %7733 = vmatprep.mubr.f32.mxu0 %v9216_v25  ;;  %8543 = vmatpush3.bf16.msra.mxu0 %v10991_v22  ;;  %v1636_v22 = vld [vmem:[#allocation2 + $0xa1] sm:$0xff]  ;;  %v6965_v25 = vld [vmem:[%s14242_s6 + $0x450] sm:$0xff] }
 0x3dd   : > { %2504 = vmatmul.mubr.f32.gmra.mrb[74].mxu1 %v1598_v60  ;;  %8545 = vmatprep.subr.bf16.mxu0 %v8544_v55  ;;  %v1600_v60 = vld [vmem:[#allocation2 + $0xa0] sm:$0xff] }
 0x3de   : > { %2508 = vmatprep.mubr.f32.mxu1 %v1635_v7  ;;  %v6966_v7 = vld [vmem:[%s14242_s6 + $0x458] sm:$0xff] }
 0x3df   : > { %7734 = vmatmul.mubr.f32.gmra.mrb[76].mxu0 %v9217_v44  ;;  %v8564_v44 = vpack.c.bf16 %v6968_v59, %v6967_v13  ;;  %v2913_v13 = vld [vmem:[#allocation2 + $0x36] sm:$0xff] }
 0x3e0   : > { %7736 = vmatprep.mubr.f32.mxu0 %v10729_v33  ;;  %8547 = vmatpush3.bf16.msra.mxu0 %v8544_v55  ;;  %v1637_v33 = vld [vmem:[#allocation2 + $0xa9] sm:$0xff]  ;;  %v8556_v55 = vpack.c.bf16 %v6964_v24, %v6963_v26  ;;  %v1604_v26 = vld [vmem:[#allocation2 + $0xc0] sm:$0xff] }
 0x3e1   : > { %2509 = vmatmul.mubr.f32.gmra.mrb[76].mxu1 %v1599_v35  ;;  %8549 = vmatprep.subr.bf16.mxu0 %v8548_v39  ;;  %v6969_v35 = vld [vmem:[%s14242_s6 + $0x470] sm:$0xff] }
 0x3e2   : > { %2513 = vmatprep.mubr.f32.mxu1 %v1636_v22  ;;  %v6970_v22 = vld [vmem:[%s14242_s6 + $0x478] sm:$0xff]  ;;  %v1641_v24 = vld [vmem:[#allocation2 + $0xc9] sm:$0xff] }
 0x3e3   : > { %7737 = vmatmul.mubr.f32.gmra.mrb[78].mxu0 %v10766_v45  ;;  %v1601_v45 = vld [vmem:[#allocation2 + $0xa8] sm:$0xff] }
 0x3e4   : > { %7739 = vmatprep.mubr.f32.mxu0 %v10797_v46  ;;  %8551 = vmatpush3.bf16.msra.mxu0 %v8548_v39  ;;  %v1638_v46 = vld [vmem:[#allocation2 + $0xb1] sm:$0xff]  ;;  %v8560_v39 = vpack.c.bf16 %v6966_v7, %v6965_v25  ;;  %v2875_v7 = vld [vmem:[#allocation2 + $0x25] sm:$0xff] }
 0x3e5   : > { %2514 = vmatmul.mubr.f32.gmra.mrb[78].mxu1 %v1600_v60  ;;  %8553 = vmatprep.subr.bf16.mxu0 %v8552_v57  ;;  %v1608_v60 = vld [vmem:[#allocation2 + $0xe0] sm:$0xff]  ;;  %v1615_v25 = vld [vmem:[#allocation2 + $0x118] sm:$0xff] }
 0x3e6   : > { %2518 = vmatprep.mubr.f32.mxu1 %v1637_v33 }
 0x3e7   : > { %7740 = vmatmul.mubr.f32.gmra.mrb[80].mxu0 %v10828_v62  ;;  %v1602_v62 = vld [vmem:[#allocation2 + $0xb0] sm:$0xff] }
 0x3e8   : > { %7742 = vmatprep.mubr.f32.mxu0 %v10857_v16  ;;  %8555 = vmatpush3.bf16.msra.mxu0 %v8552_v57  ;;  %v1639_v16 = vld [vmem:[#allocation2 + $0xb9] sm:$0xff]  ;;  %v8568_v57 = vpack.c.bf16 %v6970_v22, %v6969_v35 }
 0x3e9   : > { %2519 = vmatmul.mubr.f32.gmra.mrb[80].mxu1 %v1601_v45  ;;  %8557 = vmatprep.subr.bf16.mxu0 %v8556_v55  ;;  %v2914_v35 = vld [vmem:[#allocation2 + $0x3e] sm:$0xff] }
 0x3ea   : > { %2523 = vmatprep.mubr.f32.mxu1 %v1638_v46  ;;  %v2912_v46 = vld [vmem:[#allocation2 + $0x2e] sm:$0xff] }
 0x3eb   : > { %7743 = vmatmul.mubr.f32.gmra.mrb[82].mxu0 %v10874_v10  ;;  %v1603_v10 = vld [vmem:[#allocation2 + $0xb8] sm:$0xff] }
 0x3ec   : > { %7745 = vmatprep.mubr.f32.mxu0 %v10891_v6  ;;  %8559 = vmatpush3.bf16.msra.mxu0 %v8556_v55  ;;  %v1640_v6 = vld [vmem:[#allocation2 + $0xc1] sm:$0xff] }
 0x3ed   : > { %2524 = vmatmul.mubr.f32.gmra.mrb[82].mxu1 %v1602_v62  ;;  %8561 = vmatprep.subr.bf16.mxu0 %v8560_v39  ;;  %v2911_v55 = vld [vmem:[#allocation2 + $0x26] sm:$0xff] }
 0x3ee   : > { %2528 = vmatprep.mubr.f32.mxu1 %v1639_v16  ;;  %v2839_v62 = vld [vmem:[#allocation2 + $0x24] sm:$0xff]  ;;  %v2876_v16 = vld [vmem:[#allocation2 + $0x2d] sm:$0xff] }
 0x3ef   : > { %7746 = vmatmul.mubr.f32.gmra.mrb[84].mxu0 %v10905_v2  ;;  %v1605_v2 = vld [vmem:[#allocation2 + $0xc8] sm:$0xff] }
 0x3f0   : > { %7748 = vmatprep.mubr.f32.mxu0 %v10928_v43  ;;  %8563 = vmatpush3.bf16.msra.mxu0 %v8560_v39  ;;  %v1642_v43 = vld [vmem:[#allocation2 + $0xd1] sm:$0xff] }
 0x3f1   : > { %2529 = vmatmul.mubr.f32.gmra.mrb[84].mxu1 %v1603_v10  ;;  %8565 = vmatprep.subr.bf16.mxu0 %v8564_v44 }
 0x3f2   : > { %2533 = vmatprep.mubr.f32.mxu1 %v1640_v6  ;;  %v2915_v6 = vld [vmem:[#allocation2 + $0x46] sm:$0xff] }
 0x3f3   : > { %7749 = vmatmul.mubr.f32.gmra.mrb[86].mxu0 %v10939_v3  ;;  %v1606_v3 = vld [vmem:[#allocation2 + $0xd0] sm:$0xff] }
 0x3f4   : > { %7751 = vmatprep.mubr.f32.mxu0 %v10950_v40  ;;  %8567 = vmatpush3.bf16.msra.mxu0 %v8564_v44  ;;  %v1643_v40 = vld [vmem:[#allocation2 + $0xd9] sm:$0xff] }
 0x3f5   : > { %2534 = vmatmul.mubr.f32.gmra.mrb[86].mxu1 %v1604_v26  ;;  %8569 = vmatprep.subr.bf16.mxu0 %v8568_v57  ;;  %v2840_v26 = vld [vmem:[#allocation2 + $0x2c] sm:$0xff] }
 0x3f6   : > { %2538 = vmatprep.mubr.f32.mxu1 %v1641_v24 }
 0x3f7   : > { %7752 = vmatmul.mubr.f32.gmra.mrb[88].mxu0 %v10961_v36  ;;  %v1607_v36 = vld [vmem:[#allocation2 + $0xd8] sm:$0xff] }
 0x3f8   : > { %7754 = vmatprep.mubr.f32.mxu0 %v10972_v1  ;;  %8571 = vmatpush3.bf16.msra.mxu0 %v8568_v57  ;;  %v1644_v1 = vld [vmem:[#allocation2 + $0xe1] sm:$0xff] }
 0x3f9   : > { %2539 = vmatmul.mubr.f32.gmra.mrb[88].mxu1 %v1605_v2  ;;  %8572 = vmatprep.subr.bf16.mxu0 %v14484_v34  ;;  %v2877_v2 = vld [vmem:[#allocation2 + $0x35] sm:$0xff] }
 0x3fa   : > { %2543 = vmatprep.mubr.f32.mxu1 %v1642_v43 }
 0x3fb   : > { %7755 = vmatmul.mubr.f32.gmra.mrb[90].mxu0 %v10989_v32  ;;  %v1645_v32 = vld [vmem:[#allocation2 + $0xe9] sm:$0xff] }
 0x3fc   : > { %7757 = vmatprep.mubr.f32.mxu0 %v10997_v31  ;;  %v1609_v31 = vld [vmem:[#allocation2 + $0xe8] sm:$0xff] }
 0x3fd   : > { %2544 = vmatmul.mubr.f32.gmra.mrb[90].mxu1 %v1606_v3  ;;  %v2916_v3 = vld [vmem:[#allocation2 + $0x4e] sm:$0xff] }
 0x3fe   : > { %2548 = vmatprep.mubr.f32.mxu1 %v1643_v40 }
 0x3ff   : > { %7758 = vmatmul.mubr.f32.gmra.mrb[92].mxu0 %v11002_v52  ;;  %v1646_v52 = vld [vmem:[#allocation2 + $0xf1] sm:$0xff] }
 0x400   : > { %7760 = vmatprep.mubr.f32.mxu0 %v11012_v53  ;;  %v1610_v53 = vld [vmem:[#allocation2 + $0xf0] sm:$0xff] }
 0x401   : > { %2549 = vmatmul.mubr.f32.gmra.mrb[92].mxu1 %v1607_v36 }
 0x402   : > { %2553 = vmatprep.mubr.f32.mxu1 %v1644_v1  ;;  %v2917_v1 = vld [vmem:[#allocation2 + $0x56] sm:$0xff] }
 0x403   : > { %7761 = vmatmul.mubr.f32.gmra.mrb[94].mxu0 %v11022_v56  ;;  %v1647_v56 = vld [vmem:[#allocation2 + $0xf9] sm:$0xff] }
 0x404   : > { %7763 = vmatprep.mubr.f32.mxu0 %v11033_v41  ;;  %v1611_v41 = vld [vmem:[#allocation2 + $0xf8] sm:$0xff] }
 0x405   : > { %2554 = vmatmul.mubr.f32.gmra.mrb[94].mxu1 %v1608_v60 }
 0x406   : > { %2558 = vmatprep.mubr.f32.mxu1 %v1645_v32  ;;  %v2841_v32 = vld [vmem:[#allocation2 + $0x34] sm:$0xff] }
 0x407   : > { %7764 = vmatmul.mubr.f32.gmra.mrb[96].mxu0 %v11044_v61  ;;  %v1648_v61 = vld [vmem:[#allocation2 + $0x101] sm:$0xff] }
 0x408   : > { %7766 = vmatprep.mubr.f32.mxu0 %v11055_v50  ;;  %v1612_v50 = vld [vmem:[#allocation2 + $0x100] sm:$0xff] }
 0x409   : > { %2559 = vmatmul.mubr.f32.gmra.mrb[96].mxu1 %v1609_v31 }
 0x40a   : > { %2563 = vmatprep.mubr.f32.mxu1 %v1646_v52  ;;  %v2878_v52 = vld [vmem:[#allocation2 + $0x3d] sm:$0xff] }
 0x40b   : > { %7767 = vmatmul.mubr.f32.gmra.mrb[98].mxu0 %v11066_v15  ;;  %v1649_v15 = vld [vmem:[#allocation2 + $0x109] sm:$0xff] }
 0x40c   : > { %7769 = vmatprep.mubr.f32.mxu0 %v11077_v8  ;;  %v1613_v8 = vld [vmem:[#allocation2 + $0x108] sm:$0xff] }
 0x40d   : > { %2564 = vmatmul.mubr.f32.gmra.mrb[98].mxu1 %v1610_v53 }
 0x40e   : > { %2568 = vmatprep.mubr.f32.mxu1 %v1647_v56  ;;  %v2918_v56 = vld [vmem:[#allocation2 + $0x5e] sm:$0xff] }
 0x40f   : > { %7770 = vmatmul.mubr.f32.gmra.mrb[100].mxu0 %v11088_v51  ;;  %v1650_v51 = vld [vmem:[#allocation2 + $0x111] sm:$0xff] }
 0x410   : > { %7772 = vmatprep.mubr.f32.mxu0 %v11099_v42  ;;  %v1614_v42 = vld [vmem:[#allocation2 + $0x110] sm:$0xff] }
 0x411   : > { %2569 = vmatmul.mubr.f32.gmra.mrb[100].mxu1 %v1611_v41 }
 0x412   : > { %2573 = vmatprep.mubr.f32.mxu1 %v1648_v61 }
 0x413   : > { %7773 = vmatmul.mubr.f32.gmra.mrb[102].mxu0 %v11110_v23  ;;  %v1651_v23 = vld [vmem:[#allocation2 + $0x119] sm:$0xff] }
 0x414   : > { %7775 = vmatprep.mubr.f32.mxu0 %v11121_v48 }
 0x415   : > { %2574 = vmatmul.mubr.f32.gmra.mrb[102].mxu1 %v1612_v50  ;;  %v2919_v50 = vld [vmem:[#allocation2 + $0x66] sm:$0xff] }
 0x416   : > { %2578 = vmatprep.mubr.f32.mxu1 %v1649_v15 }
 0x417   : > { %7776 = vmatmul.mubr.f32.gmra.mrb[104].mxu0 %v11132_v58 }
 0x418   : > { %7778 = vmatprep.mubr.f32.mxu0 %v11143_v14 }
 0x419   : > { %2579 = vmatmul.mubr.f32.gmra.mrb[104].mxu1 %v1613_v8  ;;  %v1925_v48 = vpop.f32.mrb[2].mxu0  ;;  %v2842_v8 = vld [vmem:[#allocation2 + $0x3c] sm:$0xff] }
 0x41a   : > { %2583 = vmatprep.mubr.f32.mxu1 %v1650_v51  ;;  %v1927_v33 = vpop.f32.mrb[3].mxu0 }
 0x41b   : > { %7779 = vmatmul.mubr.f32.gmra.mrb[106].mxu0 %v11154_v49  ;;  %v7646_v58 = vpop.f32.mrb[2].mxu1 }
 0x41c   : > { %7781 = vmatprep.mubr.f32.mxu0 %v11165_v30  ;;  %v2170_v14 = vpop.f32.mrb[3].mxu1 }
 0x41d   : > { %2584 = vmatmul.mubr.f32.gmra.mrb[106].mxu1 %v1614_v42  ;;  %v11256_v45 = vadd.f32 %v2170_v14, %v1925_v48  ;;  %v1930_v49 = vpop.f32.mrb[4].mxu0  ;;  %v2879_v42 = vld [vmem:[#allocation2 + $0x45] sm:$0xff]  ;;  %v2920_v48 = vld [vmem:[#allocation2 + $0x6e] sm:$0xff] }
 0x41e   : > { %2588 = vmatprep.mubr.f32.mxu1 %v1651_v23  ;;  %v11258_v30 = vadd.f32 %v7646_v58, %v1930_v49  ;;  %v1932_v39 = vpop.f32.mrb[5].mxu0  ;;  %v2921_v58 = vld [vmem:[#allocation2 + $0x76] sm:$0xff]  ;;  %v2843_v14 = vld [vmem:[#allocation2 + $0x44] sm:$0xff]  ;;  %v2880_v49 = vld [vmem:[#allocation2 + $0x4d] sm:$0xff] }
 0x41f   : > { %7782 = vmatmul.mubr.f32.gmra.mrb[108].mxu0 %v11175_v47  ;;  %v7649_v59 = vpop.f32.mrb[4].mxu1  ;;  %v2922_v39 = vld [vmem:[#allocation2 + $0x7e] sm:$0xff] }
 0x420   : > { %7816 = vmatprep.mubr.f32.mxu0 %v2911_v55  ;;  %v2180_v47 = vpop.f32.mrb[5].mxu1 }
 0x421   : > { %2589 = vmatmul.mubr.f32.gmra.mrb[108].mxu1 %v1615_v25  ;;  %v1935_v44 = vpop.f32.mrb[6].mxu0 }
 0x422   : > { %3060 = vmatprep.mubr.f32.mxu1 %v2875_v7  ;;  %v11260_v22 = vadd.f32 %v2180_v47, %v1935_v44  ;;  %v1937_v10 = vpop.f32.mrb[7].mxu0 }
 0x423   : > { %7817 = vmatmul.mubr.f32.vlgmr.msra.gmra.mrb[110].mxu0 %v2912_v46 }
 0x424   : > { %7819 = vmatprep.mubr.f32.mxu0 %v2913_v13  ;;  %v7652_v57 = vpop.f32.mrb[6].mxu1 }
 0x425   : > { %3061 = vmatmul.mubr.f32.vlgmr.msra.gmra.mrb[110].mxu1 %v2839_v62  ;;  %v2190_v24 = vpop.f32.mrb[7].mxu1  ;;  %v2923_v62 = vld [vmem:[#allocation2 + $0x86] sm:$0xff] }
 0x426   : > { %3065 = vmatprep.mubr.f32.mxu1 %v2876_v16  ;;  %v2844_v16 = vld [vmem:[#allocation2 + $0x4c] sm:$0xff] }
 0x427   : > { %7820 = vmatmul.mubr.f32.gmra.mrb[112].mxu0 %v2914_v35  ;;  %v1940_v43 = vpop.f32.mrb[8].mxu0  ;;  %v2881_v35 = vld [vmem:[#allocation2 + $0x55] sm:$0xff] }
 0x428   : > { %7822 = vmatprep.mubr.f32.mxu0 %v2915_v6  ;;  %v11262_v40 = vadd.f32 %v7649_v59, %v1940_v43  ;;  %v1942_v36 = vpop.f32.mrb[9].mxu0  ;;  %v2924_v6 = vld [vmem:[#allocation2 + $0x8e] sm:$0xff] }
 0x429   : > { %3066 = vmatmul.mubr.f32.gmra.mrb[112].mxu1 %v2840_v26  ;;  %v2845_v43 = vld [vmem:[#allocation2 + $0x54] sm:$0xff]  ;;  %v2882_v36 = vld [vmem:[#allocation2 + $0x5d] sm:$0xff] }
 0x42a   : > { %3070 = vmatprep.mubr.f32.mxu1 %v2877_v2  ;;  %v7655_v60 = vpop.f32.mrb[8].mxu1 }
 0x42b   : > { %7823 = vmatmul.mubr.f32.gmra.mrb[114].mxu0 %v2916_v3  ;;  %v2200_v31 = vpop.f32.mrb[9].mxu1 }
 0x42c   : > { %7825 = vmatprep.mubr.f32.mxu0 %v2917_v1  ;;  %v1945_v53 = vpop.f32.mrb[10].mxu0 }
 0x42d   : > { %3071 = vmatmul.mubr.f32.gmra.mrb[114].mxu1 %v2841_v32  ;;  %v11264_v41 = vadd.f32 %v2190_v24, %v1945_v53  ;;  %v1947_v61 = vpop.f32.mrb[11].mxu0  ;;  %v2925_v24 = vld [vmem:[#allocation2 + $0x96] sm:$0xff]  ;;  %v2926_v32 = vld [vmem:[#allocation2 + $0x9e] sm:$0xff] }
 0x42e   : > { %3075 = vmatprep.mubr.f32.mxu1 %v2878_v52  ;;  %v7658_v15 = vpop.f32.mrb[10].mxu1 }
 0x42f   : > { %7826 = vmatmul.mubr.f32.gmra.mrb[116].mxu0 %v2918_v56  ;;  %v2210_v51 = vpop.f32.mrb[11].mxu1  ;;  %v2846_v56 = vld [vmem:[#allocation2 + $0x5c] sm:$0xff] }
 0x430   : > { %7828 = vmatprep.mubr.f32.mxu0 %v2919_v50  ;;  %v2883_v50 = vld [vmem:[#allocation2 + $0x65] sm:$0xff] }
 0x431   : > { %3076 = vmatmul.mubr.f32.gmra.mrb[116].mxu1 %v2842_v8  ;;  %v1950_v23 = vpop.f32.mrb[12].mxu0 }
 0x432   : > { %3080 = vmatprep.mubr.f32.mxu1 %v2879_v42  ;;  %v11266_v33 = vadd.f32 %v7652_v57, %v1950_v23  ;;  %v1952_v55 = vpop.f32.mrb[13].mxu0  ;;  %v11268_v25 = vpop.f32.mrb[12].mxu1  ;;  %v2928_v42 = vld [vmem:[#allocation2 + $0xae] sm:$0xff] }
 0x433   : > { %7829 = vmatmul.mubr.f32.gmra.mrb[118].mxu0 %v2920_v48  ;;  %v2220_v7 = vpop.f32.mrb[13].mxu1 }
 0x434   : > { %7831 = vmatprep.mubr.f32.mxu0 %v2921_v58  ;;  %v2847_v58 = vld [vmem:[#allocation2 + $0x64] sm:$0xff] }
 0x435   : > { %3081 = vmatmul.mubr.f32.gmra.mrb[118].mxu1 %v2843_v14  ;;  %v1955_v46 = vpop.f32.mrb[14].mxu0 }
 0x436   : > { %3085 = vmatprep.mubr.f32.mxu1 %v2880_v49  ;;  %v11270_v13 = vadd.f32 %v2200_v31, %v1955_v46  ;;  %v1957_v59 = vpop.f32.mrb[15].mxu0  ;;  %v2884_v49 = vld [vmem:[#allocation2 + $0x6d] sm:$0xff] }
 0x437   : > { %7832 = vmatmul.mubr.f32.gmra.mrb[120].mxu0 %v2922_v39  ;;  %v2930_v39 = vld [vmem:[#allocation2 + $0xbe] sm:$0xff] }
 0x438   : > { %v11272_v47 = vpop.f32.mrb[14].mxu1  ;;  %7834 = vmatprep.mubr.f32.mxu0 %v2923_v62 }
 0x439   : > { %v11274_v44 = vpop.f32.mrb[15].mxu1  ;;  %3086 = vmatmul.mubr.f32.gmra.mrb[120].mxu1 %v2844_v16  ;;  %v1960_v10 = vpop.f32.mrb[16].mxu0 }
 0x43a   : > { %3090 = vmatprep.mubr.f32.mxu1 %v2881_v35  ;;  %v11276_v57 = vadd.f32 %v7655_v60, %v1960_v10  ;;  %v1962_v26 = vpop.f32.mrb[17].mxu0  ;;  %v2927_v60 = vld [vmem:[#allocation2 + $0xa6] sm:$0xff] }
 0x43b   : > { %7835 = vmatmul.mubr.f32.gmra.mrb[122].mxu0 %v2924_v6  ;;  %v2848_v35 = vld [vmem:[#allocation2 + $0x6c] sm:$0xff]  ;;  %v2885_v6 = vld [vmem:[#allocation2 + $0x75] sm:$0xff] }
 0x43c   : > { %v11278_v2 = vpop.f32.mrb[16].mxu1  ;;  %7837 = vmatprep.mubr.f32.mxu0 %v2925_v24  ;;  %v2932_v24 = vld [vmem:[#allocation2 + $0xce] sm:$0xff] }
 0x43d   : > { %v11280_v3 = vpop.f32.mrb[17].mxu1  ;;  %3091 = vmatmul.mubr.f32.gmra.mrb[122].mxu1 %v2845_v43  ;;  %v1965_v1 = vpop.f32.mrb[18].mxu0 }
 0x43e   : > { %3095 = vmatprep.mubr.f32.mxu1 %v2882_v36  ;;  %v11282_v31 = vadd.f32 %v2210_v51, %v1965_v1  ;;  %v1967_v52 = vpop.f32.mrb[19].mxu0  ;;  %v2929_v51 = vld [vmem:[#allocation2 + $0xb6] sm:$0xff] }
 0x43f   : > { %7838 = vmatmul.mubr.f32.gmra.mrb[124].mxu0 %v2926_v32  ;;  %v2849_v32 = vld [vmem:[#allocation2 + $0x74] sm:$0xff] }
 0x440   : > { %v11284_v53 = vpop.f32.mrb[18].mxu1  ;;  %7840 = vmatprep.mubr.f32.mxu0 %v2927_v60  ;;  %v2886_v60 = vld [vmem:[#allocation2 + $0x7d] sm:$0xff] }
 0x441   : > { %v11286_v61 = vpop.f32.mrb[19].mxu1  ;;  %3096 = vmatmul.mubr.f32.gmra.mrb[124].mxu1 %v2846_v56  ;;  %v1970_v8 = vpop.f32.mrb[20].mxu0 }
 0x442   : > { %3100 = vmatprep.mubr.f32.mxu1 %v2883_v50  ;;  %v11288_v23 = vadd.f32 %v7658_v15, %v1970_v8  ;;  %v1972_v48 = vpop.f32.mrb[21].mxu0  ;;  %v2931_v15 = vld [vmem:[#allocation2 + $0xc6] sm:$0xff]  ;;  %v2934_v50 = vld [vmem:[#allocation2 + $0xde] sm:$0xff] }
 0x443   : > { %7841 = vmatmul.mubr.f32.gmra.mrb[126].mxu0 %v2928_v42 }
 0x444   : > { %v11290_v55 = vpop.f32.mrb[20].mxu1  ;;  %7843 = vmatprep.mubr.f32.mxu0 %v2929_v51  ;;  %v2850_v51 = vld [vmem:[#allocation2 + $0x7c] sm:$0xff] }
 0x445   : > { %v11292_v14 = vpop.f32.mrb[21].mxu1  ;;  %3101 = vmatmul.mubr.f32.gmra.mrb[126].mxu1 %v2847_v58  ;;  %v1975_v46 = vpop.f32.mrb[22].mxu0 }
 0x446   : > { %3105 = vmatprep.mubr.f32.mxu1 %v2884_v49  ;;  %v11294_v59 = vadd.f32 %v2220_v7, %v1975_v46  ;;  %v1977_v62 = vpop.f32.mrb[23].mxu0  ;;  %v2933_v7 = vld [vmem:[#allocation2 + $0xd6] sm:$0xff]  ;;  %v2887_v49 = vld [vmem:[#allocation2 + $0x85] sm:$0xff] }
 0x447   : > { %7844 = vmatmul.mubr.f32.gmra.mrb[128].mxu0 %v2930_v39  ;;  %v2936_v39 = vld [vmem:[#allocation2 + $0xee] sm:$0xff] }
 0x448   : > { %v11296_v16 = vpop.f32.mrb[22].mxu1  ;;  %7846 = vmatprep.mubr.f32.mxu0 %v2931_v15 }
 0x449   : > { %v11298_v10 = vpop.f32.mrb[23].mxu1  ;;  %3106 = vmatmul.mubr.f32.gmra.mrb[128].mxu1 %v2848_v35  ;;  %v1980_v26 = vpop.f32.mrb[24].mxu0 }
 0x44a   : > { %3110 = vmatprep.mubr.f32.mxu1 %v2885_v6  ;;  %v11301_v43 = vadd.f32 %v11268_v25, %v1980_v26  ;;  %v1982_v36 = vpop.f32.mrb[25].mxu0  ;;  %v2935_v25 = vld [vmem:[#allocation2 + $0xe6] sm:$0xff] }
 0x44b   : > { %7847 = vmatmul.mubr.f32.gmra.mrb[130].mxu0 %v2932_v24  ;;  %v2851_v6 = vld [vmem:[#allocation2 + $0x84] sm:$0xff]  ;;  %v2888_v24 = vld [vmem:[#allocation2 + $0x8d] sm:$0xff] }
 0x44c   : > { %v11303_v1 = vpop.f32.mrb[24].mxu1  ;;  %7849 = vmatprep.mubr.f32.mxu0 %v2933_v7  ;;  %v2938_v7 = vld [vmem:[#allocation2 + $0xfe] sm:$0xff] }
 0x44d   : > { %v11305_v52 = vpop.f32.mrb[25].mxu1  ;;  %3111 = vmatmul.mubr.f32.gmra.mrb[130].mxu1 %v2849_v32  ;;  %v1985_v56 = vpop.f32.mrb[26].mxu0 }
 0x44e   : > { %3115 = vmatprep.mubr.f32.mxu1 %v2886_v60  ;;  %v11308_v8 = vadd.f32 %v11274_v44, %v1985_v56  ;;  %v1987_v42 = vpop.f32.mrb[27].mxu0  ;;  %v2937_v44 = vld [vmem:[#allocation2 + $0xf6] sm:$0xff] }
 0x44f   : > { %7850 = vmatmul.mubr.f32.gmra.mrb[132].mxu0 %v2934_v50  ;;  %v2852_v50 = vld [vmem:[#allocation2 + $0x8c] sm:$0xff] }
 0x450   : > { %v11310_v48 = vpop.f32.mrb[26].mxu1  ;;  %7852 = vmatprep.mubr.f32.mxu0 %v2935_v25  ;;  %v2889_v25 = vld [vmem:[#allocation2 + $0x95] sm:$0xff] }
 0x451   : > { %v11312_v58 = vpop.f32.mrb[27].mxu1  ;;  %3116 = vmatmul.mubr.f32.gmra.mrb[132].mxu1 %v2850_v51  ;;  %v1990_v46 = vpop.f32.mrb[28].mxu0 }
 0x452   : > { %3120 = vmatprep.mubr.f32.mxu1 %v2887_v49  ;;  %v11315_v62 = vadd.f32 %v11272_v47, %v1990_v46  ;;  %v1992_v15 = vpop.f32.mrb[29].mxu0  ;;  %v2939_v47 = vld [vmem:[#allocation2 + $0x106] sm:$0xff]  ;;  %v2940_v49 = vld [vmem:[#allocation2 + $0x10e] sm:$0xff] }
 0x453   : > { %7853 = vmatmul.mubr.f32.gmra.mrb[134].mxu0 %v2936_v39 }
 0x454   : > { %v11317_v35 = vpop.f32.mrb[28].mxu1  ;;  %7855 = vmatprep.mubr.f32.mxu0 %v2937_v44  ;;  %v2853_v44 = vld [vmem:[#allocation2 + $0x94] sm:$0xff] }
 0x455   : > { %v11319_v26 = vpop.f32.mrb[29].mxu1  ;;  %3121 = vmatmul.mubr.f32.gmra.mrb[134].mxu1 %v2851_v6  ;;  %v1995_v36 = vpop.f32.mrb[30].mxu0 }
 0x456   : > { %3125 = vmatprep.mubr.f32.mxu1 %v2888_v24  ;;  %v11322_v32 = vadd.f32 %v11280_v3, %v1995_v36  ;;  %v1997_v60 = vpop.f32.mrb[31].mxu0  ;;  %v2941_v3 = vld [vmem:[#allocation2 + $0x116] sm:$0xff] }
 0x457   : > { %7856 = vmatmul.mubr.f32.gmra.mrb[136].mxu0 %v2938_v7  ;;  %v2890_v24 = vld [vmem:[#allocation2 + $0x9d] sm:$0xff] }
 0x458   : > { %v11324_v56 = vpop.f32.mrb[30].mxu1  ;;  %7858 = vmatprep.mubr.f32.mxu0 %v2939_v47  ;;  %v2942_v7 = vld [vmem:[#allocation2 + $0x11e] sm:$0xff] }
 0x459   : > { %v11326_v42 = vpop.f32.mrb[31].mxu1  ;;  %3126 = vmatmul.mubr.f32.gmra.mrb[136].mxu1 %v2852_v50  ;;  %v2000_v51 = vpop.f32.mrb[32].mxu0 }
 0x45a   : > { %3130 = vmatprep.mubr.f32.mxu1 %v2889_v25  ;;  %v11329_v46 = vadd.f32 %v11278_v2, %v2000_v51  ;;  %v2002_v39 = vpop.f32.mrb[33].mxu0  ;;  %v2943_v2 = vld [vmem:[#allocation2 + $0x126] sm:$0xff]  ;;  %v2854_v25 = vld [vmem:[#allocation2 + $0x9c] sm:$0xff] }
 0x45b   : > { %7859 = vmatmul.mubr.f32.gmra.mrb[138].mxu0 %v2940_v49  ;;  %v2891_v49 = vld [vmem:[#allocation2 + $0xa5] sm:$0xff]  ;;  %v2945_v39 = vld [vmem:[#allocation2 + $0x136] sm:$0xff] }
 0x45c   : > { %v11331_v15 = vpop.f32.mrb[32].mxu1  ;;  %7861 = vmatprep.mubr.f32.mxu0 %v2941_v3 }
 0x45d   : > { %v11333_v6 = vpop.f32.mrb[33].mxu1  ;;  %3131 = vmatmul.mubr.f32.gmra.mrb[138].mxu1 %v2853_v44  ;;  %v2005_v36 = vpop.f32.mrb[34].mxu0  ;;  %v2944_v44 = vld [vmem:[#allocation2 + $0x12e] sm:$0xff] }
 0x45e   : > { %3135 = vmatprep.mubr.f32.mxu1 %v2890_v24  ;;  %v11336_v60 = vadd.f32 %v11286_v61, %v2005_v36  ;;  %v2007_v47 = vpop.f32.mrb[35].mxu0 }
 0x45f   : > { %7862 = vmatmul.mubr.f32.gmra.mrb[140].mxu0 %v2942_v7  ;;  %v2855_v7 = vld [vmem:[#allocation2 + $0xa4] sm:$0xff] }
 0x460   : > { %v11338_v50 = vpop.f32.mrb[34].mxu1  ;;  %7864 = vmatprep.mubr.f32.mxu0 %v2943_v2  ;;  %v2946_v47 = vld [vmem:[#allocation2 + $0x13e] sm:$0xff]  ;;  %v2892_v2 = vld [vmem:[#allocation2 + $0xad] sm:$0xff] }
 0x461   : > { %v11340_v51 = vpop.f32.mrb[35].mxu1  ;;  %3136 = vmatmul.mubr.f32.gmra.mrb[140].mxu1 %v2854_v25  ;;  %v2010_v3 = vpop.f32.mrb[36].mxu0 }
 0x462   : > { %3140 = vmatprep.mubr.f32.mxu1 %v2891_v49  ;;  %v11343_v24 = vadd.f32 %v11284_v53, %v2010_v3  ;;  %v2012_v61 = vpop.f32.mrb[37].mxu0  ;;  %v2856_v3 = vld [vmem:[#allocation2 + $0xac] sm:$0xff] }
 0x463   : > { %7865 = vmatmul.mubr.f32.gmra.mrb[142].mxu0 %v2944_v44  ;;  %v9218_v61 = vld [vmem:[#allocation2] sm:$0xff] }
 0x464   : > { %v11345_v36 = vpop.f32.mrb[36].mxu1  ;;  %7867 = vmatprep.mubr.f32.mxu0 %v2945_v39  ;;  %v2893_v39 = vld [vmem:[#allocation2 + $0xb5] sm:$0xff] }
 0x465   : > { %v11347_v18 = vpop.f32.mrb[37].mxu1  ;;  %3141 = vmatmul.mubr.f32.gmra.mrb[142].mxu1 %v2855_v7  ;;  %v2015_v25 = vpop.f32.mrb[38].mxu0 }
 0x466   : > { %3145 = vmatprep.mubr.f32.mxu1 %v2892_v2  ;;  %v11350_v49 = vadd.f32 %v11292_v14, %v2015_v25  ;;  %v2017_v17 = vpop.f32.mrb[39].mxu0 }
 0x467   : > { %7868 = vmatmul.mubr.f32.gmra.mrb[144].mxu0 %v2946_v47  ;;  %v2857_v17 = vld [vmem:[#allocation2 + $0xb4] sm:$0xff] }
 0x468   : > { %v2415_v53 = vpop.f32.mrb[38].mxu1  ;;  %7902 = vmatprep.mubr.msk.f32.mxu0 %vm9232_vm0, %v9218_v61 }
 0x469   : > { %v2417_v44 = vpop.f32.mrb[39].mxu1  ;;  %3146 = vmatmul.mubr.f32.gmra.mrb[144].mxu1 %v2856_v3  ;;  %v11354_v21 = vadd.f32 %v2415_v53, %v11256_v45 }
 0x46a   : > { %3150 = vmatprep.mubr.f32.mxu1 %v2893_v39  ;;  %v2020_v7 = vpop.f32.mrb[40].mxu0  ;;  %v2858_v44 = vld [vmem:[#allocation2 + $0xbc] sm:$0xff] }
 0x46b   : > { %v11357_v2 = vadd.f32 %v11290_v55, %v2020_v7  ;;  %v2022_v14 = vpop.f32.mrb[41].mxu0  ;;  %v2895_v55 = vld [vmem:[#allocation2 + $0xc5] sm:$0xff] }
 0x46c   : > { %v2420_v25 = vpop.f32.mrb[40].mxu1 }
 0x46d   : > { %v2422_v47 = vpop.f32.mrb[41].mxu1  ;;  %3151 = vmatmul.mubr.f32.gmra.mrb[146].mxu1 %v2857_v17  ;;  %v11360_v54 = vadd.f32 %v2420_v25, %v11258_v30  ;;  %v2859_v25 = vld [vmem:[#allocation2 + $0xc4] sm:$0xff] }
 0x46e   : > { %3155 = vmatprep.mubr.f32.mxu1 %v2894_v9  ;;  %v2025_v3 = vpop.f32.mrb[42].mxu0 }
 0x46f   : > { %v11363_v61 = vadd.f32 %v11298_v10, %v2025_v3  ;;  %v2027_v45 = vpop.f32.mrb[43].mxu0  ;;  %v2896_v10 = vld [vmem:[#allocation2 + $0xcd] sm:$0xff] }
 0x470   : > { %v2425_v53 = vpop.f32.mrb[42].mxu1 }
 0x471   : > { %v2427_v39 = vpop.f32.mrb[43].mxu1  ;;  %3156 = vmatmul.mubr.f32.gmra.mrb[148].mxu1 %v2858_v44  ;;  %v11366_v7 = vadd.f32 %v2425_v53, %v11260_v22 }
 0x472   : > { %3160 = vmatprep.mubr.f32.mxu1 %v2895_v55  ;;  %v2030_v14 = vpop.f32.mrb[44].mxu0  ;;  %v2860_v39 = vld [vmem:[#allocation2 + $0xcc] sm:$0xff] }
 0x473   : > { %v11369_v17 = vadd.f32 %v11296_v16, %v2030_v14  ;;  %v2032_v30 = vpop.f32.mrb[45].mxu0  ;;  %v2897_v16 = vld [vmem:[#allocation2 + $0xd5] sm:$0xff] }
 0x474   : > { %v2430_v9 = vpop.f32.mrb[44].mxu1 }
 0x475   : > { %v2432_v47 = vpop.f32.mrb[45].mxu1  ;;  %3161 = vmatmul.mubr.f32.gmra.mrb[150].mxu1 %v2859_v25  ;;  %v11372_v3 = vadd.f32 %v2430_v9, %v11262_v40 }
 0x476   : > { %3165 = vmatprep.mubr.f32.mxu1 %v2896_v10  ;;  %v2035_v45 = vpop.f32.mrb[46].mxu0  ;;  %v2861_v47 = vld [vmem:[#allocation2 + $0xd4] sm:$0xff] }
 0x477   : > { %v11375_v44 = vadd.f32 %v11305_v52, %v2035_v45  ;;  %v2037_v22 = vpop.f32.mrb[47].mxu0  ;;  %v2898_v52 = vld [vmem:[#allocation2 + $0xdd] sm:$0xff] }
 0x478   : > { %v2435_v53 = vpop.f32.mrb[46].mxu1 }
 0x479   : > { %v2437_v55 = vpop.f32.mrb[47].mxu1  ;;  %3166 = vmatmul.mubr.f32.gmra.mrb[152].mxu1 %v2860_v39  ;;  %v11378_v14 = vadd.f32 %v2435_v53, %v11264_v41 }
 0x47a   : > { %3170 = vmatprep.mubr.f32.mxu1 %v2897_v16  ;;  %v2040_v30 = vpop.f32.mrb[48].mxu0  ;;  %v2862_v55 = vld [vmem:[#allocation2 + $0xdc] sm:$0xff] }
 0x47b   : > { %v11381_v25 = vadd.f32 %v11303_v1, %v2040_v30  ;;  %v2042_v40 = vpop.f32.mrb[49].mxu0  ;;  %v2899_v1 = vld [vmem:[#allocation2 + $0xe5] sm:$0xff] }
 0x47c   : > { %v2440_v9 = vpop.f32.mrb[48].mxu1 }
 0x47d   : > { %v2442_v10 = vpop.f32.mrb[49].mxu1  ;;  %3171 = vmatmul.mubr.f32.gmra.mrb[154].mxu1 %v2861_v47  ;;  %v11384_v45 = vadd.f32 %v2440_v9, %v11266_v33 }
 0x47e   : > { %3175 = vmatprep.mubr.f32.mxu1 %v2898_v52  ;;  %v2045_v22 = vpop.f32.mrb[50].mxu0  ;;  %v2863_v10 = vld [vmem:[#allocation2 + $0xe4] sm:$0xff] }
 0x47f   : > { %v11387_v39 = vadd.f32 %v11312_v58, %v2045_v22  ;;  %v2047_v41 = vpop.f32.mrb[51].mxu0  ;;  %v2900_v58 = vld [vmem:[#allocation2 + $0xed] sm:$0xff] }
 0x480   : > { %v2445_v53 = vpop.f32.mrb[50].mxu1 }
 0x481   : > { %v2447_v16 = vpop.f32.mrb[51].mxu1  ;;  %3176 = vmatmul.mubr.f32.gmra.mrb[156].mxu1 %v2862_v55  ;;  %v11390_v30 = vadd.f32 %v2445_v53, %v11270_v13 }
 0x482   : > { %3180 = vmatprep.mubr.f32.mxu1 %v2899_v1  ;;  %v2050_v40 = vpop.f32.mrb[52].mxu0  ;;  %v2864_v16 = vld [vmem:[#allocation2 + $0xec] sm:$0xff] }
 0x483   : > { %v11393_v47 = vadd.f32 %v11310_v48, %v2050_v40  ;;  %v2052_v33 = vpop.f32.mrb[53].mxu0  ;;  %v2901_v48 = vld [vmem:[#allocation2 + $0xf5] sm:$0xff] }
 0x484   : > { %v2450_v9 = vpop.f32.mrb[52].mxu1 }
 0x485   : > { %v2452_v52 = vpop.f32.mrb[53].mxu1  ;;  %3181 = vmatmul.mubr.f32.gmra.mrb[158].mxu1 %v2863_v10  ;;  %v11396_v22 = vadd.f32 %v2450_v9, %v11276_v57 }
 0x486   : > { %3185 = vmatprep.mubr.f32.mxu1 %v2900_v58  ;;  %v2055_v41 = vpop.f32.mrb[54].mxu0  ;;  %v2865_v52 = vld [vmem:[#allocation2 + $0xf4] sm:$0xff] }
 0x487   : > { %v11399_v55 = vadd.f32 %v11319_v26, %v2055_v41  ;;  %v2057_v13 = vpop.f32.mrb[55].mxu0  ;;  %v2902_v26 = vld [vmem:[#allocation2 + $0xfd] sm:$0xff] }
 0x488   : > { %v2455_v53 = vpop.f32.mrb[54].mxu1 }
 0x489   : > { %v2457_v1 = vpop.f32.mrb[55].mxu1  ;;  %3186 = vmatmul.mubr.f32.gmra.mrb[160].mxu1 %v2864_v16  ;;  %v11402_v40 = vadd.f32 %v2455_v53, %v11282_v31 }
 0x48a   : > { %3190 = vmatprep.mubr.f32.mxu1 %v2901_v48  ;;  %v2060_v33 = vpop.f32.mrb[56].mxu0  ;;  %v2866_v1 = vld [vmem:[#allocation2 + $0xfc] sm:$0xff] }
 0x48b   : > { %v11405_v10 = vadd.f32 %v11317_v35, %v2060_v33  ;;  %v2062_v57 = vpop.f32.mrb[57].mxu0  ;;  %v2903_v35 = vld [vmem:[#allocation2 + $0x105] sm:$0xff] }
 0x48c   : > { %v2460_v9 = vpop.f32.mrb[56].mxu1 }
 0x48d   : > { %v2462_v58 = vpop.f32.mrb[57].mxu1  ;;  %3191 = vmatmul.mubr.f32.gmra.mrb[162].mxu1 %v2865_v52  ;;  %v11408_v41 = vadd.f32 %v2460_v9, %v11288_v23 }
 0x48e   : > { %3195 = vmatprep.mubr.f32.mxu1 %v2902_v26  ;;  %v2065_v13 = vpop.f32.mrb[58].mxu0  ;;  %v2867_v58 = vld [vmem:[#allocation2 + $0x104] sm:$0xff] }
 0x48f   : > { %v11411_v16 = vadd.f32 %v11326_v42, %v2065_v13  ;;  %v2067_v31 = vpop.f32.mrb[59].mxu0  ;;  %v2904_v42 = vld [vmem:[#allocation2 + $0x10d] sm:$0xff] }
 0x490   : > { %v2465_v53 = vpop.f32.mrb[58].mxu1 }
 0x491   : > { %v2467_v48 = vpop.f32.mrb[59].mxu1  ;;  %3196 = vmatmul.mubr.f32.gmra.mrb[164].mxu1 %v2866_v1  ;;  %v11414_v33 = vadd.f32 %v2465_v53, %v11294_v59 }
 0x492   : > { %3200 = vmatprep.mubr.f32.mxu1 %v2903_v35  ;;  %v2070_v57 = vpop.f32.mrb[60].mxu0  ;;  %v2868_v48 = vld [vmem:[#allocation2 + $0x10c] sm:$0xff] }
 0x493   : > { %v11417_v52 = vadd.f32 %v11324_v56, %v2070_v57  ;;  %v2072_v23 = vpop.f32.mrb[61].mxu0  ;;  %v2905_v56 = vld [vmem:[#allocation2 + $0x115] sm:$0xff] }
 0x494   : > { %v2470_v9 = vpop.f32.mrb[60].mxu1 }
 0x495   : > { %v2472_v26 = vpop.f32.mrb[61].mxu1  ;;  %3201 = vmatmul.mubr.f32.gmra.mrb[166].mxu1 %v2867_v58  ;;  %v11420_v13 = vadd.f32 %v2470_v9, %v11301_v43 }
 0x496   : > { %3205 = vmatprep.mubr.f32.mxu1 %v2904_v42  ;;  %v2075_v31 = vpop.f32.mrb[62].mxu0  ;;  %v2869_v26 = vld [vmem:[#allocation2 + $0x114] sm:$0xff] }
 0x497   : > { %v11423_v1 = vadd.f32 %v11333_v6, %v2075_v31  ;;  %v2077_v59 = vpop.f32.mrb[63].mxu0  ;;  %v2906_v6 = vld [vmem:[#allocation2 + $0x11d] sm:$0xff] }
 0x498   : > { %v2475_v53 = vpop.f32.mrb[62].mxu1 }
 0x499   : > { %v2477_v35 = vpop.f32.mrb[63].mxu1  ;;  %3206 = vmatmul.mubr.f32.gmra.mrb[168].mxu1 %v2868_v48  ;;  %v11426_v57 = vadd.f32 %v2475_v53, %v11308_v8 }
 0x49a   : > { %3210 = vmatprep.mubr.f32.mxu1 %v2905_v56  ;;  %v2080_v23 = vpop.f32.mrb[64].mxu0  ;;  %v2870_v35 = vld [vmem:[#allocation2 + $0x11c] sm:$0xff] }
 0x49b   : > { %v11429_v58 = vadd.f32 %v11331_v15, %v2080_v23  ;;  %v2082_v43 = vpop.f32.mrb[65].mxu0  ;;  %v2907_v15 = vld [vmem:[#allocation2 + $0x125] sm:$0xff] }
 0x49c   : > { %v2480_v9 = vpop.f32.mrb[64].mxu1 }
 0x49d   : > { %v2482_v42 = vpop.f32.mrb[65].mxu1  ;;  %3211 = vmatmul.mubr.f32.gmra.mrb[170].mxu1 %v2869_v26  ;;  %v11432_v31 = vadd.f32 %v2480_v9, %v11315_v62 }
 0x49e   : > { %3215 = vmatprep.mubr.f32.mxu1 %v2906_v6  ;;  %v2085_v59 = vpop.f32.mrb[66].mxu0  ;;  %v2871_v42 = vld [vmem:[#allocation2 + $0x124] sm:$0xff] }
 0x49f   : > { %v11435_v48 = vadd.f32 %v11340_v51, %v2085_v59  ;;  %v2087_v8 = vpop.f32.mrb[67].mxu0  ;;  %v2908_v51 = vld [vmem:[#allocation2 + $0x12d] sm:$0xff] }
 0x4a0   : > { %v2485_v53 = vpop.f32.mrb[66].mxu1 }
 0x4a1   : > { %v2487_v56 = vpop.f32.mrb[67].mxu1  ;;  %3216 = vmatmul.mubr.f32.gmra.mrb[172].mxu1 %v2870_v35  ;;  %v11438_v23 = vadd.f32 %v2485_v53, %v11322_v32  ;;  %v2909_v53 = vld [vmem:[#allocation2 + $0x135] sm:$0xff] }
 0x4a2   : > { %3220 = vmatprep.mubr.f32.mxu1 %v2907_v15  ;;  %v2090_v43 = vpop.f32.mrb[68].mxu0  ;;  %v2872_v15 = vld [vmem:[#allocation2 + $0x12c] sm:$0xff] }
 0x4a3   : > { %v11441_v26 = vadd.f32 %v11338_v50, %v2090_v43  ;;  %v2092_v62 = vpop.f32.mrb[69].mxu0 }
 0x4a4   : > { %v2490_v9 = vpop.f32.mrb[68].mxu1 }
 0x4a5   : > { %v2492_v6 = vpop.f32.mrb[69].mxu1  ;;  %3221 = vmatmul.mubr.f32.gmra.mrb[174].mxu1 %v2871_v42  ;;  %v11444_v59 = vadd.f32 %v2490_v9, %v11329_v46  ;;  %v2873_v42 = vld [vmem:[#allocation2 + $0x134] sm:$0xff] }
 0x4a6   : > { %3225 = vmatprep.mubr.f32.mxu1 %v2908_v51  ;;  %v2095_v8 = vpop.f32.mrb[70].mxu0  ;;  %v2910_v6 = vld [vmem:[#allocation2 + $0x13d] sm:$0xff] }
 0x4a7   : > { %v11447_v35 = vadd.f32 %v11347_v18, %v2095_v8  ;;  %v2097_v32 = vpop.f32.mrb[71].mxu0 }
 0x4a8   : > { %v2495_v56 = vpop.f32.mrb[70].mxu1 }
 0x4a9   : > { %v2497_v50 = vpop.f32.mrb[71].mxu1  ;;  %3226 = vmatmul.mubr.f32.gmra.mrb[176].mxu1 %v2872_v15  ;;  %v11450_v43 = vadd.f32 %v2495_v56, %v11336_v60 }
 0x4aa   : > { %v2100_v62 = vpop.f32.mrb[72].mxu0  ;;  %3230 = vmatprep.mubr.f32.mxu1 %v2909_v53  ;;  %v2874_v50 = vld [vmem:[#allocation2 + $0x13c] sm:$0xff] }
 0x4ab   : > { %v11453_v46 = vadd.f32 %v11345_v36, %v2100_v62  ;;  %v2102_v9 = vpop.f32.mrb[73].mxu0 }
 0x4ac   : > { %v2500_v51 = vpop.f32.mrb[72].mxu1 }
 0x4ad   : > { %v2502_v18 = vpop.f32.mrb[73].mxu1  ;;  %3231 = vmatmul.mubr.f32.gmra.mrb[178].mxu1 %v2873_v42  ;;  %v2501_v8 = vadd.f32 %v2500_v51, %v11343_v24 }
 0x4ae   : > { %v7732_v32 = vpop.f32.mrb[74].mxu0  ;;  %3235 = vmatprep.mubr.f32.mxu1 %v2910_v6 }
 0x4af   : > { %v11457_v15 = vadd.f32 %v7732_v32, %v11360_v54  ;;  %v2660_v60 = vpop.f32.mrb[75].mxu0 }
 0x4b0   : > { %v2505_v56 = vpop.f32.mrb[74].mxu1  ;;  %v11460_v53 = vadd.f32 %v2660_v60, %v11354_v21 }
 0x4b1   : > { %v2507_v36 = vpop.f32.mrb[75].mxu1  ;;  %3236 = vmatmul.mubr.f32.gmra.mrb[180].mxu1 %v2874_v50  ;;  %v2506_v62 = vadd.f32 %v2505_v56, %v11350_v49 }
 0x4b2   : > { %v7735_v9 = vpop.f32.mrb[76].mxu0 }
 0x4b3   : > { %v11464_v42 = vadd.f32 %v7735_v9, %v11372_v3  ;;  %v2670_v24 = vpop.f32.mrb[77].mxu0 }
 0x4b4   : > { %v2510_v51 = vpop.f32.mrb[76].mxu1  ;;  %v11467_v6 = vadd.f32 %v2670_v24, %v11366_v7 }
 0x4b5   : > { %v2512_v54 = vpop.f32.mrb[77].mxu1  ;;  %v2511_v18 = vadd.f32 %v2510_v51, %v11357_v2 }
 0x4b6   : > { %v7738_v32 = vpop.f32.mrb[78].mxu0 }
 0x4b7   : > { %v11471_v21 = vadd.f32 %v7738_v32, %v11384_v45  ;;  %v2680_v60 = vpop.f32.mrb[79].mxu0 }
 0x4b8   : > { %v2515_v50 = vpop.f32.mrb[78].mxu1  ;;  %v11474_v49 = vadd.f32 %v2680_v60, %v11378_v14 }
 0x4b9   : > { %v2517_v56 = vpop.f32.mrb[79].mxu1  ;;  %v2516_v3 = vadd.f32 %v2515_v50, %v11363_v61 }
 0x4ba   : > { %v7741_v36 = vpop.f32.mrb[80].mxu0 }
 0x4bb   : > { %v11478_v9 = vadd.f32 %v7741_v36, %v11396_v22  ;;  %v2690_v7 = vpop.f32.mrb[81].mxu0 }
 0x4bc   : > { %v2520_v24 = vpop.f32.mrb[80].mxu1  ;;  %v11481_v2 = vadd.f32 %v2690_v7, %v11390_v30 }
 0x4bd   : > { %v2522_v51 = vpop.f32.mrb[81].mxu1  ;;  %v2521_v45 = vadd.f32 %v2520_v24, %v11369_v17 }
 0x4be   : > { %v7744_v54 = vpop.f32.mrb[82].mxu0 }
 0x4bf   : > { %v11485_v32 = vadd.f32 %v7744_v54, %v11408_v41  ;;  %v2700_v14 = vpop.f32.mrb[83].mxu0 }
 0x4c0   : > { %v2525_v60 = vpop.f32.mrb[82].mxu1  ;;  %v11488_v61 = vadd.f32 %v2700_v14, %v11402_v40 }
 0x4c1   : > { %v2527_v50 = vpop.f32.mrb[83].mxu1  ;;  %v2526_v22 = vadd.f32 %v2525_v60, %v11375_v44 }
 0x4c2   : > { %v7747_v56 = vpop.f32.mrb[84].mxu0 }
 0x4c3   : > { %v11492_v36 = vadd.f32 %v7747_v56, %v11420_v13  ;;  %v2710_v30 = vpop.f32.mrb[85].mxu0 }
 0x4c4   : > { %v2530_v7 = vpop.f32.mrb[84].mxu1  ;;  %v11495_v17 = vadd.f32 %v2710_v30, %v11414_v33 }
 0x4c5   : > { %v2532_v24 = vpop.f32.mrb[85].mxu1  ;;  %v2531_v41 = vadd.f32 %v2530_v7, %v11381_v25 }
 0x4c6   : > { %v7750_v51 = vpop.f32.mrb[86].mxu0 }
 0x4c7   : > { %v11499_v54 = vadd.f32 %v7750_v51, %v11432_v31  ;;  %v2720_v40 = vpop.f32.mrb[87].mxu0 }
 0x4c8   : > { %v2535_v14 = vpop.f32.mrb[86].mxu1  ;;  %v11502_v44 = vadd.f32 %v2720_v40, %v11426_v57 }
 0x4c9   : > { %v2537_v60 = vpop.f32.mrb[87].mxu1  ;;  %v2536_v13 = vadd.f32 %v2535_v14, %v11387_v39 }
 0x4ca   : > { %v7753_v50 = vpop.f32.mrb[88].mxu0 }
 0x4cb   : > { %v11506_v56 = vadd.f32 %v7753_v50, %v11444_v59  ;;  %v2730_v33 = vpop.f32.mrb[89].mxu0 }
 0x4cc   : > { %v2540_v30 = vpop.f32.mrb[88].mxu1  ;;  %v11509_v25 = vadd.f32 %v2730_v33, %v11438_v23 }
 0x4cd   : > { %v2542_v7 = vpop.f32.mrb[89].mxu1  ;;  %v2541_v31 = vadd.f32 %v2540_v30, %v11393_v47 }
 0x4ce   : > { %v7756_v24 = vpop.f32.mrb[90].mxu0 }
 0x4cf   : > { %v11512_v51 = vadd.f32 %v7756_v24, %v2501_v8  ;;  %v2740_v57 = vpop.f32.mrb[91].mxu0 }
 0x4d0   : > { %v2545_v40 = vpop.f32.mrb[90].mxu1  ;;  %v11515_v60 = vadd.f32 %v2740_v57, %v11450_v43 }
 0x4d1   : > { %v2547_v39 = vpop.f32.mrb[91].mxu1  ;;  %v2546_v59 = vadd.f32 %v2545_v40, %v11399_v55 }
 0x4d2   : > { %v7759_v14 = vpop.f32.mrb[92].mxu0 }
 0x4d3   : > { %v11518_v50 = vadd.f32 %v7759_v14, %v2511_v18  ;;  %v2750_v38 = vpop.f32.mrb[93].mxu0  ;;  %v3642_v18 = vld [vmem:[%s14243_s7] sm:$0xff] }
 0x4d4   : > { %v2550_v23 = vpop.f32.mrb[92].mxu1  ;;  %v11520_v33 = vadd.f32 %v2750_v38, %v2506_v62  ;;  %v3643_v38 = vld [vmem:[%s14243_s7 + $0x8] sm:$0xff] }
 0x4d5   : > { %v2552_v7 = vpop.f32.mrb[93].mxu1  ;;  %v2551_v47 = vadd.f32 %v2550_v23, %v11405_v10  ;;  %v11534_v10 = vpack.c.bf16 %v3643_v38, %v3642_v18 }
 0x4d6   : > { %v7762_v8 = vpop.f32.mrb[94].mxu0 }
 0x4d7   : > { %v11523_v30 = vadd.f32 %v7762_v8, %v2521_v45  ;;  %v2760_v24 = vpop.f32.mrb[95].mxu0  ;;  %14532 = vst [vmem:[#allocation19_spill] sm:$0xff] %v11534_v10  ;;  %8574 = vmatpush3.bf16.msra.mxu0 %v11534_v10 }
 0x4d8   : > { %v2555_v29 = vpop.f32.mrb[94].mxu1  ;;  %v11525_v43 = vadd.f32 %v2760_v24, %v2516_v3  ;;  %8575 = vmatprep.subr.bf16.mxu0 %v14484_v34 }
 0x4d9   : > { %v2557_v57 = vpop.f32.mrb[95].mxu1  ;;  %v2556_v55 = vadd.f32 %v2555_v29, %v11411_v16 }
 0x4da   : > { %v7765_v62 = vpop.f32.mrb[96].mxu0 }
 0x4db   : > { %v11536_v45 = vadd.f32 %v7765_v62, %v2531_v41  ;;  %v2770_v40 = vpop.f32.mrb[97].mxu0 }
 0x4dc   : > { %v2560_v39 = vpop.f32.mrb[96].mxu1  ;;  %v11538_v3 = vadd.f32 %v2770_v40, %v2526_v22 }
 0x4dd   : > { %v2562_v29 = vpop.f32.mrb[97].mxu1  ;;  %v2561_v16 = vadd.f32 %v2560_v39, %v11417_v52 }
 0x4de   : > { %v7768_v14 = vpop.f32.mrb[98].mxu0 }
 0x4df   : > { %v11543_v23 = vadd.f32 %v7768_v14, %v2541_v31  ;;  %v2780_v7 = vpop.f32.mrb[99].mxu0  ;;  %v3644_v31 = vld [vmem:[%s14243_s7 + $0x10] sm:$0xff] }
 0x4e0   : > { %v2565_v8 = vpop.f32.mrb[98].mxu1  ;;  %v11545_v24 = vadd.f32 %v2780_v7, %v2536_v13  ;;  %v3645_v13 = vld [vmem:[%s14243_s7 + $0x18] sm:$0xff] }
 0x4e1   : > { %v2567_v41 = vpop.f32.mrb[99].mxu1  ;;  %v2566_v57 = vadd.f32 %v2565_v8, %v11423_v1  ;;  %v11559_v1 = vpack.c.bf16 %v3645_v13, %v3644_v31 }
 0x4e2   : > { %v7771_v18 = vpop.f32.mrb[100].mxu0 }
 0x4e3   : > { %v11548_v22 = vadd.f32 %v7771_v18, %v2551_v47  ;;  %v2790_v38 = vpop.f32.mrb[101].mxu0  ;;  %14535 = vst [vmem:[#allocation53_spill] sm:$0xff] %v11559_v1  ;;  %8577 = vmatpush3.bf16.msra.mxu0 %v11559_v1 }
 0x4e4   : > { %v2570_v62 = vpop.f32.mrb[100].mxu1  ;;  %v11550_v40 = vadd.f32 %v2790_v38, %v2546_v59  ;;  %8578 = vmatprep.subr.bf16.mxu0 %v14484_v34 }
 0x4e5   : > { %14533 = vst [vmem:[#allocation52_spill] sm:$0xff] %v11548_v22  ;;  %v2572_v52 = vpop.f32.mrb[101].mxu1  ;;  %v2571_v39 = vadd.f32 %v2570_v62, %v11429_v58 }
 0x4e6   : > { %14534 = vst [vmem:[#allocation20_spill] sm:$0xff] %v11550_v40  ;;  %v7774_v29 = vpop.f32.mrb[102].mxu0 }
 0x4e7   : > { %v11561_v47 = vadd.f32 %v7774_v29, %v2561_v16  ;;  %v2800_v14 = vpop.f32.mrb[103].mxu0 }
 0x4e8   : > { %v2575_v7 = vpop.f32.mrb[102].mxu1  ;;  %v11563_v59 = vadd.f32 %v2800_v14, %v2556_v55  ;;  %v3646_v55 = vld [vmem:[%s14243_s7 + $0x20] sm:$0xff] }
 0x4e9   : > { %14536 = vst [vmem:[#allocation23_spill] sm:$0xff] %v11561_v47  ;;  %v2577_v58 = vpop.f32.mrb[103].mxu1  ;;  %v2576_v8 = vadd.f32 %v2575_v7, %v11435_v48  ;;  %v3647_v48 = vld [vmem:[%s14243_s7 + $0x28] sm:$0xff] }
 0x4ea   : > { %14537 = vst [vmem:[#allocation54_spill] sm:$0xff] %v11563_v59  ;;  %v7777_v41 = vpop.f32.mrb[104].mxu0  ;;  %v11579_v29 = vpack.c.bf16 %v3647_v48, %v3646_v55  ;;  %v3649_v48 = vld [vmem:[%s14243_s7 + $0x38] sm:$0xff] }
 0x4eb   : > { %v11568_v18 = vadd.f32 %v7777_v41, %v2571_v39  ;;  %v2810_v38 = vpop.f32.mrb[105].mxu0 }
 0x4ec   : > { %v2580_v62 = vpop.f32.mrb[104].mxu1  ;;  %v11570_v52 = vadd.f32 %v2810_v38, %v2566_v57  ;;  %14540 = vst [vmem:[#allocation27_spill] sm:$0xff] %v11579_v29  ;;  %8580 = vmatpush3.bf16.msra.mxu0 %v11579_v29 }
 0x4ed   : > { %14538 = vst [vmem:[#allocation24_spill] sm:$0xff] %v11568_v18  ;;  %v2582_v16 = vpop.f32.mrb[105].mxu1  ;;  %v2581_v31 = vadd.f32 %v2580_v62, %v11441_v26  ;;  %8581 = vmatprep.subr.bf16.mxu0 %v14484_v34 }
 0x4ee   : > { %14539 = vst [vmem:[#allocation56_spill] sm:$0xff] %v11570_v52  ;;  %v7780_v13 = vpop.f32.mrb[106].mxu0 }
 0x4ef   : > { %v11581_v39 = vadd.f32 %v7780_v13, %v2581_v31  ;;  %v2820_v14 = vpop.f32.mrb[107].mxu0 }
 0x4f0   : > { %v2585_v7 = vpop.f32.mrb[106].mxu1  ;;  %v11583_v57 = vadd.f32 %v2820_v14, %v2576_v8  ;;  %v3648_v8 = vld [vmem:[%s14243_s7 + $0x30] sm:$0xff] }
 0x4f1   : > { %14541 = vst [vmem:[#allocation57_spill] sm:$0xff] %v11581_v39  ;;  %v2587_v26 = vpop.f32.mrb[107].mxu1  ;;  %v2586_v58 = vadd.f32 %v2585_v7, %v11447_v35  ;;  %v11597_v35 = vpack.c.bf16 %v3649_v48, %v3648_v8 }
 0x4f2   : > { %14542 = vst [vmem:[#allocation28_spill] sm:$0xff] %v11583_v57  ;;  %v7783_v41 = vpop.f32.mrb[108].mxu0 }
 0x4f3   : > { %v2830_v38 = vpop.f32.mrb[109].mxu0  ;;  %14544 = vst [vmem:[#allocation58_spill] sm:$0xff] %v11597_v35  ;;  %8583 = vmatpush3.bf16.msra.mxu0 %v11597_v35 }
 0x4f4   : > { %v2590_v62 = vpop.f32.mrb[108].mxu1  ;;  %v11588_v16 = vadd.f32 %v2830_v38, %v2586_v58  ;;  %8584 = vmatprep.subr.bf16.mxu0 %v14484_v34 }
 0x4f5   : > { %v2591_v55 = vadd.f32 %v2590_v62, %v11453_v46  ;;  %v2592_v31 = vpop.f32.mrb[109].mxu1 }
 0x4f6   : > { %14543 = vst [vmem:[#allocation55_spill] sm:$0xff] %v11588_v16  ;;  %v7818_v13 = vpop.f32.mrb[110].mxu0 }
 0x4f7   : > { %v11599_v14 = vadd.f32 %v7783_v41, %v2591_v55  ;;  %v3307_v7 = vpop.f32.mrb[111].mxu0  ;;  %v3650_v41 = vld [vmem:[%s14243_s7 + $0x40] sm:$0xff]  ;;  %v3651_v55 = vld [vmem:[%s14243_s7 + $0x48] sm:$0xff] }
 0x4f8   : > { %v3062_v26 = vpop.f32.mrb[110].mxu1  ;;  %v11612_v48 = vpack.c.bf16 %v3651_v55, %v3650_v41 }
 0x4f9   : > { %14545 = vst [vmem:[#allocation31_spill] sm:$0xff] %v11599_v14  ;;  %v3064_v58 = vpop.f32.mrb[111].mxu1  ;;  %v3308_v46 = vadd.f32 %v3307_v7, %v3062_v26 }
 0x4fa   : > { %v7821_v38 = vpop.f32.mrb[112].mxu0  ;;  %14546 = vst [vmem:[#allocation32_spill] sm:$0xff] %v11612_v48  ;;  %8586 = vmatpush3.bf16.msra.mxu0 %v11612_v48 }
 0x4fb   : > { %v11604_v62 = vadd.f32 %v3308_v46, %v11460_v53  ;;  %v3317_v31 = vpop.f32.mrb[113].mxu0  ;;  %8587 = vmatprep.subr.bf16.mxu0 %v14484_v34 }
 0x4fc   : > { %v3067_v29 = vpop.f32.mrb[112].mxu1 }
 0x4fd   : > { %v3313_v1 = vadd.f32 %v7818_v13, %v3067_v29  ;;  %v3069_v10 = vpop.f32.mrb[113].mxu1 }
 0x4fe   : > { %v7824_v8 = vpop.f32.mrb[114].mxu0 }
 0x4ff   : > { %v11615_v7 = vadd.f32 %v3313_v1, %v11457_v15  ;;  %v3327_v53 = vpop.f32.mrb[115].mxu0 }
 0x500   : > { %v3072_v26 = vpop.f32.mrb[114].mxu1 }
 0x501   : > { %v3318_v29 = vadd.f32 %v3317_v31, %v3072_v26  ;;  %v3074_v10 = vpop.f32.mrb[115].mxu1  ;;  %v3652_v31 = vld [vmem:[%s14243_s7 + $0x50] sm:$0xff] }
 0x502   : > { %v7827_v13 = vpop.f32.mrb[116].mxu0 }
 0x503   : > { %v11620_v58 = vadd.f32 %v3318_v29, %v11467_v6  ;;  %v3337_v46 = vpop.f32.mrb[117].mxu0  ;;  %v3653_v6 = vld [vmem:[%s14243_s7 + $0x58] sm:$0xff] }
 0x504   : > { %v3077_v35 = vpop.f32.mrb[116].mxu1  ;;  %v11631_v29 = vpack.c.bf16 %v3653_v6, %v3652_v31 }
 0x505   : > { %v3323_v14 = vadd.f32 %v7821_v38, %v3077_v35  ;;  %v3079_v41 = vpop.f32.mrb[117].mxu1 }
 0x506   : > { %v7830_v55 = vpop.f32.mrb[118].mxu0  ;;  %14547 = vst [vmem:[#allocation35_spill] sm:$0xff] %v11631_v29  ;;  %8589 = vmatpush3.bf16.msra.mxu0 %v11631_v29 }
 0x507   : > { %v11623_v15 = vadd.f32 %v3323_v14, %v11464_v42  ;;  %v3347_v1 = vpop.f32.mrb[119].mxu0  ;;  %8590 = vmatprep.subr.bf16.mxu0 %v14484_v34 }
 0x508   : > { %v3082_v16 = vpop.f32.mrb[118].mxu1 }
 0x509   : > { %v3328_v39 = vadd.f32 %v3327_v53, %v3082_v16  ;;  %v3084_v48 = vpop.f32.mrb[119].mxu1 }
 0x50a   : > { %v7833_v26 = vpop.f32.mrb[120].mxu0 }
 0x50b   : > { %v11634_v35 = vadd.f32 %v3328_v39, %v11474_v49  ;;  %v3357_v42 = vpop.f32.mrb[121].mxu0 }
 0x50c   : > { %v3087_v14 = vpop.f32.mrb[120].mxu1 }
 0x50d   : > { %v3333_v16 = vadd.f32 %v7824_v8, %v3087_v14  ;;  %v3089_v38 = vpop.f32.mrb[121].mxu1  ;;  %v3654_v8 = vld [vmem:[%s14243_s7 + $0x60] sm:$0xff] }
 0x50e   : > { %v7836_v48 = vpop.f32.mrb[122].mxu0 }
 0x50f   : > { %v11639_v53 = vadd.f32 %v3333_v16, %v11471_v21  ;;  %v3367_v10 = vpop.f32.mrb[123].mxu0  ;;  %v3655_v21 = vld [vmem:[%s14243_s7 + $0x68] sm:$0xff] }
 0x510   : > { %v3092_v41 = vpop.f32.mrb[122].mxu1 }
 0x511   : > { %v3338_v57 = vadd.f32 %v3337_v46, %v3092_v41  ;;  %v3094_v31 = vpop.f32.mrb[123].mxu1  ;;  %v3656_v46 = vld [vmem:[%s14243_s7 + $0x70] sm:$0xff] }
 0x512   : > { %v7839_v6 = vpop.f32.mrb[124].mxu0 }
 0x513   : > { %v11642_v49 = vadd.f32 %v3338_v57, %v11481_v2  ;;  %v3377_v39 = vpop.f32.mrb[125].mxu0  ;;  %v11655_v2 = vpack.c.bf16 %v3655_v21, %v3654_v8 }
 0x514   : > { %v3097_v18 = vpop.f32.mrb[124].mxu1 }
 0x515   : > { %v3343_v52 = vadd.f32 %v7827_v13, %v3097_v18  ;;  %v3099_v29 = vpop.f32.mrb[125].mxu1  ;;  %14548 = vst [vmem:[#allocation36_spill] sm:$0xff] %v11655_v2  ;;  %v3657_v18 = vld [vmem:[%s14243_s7 + $0x78] sm:$0xff]  ;;  %8592 = vmatpush3.bf16.msra.mxu0 %v11655_v2 }
 0x516   : > { %v11653_v14 = vpop.f32.mrb[126].mxu0  ;;  %v11664_v16 = vpack.c.bf16 %v3657_v18, %v3656_v46  ;;  %8593 = vmatprep.subr.bf16.mxu0 %v14484_v34 }
 0x517   : > { %v11661_v57 = vadd.f32 %v3343_v52, %v11478_v9  ;;  %v3387_v13 = vpop.f32.mrb[127].mxu0 }
 0x518   : > { %v3102_v29 = vpop.f32.mrb[126].mxu1  ;;  %14549 = vst [vmem:[#allocation40_spill] sm:$0xff] %v11664_v16 }
 0x519   : > { %v3348_v38 = vadd.f32 %v3347_v1, %v3102_v29  ;;  %v3104_v41 = vpop.f32.mrb[127].mxu1  ;;  %8595 = vmatpush3.bf16.msra.mxu0 %v11664_v16 }
 0x51a   : > { %v11667_v31 = vpop.f32.mrb[128].mxu0  ;;  %8596 = vmatprep.subr.bf16.mxu0 %v14484_v34 }
 0x51b   : > { %v11670_v8 = vadd.f32 %v3348_v38, %v11488_v61  ;;  %v3397_v21 = vpop.f32.mrb[129].mxu0 }
 0x51c   : > { %v3107_v47 = vpop.f32.mrb[128].mxu1 }
 0x51d   : > { %v3353_v9 = vadd.f32 %v7830_v55, %v3107_v47  ;;  %v3109_v52 = vpop.f32.mrb[129].mxu1 }
 0x51e   : > { %v11674_v2 = vpop.f32.mrb[130].mxu0 }
 0x51f   : > { %v11677_v1 = vadd.f32 %v3353_v9, %v11485_v32  ;;  %v11679_v46 = vpop.f32.mrb[131].mxu0 }
 0x520   : > { %v3112_v18 = vpop.f32.mrb[130].mxu1 }
 0x521   : > { %v3358_v29 = vadd.f32 %v3357_v42, %v3112_v18  ;;  %v3114_v41 = vpop.f32.mrb[131].mxu1 }
 0x522   : > { %v11681_v61 = vpop.f32.mrb[132].mxu0 }
 0x523   : > { %v11684_v38 = vadd.f32 %v3358_v29, %v11495_v17  ;;  %v11686_v16 = vpop.f32.mrb[133].mxu0 }
 0x524   : > { %v3117_v47 = vpop.f32.mrb[132].mxu1 }
 0x525   : > { %v3363_v55 = vadd.f32 %v7833_v26, %v3117_v47  ;;  %v3119_v52 = vpop.f32.mrb[133].mxu1 }
 0x526   : > { %v11688_v34 = vpop.f32.mrb[134].mxu0 }
 0x527   : > { %v11691_v32 = vadd.f32 %v3363_v55, %v11492_v36  ;;  %v11693_v9 = vpop.f32.mrb[135].mxu0 }
 0x528   : > { %v3122_v59 = vpop.f32.mrb[134].mxu1 }
 0x529   : > { %v3368_v42 = vadd.f32 %v3367_v10, %v3122_v59  ;;  %v3124_v18 = vpop.f32.mrb[135].mxu1 }
 0x52a   : > { %v11695_v41 = vpop.f32.mrb[136].mxu0 }
 0x52b   : > { %v11698_v17 = vadd.f32 %v3368_v42, %v11502_v44  ;;  %v11700_v29 = vpop.f32.mrb[137].mxu0 }
 0x52c   : > { %v3127_v22 = vpop.f32.mrb[136].mxu1 }
 0x52d   : > { %v3373_v26 = vadd.f32 %v7836_v48, %v3127_v22  ;;  %v3129_v47 = vpop.f32.mrb[137].mxu1 }
 0x52e   : > { %v11702_v52 = vpop.f32.mrb[138].mxu0 }
 0x52f   : > { %14550 = vst [vmem:[#allocation41_spill] sm:$0xff] %v11702_v52  ;;  %v11705_v36 = vadd.f32 %v3373_v26, %v11499_v54  ;;  %v11707_v55 = vpop.f32.mrb[139].mxu0 }
 0x530   : > { %v3132_v40 = vpop.f32.mrb[138].mxu1 }
 0x531   : > { %v3378_v59 = vadd.f32 %v3377_v39, %v3132_v40  ;;  %v3134_v10 = vpop.f32.mrb[139].mxu1 }
 0x532   : > { %v11709_v18 = vpop.f32.mrb[140].mxu0 }
 0x533   : > { %14551 = vst [vmem:[#allocation42_spill] sm:$0xff] %v11709_v18  ;;  %v11712_v44 = vadd.f32 %v3378_v59, %v11509_v25  ;;  %v11714_v42 = vpop.f32.mrb[141].mxu0 }
 0x534   : > { %14552 = vst [vmem:[#allocation43_spill] sm:$0xff] %v11714_v42  ;;  %v3137_v22 = vpop.f32.mrb[140].mxu1 }
 0x535   : > { %v3383_v48 = vadd.f32 %v7839_v6, %v3137_v22  ;;  %v3139_v47 = vpop.f32.mrb[141].mxu1 }
 0x536   : > { %v11716_v52 = vpop.f32.mrb[142].mxu0 }
 0x537   : > { %v11719_v54 = vadd.f32 %v3383_v48, %v11506_v56  ;;  %v11721_v26 = vpop.f32.mrb[143].mxu0 }
 0x538   : > { %v3142_v40 = vpop.f32.mrb[142].mxu1 }
 0x539   : > { %v3388_v39 = vadd.f32 %v3387_v13, %v3142_v40  ;;  %v3144_v10 = vpop.f32.mrb[143].mxu1  ;;  %v11738_v13 = vld [vmem:[%s476_s27] ss:$0 sm:$0xff] }
 0x53a   : > { %v11723_v18 = vpop.f32.mrb[144].mxu0  ;;  %v3531_v10 = vadd.f32 %v11738_v13, %v11620_v58 }
 0x53b   : > { %v11726_v25 = vadd.f32 %v3388_v39, %v11515_v60  ;;  %v11728_v59 = vpop.f32.mrb[145].mxu0  ;;  %v3530_v60 = vadd.f32 %v11738_v13, %v11615_v7  ;;  %v3529_v39 = vadd.f32 %v11738_v13, %v11604_v62 }
 0x53c   : > { %v3147_v42 = vpop.f32.mrb[144].mxu1  ;;  %v11759_v62 = vmul.f32 %v3531_v10, %v9506_v63 }
 0x53d   : > { %v3393_v56 = vadd.f32 %v11653_v14, %v3147_v42  ;;  %v3149_v6 = vpop.f32.mrb[145].mxu1 }
 0x53e   : > { %v11756_v6 = vmul.f32 %v3529_v39, %v9508_v0 }
 0x53f   : > { %v11736_v22 = vadd.f32 %v3393_v56, %v11512_v51  ;;  %v11750_v51 = vmul.f32 %v3530_v60, %v9515_v5  ;;  %v3532_v56 = vadd.f32 %v11738_v13, %v11623_v15 }
 0x540   : > { %v3152_v48 = vpop.f32.mrb[146].mxu1 }
 0x541   : > { %v3398_v47 = vadd.f32 %v3397_v21, %v3152_v48  ;;  %v3154_v40 = vpop.f32.mrb[147].mxu1  ;;  %v3601_v60 = vadd.f32 %v11750_v51, %v11756_v6  ;;  %v11769_v15 = vmul.f32 %v3532_v56, %v9513_v4 }
 0x543   : > { %v11747_v14 = vadd.f32 %v3398_v47, %v11520_v33  ;;  %v3533_v33 = vadd.f32 %v11738_v13, %v11634_v35  ;;  %v3602_v39 = vadd.f32 %v3601_v60, %v11759_v62 }
 0x544   : > { %v3157_v42 = vpop.f32.mrb[148].mxu1 }
 0x545   : > { %v3403_v7 = vadd.f32 %v11667_v31, %v3157_v42  ;;  %v3159_v21 = vpop.f32.mrb[149].mxu1  ;;  %v3534_v31 = vadd.f32 %v11738_v13, %v11639_v53  ;;  %v11776_v35 = vmul.f32 %v3533_v33, %v9531_v12  ;;  %v3603_v56 = vadd.f32 %v3602_v39, %v11769_v15 }
 0x546   : > { %v3536_v53 = vadd.f32 %v11738_v13, %v11661_v57 }
 0x547   : > { %v11764_v58 = vadd.f32 %v3403_v7, %v11518_v50  ;;  %v3535_v50 = vadd.f32 %v11738_v13, %v11642_v49  ;;  %v11785_v7 = vmul.f32 %v3534_v31, %v9529_v11  ;;  %v3604_v33 = vadd.f32 %v3603_v56, %v11776_v35 }
 0x548   : > { %v3162_v48 = vpop.f32.mrb[150].mxu1 }
 0x549   : > { %v3408_v47 = vadd.f32 %v11679_v46, %v3162_v48  ;;  %v3164_v40 = vpop.f32.mrb[151].mxu1  ;;  %v11792_v48 = vmul.f32 %v3535_v50, %v9545_v20  ;;  %v3605_v31 = vadd.f32 %v3604_v33, %v11785_v7 }
 0x54b   : > { %v11781_v10 = vadd.f32 %v3408_v47, %v11525_v43  ;;  %v3537_v43 = vadd.f32 %v11738_v13, %v11670_v8  ;;  %v11801_v47 = vmul.f32 %v3536_v53, %v9543_v19  ;;  %v3606_v39 = vadd.f32 %v3605_v31, %v11792_v48  ;;  %v14553_v31 = vld [vmem:[#allocation3_spill] sm:$0xff] }
 0x54c   : > { %v3167_v42 = vpop.f32.mrb[152].mxu1 }
 0x54d   : > { %v3413_v46 = vadd.f32 %v11674_v2, %v3167_v42  ;;  %v3169_v21 = vpop.f32.mrb[153].mxu1  ;;  %v3538_v2 = vadd.f32 %v11738_v13, %v11677_v1  ;;  %v11808_v50 = vmul.f32 %v3537_v43, %v9559_v28  ;;  %v3607_v56 = vadd.f32 %v3606_v39, %v11801_v47  ;;  %v14554_v39 = vld [vmem:[#allocation6_spill] sm:$0xff] }
 0x54f   : > { %v11797_v49 = vadd.f32 %v3413_v46, %v11523_v30  ;;  %v3539_v30 = vadd.f32 %v11738_v13, %v11684_v38  ;;  %v11815_v53 = vmul.f32 %v3538_v2, %v9557_v27  ;;  %v3608_v21 = vadd.f32 %v3607_v56, %v11808_v50 }
 0x550   : > { %v3172_v60 = vpop.f32.mrb[154].mxu1 }
 0x551   : > { %v3418_v57 = vadd.f32 %v11686_v16, %v3172_v60  ;;  %v3174_v40 = vpop.f32.mrb[155].mxu1  ;;  %v3540_v16 = vadd.f32 %v11738_v13, %v11691_v32  ;;  %v11822_v33 = vmul.f32 %v3539_v30, %v9573_v37  ;;  %v3609_v60 = vadd.f32 %v3608_v21, %v11815_v53 }
 0x553   : > { %v3508_v8 = vadd.f32 %v3418_v57, %v11538_v3  ;;  %v3541_v3 = vadd.f32 %v11738_v13, %v11698_v17  ;;  %v11829_v2 = vmul.f32 %v3540_v16, %v14553_v31  ;;  %v3610_v40 = vadd.f32 %v3609_v60, %v11822_v33  ;;  %v14555_v16 = vld [vmem:[#allocation5_spill] sm:$0xff] }
 0x554   : > { %v3177_v42 = vpop.f32.mrb[156].mxu1 }
 0x555   : > { %v3423_v1 = vadd.f32 %v11681_v61, %v3177_v42  ;;  %v3179_v46 = vpop.f32.mrb[157].mxu1  ;;  %v3542_v61 = vadd.f32 %v11738_v13, %v11705_v36  ;;  %v11836_v30 = vmul.f32 %v3541_v3, %v14554_v39  ;;  %v3611_v56 = vadd.f32 %v3610_v40, %v11829_v2  ;;  %v14556_v3 = vld [vmem:[#allocation8_spill] sm:$0xff] }
 0x557   : > { %v3509_v38 = vadd.f32 %v3423_v1, %v11536_v45  ;;  %v3543_v45 = vadd.f32 %v11738_v13, %v11712_v44  ;;  %v11843_v1 = vmul.f32 %v3542_v61, %v14555_v16  ;;  %v3612_v21 = vadd.f32 %v3611_v56, %v11836_v30 }
 0x558   : > { %v3182_v43 = vpop.f32.mrb[158].mxu1 }
 0x559   : > { %v3428_v32 = vadd.f32 %v11693_v9, %v3182_v43  ;;  %v3184_v57 = vpop.f32.mrb[159].mxu1  ;;  %v3544_v9 = vadd.f32 %v11738_v13, %v11719_v54  ;;  %v11850_v43 = vmul.f32 %v3543_v45, %v14556_v3  ;;  %v3613_v61 = vadd.f32 %v3612_v21, %v11843_v1  ;;  %v14560_v21 = vld [vmem:[#allocation9_spill] sm:$0xff] }
 0x55b   : > { %v3510_v17 = vadd.f32 %v3428_v32, %v11545_v24  ;;  %v3545_v24 = vadd.f32 %v11738_v13, %v11726_v25  ;;  %v14557_v32 = vld [vmem:[#allocation7_spill] sm:$0xff]  ;;  %v3614_v45 = vadd.f32 %v3613_v61, %v11850_v43  ;;  %v14559_v25 = vld [vmem:[#allocation20_spill] sm:$0xff] }
 0x55c   : > { %v3187_v42 = vpop.f32.mrb[160].mxu1  ;;  %v11857_v57 = vmul.f32 %v3544_v9, %v14557_v32  ;;  %v14562_v61 = vld [vmem:[#allocation12_spill] sm:$0xff] }
 0x55d   : > { %v3433_v36 = vadd.f32 %v11688_v34, %v3187_v42  ;;  %v3189_v46 = vpop.f32.mrb[161].mxu1  ;;  %v3546_v34 = vadd.f32 %v11738_v13, %v11736_v22  ;;  %v14558_v42 = vld [vmem:[#allocation10_spill] sm:$0xff] }
 0x55e   : > { %v11864_v56 = vmul.f32 %v3545_v24, %v14558_v42  ;;  %v3615_v9 = vadd.f32 %v3614_v45, %v11857_v57 }
 0x55f   : > { %v3511_v44 = vadd.f32 %v3433_v36, %v11543_v23  ;;  %v3547_v23 = vadd.f32 %v11738_v13, %v11747_v14  ;;  %v11871_v32 = vmul.f32 %v3546_v34, %v14560_v21  ;;  %v3549_v14 = vadd.f32 %v11738_v13, %v11781_v10  ;;  %v14564_v21 = vld [vmem:[#allocation11_spill] sm:$0xff] }
 0x560   : > { %v3192_v60 = vpop.f32.mrb[162].mxu1  ;;  %v3616_v24 = vadd.f32 %v3615_v9, %v11864_v56  ;;  %v14566_v9 = vld [vmem:[#allocation14_spill] sm:$0xff]  ;;  %v3551_v10 = vadd.f32 %v11738_v13, %v3508_v8  ;;  %v3553_v8 = vadd.f32 %v11738_v13, %v3510_v17 }
 0x561   : > { %v3438_v54 = vadd.f32 %v11700_v29, %v3192_v60  ;;  %v3194_v40 = vpop.f32.mrb[163].mxu1  ;;  %14561 = vst [vmem:[#allocation44_spill] sm:$0xff] %v11871_v32  ;;  %v3548_v29 = vadd.f32 %v11738_v13, %v11764_v58 }
 0x562   : > { %v11878_v40 = vmul.f32 %v3547_v23, %v14562_v61  ;;  %v3617_v34 = vadd.f32 %v3616_v24, %v11871_v32  ;;  %v14570_v32 = vld [vmem:[#allocation41_spill] sm:$0xff] }
 0x563   : > { %v3512_v36 = vadd.f32 %v3438_v54, %v14559_v25  ;;  %v14563_v54 = vld [vmem:[#allocation52_spill] sm:$0xff]  ;;  %v11885_v42 = vmul.f32 %v3548_v29, %v14564_v21  ;;  %v14568_v29 = vld [vmem:[#allocation13_spill] sm:$0xff] }
 0x564   : > { %v3197_v46 = vpop.f32.mrb[164].mxu1  ;;  %v3618_v23 = vadd.f32 %v3617_v34, %v11878_v40 }
 0x565   : > { %v3443_v22 = vadd.f32 %v11695_v41, %v3197_v46  ;;  %v3199_v60 = vpop.f32.mrb[165].mxu1  ;;  %14565 = vst [vmem:[#allocation45_spill] sm:$0xff] %v11885_v42  ;;  %v3550_v41 = vadd.f32 %v11738_v13, %v11797_v49  ;;  %v3552_v49 = vadd.f32 %v11738_v13, %v3509_v38  ;;  %v3554_v38 = vadd.f32 %v11738_v13, %v3511_v44 }
 0x566   : > { %v11892_v60 = vmul.f32 %v3549_v14, %v14566_v9  ;;  %v3619_v24 = vadd.f32 %v3618_v23, %v11885_v42  ;;  %v14572_v9 = vld [vmem:[#allocation23_spill] sm:$0xff]  ;;  %v3555_v17 = vadd.f32 %v11738_v13, %v3512_v36 }
 0x567   : > { %v3513_v25 = vadd.f32 %v3443_v22, %v14563_v54  ;;  %v14567_v22 = vld [vmem:[#allocation54_spill] sm:$0xff]  ;;  %v11898_v21 = vmul.f32 %v3550_v41, %v14568_v29  ;;  %v14573_v42 = vld [vmem:[#allocation15_spill] sm:$0xff] }
 0x568   : > { %v3202_v45 = vpop.f32.mrb[166].mxu1  ;;  %v3620_v34 = vadd.f32 %v3619_v24, %v11892_v60  ;;  %v11910_v41 = vmul.f32 %v3552_v49, %v14573_v42  ;;  %v14575_v29 = vld [vmem:[#allocation43_spill] sm:$0xff]  ;;  %v14579_v42 = vld [vmem:[#allocation42_spill] sm:$0xff] }
 0x569   : > { %v3448_v58 = vadd.f32 %v11707_v55, %v3202_v45  ;;  %v3204_v46 = vpop.f32.mrb[167].mxu1  ;;  %14569 = vst [vmem:[#allocation46_spill] sm:$0xff] %v11898_v21  ;;  %v3556_v44 = vadd.f32 %v11738_v13, %v3513_v25 }
 0x56a   : > { %v14571_v46 = vld [vmem:[#allocation16_spill] sm:$0xff]  ;;  %v3621_v23 = vadd.f32 %v3620_v34, %v11898_v21  ;;  %14574 = vst [vmem:[#allocation47_spill] sm:$0xff] %v11910_v41  ;;  %v14578_v21 = vld [vmem:[#allocation17_spill] sm:$0xff] }
 0x56b   : > { %v3514_v54 = vadd.f32 %v3448_v58, %v14567_v22  ;;  %v11904_v14 = vmul.f32 %v3551_v10, %v14571_v46  ;;  %v14577_v46 = vld [vmem:[#allocation56_spill] sm:$0xff]  ;;  %v11922_v49 = vmul.f32 %v3554_v38, %v14578_v21  ;;  %v14585_v21 = vld [vmem:[#allocation25_spill] sm:$0xff] }
 0x56c   : > { %v3207_v61 = vpop.f32.mrb[168].mxu1 }
 0x56d   : > { %v3453_v55 = vadd.f32 %v14570_v32, %v3207_v61  ;;  %v3209_v45 = vpop.f32.mrb[169].mxu1  ;;  %v3622_v24 = vadd.f32 %v3621_v23, %v11904_v14  ;;  %v3557_v36 = vadd.f32 %v11738_v13, %v3514_v54 }
 0x56e   : > { %v14576_v45 = vld [vmem:[#allocation18_spill] sm:$0xff] }
 0x56f   : > { %v3515_v58 = vadd.f32 %v3453_v55, %v14572_v9  ;;  %v11916_v10 = vmul.f32 %v3553_v8, %v14576_v45  ;;  %v3623_v34 = vadd.f32 %v3622_v24, %v11910_v41  ;;  %v14581_v45 = vld [vmem:[#allocation24_spill] sm:$0xff]  ;;  %v14582_v41 = vld [vmem:[#allocation21_spill] sm:$0xff] }
 0x570   : > { %v3212_v22 = vpop.f32.mrb[170].mxu1  ;;  %v11934_v38 = vmul.f32 %v3556_v44, %v14582_v41  ;;  %v14588_v41 = vld [vmem:[#allocation29_spill] sm:$0xff] }
 0x571   : > { %v3458_v32 = vadd.f32 %v14575_v29, %v3212_v22  ;;  %v3214_v61 = vpop.f32.mrb[171].mxu1  ;;  %v3624_v23 = vadd.f32 %v3623_v34, %v11916_v10  ;;  %v3558_v25 = vadd.f32 %v11738_v13, %v3515_v58 }
 0x572   : > { %v14580_v61 = vld [vmem:[#allocation22_spill] sm:$0xff] }
 0x573   : > { %v3516_v9 = vadd.f32 %v3458_v32, %v14577_v46  ;;  %v11928_v8 = vmul.f32 %v3555_v17, %v14580_v61  ;;  %v3625_v24 = vadd.f32 %v3624_v23, %v11922_v49  ;;  %v14584_v61 = vld [vmem:[#allocation28_spill] sm:$0xff]  ;;  %v11946_v44 = vmul.f32 %v3558_v25, %v14585_v21 }
 0x574   : > { %v3217_v55 = vpop.f32.mrb[172].mxu1 }
 0x575   : > { %v3463_v29 = vadd.f32 %v14579_v42, %v3217_v55  ;;  %v3219_v22 = vpop.f32.mrb[173].mxu1  ;;  %v3626_v34 = vadd.f32 %v3625_v24, %v11928_v8  ;;  %v3559_v54 = vadd.f32 %v11738_v13, %v3516_v9 }
 0x576   : > { %v14583_v22 = vld [vmem:[#allocation26_spill] sm:$0xff] }
 0x577   : > { %v3517_v46 = vadd.f32 %v3463_v29, %v14581_v45  ;;  %v11940_v17 = vmul.f32 %v3557_v36, %v14583_v22  ;;  %v3627_v23 = vadd.f32 %v3626_v34, %v11934_v38  ;;  %v14587_v22 = vld [vmem:[#allocation57_spill] sm:$0xff] }
 0x578   : > { %v3222_v32 = vpop.f32.mrb[174].mxu1 }
 0x579   : > { %v3468_v42 = vadd.f32 %v11721_v26, %v3222_v32  ;;  %v3224_v55 = vpop.f32.mrb[175].mxu1  ;;  %v3560_v58 = vadd.f32 %v11738_v13, %v3517_v46  ;;  %v3628_v24 = vadd.f32 %v3627_v23, %v11940_v17 }
 0x57a   : > { %v14586_v55 = vld [vmem:[#allocation30_spill] sm:$0xff] }
 0x57b   : > { %v3518_v45 = vadd.f32 %v3468_v42, %v14584_v61  ;;  %v11952_v36 = vmul.f32 %v3559_v54, %v14586_v55  ;;  %v3629_v34 = vadd.f32 %v3628_v24, %v11946_v44  ;;  %v11958_v25 = vmul.f32 %v3560_v58, %v14588_v41  ;;  %v14590_v55 = vld [vmem:[#allocation55_spill] sm:$0xff] }
 0x57c   : > { %v3227_v29 = vpop.f32.mrb[176].mxu1 }
 0x57d   : > { %v3473_v26 = vadd.f32 %v11716_v52, %v3227_v29  ;;  %v3229_v32 = vpop.f32.mrb[177].mxu1  ;;  %v3561_v9 = vadd.f32 %v11738_v13, %v3518_v45  ;;  %v3630_v23 = vadd.f32 %v3629_v34, %v11952_v36 }
 0x57e   : > { %v14589_v32 = vld [vmem:[#allocation34_spill] sm:$0xff] }
 0x57f   : > { %v3519_v61 = vadd.f32 %v3473_v26, %v14587_v22  ;;  %v11964_v54 = vmul.f32 %v3561_v9, %v14589_v32  ;;  %v3631_v22 = vadd.f32 %v3630_v23, %v11958_v25  ;;  %v14591_v26 = vld [vmem:[#allocation33_spill] sm:$0xff]  ;;  %v14593_v9 = vld [vmem:[#allocation31_spill] sm:$0xff] }
 0x580   : > { %v3232_v42 = vpop.f32.mrb[178].mxu1 }
 0x581   : > { %v3562_v46 = vadd.f32 %v11738_v13, %v3519_v61  ;;  %v3478_v52 = vadd.f32 %v11728_v59, %v3232_v42  ;;  %v3234_v29 = vpop.f32.mrb[179].mxu1  ;;  %v3632_v59 = vadd.f32 %v3631_v22, %v11964_v54  ;;  %v14592_v42 = vld [vmem:[#allocation37_spill] sm:$0xff] }
 0x583   : > { %v3520_v45 = vadd.f32 %v3478_v52, %v14590_v55  ;;  %v11969_v24 = vmul.f32 %v3562_v46, %v14591_v26  ;;  %v14594_v46 = vld [vmem:[#allocation38_spill] sm:$0xff] }
 0x584   : > { %v3237_v21 = vpop.f32.mrb[180].mxu1 }
 0x585   : > { %v3563_v58 = vadd.f32 %v11738_v13, %v3520_v45  ;;  %v3483_v61 = vadd.f32 %v11723_v18, %v3237_v21  ;;  %v3239_v41 = vpop.f32.mrb[181].mxu1  ;;  %v3633_v55 = vadd.f32 %v3632_v59, %v11969_v24  ;;  %v14597_v59 = vld [vmem:[#allocation53_spill] sm:$0xff] }
 0x587   : > { %v11975_v34 = vmul.f32 %v3563_v58, %v14592_v42  ;;  %v3521_v29 = vadd.f32 %v3483_v61, %v14593_v9  ;;  %v14595_v42 = vld [vmem:[#allocation19_spill] sm:$0xff]  ;;  %v9219_v61 = vld [vmem:[#allocation2] sm:$0xff] }
 0x588   : > { %v14598_v9 = vld [vmem:[#allocation27_spill] sm:$0xff] }
 0x589   : > { %v3564_v52 = vadd.f32 %v11738_v13, %v3521_v29  ;;  %v3634_v23 = vadd.f32 %v3633_v55, %v11975_v34  ;;  %v14596_v13 = vmov 0.0|0.0   ;;  %v14599_v29 = vld [vmem:[#allocation58_spill] sm:$0xff]  ;;  %v14602_v55 = vld [vmem:[#allocation36_spill] sm:$0xff] }
 0x58b   : > { %v11982_v26 = vmul.f32 %v3564_v52, %v14594_v46  ;;  %v14603_v52 = vld [vmem:[#allocation40_spill] sm:$0xff] }
 0x58d   : > { %v3635_v45 = vadd.f32 %v3634_v23, %v11982_v26  ;;  %v7010_v23 = vld [vmem:[%s14246_s10 + $0x180] sm:$0xff] }
 0x58f   : > { %v3636_v18 = vrot.slane %v3635_v45, 4 }
 0x591   : > { %v3637_v21 = vadd.f32 %v3636_v18, %v3635_v45  ;;  %v7011_v45 = vld [vmem:[%s14246_s10 + $0x188] sm:$0xff]  ;;  %v7012_v18 = vld [vmem:[%s14246_s10 + $0x190] sm:$0xff] }
 0x593   : > { %v3638_v41 = vrot.slane %v3637_v21, 2 }
 0x595   : > { %v3639_v22 = vadd.f32 %v3638_v41, %v3637_v21  ;;  %v8621_v21 = vpack.c.bf16 %v7011_v45, %v7010_v23  ;;  %v7013_v41 = vld [vmem:[%s14246_s10 + $0x198] sm:$0xff] }
 0x597   : > { %v3640_v32 = vrot.slane %v3639_v22, 1  ;;  %8622 = vmatpush1.bf16.msra.mxu1 %v8621_v21  ;;  %v7021_v21 = vld [vmem:[%s14246_s10 + $0x1d8] sm:$0xff] }
 0x598   : > { %8623 = vmatprep.subr.bf16.mxu1 %v14596_v13 }
 0x599   : > { %v3641_v58 = vadd.f32 %v3640_v32, %v3639_v22  ;;  %v14600_v32 = vld [vmem:[#allocation32_spill] sm:$0xff]  ;;  %v8624_v22 = vpack.c.bf16 %v7013_v41, %v7012_v18 }
 0x59a   : > { %v7020_v18 = vld [vmem:[%s14246_s10 + $0x1d0] sm:$0xff] }
 0x59b   : > { %7903 = vmatmul.mubr.f32.vlgmr.msra.gmra.mrb[146].mxu0 %v3641_v58  ;;  %v7014_v58 = vld [vmem:[%s14246_s10 + $0x1a0] sm:$0xff]  ;;  %8625 = vmatpush1.bf16.msra.mxu1 %v8624_v22  ;;  %v8636_v41 = vpack.c.bf16 %v7021_v21, %v7020_v18 }
 0x59c   : > { %8598 = vmatpush3.bf16.msra.mxu0 %v14595_v42  ;;  %7937 = vmatprep.mubr.msk.f32.mxu0 %vm9232_vm0, %v9219_v61  ;;  %v14601_v42 = vld [vmem:[#allocation35_spill] sm:$0xff]  ;;  %v7022_v22 = vld [vmem:[%s14246_s10 + $0x1e0] sm:$0xff] }
 0x59d   : > { %8599 = vmatprep.subr.bf16.mxu0 %v14596_v13  ;;  %v7015_v61 = vld [vmem:[%s14246_s10 + $0x1a8] sm:$0xff]  ;;  %8626 = vmatprep.subr.bf16.mxu1 %v14596_v13 }
 0x5a0   : > { %8601 = vmatpush3.bf16.msra.mxu0 %v14597_v59  ;;  %v8627_v59 = vpack.c.bf16 %v7015_v61, %v7014_v58  ;;  %v7023_v58 = vld [vmem:[%s14246_s10 + $0x1e8] sm:$0xff] }
 0x5a1   : > { %8602 = vmatprep.subr.bf16.mxu0 %v14596_v13  ;;  %v8639_v61 = vpack.c.bf16 %v7023_v58, %v7022_v22 }
 0x5a2   : > { %8628 = vmatpush1.bf16.msra.mxu1 %v8627_v59  ;;  %v7024_v59 = vld [vmem:[%s14246_s10 + $0x1f0] sm:$0xff] }
 0x5a3   : > { %8629 = vmatprep.subr.bf16.mxu1 %v14596_v13 }
 0x5a4   : > { %8604 = vmatpush3.bf16.msra.mxu0 %v14598_v9  ;;  %v7016_v9 = vld [vmem:[%s14246_s10 + $0x1b0] sm:$0xff] }
 0x5a5   : > { %8605 = vmatprep.subr.bf16.mxu0 %v14596_v13 }
 0x5a8   : > { %8607 = vmatpush3.bf16.msra.mxu0 %v14599_v29  ;;  %v7017_v29 = vld [vmem:[%s14246_s10 + $0x1b8] sm:$0xff] }
 0x5a9   : > { %8608 = vmatprep.subr.bf16.mxu0 %v14596_v13 }
 0x5ac   : > { %8610 = vmatpush3.bf16.msra.mxu0 %v14600_v32  ;;  %v8630_v32 = vpack.c.bf16 %v7017_v29, %v7016_v9  ;;  %v7025_v9 = vld [vmem:[%s14246_s10 + $0x1f8] sm:$0xff] }
 0x5ad   : > { %8611 = vmatprep.subr.bf16.mxu0 %v14596_v13 }
 0x5ae   : > { %8631 = vmatpush1.bf16.msra.mxu1 %v8630_v32  ;;  %v8642_v32 = vpack.c.bf16 %v7025_v9, %v7024_v59 }
 0x5af   : > { %8632 = vmatprep.subr.bf16.mxu1 %v14596_v13 }
 0x5b0   : > { %8613 = vmatpush3.bf16.msra.mxu0 %v14601_v42  ;;  %v7018_v42 = vld [vmem:[%s14246_s10 + $0x1c0] sm:$0xff] }
 0x5b1   : > { %8614 = vmatprep.subr.bf16.mxu0 %v14596_v13 }
 0x5b4   : > { %8616 = vmatpush3.bf16.msra.mxu0 %v14602_v55  ;;  %v7019_v55 = vld [vmem:[%s14246_s10 + $0x1c8] sm:$0xff] }
 0x5b5   : > { %8617 = vmatprep.subr.bf16.mxu0 %v14596_v13  ;;  %v8633_v45 = vpack.c.bf16 %v7019_v55, %v7018_v42  ;;  %v7026_v42 = vld [vmem:[%s14246_s10 + $0x200] sm:$0xff]  ;;  %v7027_v55 = vld [vmem:[%s14246_s10 + $0x208] sm:$0xff] }
 0x5b6   : > { %v8645_v18 = vpack.c.bf16 %v7027_v55, %v7026_v42 }
 0x5b7   : > { %8634 = vmatpush1.bf16.msra.mxu1 %v8633_v45 }
 0x5b8   : > { %8619 = vmatpush3.bf16.msra.mxu0 %v14603_v52  ;;  %8635 = vmatprep.subr.bf16.mxu1 %v14596_v13 }
 0x5bb   : > { %8637 = vmatpush1.bf16.msra.mxu1 %v8636_v41 }
 0x5bc   : > { %8638 = vmatprep.subr.bf16.mxu1 %v14596_v13 }
 0x5bf   : > { %8640 = vmatpush1.bf16.msra.mxu1 %v8639_v61 }
 0x5c0   : > { %8641 = vmatprep.subr.bf16.mxu1 %v14596_v13 }
 0x5c3   : > { %8643 = vmatpush1.bf16.msra.mxu1 %v8642_v32 }
 0x5c4   : > { %8644 = vmatprep.subr.bf16.mxu1 %v14596_v13 }
 0x5c7   : > { %8646 = vmatpush1.bf16.msra.mxu1 %v8645_v18 }
 0x5c8   : > { %8647 = vmatprep.subr.bf16.mxu1 %v14596_v13 }
 0x66e   : > { %v3724_v52 = vpop.f32.mrb[146].mxu0 }
 0x66f   : > { %v7904_v23 = vpop.f32.mrb[147].mxu0  ;;  %v3728_v29 = vmul.f32 0.00390625, %v3724_v52 }
 0x670   : > { %v14604_v23 = vld [vmem:[#allocation39_spill] sm:$0xff] }
 0x671   : > { %v12063_v45 = vrot.slane %v3728_v29, %v14604_v23 }
 0x673   : > { %v3733_v52 = vsub.f32 %v11756_v6, %v12063_v45  ;;  %v3734_v21 = vsub.f32 %v11750_v51, %v12063_v45  ;;  %v3735_v41 = vsub.f32 %v11759_v62, %v12063_v45  ;;  %v3736_v61 = vsub.f32 %v11769_v15, %v12063_v45 }
 0x674   : > { %v3737_v6 = vsub.f32 %v11776_v35, %v12063_v45  ;;  %v3738_v9 = vsub.f32 %v11785_v7, %v12063_v45  ;;  %v3739_v15 = vsub.f32 %v11792_v48, %v12063_v45  ;;  %v3740_v55 = vsub.f32 %v11801_v47, %v12063_v45 }
 0x675   : > { %v12074_v22 = vmul.f32 %v3733_v52, %v9508_v0  ;;  %v12077_v58 = vmul.f32 %v3734_v21, %v9515_v5  ;;  %v12084_v51 = vmul.f32 %v3735_v41, %v9506_v63  ;;  %v12093_v29 = vmul.f32 %v3736_v61, %v9513_v4 }
 0x676   : > { %v12098_v35 = vmul.f32 %v3737_v6, %v9531_v12  ;;  %v12105_v18 = vmul.f32 %v3738_v9, %v9529_v11  ;;  %v3741_v48 = vsub.f32 %v11808_v50, %v12063_v45  ;;  %v12112_v21 = vmul.f32 %v3739_v15, %v9545_v20 }
 0x677   : > { %v3805_v59 = vmul.f32 %v12074_v22, %v12074_v22  ;;  %v3806_v62 = vmul.f32 %v12077_v58, %v12077_v58  ;;  %v3807_v32 = vmul.f32 %v12084_v51, %v12084_v51  ;;  %v3808_v7 = vmul.f32 %v12093_v29, %v12093_v29 }
 0x678   : > { %v3809_v41 = vmul.f32 %v12098_v35, %v12098_v35  ;;  %v3742_v47 = vsub.f32 %v11815_v53, %v12063_v45  ;;  %v12119_v6 = vmul.f32 %v3740_v55, %v9543_v19  ;;  %v3743_v50 = vsub.f32 %v11822_v33, %v12063_v45 }
 0x679   : > { %v3841_v42 = vadd.f32 %v3806_v62, %v3805_v59  ;;  %v3810_v59 = vmul.f32 %v12105_v18, %v12105_v18  ;;  %v12126_v9 = vmul.f32 %v3741_v48, %v9559_v28  ;;  %v3811_v15 = vmul.f32 %v12112_v21, %v12112_v21 }
 0x67a   : > { %v3744_v53 = vsub.f32 %v11829_v2, %v12063_v45  ;;  %v3812_v55 = vmul.f32 %v12119_v6, %v12119_v6  ;;  %v3745_v33 = vsub.f32 %v11836_v30, %v12063_v45  ;;  %v3746_v2 = vsub.f32 %v11843_v1, %v12063_v45 }
 0x67b   : > { %v3842_v52 = vadd.f32 %v3841_v42, %v3807_v32  ;;  %v12133_v42 = vmul.f32 %v3742_v47, %v9557_v27  ;;  %v3813_v48 = vmul.f32 %v12126_v9, %v12126_v9  ;;  %v3747_v30 = vsub.f32 %v11850_v43, %v12063_v45 }
 0x67c   : > { %v3748_v1 = vsub.f32 %v11857_v57, %v12063_v45  ;;  %v3749_v43 = vsub.f32 %v11864_v56, %v12063_v45  ;;  %v3751_v56 = vsub.f32 %v11878_v40, %v12063_v45  ;;  %v3753_v40 = vsub.f32 %v11892_v60, %v12063_v45 }
 0x67d   : > { %v3843_v61 = vadd.f32 %v3842_v52, %v3808_v7  ;;  %v12140_v52 = vmul.f32 %v3743_v50, %v9573_v37  ;;  %v3814_v47 = vmul.f32 %v12133_v42, %v12133_v42  ;;  %v3755_v60 = vsub.f32 %v11904_v14, %v12063_v45 }
 0x67e   : > { %v3757_v14 = vsub.f32 %v11916_v10, %v12063_v45  ;;  %v3759_v10 = vsub.f32 %v11928_v8, %v12063_v45  ;;  %v3761_v8 = vsub.f32 %v11940_v17, %v12063_v45  ;;  %v3763_v17 = vsub.f32 %v11952_v36, %v12063_v45 }
 0x67f   : > { %v3844_v62 = vadd.f32 %v3843_v61, %v3809_v41  ;;  %v12147_v61 = vmul.f32 %v3744_v53, %v14553_v31  ;;  %v3815_v50 = vmul.f32 %v12140_v52, %v12140_v52  ;;  %v14615_v31 = vld [vmem:[#allocation13_spill] sm:$0xff]  ;;  %v3765_v36 = vsub.f32 %v11964_v54, %v12063_v45 }
 0x680   : > { %v3767_v54 = vsub.f32 %v11975_v34, %v12063_v45 }
 0x681   : > { %v3845_v32 = vadd.f32 %v3844_v62, %v3810_v59  ;;  %v12154_v62 = vmul.f32 %v3745_v33, %v14554_v39  ;;  %v3816_v53 = vmul.f32 %v12147_v61, %v12147_v61  ;;  %v14612_v39 = vld [vmem:[#allocation11_spill] sm:$0xff] }
 0x683   : > { %v3846_v7 = vadd.f32 %v3845_v32, %v3811_v15  ;;  %v12161_v32 = vmul.f32 %v3746_v2, %v14555_v16  ;;  %v3817_v33 = vmul.f32 %v12154_v62, %v12154_v62  ;;  %v14609_v16 = vld [vmem:[#allocation9_spill] sm:$0xff] }
 0x685   : > { %v3847_v41 = vadd.f32 %v3846_v7, %v3812_v55  ;;  %v12168_v7 = vmul.f32 %v3747_v30, %v14556_v3 }
 0x687   : > { %v3848_v59 = vadd.f32 %v3847_v41, %v3813_v48  ;;  %v14605_v41 = vld [vmem:[#allocation44_spill] sm:$0xff]  ;;  %v3819_v3 = vmul.f32 %v12168_v7, %v12168_v7 }
 0x688   : > { %v3750_v57 = vsub.f32 %v14605_v41, %v12063_v45 }
 0x689   : > { %v3849_v15 = vadd.f32 %v3848_v59, %v3814_v47  ;;  %v14606_v47 = vld [vmem:[#allocation7_spill] sm:$0xff]  ;;  %v3818_v59 = vmul.f32 %v12161_v32, %v12161_v32 }
 0x68a   : > { %v12175_v2 = vmul.f32 %v3748_v1, %v14606_v47  ;;  %v12189_v1 = vmul.f32 %v3750_v57, %v14609_v16 }
 0x68b   : > { %v3850_v55 = vadd.f32 %v3849_v15, %v3815_v50  ;;  %v14607_v15 = vld [vmem:[#allocation10_spill] sm:$0xff] }
 0x68c   : > { %v12182_v30 = vmul.f32 %v3749_v43, %v14607_v15  ;;  %v3820_v47 = vmul.f32 %v12175_v2, %v12175_v2  ;;  %v3822_v16 = vmul.f32 %v12189_v1, %v12189_v1 }
 0x68d   : > { %v3851_v48 = vadd.f32 %v3850_v55, %v3816_v53  ;;  %v14608_v55 = vld [vmem:[#allocation45_spill] sm:$0xff] }
 0x68e   : > { %v3752_v41 = vsub.f32 %v14608_v55, %v12063_v45  ;;  %v3821_v15 = vmul.f32 %v12182_v30, %v12182_v30 }
 0x68f   : > { %v3852_v50 = vadd.f32 %v3851_v48, %v3817_v33  ;;  %v14610_v48 = vld [vmem:[#allocation12_spill] sm:$0xff] }
 0x690   : > { %v12196_v43 = vmul.f32 %v3751_v56, %v14610_v48  ;;  %v12203_v57 = vmul.f32 %v3752_v41, %v14612_v39 }
 0x691   : > { %v3853_v53 = vadd.f32 %v3852_v50, %v3818_v59  ;;  %v14611_v50 = vld [vmem:[#allocation46_spill] sm:$0xff] }
 0x692   : > { %v3754_v55 = vsub.f32 %v14611_v50, %v12063_v45  ;;  %v3823_v48 = vmul.f32 %v12196_v43, %v12196_v43  ;;  %v3824_v39 = vmul.f32 %v12203_v57, %v12203_v57 }
 0x693   : > { %v3854_v33 = vadd.f32 %v3853_v53, %v3819_v3  ;;  %v14613_v53 = vld [vmem:[#allocation14_spill] sm:$0xff] }
 0x694   : > { %v12210_v56 = vmul.f32 %v3753_v40, %v14613_v53  ;;  %v12217_v41 = vmul.f32 %v3754_v55, %v14615_v31 }
 0x695   : > { %v3855_v59 = vadd.f32 %v3854_v33, %v3820_v47  ;;  %v14614_v33 = vld [vmem:[#allocation47_spill] sm:$0xff] }
 0x696   : > { %v3756_v50 = vsub.f32 %v14614_v33, %v12063_v45  ;;  %v3825_v53 = vmul.f32 %v12210_v56, %v12210_v56  ;;  %v14617_v33 = vld [vmem:[#allocation15_spill] sm:$0xff]  ;;  %v3826_v31 = vmul.f32 %v12217_v41, %v12217_v41 }
 0x697   : > { %v3856_v3 = vadd.f32 %v3855_v59, %v3821_v15  ;;  %v14616_v59 = vld [vmem:[#allocation16_spill] sm:$0xff] }
 0x698   : > { %v12224_v40 = vmul.f32 %v3755_v60, %v14616_v59  ;;  %v12231_v55 = vmul.f32 %v3756_v50, %v14617_v33 }
 0x699   : > { %v3857_v47 = vadd.f32 %v3856_v3, %v3822_v16  ;;  %v3758_v3 = vsub.f32 %v11922_v49, %v12063_v45  ;;  %v3760_v49 = vsub.f32 %v11934_v38, %v12063_v45  ;;  %v3762_v38 = vsub.f32 %v11946_v44, %v12063_v45 }
 0x69a   : > { %v3827_v59 = vmul.f32 %v12224_v40, %v12224_v40  ;;  %v3828_v33 = vmul.f32 %v12231_v55, %v12231_v55  ;;  %v3764_v44 = vsub.f32 %v11958_v25, %v12063_v45  ;;  %v3766_v25 = vsub.f32 %v11969_v24, %v12063_v45 }
 0x69b   : > { %v3858_v15 = vadd.f32 %v3857_v47, %v3823_v48  ;;  %v14618_v47 = vld [vmem:[#allocation18_spill] sm:$0xff]  ;;  %v3768_v24 = vsub.f32 %v11982_v26, %v12063_v45 }
 0x69c   : > { %v12238_v60 = vmul.f32 %v3757_v14, %v14618_v47 }
 0x69d   : > { %v3859_v16 = vadd.f32 %v3858_v15, %v3824_v39  ;;  %v14619_v15 = vld [vmem:[#allocation17_spill] sm:$0xff] }
 0x69e   : > { %v12245_v50 = vmul.f32 %v3758_v3, %v14619_v15  ;;  %v3829_v47 = vmul.f32 %v12238_v60, %v12238_v60 }
 0x69f   : > { %v3860_v48 = vadd.f32 %v3859_v16, %v3825_v53  ;;  %v14620_v16 = vld [vmem:[#allocation22_spill] sm:$0xff] }
 0x6a0   : > { %v12252_v14 = vmul.f32 %v3759_v10, %v14620_v16  ;;  %v3830_v15 = vmul.f32 %v12245_v50, %v12245_v50 }
 0x6a1   : > { %v3861_v39 = vadd.f32 %v3860_v48, %v3826_v31  ;;  %v14621_v48 = vld [vmem:[#allocation21_spill] sm:$0xff] }
 0x6a2   : > { %v12259_v3 = vmul.f32 %v3760_v49, %v14621_v48  ;;  %v3831_v16 = vmul.f32 %v12252_v14, %v12252_v14 }
 0x6a3   : > { %v3862_v53 = vadd.f32 %v3861_v39, %v3827_v59  ;;  %v14622_v39 = vld [vmem:[#allocation26_spill] sm:$0xff] }
 0x6a4   : > { %v12266_v10 = vmul.f32 %v3761_v8, %v14622_v39  ;;  %v3832_v48 = vmul.f32 %v12259_v3, %v12259_v3 }
 0x6a5   : > { %v3863_v31 = vadd.f32 %v3862_v53, %v3828_v33  ;;  %v14623_v53 = vld [vmem:[#allocation25_spill] sm:$0xff] }
 0x6a6   : > { %v12273_v49 = vmul.f32 %v3762_v38, %v14623_v53  ;;  %v3833_v39 = vmul.f32 %v12266_v10, %v12266_v10 }
 0x6a7   : > { %v3864_v59 = vadd.f32 %v3863_v31, %v3829_v47  ;;  %v14624_v31 = vld [vmem:[#allocation30_spill] sm:$0xff] }
 0x6a8   : > { %v12280_v8 = vmul.f32 %v3763_v17, %v14624_v31  ;;  %v3834_v53 = vmul.f32 %v12273_v49, %v12273_v49 }
 0x6a9   : > { %v3865_v33 = vadd.f32 %v3864_v59, %v3830_v15  ;;  %v14625_v59 = vld [vmem:[#allocation29_spill] sm:$0xff] }
 0x6aa   : > { %v12287_v38 = vmul.f32 %v3764_v44, %v14625_v59  ;;  %v3835_v31 = vmul.f32 %v12280_v8, %v12280_v8 }
 0x6ab   : > { %v3866_v47 = vadd.f32 %v3865_v33, %v3831_v16  ;;  %v14626_v33 = vld [vmem:[#allocation34_spill] sm:$0xff] }
 0x6ac   : > { %v12294_v17 = vmul.f32 %v3765_v36, %v14626_v33  ;;  %v3836_v59 = vmul.f32 %v12287_v38, %v12287_v38  ;;  %v12311_v33 = vmul.f32 %v3768_v24, %v14594_v46 }
 0x6ad   : > { %v3867_v15 = vadd.f32 %v3866_v47, %v3832_v48  ;;  %v14627_v47 = vld [vmem:[#allocation33_spill] sm:$0xff] }
 0x6ae   : > { %v12301_v44 = vmul.f32 %v3766_v25, %v14627_v47  ;;  %v3837_v34 = vmul.f32 %v12294_v17, %v12294_v17 }
 0x6af   : > { %v3868_v16 = vadd.f32 %v3867_v15, %v3833_v39  ;;  %v14628_v15 = vld [vmem:[#allocation37_spill] sm:$0xff] }
 0x6b0   : > { %v12306_v37 = vmul.f32 %v3767_v54, %v14628_v15  ;;  %v3838_v26 = vmul.f32 %v12301_v44, %v12301_v44 }
 0x6b1   : > { %v3869_v48 = vadd.f32 %v3868_v16, %v3834_v53 }
 0x6b2   : > { %v3839_v53 = vmul.f32 %v12306_v37, %v12306_v37 }
 0x6b3   : > { %v3870_v39 = vadd.f32 %v3869_v48, %v3835_v31  ;;  %v3840_v31 = vmul.f32 %v12311_v33, %v12311_v33 }
 0x6b5   : > { %v3871_v36 = vadd.f32 %v3870_v39, %v3836_v59 }
 0x6b7   : > { %v3872_v45 = vadd.f32 %v3871_v36, %v3837_v34  ;;  %v7042_v34 = vld [vmem:[%s14246_s10 + $0x280] sm:$0xff]  ;;  %v7043_v36 = vld [vmem:[%s14246_s10 + $0x288] sm:$0xff] }
 0x6b9   : > { %v3873_v25 = vadd.f32 %v3872_v45, %v3838_v26  ;;  %v8668_v26 = vpack.c.bf16 %v7043_v36, %v7042_v34  ;;  %v7028_v45 = vld [vmem:[%s14246_s10 + $0x210] sm:$0xff]  ;;  %v7033_v36 = vld [vmem:[%s14246_s10 + $0x238] sm:$0xff] }
 0x6ba   : > { %v7032_v34 = vld [vmem:[%s14246_s10 + $0x230] sm:$0xff] }
 0x6bb   : > { %v3874_v16 = vadd.f32 %v3873_v25, %v3839_v53  ;;  %8669 = vmatprep.subr.bf16.mxu0 %v8668_v26  ;;  %v7045_v25 = vld [vmem:[%s14246_s10 + $0x298] sm:$0xff] }
 0x6bd   : > { %v3875_v54 = vadd.f32 %v3874_v16, %v3840_v31  ;;  %v7030_v16 = vld [vmem:[%s14246_s10 + $0x220] sm:$0xff] }
 0x6bf   : > { %v3876_v48 = vrot.slane %v3875_v54, 4 }
 0x6c1   : > { %v3877_v15 = vadd.f32 %v3876_v48, %v3875_v54  ;;  %v7031_v54 = vld [vmem:[%s14246_s10 + $0x228] sm:$0xff]  ;;  %v7046_v48 = vld [vmem:[%s14246_s10 + $0x2a0] sm:$0xff] }
 0x6c3   : > { %v3878_v47 = vrot.slane %v3877_v15, 2 }
 0x6c5   : > { %v3879_v59 = vadd.f32 %v3878_v47, %v3877_v15  ;;  %v7029_v47 = vld [vmem:[%s14246_s10 + $0x218] sm:$0xff]  ;;  %v7044_v15 = vld [vmem:[%s14246_s10 + $0x290] sm:$0xff] }
 0x6c6   : > { %v8648_v53 = vpack.c.bf16 %v7029_v47, %v7028_v45  ;;  %v8672_v31 = vpack.c.bf16 %v7045_v25, %v7044_v15  ;;  %v8654_v45 = vpack.c.bf16 %v7033_v36, %v7032_v34  ;;  %v7049_v47 = vld [vmem:[%s14246_s10 + $0x2b8] sm:$0xff]  ;;  %v7035_v25 = vld [vmem:[%s14246_s10 + $0x248] sm:$0xff] }
 0x6c7   : > { %v3880_v39 = vrot.slane %v3879_v59, 1 }
 0x6c8   : > { %8649 = vmatpush1.bf16.msra.mxu1 %v8648_v53  ;;  %v7034_v53 = vld [vmem:[%s14246_s10 + $0x240] sm:$0xff] }
 0x6c9   : > { %v3881_v24 = vadd.f32 %v3880_v39, %v3879_v59  ;;  %8650 = vmatprep.subr.bf16.mxu1 %v14596_v13  ;;  %v8651_v59 = vpack.c.bf16 %v7031_v54, %v7030_v16  ;;  %v7047_v39 = vld [vmem:[%s14246_s10 + $0x2a8] sm:$0xff]  ;;  %v8657_v16 = vpack.c.bf16 %v7035_v25, %v7034_v53  ;;  %v7054_v25 = vld [vmem:[%s14246_s10 + $0x2e0] sm:$0xff] }
 0x6ca   : > { %v7051_v54 = vld [vmem:[%s14246_s10 + $0x2c8] sm:$0xff] }
 0x6cb   : > { %7938 = vmatmul.mubr.f32.vlgmr.msra.gmra.mrb[148].mxu0 %v3881_v24  ;;  %v8676_v24 = vpack.c.bf16 %v7047_v39, %v7046_v48  ;;  %v7037_v39 = vld [vmem:[%s14246_s10 + $0x258] sm:$0xff]  ;;  %v7039_v53 = vld [vmem:[%s14246_s10 + $0x268] sm:$0xff] }
 0x6cc   : > { %8671 = vmatpush3.bf16.msra.mxu0 %v8668_v26  ;;  %8652 = vmatpush1.bf16.msra.mxu1 %v8651_v59  ;;  %v7048_v26 = vld [vmem:[%s14246_s10 + $0x2b0] sm:$0xff] }
 0x6cd   : > { %8673 = vmatprep.subr.bf16.mxu0 %v8672_v31  ;;  %8653 = vmatprep.subr.bf16.mxu1 %v14596_v13  ;;  %v8680_v15 = vpack.c.bf16 %v7049_v47, %v7048_v26  ;;  %v7036_v59 = vld [vmem:[%s14246_s10 + $0x250] sm:$0xff]  ;;  %v7053_v26 = vld [vmem:[%s14246_s10 + $0x2d8] sm:$0xff] }
 0x6ce   : > { %v8660_v36 = vpack.c.bf16 %v7037_v39, %v7036_v59  ;;  %v7056_v39 = vld [vmem:[%s14246_s10 + $0x2f0] sm:$0xff] }
 0x6d0   : > { %8675 = vmatpush3.bf16.msra.mxu0 %v8672_v31  ;;  %8655 = vmatpush1.bf16.msra.mxu1 %v8654_v45  ;;  %v7050_v31 = vld [vmem:[%s14246_s10 + $0x2c0] sm:$0xff] }
 0x6d1   : > { %8677 = vmatprep.subr.bf16.mxu0 %v8676_v24  ;;  %8656 = vmatprep.subr.bf16.mxu1 %v14596_v13  ;;  %v8684_v48 = vpack.c.bf16 %v7051_v54, %v7050_v31  ;;  %v7040_v54 = vld [vmem:[%s14246_s10 + $0x270] sm:$0xff] }
 0x6d4   : > { %8679 = vmatpush3.bf16.msra.mxu0 %v8676_v24  ;;  %8658 = vmatpush1.bf16.msra.mxu1 %v8657_v16  ;;  %v7052_v24 = vld [vmem:[%s14246_s10 + $0x2d0] sm:$0xff]  ;;  %v7055_v16 = vld [vmem:[%s14246_s10 + $0x2e8] sm:$0xff] }
 0x6d5   : > { %8681 = vmatprep.subr.bf16.mxu0 %v8680_v15  ;;  %8659 = vmatprep.subr.bf16.mxu1 %v14596_v13  ;;  %v8688_v47 = vpack.c.bf16 %v7053_v26, %v7052_v24  ;;  %v8692_v59 = vpack.c.bf16 %v7055_v16, %v7054_v25  ;;  %v4545_v26 = vld [vmem:[%s14246_s10 + $0x100] sm:$0xff] }
 0x6d8   : > { %8683 = vmatpush3.bf16.msra.mxu0 %v8680_v15  ;;  %8661 = vmatpush1.bf16.msra.mxu1 %v8660_v36  ;;  %v7038_v15 = vld [vmem:[%s14246_s10 + $0x260] sm:$0xff]  ;;  %v7057_v36 = vld [vmem:[%s14246_s10 + $0x2f8] sm:$0xff] }
 0x6d9   : > { %8685 = vmatprep.subr.bf16.mxu0 %v8684_v48  ;;  %8662 = vmatprep.subr.bf16.mxu1 %v14596_v13  ;;  %v8663_v31 = vpack.c.bf16 %v7039_v53, %v7038_v15  ;;  %v8696_v15 = vpack.c.bf16 %v7057_v36, %v7056_v39 }
 0x6dc   : > { %8687 = vmatpush3.bf16.msra.mxu0 %v8684_v48  ;;  %v7041_v48 = vld [vmem:[%s14246_s10 + $0x278] sm:$0xff]  ;;  %8664 = vmatpush1.bf16.msra.mxu1 %v8663_v31 }
 0x6dd   : > { %8689 = vmatprep.subr.bf16.mxu0 %v8688_v47  ;;  %v8666_v24 = vpack.c.bf16 %v7041_v48, %v7040_v54  ;;  %8665 = vmatprep.subr.bf16.mxu1 %v14596_v13 }
 0x6e0   : > { %8691 = vmatpush3.bf16.msra.mxu0 %v8688_v47  ;;  %8667 = vmatpush1.bf16.msra.mxu1 %v8666_v24 }
 0x6e1   : > { %8693 = vmatprep.subr.bf16.mxu0 %v8692_v59 }
 0x6e4   : > { %8695 = vmatpush3.bf16.msra.mxu0 %v8692_v59 }
 0x6e5   : > { %8697 = vmatprep.subr.bf16.mxu0 %v8696_v15 }
 0x6e8   : > { %8699 = vmatpush3.bf16.msra.mxu0 %v8696_v15 }
 0x6e9   : > { %8700 = vmatprep.subr.bf16.mxu0 %v14596_v13 }
 0x79e   : > { %v3948_v34 = vpop.f32.mrb[148].mxu0 }
 0x79f   : > { %v7939_v45 = vpop.f32.mrb[149].mxu0  ;;  %v3952_v47 = vmul.f32 0.00390625, %v3948_v34 }
 0x7a0   : > { %v4546_v45 = vld [vmem:[%s14246_s10 + $0x108] sm:$0xff] }
 0x7a1   : > { %v12421_v53 = vpack.c.bf16 %v4546_v45, %v4545_v26  ;;  %v3953_v25 = vadd.f32 1e-05, %v3952_v47 }
 0x7a3   : > { %8749 = vmatprep.subr.bf16.mxu1 %v12421_v53  ;;  %9069 = vrsqrt.f32 %v3953_v25 }
 0x7ad   : > { %v9070_v31 = vpop.eup %9069 }
 0x7ae   : > { %v3958_v16 = vrot.slane %v9070_v31, %v14604_v23  ;;  %v12437_v23 = vld [vmem:[%s14244_s8] ss:$0 sm:$0xff] }
 0x7b0   : > { %v3959_v34 = vmul.f32 %v3958_v16, %v12074_v22  ;;  %v3960_v54 = vmul.f32 %v3958_v16, %v12077_v58  ;;  %v3961_v48 = vmul.f32 %v3958_v16, %v12084_v51  ;;  %v3962_v59 = vmul.f32 %v3958_v16, %v12093_v29 }
 0x7b1   : > { %v3963_v39 = vmul.f32 %v3958_v16, %v12098_v35  ;;  %v3964_v24 = vmul.f32 %v3958_v16, %v12105_v18  ;;  %v3965_v36 = vmul.f32 %v3958_v16, %v12112_v21  ;;  %v3966_v26 = vmul.f32 %v3958_v16, %v12119_v6 }
 0x7b2   : > { %v3967_v22 = vmul.f32 %v3958_v16, %v12126_v9  ;;  %v3968_v58 = vmul.f32 %v3958_v16, %v12133_v42  ;;  %v3969_v51 = vmul.f32 %v3958_v16, %v12140_v52  ;;  %v3970_v29 = vmul.f32 %v3958_v16, %v12147_v61 }
 0x7b3   : > { %v3971_v35 = vmul.f32 %v3958_v16, %v12154_v62  ;;  %v3972_v18 = vmul.f32 %v3958_v16, %v12161_v32  ;;  %v3973_v21 = vmul.f32 %v3958_v16, %v12168_v7  ;;  %v3974_v6 = vmul.f32 %v3958_v16, %v12175_v2  ;;  %v12466_v7 = vld [vmem:[%s14245_s9] ss:$0 sm:$0xff] }
 0x7b4   : > { %v3975_v45 = vmul.f32 %v3958_v16, %v12182_v30  ;;  %v12449_v47 = vmul.f32 %v3958_v16, %v12189_v1  ;;  %v12452_v9 = vmul.f32 %v3958_v16, %v12196_v43  ;;  %v12455_v42 = vmul.f32 %v3958_v16, %v12203_v57 }
 0x7b5   : > { %v12458_v52 = vmul.f32 %v3958_v16, %v12210_v56  ;;  %v4002_v61 = vmul.f32 %v12437_v23, %v3959_v34  ;;  %v4003_v62 = vmul.f32 %v12437_v23, %v3960_v54  ;;  %v4004_v32 = vmul.f32 %v12437_v23, %v3961_v48 }
 0x7b6   : > { %v12469_v2 = vmul.f32 %v3958_v16, %v12217_v41  ;;  %v12472_v30 = vmul.f32 %v3958_v16, %v12224_v40  ;;  %v12475_v1 = vmul.f32 %v3958_v16, %v12231_v55  ;;  %v4005_v43 = vmul.f32 %v12437_v23, %v3962_v59 }
 0x7b7   : > { %v12479_v57 = vmul.f32 %v3958_v16, %v12238_v60  ;;  %v12482_v56 = vmul.f32 %v3958_v16, %v12245_v50  ;;  %v12485_v15 = vmul.f32 %v3958_v16, %v12252_v14  ;;  %v4006_v41 = vmul.f32 %v12437_v23, %v3963_v39 }
 0x7b8   : > { %v12489_v25 = vmul.f32 %v3958_v16, %v12259_v3  ;;  %v12492_v40 = vmul.f32 %v3958_v16, %v12266_v10  ;;  %v12495_v55 = vmul.f32 %v3958_v16, %v12273_v49  ;;  %v4007_v60 = vmul.f32 %v12437_v23, %v3964_v24 }
 0x7b9   : > { %v4008_v31 = vmul.f32 %v12437_v23, %v3965_v36  ;;  %v12500_v50 = vadd.f32 %v12466_v7, %v4002_v61  ;;  %v12503_v14 = vadd.f32 %v12466_v7, %v4003_v62  ;;  %v12506_v34 = vadd.f32 %v12466_v7, %v4004_v32 }
 0x7ba   : > { %v12509_v3 = vmul.f32 %v3958_v16, %v12280_v8  ;;  %v12512_v10 = vmul.f32 %v3958_v16, %v12287_v38  ;;  %v4009_v49 = vmul.f32 %v12437_v23, %v3966_v26  ;;  %v12516_v54 = vadd.f32 %v12466_v7, %v4005_v43 }
 0x7bb   : > { %v12519_v48 = vmul.f32 %v3958_v16, %v12294_v17  ;;  %v12522_v59 = vmul.f32 %v3958_v16, %v12301_v44  ;;  %v4010_v39 = vmul.f32 %v12437_v23, %v3967_v22  ;;  %v12526_v24 = vadd.f32 %v12466_v7, %v4006_v41 }
 0x7bc   : > { %v12529_v8 = vmul.f32 %v3958_v16, %v12306_v37  ;;  %v4011_v38 = vmul.f32 %v12437_v23, %v3968_v58  ;;  %v4012_v36 = vmul.f32 %v12437_v23, %v3969_v51  ;;  %v12534_v26 = vadd.f32 %v12466_v7, %v4007_v60 }
 0x7bd   : > { %v12537_v17 = vadd.f32 %v12466_v7, %v4008_v31  ;;  %v6974_v44 = vmul.f32 -1.442695, %v12500_v50  ;;  %v6975_v22 = vmul.f32 -1.442695, %v12503_v14  ;;  %v6976_v61 = vmul.f32 -1.442695, %v12506_v34 }
 0x7be   : > { %v12543_v62 = vmul.f32 %v3958_v16, %v12311_v33  ;;  %v4013_v37 = vmul.f32 %v12437_v23, %v3970_v29  ;;  %v12547_v58 = vadd.f32 %v12466_v7, %v4009_v49  ;;  %v6977_v51 = vmul.f32 -1.442695, %v12516_v54 }
 0x7bf   : > { %v4014_v32 = vmul.f32 %v12437_v23, %v3971_v35  ;;  %v12552_v43 = vadd.f32 %v12466_v7, %v4010_v39  ;;  %9071 = vpow2.f32 %v6974_v44  ;;  %v6978_v41 = vmul.f32 -1.442695, %v12526_v24 }
 0x7c0   : > { %v4015_v60 = vmul.f32 %v12437_v23, %v3972_v18  ;;  %v12557_v33 = vadd.f32 %v12466_v7, %v4011_v38  ;;  %9073 = vpow2.f32 %v6975_v22  ;;  %v6979_v16 = vmul.f32 -1.442695, %v12534_v26 }
 0x7c1   : > { %v4016_v29 = vmul.f32 %v12437_v23, %v3973_v21  ;;  %v12562_v31 = vadd.f32 %v12466_v7, %v4012_v36  ;;  %9075 = vpow2.f32 %v6976_v61  ;;  %v6980_v35 = vmul.f32 -1.442695, %v12537_v17 }
 0x7c2   : > { %v4017_v49 = vmul.f32 %v12437_v23, %v3974_v6  ;;  %v12567_v39 = vadd.f32 %v12466_v7, %v4013_v37  ;;  %9077 = vpow2.f32 %v6977_v51  ;;  %v6981_v18 = vmul.f32 -1.442695, %v12547_v58 }
 0x7c3   : > { %v4018_v38 = vmul.f32 %v12437_v23, %v3975_v45  ;;  %v12572_v44 = vadd.f32 %v12466_v7, %v4014_v32  ;;  %9079 = vpow2.f32 %v6978_v41  ;;  %v6982_v21 = vmul.f32 -1.442695, %v12552_v43 }
 0x7c4   : > { %v4019_v36 = vmul.f32 %v12437_v23, %v12449_v47  ;;  %v12578_v22 = vadd.f32 %v12466_v7, %v4015_v60  ;;  %9081 = vpow2.f32 %v6979_v16  ;;  %v6983_v6 = vmul.f32 -1.442695, %v12557_v33 }
 0x7c5   : > { %v4020_v61 = vmul.f32 %v12437_v23, %v12452_v9  ;;  %v12584_v45 = vadd.f32 %v12466_v7, %v4016_v29  ;;  %9083 = vpow2.f32 %v6980_v35  ;;  %v6984_v37 = vmul.f32 -1.442695, %v12562_v31 }
 0x7c6   : > { %v4021_v51 = vmul.f32 %v12437_v23, %v12455_v42  ;;  %v12590_v47 = vadd.f32 %v12466_v7, %v4017_v49  ;;  %9085 = vpow2.f32 %v6981_v18  ;;  %v6985_v32 = vmul.f32 -1.442695, %v12567_v39 }
 0x7c7   : > { %v4022_v41 = vmul.f32 %v12437_v23, %v12458_v52  ;;  %v12596_v9 = vadd.f32 %v12466_v7, %v4018_v38  ;;  %9087 = vpow2.f32 %v6982_v21  ;;  %v6986_v60 = vmul.f32 -1.442695, %v12572_v44 }
 0x7c8   : > { %14629 = vst [vmem:[#allocation48_spill] sm:$0xff] %v12590_v47  ;;  %v4023_v16 = vmul.f32 %v12437_v23, %v12469_v2  ;;  %v12602_v42 = vadd.f32 %v12466_v7, %v4019_v36  ;;  %9089 = vpow2.f32 %v6983_v6  ;;  %v6987_v29 = vmul.f32 -1.442695, %v12578_v22 }
 0x7c9   : > { %14630 = vst [vmem:[#allocation49_spill] sm:$0xff] %v12596_v9  ;;  %v12605_v35 = vpop.eup %9071  ;;  %v4024_v52 = vmul.f32 %v12437_v23, %v12472_v30  ;;  %v12610_v49 = vadd.f32 %v12466_v7, %v4020_v61  ;;  %9091 = vpow2.f32 %v6984_v37  ;;  %v6988_v18 = vmul.f32 -1.442695, %v12584_v45 }
 0x7ca   : > { %14631 = vst [vmem:[#allocation50_spill] sm:$0xff] %v12602_v42  ;;  %v12613_v38 = vpop.eup %9073  ;;  %v4025_v2 = vmul.f32 %v12437_v23, %v12475_v1  ;;  %v12618_v21 = vadd.f32 %v12466_v7, %v4021_v51  ;;  %9093 = vpow2.f32 %v6985_v32  ;;  %v6989_v36 = vmul.f32 -1.442695, %v12590_v47 }
 0x7cb   : > { %14632 = vst [vmem:[#allocation51_spill] sm:$0xff] %v12610_v49  ;;  %v12621_v6 = vpop.eup %9075  ;;  %v4026_v30 = vmul.f32 %v12437_v23, %v12479_v57  ;;  %v12626_v61 = vadd.f32 %v12466_v7, %v4022_v41  ;;  %9095 = vpow2.f32 %v6986_v60  ;;  %v6990_v37 = vmul.f32 -1.442695, %v12596_v9 }
 0x7cc   : > { %14633 = vst [vmem:[#allocation20_spill] sm:$0xff] %v12618_v21  ;;  %v12629_v46 = vpop.eup %9077  ;;  %v4027_v1 = vmul.f32 %v12437_v23, %v12482_v56  ;;  %v12634_v51 = vadd.f32 %v12466_v7, %v4023_v16  ;;  %9097 = vpow2.f32 %v6987_v29  ;;  %v6991_v32 = vmul.f32 -1.442695, %v12602_v42 }
 0x7cd   : > { %14634 = vst [vmem:[#allocation52_spill] sm:$0xff] %v12626_v61  ;;  %v12637_v13 = vpop.eup %9079  ;;  %v4028_v57 = vmul.f32 %v12437_v23, %v12485_v15  ;;  %v12642_v41 = vadd.f32 %v12466_v7, %v4024_v52  ;;  %9099 = vpow2.f32 %v6988_v18  ;;  %v6992_v60 = vmul.f32 -1.442695, %v12610_v49 }
 0x7ce   : > { %14635 = vst [vmem:[#allocation54_spill] sm:$0xff] %v12634_v51  ;;  %v12645_v9 = vpop.eup %9081  ;;  %v4029_v56 = vmul.f32 %v12437_v23, %v12489_v25  ;;  %v12650_v16 = vadd.f32 %v12466_v7, %v4025_v2  ;;  %9101 = vpow2.f32 %v6989_v36  ;;  %v6993_v29 = vmul.f32 -1.442695, %v12618_v21 }
 0x7cf   : > { %14636 = vst [vmem:[#allocation41_spill] sm:$0xff] %v12642_v41  ;;  %v12653_v42 = vpop.eup %9083  ;;  %v4030_v15 = vmul.f32 %v12437_v23, %v12492_v40  ;;  %v12658_v52 = vadd.f32 %v12466_v7, %v4026_v30  ;;  %9103 = vpow2.f32 %v6990_v37  ;;  %v6994_v18 = vmul.f32 -1.442695, %v12626_v61 }
 0x7d0   : > { %14637 = vst [vmem:[#allocation23_spill] sm:$0xff] %v12650_v16  ;;  %v12661_v49 = vpop.eup %9085  ;;  %v4031_v25 = vmul.f32 %v12437_v23, %v12495_v55  ;;  %v12666_v2 = vadd.f32 %v12466_v7, %v4027_v1  ;;  %9105 = vpow2.f32 %v6991_v32  ;;  %v6995_v36 = vmul.f32 -1.442695, %v12634_v51 }
 0x7d1   : > { %14638 = vst [vmem:[#allocation43_spill] sm:$0xff] %v12658_v52  ;;  %v12669_v21 = vpop.eup %9087  ;;  %v4032_v40 = vmul.f32 %v12437_v23, %v12509_v3  ;;  %v12674_v30 = vadd.f32 %v12466_v7, %v4028_v57  ;;  %9107 = vpow2.f32 %v6992_v60  ;;  %v6996_v37 = vmul.f32 -1.442695, %v12642_v41 }
 0x7d2   : > { %14639 = vst [vmem:[#allocation56_spill] sm:$0xff] %v12666_v2  ;;  %v12677_v61 = vpop.eup %9089  ;;  %v4033_v55 = vmul.f32 %v12437_v23, %v12512_v10  ;;  %v12682_v1 = vadd.f32 %v12466_v7, %v4029_v56  ;;  %9109 = vpow2.f32 %v6993_v29  ;;  %v6997_v32 = vmul.f32 -1.442695, %v12650_v16 }
 0x7d3   : > { %14640 = vst [vmem:[#allocation42_spill] sm:$0xff] %v12674_v30  ;;  %v12685_v51 = vpop.eup %9091  ;;  %v4034_v3 = vmul.f32 %v12437_v23, %v12519_v48  ;;  %v12690_v57 = vadd.f32 %v12466_v7, %v4030_v15  ;;  %9111 = vpow2.f32 %v6994_v18  ;;  %v6998_v60 = vmul.f32 -1.442695, %v12658_v52 }
 0x7d4   : > { %14641 = vst [vmem:[#allocation24_spill] sm:$0xff] %v12682_v1  ;;  %v12693_v41 = vpop.eup %9093  ;;  %v4035_v10 = vmul.f32 %v12437_v23, %v12522_v59  ;;  %v12698_v56 = vadd.f32 %v12466_v7, %v4031_v25  ;;  %9113 = vpow2.f32 %v6995_v36  ;;  %v6999_v29 = vmul.f32 -1.442695, %v12666_v2 }
 0x7d5   : > { %14642 = vst [vmem:[#allocation28_spill] sm:$0xff] %v12690_v57  ;;  %v12701_v16 = vpop.eup %9095  ;;  %v4036_v48 = vmul.f32 %v12437_v23, %v12529_v8  ;;  %v12706_v15 = vadd.f32 %v12466_v7, %v4032_v40  ;;  %9115 = vpow2.f32 %v6996_v37  ;;  %v7000_v18 = vmul.f32 -1.442695, %v12674_v30 }
 0x7d6   : > { %14643 = vst [vmem:[#allocation57_spill] sm:$0xff] %v12698_v56  ;;  %v12709_v52 = vpop.eup %9097  ;;  %v4037_v59 = vmul.f32 %v12437_v23, %v12543_v62  ;;  %v12714_v25 = vadd.f32 %v12466_v7, %v4033_v55  ;;  %9117 = vpow2.f32 %v6997_v32  ;;  %v7001_v36 = vmul.f32 -1.442695, %v12682_v1 }
 0x7d7   : > { %14644 = vst [vmem:[#allocation55_spill] sm:$0xff] %v12706_v15  ;;  %v12717_v2 = vpop.eup %9099  ;;  %v12720_v8 = vadd.f32 %v12466_v7, %v4034_v3  ;;  %9119 = vpow2.f32 %v6998_v60  ;;  %v7002_v40 = vmul.f32 -1.442695, %v12690_v57  ;;  %v12726_v30 = vadd.f32 %v12466_v7, %v4035_v10 }
 0x7d8   : > { %14645 = vst [vmem:[#allocation31_spill] sm:$0xff] %v12714_v25  ;;  %v12723_v37 = vpop.eup %9101  ;;  %9121 = vpow2.f32 %v6999_v29  ;;  %v7003_v23 = vmul.f32 -1.442695, %v12698_v56  ;;  %v12732_v55 = vadd.f32 %v12466_v7, %v4036_v48  ;;  %v7004_v32 = vmul.f32 -1.442695, %v12706_v15 }
 0x7d9   : > { %14646 = vst [vmem:[#allocation19_spill] sm:$0xff] %v12720_v8  ;;  %14647 = vst [vmem:[#allocation53_spill] sm:$0xff] %v12726_v30  ;;  %v12729_v62 = vpop.eup %9103  ;;  %9123 = vpow2.f32 %v7000_v18  ;;  %v12738_v60 = vadd.f32 %v12466_v7, %v4037_v59  ;;  %v7005_v10 = vmul.f32 -1.442695, %v12714_v25  ;;  %v7006_v29 = vmul.f32 -1.442695, %v12720_v8 }
 0x7da   : > { %14648 = vst [vmem:[#allocation27_spill] sm:$0xff] %v12732_v55  ;;  %v12735_v3 = vpop.eup %9105  ;;  %9125 = vpow2.f32 %v7001_v36  ;;  %v7007_v48 = vmul.f32 -1.442695, %v12726_v30  ;;  %v7008_v15 = vmul.f32 -1.442695, %v12732_v55  ;;  %v4548_v25 = vld [vmem:[%s14246_s10 + $0x118] sm:$0xff] }
 0x7db   : > { %14649 = vst [vmem:[#allocation58_spill] sm:$0xff] %v12738_v60  ;;  %v12741_v57 = vpop.eup %9107  ;;  %9127 = vpow2.f32 %v7002_v40  ;;  %v7009_v59 = vmul.f32 -1.442695, %v12738_v60  ;;  %v4189_v40 = vadd.f32 1.0, %v12605_v35 }
 0x7dc   : > { %v12744_v56 = vpop.eup %9109  ;;  %9129 = vpow2.f32 %v7003_v23  ;;  %v4190_v23 = vadd.f32 1.0, %v12613_v38 }
 0x7dd   : > { %v12747_v18 = vpop.eup %9111  ;;  %9131 = vpow2.f32 %v7004_v32  ;;  %v4191_v32 = vadd.f32 1.0, %v12621_v6 }
 0x7de   : > { %v12750_v7 = vpop.eup %9113  ;;  %9133 = vpow2.f32 %v7005_v10  ;;  %v4192_v10 = vadd.f32 1.0, %v12629_v46 }
 0x7df   : > { %v12753_v36 = vpop.eup %9115  ;;  %9135 = vpow2.f32 %v7006_v29  ;;  %v4193_v29 = vadd.f32 1.0, %v12637_v13  ;;  %v4197_v13 = vadd.f32 1.0, %v12669_v21  ;;  %v12794_v21 = vld [vmem:[%s14246_s10 + $0x8] sm:$0xff] }
 0x7e0   : > { %v12756_v8 = vpop.eup %9117  ;;  %9137 = vpow2.f32 %v7007_v48  ;;  %v4194_v48 = vadd.f32 1.0, %v12645_v9  ;;  %v4198_v9 = vadd.f32 1.0, %v12677_v61  ;;  %14654 = vst [vmem:[#allocation39_spill] sm:$0xff] %v12794_v21  ;;  %v12799_v61 = vld [vmem:[%s14246_s10 + $0x10] sm:$0xff] }
 0x7e1   : > { %v12759_v30 = vpop.eup %9119  ;;  %9139 = vpow2.f32 %v7008_v15  ;;  %v4195_v15 = vadd.f32 1.0, %v12653_v42  ;;  %v4199_v42 = vadd.f32 1.0, %v12685_v51  ;;  %14655 = vst [vmem:[#allocation44_spill] sm:$0xff] %v12799_v61  ;;  %v4200_v51 = vadd.f32 1.0, %v12693_v41 }
 0x7e2   : > { %v12762_v55 = vpop.eup %9121  ;;  %9141 = vpow2.f32 %v7009_v59  ;;  %v4196_v59 = vadd.f32 1.0, %v12661_v49  ;;  %v12789_v49 = vld [vmem:[%s14246_s10] sm:$0xff]  ;;  %v4201_v41 = vadd.f32 1.0, %v12701_v16  ;;  %v4206_v61 = vadd.f32 1.0, %v12735_v3 }
 0x7e3   : > { %v12765_v60 = vpop.eup %9123  ;;  %9143 = vrcp.f32 %v4189_v40  ;;  %14653 = vst [vmem:[#allocation40_spill] sm:$0xff] %v12789_v49  ;;  %v4549_v16 = vld [vmem:[%s14246_s10 + $0x120] sm:$0xff] }
 0x7e4   : > { %v12768_v35 = vpop.eup %9125  ;;  %9145 = vrcp.f32 %v4190_v23 }
 0x7e5   : > { %v12771_v38 = vpop.eup %9127  ;;  %9147 = vrcp.f32 %v4191_v32 }
 0x7e6   : > { %v12774_v6 = vpop.eup %9129  ;;  %9149 = vrcp.f32 %v4192_v10  ;;  %v12807_v10 = vld [vmem:[%s14246_s10 + $0x18] sm:$0xff] }
 0x7e7   : > { %v12777_v46 = vpop.eup %9131  ;;  %9151 = vrcp.f32 %v4193_v29  ;;  %v12812_v29 = vld [vmem:[%s14246_s10 + $0x20] sm:$0xff] }
 0x7e8   : > { %14650 = vst [vmem:[#allocation32_spill] sm:$0xff] %v12777_v46  ;;  %v12780_v40 = vpop.eup %9133  ;;  %9153 = vrcp.f32 %v4194_v48  ;;  %v12817_v48 = vld [vmem:[%s14246_s10 + $0x28] sm:$0xff]  ;;  %v4205_v46 = vadd.f32 1.0, %v12729_v62 }
 0x7e9   : > { %14651 = vst [vmem:[#allocation35_spill] sm:$0xff] %v12780_v40  ;;  %v12783_v23 = vpop.eup %9135  ;;  %9155 = vrcp.f32 %v4195_v15  ;;  %v4203_v40 = vadd.f32 1.0, %v12717_v2 }
 0x7ea   : > { %14652 = vst [vmem:[#allocation36_spill] sm:$0xff] %v12783_v23  ;;  %v12801_v32 = vpop.eup %9137  ;;  %9157 = vrcp.f32 %v4196_v59  ;;  %v4547_v59 = vld [vmem:[%s14246_s10 + $0x110] sm:$0xff]  ;;  %v4204_v23 = vadd.f32 1.0, %v12723_v37 }
 0x7eb   : > { %14656 = vst [vmem:[#allocation45_spill] sm:$0xff] %v12801_v32  ;;  %v12819_v15 = vpop.eup %9139  ;;  %9159 = vrcp.f32 %v4197_v13  ;;  %v4202_v32 = vadd.f32 1.0, %v12709_v52  ;;  %v4550_v13 = vld [vmem:[%s14246_s10 + $0x128] sm:$0xff]  ;;  %v12846_v21 = vpack.c.bf16 %v4548_v25, %v4547_v59 }
 0x7ec   : > { %14657 = vst [vmem:[#allocation46_spill] sm:$0xff] %v12819_v15  ;;  %v12828_v1 = vpop.eup %9141  ;;  %9161 = vrcp.f32 %v4198_v9 }
 0x7ed   : > { %14658 = vst [vmem:[#allocation47_spill] sm:$0xff] %v12828_v1  ;;  %v9144_v15 = vpop.eup %9143  ;;  %9163 = vrcp.f32 %v4199_v42  ;;  %v12850_v42 = vpack.c.bf16 %v4550_v13, %v4549_v16  ;;  %v14660_v16 = vld [vmem:[#allocation3_spill] sm:$0xff] }
 0x7ee   : > { %v9146_v9 = vpop.eup %9145  ;;  %9165 = vrcp.f32 %v4200_v51  ;;  %v4297_v49 = vmul.f32 %v9144_v15, %v12500_v50  ;;  %v4207_v50 = vadd.f32 1.0, %v12741_v57  ;;  %v4208_v15 = vadd.f32 1.0, %v12744_v56 }
 0x7ef   : > { %v9148_v47 = vpop.eup %9147  ;;  %9167 = vrcp.f32 %v4201_v41  ;;  %v4298_v2 = vmul.f32 %v9146_v9, %v12503_v14  ;;  %v4211_v56 = vadd.f32 1.0, %v12753_v36 }
 0x7f0   : > { %v9150_v1 = vpop.eup %9149  ;;  %9169 = vrcp.f32 %v4202_v32  ;;  %v4299_v52 = vmul.f32 %v9148_v47, %v12506_v34  ;;  %v4333_v37 = vmul.f32 %v4297_v49, %v9508_v0  ;;  %v4209_v34 = vadd.f32 1.0, %v12747_v18 }
 0x7f1   : > { %v9152_v51 = vpop.eup %9151  ;;  %9171 = vrcp.f32 %v4203_v40  ;;  %v4300_v25 = vmul.f32 %v9150_v1, %v12516_v54  ;;  %v12858_v62 = vmul.f32 %v4298_v2, %v9515_v5  ;;  %v4210_v1 = vadd.f32 1.0, %v12750_v7  ;;  %v14661_v2 = vld [vmem:[#allocation6_spill] sm:$0xff] }
 0x7f2   : > { %v9154_v14 = vpop.eup %9153  ;;  %9173 = vrcp.f32 %v4204_v23  ;;  %v4301_v3 = vmul.f32 %v9152_v51, %v12526_v24  ;;  %v12863_v32 = vmul.f32 %v4299_v52, %v9506_v63  ;;  %4369 = vst [vmem:[#allocation2 + $0x13] sm:$0xff] %v4333_v37  ;;  %4748 = vmatprep.mubr.f32.mxu1 %v4333_v37  ;;  %v4212_v7 = vadd.f32 1.0, %v12756_v8  ;;  %v14662_v51 = vld [vmem:[#allocation32_spill] sm:$0xff] }
 0x7f3   : > { %v9156_v0 = vpop.eup %9155  ;;  %9175 = vrcp.f32 %v4205_v46  ;;  %v4302_v54 = vmul.f32 %v9154_v14, %v12534_v26  ;;  %v12868_v5 = vmul.f32 %v4300_v25, %v9513_v4  ;;  %4370 = vst [vmem:[#allocation2 + $0x1b] sm:$0xff] %v12858_v62  ;;  %v4213_v46 = vadd.f32 1.0, %v12759_v30  ;;  %v14664_v14 = vld [vmem:[#allocation5_spill] sm:$0xff] }
 0x7f4   : > { %v9158_v47 = vpop.eup %9157  ;;  %9177 = vrcp.f32 %v4206_v61  ;;  %v4303_v63 = vmul.f32 %v9156_v0, %v12537_v17  ;;  %v12874_v24 = vmul.f32 %v4301_v3, %v9531_v12  ;;  %4371 = vst [vmem:[#allocation2 + $0x23] sm:$0xff] %v12863_v32  ;;  %v4214_v40 = vadd.f32 1.0, %v12762_v55  ;;  %v14659_v61 = vld [vmem:[#allocation4_spill] sm:$0xff] }
 0x7f5   : > { %v9160_v57 = vpop.eup %9159  ;;  %9179 = vrcp.f32 %v4207_v50  ;;  %v4304_v4 = vmul.f32 %v9158_v47, %v12547_v58  ;;  %v12880_v26 = vmul.f32 %v4302_v54, %v9529_v11  ;;  %4372 = vst [vmem:[#allocation2 + $0x2b] sm:$0xff] %v12868_v5  ;;  %v4215_v23 = vadd.f32 1.0, %v12765_v60  ;;  %v14666_v3 = vld [vmem:[#allocation40_spill] sm:$0xff]  ;;  %v14669_v47 = vld [vmem:[#allocation49_spill] sm:$0xff] }
 0x7f6   : > { %v9162_v18 = vpop.eup %9161  ;;  %9181 = vrcp.f32 %v4208_v15  ;;  %v4305_v12 = vmul.f32 %v9160_v57, %v12552_v43  ;;  %v12886_v17 = vmul.f32 %v4303_v63, %v9545_v20  ;;  %4373 = vst [vmem:[#allocation2 + $0x33] sm:$0xff] %v12874_v24  ;;  %v4218_v52 = vadd.f32 1.0, %v12774_v6  ;;  %v14665_v15 = vld [vmem:[#allocation39_spill] sm:$0xff]  ;;  %v14670_v63 = vld [vmem:[#allocation8_spill] sm:$0xff] }
 0x7f7   : > { %v9164_v36 = vpop.eup %9163  ;;  %9183 = vrcp.f32 %v4209_v34  ;;  %v4306_v11 = vmul.f32 %v9162_v18, %v12557_v33  ;;  %v12892_v58 = vmul.f32 %v4304_v4, %v9543_v19  ;;  %4374 = vst [vmem:[#allocation2 + $0x3b] sm:$0xff] %v12880_v26  ;;  %v4219_v50 = vadd.f32 1.0, %v14662_v51  ;;  %v14668_v34 = vld [vmem:[#allocation35_spill] sm:$0xff]  ;;  %v14672_v18 = vld [vmem:[#allocation36_spill] sm:$0xff] }
 0x7f8   : > { %v9166_v8 = vpop.eup %9165  ;;  %9185 = vrcp.f32 %v4210_v1  ;;  %v4307_v20 = vmul.f32 %v9164_v36, %v12562_v31  ;;  %v12898_v43 = vmul.f32 %v4305_v12, %v9559_v28  ;;  %4375 = vst [vmem:[#allocation2 + $0x43] sm:$0xff] %v12886_v17  ;;  %v4216_v31 = vadd.f32 1.0, %v12768_v35  ;;  %v14673_v12 = vld [vmem:[#allocation50_spill] sm:$0xff] }
 0x7f9   : > { %v9168_v30 = vpop.eup %9167  ;;  %9187 = vrcp.f32 %v4211_v56  ;;  %v4308_v19 = vmul.f32 %v9166_v8, %v12567_v39  ;;  %v12904_v33 = vmul.f32 %v4306_v11, %v9557_v27  ;;  %4376 = vst [vmem:[#allocation2 + $0x4b] sm:$0xff] %v12892_v58  ;;  %v4479_v55 = vld [vmem:[#allocation2 + $0x12] sm:$0xff]  ;;  %v4217_v27 = vadd.f32 1.0, %v12771_v38 }
 0x7fa   : > { %v9170_v49 = vpop.eup %9169  ;;  %9189 = vrcp.f32 %v4212_v7  ;;  %v4309_v28 = vmul.f32 %v9168_v30, %v12572_v44  ;;  %v12910_v41 = vmul.f32 %v4307_v20, %v14659_v61  ;;  %4377 = vst [vmem:[#allocation2 + $0x53] sm:$0xff] %v12898_v43  ;;  %v4599_v60 = vld [vmem:[#allocation2 + $0x14] sm:$0xff]  ;;  %4749 = vmatmul.mubr.f32.vlgmr.msra.gmra.mrb[182].mxu1 %v4479_v55  ;;  %v14667_v0 = vpack.c.bf16 %v14665_v15, %v14666_v3  ;;  %v14677_v55 = vld [vmem:[#allocation10_spill] sm:$0xff] }
 0x7fb   : > { %v9172_v39 = vpop.eup %9171  ;;  %9191 = vrcp.f32 %v4213_v46  ;;  %v4310_v59 = vmul.f32 %v9170_v49, %v12578_v22  ;;  %v12916_v13 = vmul.f32 %v4308_v19, %v14660_v16  ;;  %4378 = vst [vmem:[#allocation2 + $0x5b] sm:$0xff] %v12904_v33  ;;  %7972 = vmatprep.mubr.f32.mxu0 %v4599_v60  ;;  %v4600_v44 = vld [vmem:[#allocation2 + $0x1c] sm:$0xff]  ;;  %8751 = vmatpush3.bf16.msra.mxu1 %v12421_v53  ;;  %v14663_v53 = vld [vmem:[#allocation48_spill] sm:$0xff]  ;;  %v4220_v54 = vadd.f32 1.0, %v14668_v34  ;;  %v14674_v46 = vld [vmem:[#allocation7_spill] sm:$0xff] }
 0x7fc   : > { %v9174_v35 = vpop.eup %9173  ;;  %9193 = vrcp.f32 %v4214_v40  ;;  %v4311_v9 = vmul.f32 %v9172_v39, %v12584_v45  ;;  %v12923_v38 = vmul.f32 %v4309_v28, %v14661_v2  ;;  %4379 = vst [vmem:[#allocation2 + $0x63] sm:$0xff] %v12910_v41  ;;  %7973 = vmatmul.mubr.f32.vlgmr.msra.gmra.mrb[150].mxu0 %v4600_v44  ;;  %4753 = vmatprep.mubr.f32.mxu1 %v12858_v62  ;;  %v4601_v22 = vld [vmem:[#allocation2 + $0x24] sm:$0xff]  ;;  %v12933_v45 = vld [vmem:[#allocation2 + $0x1a] sm:$0xff]  ;;  %v14671_v56 = vmov 0.0|0.0  }
 0x7fd   : > { %v9176_v37 = vpop.eup %9175  ;;  %9195 = vrcp.f32 %v4215_v23  ;;  %v4312_v25 = vmul.f32 %v9174_v35, %v14663_v53  ;;  %v12930_v6 = vmul.f32 %v4310_v59, %v14664_v14  ;;  %4380 = vst [vmem:[#allocation2 + $0x6b] sm:$0xff] %v12916_v13  ;;  %7975 = vmatprep.mubr.f32.mxu0 %v4601_v22  ;;  %8702 = vmatpush1.bf16.msra.mxu0 %v14667_v0  ;;  %v4221_v7 = vadd.f32 1.0, %v14672_v18  ;;  %v4602_v8 = vld [vmem:[#allocation2 + $0x2c] sm:$0xff]  ;;  %v14675_v20 = vld [vmem:[#allocation45_spill] sm:$0xff]  ;;  %v14678_v60 = vld [vmem:[#allocation46_spill] sm:$0xff] }
 0x7fe   : > { %v9178_v62 = vpop.eup %9177  ;;  %9197 = vrcp.f32 %v4216_v31  ;;  %v4313_v1 = vmul.f32 %v9176_v37, %v14669_v47  ;;  %v12941_v57 = vmul.f32 %v4311_v9, %v14670_v63  ;;  %4381 = vst [vmem:[#allocation2 + $0x73] sm:$0xff] %v12923_v38  ;;  %4754 = vmatmul.mubr.f32.gmra.mrb[184].mxu1 %v12933_v45  ;;  %8703 = vmatprep.subr.bf16.mxu0 %v14671_v56  ;;  %v4222_v30 = vadd.f32 1.0, %v14675_v20  ;;  %v14676_v23 = vld [vmem:[#allocation51_spill] sm:$0xff]  ;;  %v4603_v31 = vld [vmem:[#allocation2 + $0x34] sm:$0xff]  ;;  %v14686_v15 = vld [vmem:[#allocation54_spill] sm:$0xff] }
 0x7ff   : > { %v9180_v4 = vpop.eup %9179  ;;  %9199 = vrcp.f32 %v4217_v27  ;;  %v4314_v36 = vmul.f32 %v9178_v62, %v14673_v12  ;;  %v12949_v11 = vmul.f32 %v4312_v25, %v14674_v46  ;;  %4382 = vst [vmem:[#allocation2 + $0x7b] sm:$0xff] %v12930_v6  ;;  %4758 = vmatprep.mubr.f32.mxu1 %v12863_v32  ;;  %8753 = vmatprep.subr.bf16.mxu1 %v12846_v21  ;;  %v4551_v32 = vld [vmem:[%s14246_s10 + $0x130] sm:$0xff]  ;;  %v4552_v28 = vld [vmem:[%s14246_s10 + $0x138] sm:$0xff]  ;;  %v4223_v39 = vadd.f32 1.0, %v14678_v60  ;;  %v14683_v2 = vld [vmem:[#allocation47_spill] sm:$0xff] }
 0x800   : > { %v9182_v40 = vpop.eup %9181  ;;  %9201 = vrcp.f32 %v4218_v52  ;;  %v4315_v19 = vmul.f32 %v9180_v4, %v14676_v23  ;;  %v12957_v49 = vmul.f32 %v4313_v1, %v14677_v55  ;;  %4383 = vst [vmem:[#allocation2 + $0x83] sm:$0xff] %v12941_v57  ;;  %7976 = vmatmul.mubr.f32.gmra.mrb[152].mxu0 %v4602_v8  ;;  %8755 = vmatpush3.bf16.msra.mxu1 %v12846_v21  ;;  %v14679_v27 = vld [vmem:[#allocation20_spill] sm:$0xff]  ;;  %v14680_v16 = vld [vmem:[#allocation9_spill] sm:$0xff]  ;;  %v12973_v21 = vld [vmem:[#allocation2 + $0x22] sm:$0xff]  ;;  %v4224_v22 = vadd.f32 1.0, %v14683_v2 }
 0x801   : > { %v9184_v61 = vpop.eup %9183  ;;  %9203 = vrcp.f32 %v4219_v50  ;;  %v4316_v59 = vmul.f32 %v9182_v40, %v14679_v27  ;;  %v12970_v44 = vmul.f32 %v4314_v36, %v14680_v16  ;;  %4384 = vst [vmem:[#allocation2 + $0x8b] sm:$0xff] %v12949_v11  ;;  %7978 = vmatprep.mubr.f32.mxu0 %v4603_v31  ;;  %v14681_v35 = vld [vmem:[#allocation44_spill] sm:$0xff]  ;;  %v4520_v25 = vld [vmem:[%s14246_s10 + $0x38] sm:$0xff]  ;;  %v14687_v0 = vld [vmem:[#allocation11_spill] sm:$0xff]  ;;  %8757 = vmatprep.subr.bf16.mxu1 %v12850_v42 }
 0x802   : > { %v14682_v52 = vpack.c.bf16 %v12807_v10, %v14681_v35  ;;  %v9186_v9 = vpop.eup %9185  ;;  %9205 = vrcp.f32 %v4220_v54  ;;  %v14684_v37 = vld [vmem:[#allocation52_spill] sm:$0xff]  ;;  %4385 = vst [vmem:[#allocation2 + $0x93] sm:$0xff] %v12957_v49  ;;  %4759 = vmatmul.mubr.f32.gmra.mrb[186].mxu1 %v12973_v21  ;;  %v4604_v34 = vld [vmem:[#allocation2 + $0x3c] sm:$0xff]  ;;  %v8760_v54 = vpack.c.bf16 %v4552_v28, %v4551_v32  ;;  %v4554_v12 = vld [vmem:[%s14246_s10 + $0x148] sm:$0xff] }
 0x803   : > { %v4317_v51 = vmul.f32 %v9184_v61, %v14684_v37  ;;  %v14685_v50 = vld [vmem:[#allocation12_spill] sm:$0xff]  ;;  %v9188_v14 = vpop.eup %9187  ;;  %9207 = vrcp.f32 %v4221_v7  ;;  %v4318_v3 = vmul.f32 %v9186_v9, %v14686_v15  ;;  %v12994_v62 = vmul.f32 %v4316_v59, %v14687_v0  ;;  %4386 = vst [vmem:[#allocation2 + $0x9b] sm:$0xff] %v12970_v44  ;;  %4763 = vmatprep.mubr.f32.mxu1 %v12868_v5  ;;  %v14688_v1 = vld [vmem:[#allocation41_spill] sm:$0xff]  ;;  %v14689_v4 = vld [vmem:[#allocation14_spill] sm:$0xff] }
 0x804   : > { %8705 = vmatpush1.bf16.msra.mxu0 %v14682_v52  ;;  %v12981_v53 = vmul.f32 %v4315_v19, %v14685_v50  ;;  %v4519_v10 = vld [vmem:[%s14246_s10 + $0x30] sm:$0xff]  ;;  %v9190_v47 = vpop.eup %9189  ;;  %9209 = vrcp.f32 %v4222_v30  ;;  %v4319_v63 = vmul.f32 %v9188_v14, %v14688_v1  ;;  %v4605_v7 = vld [vmem:[#allocation2 + $0x44] sm:$0xff]  ;;  %8759 = vmatpush3.bf16.msra.mxu1 %v12850_v42  ;;  %v14691_v40 = vld [vmem:[#allocation13_spill] sm:$0xff]  ;;  %v14692_v42 = vpack.c.bf16 %v12817_v48, %v12812_v29 }
 0x805   : > { %8706 = vmatprep.subr.bf16.mxu0 %v14671_v56  ;;  %v13001_v18 = vmul.f32 %v4317_v51, %v14689_v4  ;;  %7979 = vmatmul.mubr.f32.gmra.mrb[154].mxu0 %v4604_v34  ;;  %v4553_v5 = vld [vmem:[%s14246_s10 + $0x140] sm:$0xff]  ;;  %v9192_v36 = vpop.eup %9191  ;;  %9211 = vrcp.f32 %v4223_v39  ;;  %v14690_v46 = vld [vmem:[#allocation23_spill] sm:$0xff]  ;;  %v13013_v20 = vmul.f32 %v4318_v3, %v14691_v40  ;;  %4388 = vst [vmem:[#allocation2 + $0xab] sm:$0xff] %v12994_v62  ;;  %v14694_v32 = vld [vmem:[#allocation16_spill] sm:$0xff] }
 0x806   : > { %4387 = vst [vmem:[#allocation2 + $0xa3] sm:$0xff] %v12981_v53  ;;  %v4320_v8 = vmul.f32 %v9190_v47, %v14690_v46  ;;  %7981 = vmatprep.mubr.f32.mxu0 %v4605_v7  ;;  %v13016_v30 = vld [vmem:[#allocation2 + $0x2a] sm:$0xff]  ;;  %v8710_v23 = vpack.c.bf16 %v4520_v25, %v4519_v10  ;;  %v9194_v19 = vpop.eup %9193  ;;  %9213 = vrcp.f32 %v4224_v22  ;;  %v13023_v28 = vmul.f32 %v4319_v63, %v14694_v32  ;;  %v4521_v61 = vld [vmem:[%s14246_s10 + $0x40] sm:$0xff]  ;;  %v4607_v51 = vld [vmem:[#allocation2 + $0x54] sm:$0xff] }
 0x807   : > { %v14693_v55 = vld [vmem:[#allocation43_spill] sm:$0xff]  ;;  %4389 = vst [vmem:[#allocation2 + $0xb3] sm:$0xff] %v13001_v18  ;;  %4764 = vmatmul.mubr.f32.gmra.mrb[188].mxu1 %v13016_v30  ;;  %v9196_v48 = vpop.eup %9195  ;;  %v14695_v60 = vld [vmem:[#allocation56_spill] sm:$0xff]  ;;  %4390 = vst [vmem:[#allocation2 + $0xbb] sm:$0xff] %v13013_v20  ;;  %8761 = vmatprep.subr.bf16.mxu1 %v8760_v54  ;;  %v8764_v35 = vpack.c.bf16 %v4554_v12, %v4553_v5 }
 0x808   : > { %8708 = vmatpush1.bf16.msra.mxu0 %v14692_v42  ;;  %v4321_v31 = vmul.f32 %v9192_v36, %v14693_v55  ;;  %v4522_v29 = vld [vmem:[%s14246_s10 + $0x48] sm:$0xff]  ;;  %v4322_v39 = vmul.f32 %v9194_v19, %v14695_v60  ;;  %4768 = vmatprep.mubr.f32.mxu1 %v12874_v24  ;;  %v9198_v52 = vpop.eup %9197  ;;  %v14697_v9 = vld [vmem:[#allocation42_spill] sm:$0xff]  ;;  %4391 = vst [vmem:[#allocation2 + $0xc3] sm:$0xff] %v13023_v28  ;;  %v4555_v50 = vld [vmem:[%s14246_s10 + $0x150] sm:$0xff] }
 0x809   : > { %8709 = vmatprep.subr.bf16.mxu0 %v14671_v56  ;;  %v14696_v27 = vld [vmem:[#allocation15_spill] sm:$0xff]  ;;  %v4323_v2 = vmul.f32 %v9196_v48, %v14697_v9  ;;  %v14698_v22 = vld [vmem:[#allocation18_spill] sm:$0xff]  ;;  %8763 = vmatpush3.bf16.msra.mxu1 %v8760_v54  ;;  %v4556_v24 = vld [vmem:[%s14246_s10 + $0x158] sm:$0xff]  ;;  %v9200_v10 = vpop.eup %9199  ;;  %v8713_v34 = vpack.c.bf16 %v4522_v29, %v4521_v61 }
 0x80a   : > { %v13036_v59 = vmul.f32 %v4320_v8, %v14696_v27  ;;  %v4606_v16 = vld [vmem:[#allocation2 + $0x4c] sm:$0xff]  ;;  %v13042_v37 = vmul.f32 %v4321_v31, %v14698_v22  ;;  %v14700_v15 = vld [vmem:[#allocation17_spill] sm:$0xff]  ;;  %v9202_v54 = vpop.eup %9201  ;;  %v14702_v63 = vld [vmem:[#allocation22_spill] sm:$0xff]  ;;  %8765 = vmatprep.subr.bf16.mxu1 %v8764_v35 }
 0x80b   : > { %7982 = vmatmul.mubr.f32.gmra.mrb[156].mxu0 %v4606_v16  ;;  %v14699_v25 = vld [vmem:[#allocation24_spill] sm:$0xff]  ;;  %v13053_v3 = vmul.f32 %v4322_v39, %v14700_v15  ;;  %v13060_v4 = vmul.f32 %v4323_v2, %v14702_v63  ;;  %v4524_v5 = vld [vmem:[%s14246_s10 + $0x58] sm:$0xff]  ;;  %v9204_v12 = vpop.eup %9203  ;;  %v14705_v55 = vld [vmem:[#allocation55_spill] sm:$0xff] }
 0x80c   : > { %v4324_v14 = vmul.f32 %v9198_v52, %v14699_v25  ;;  %4392 = vst [vmem:[#allocation2 + $0xcb] sm:$0xff] %v13036_v59  ;;  %7984 = vmatprep.mubr.f32.mxu0 %v4607_v51  ;;  %v13056_v0 = vld [vmem:[#allocation2 + $0x32] sm:$0xff]  ;;  %8711 = vmatpush1.bf16.msra.mxu0 %v8710_v23  ;;  %4393 = vst [vmem:[#allocation2 + $0xd3] sm:$0xff] %v13042_v37  ;;  %v4608_v42 = vld [vmem:[#allocation2 + $0x5c] sm:$0xff]  ;;  %v8768_v23 = vpack.c.bf16 %v4556_v24, %v4555_v50  ;;  %v9206_v19 = vpop.eup %9205 }
 0x80d   : > { %v14701_v47 = vld [vmem:[#allocation28_spill] sm:$0xff]  ;;  %4769 = vmatmul.mubr.f32.gmra.mrb[190].mxu1 %v13056_v0  ;;  %8712 = vmatprep.subr.bf16.mxu0 %v14671_v56  ;;  %v14703_v36 = vld [vmem:[#allocation57_spill] sm:$0xff]  ;;  %4394 = vst [vmem:[#allocation2 + $0xdb] sm:$0xff] %v13053_v3  ;;  %v4327_v31 = vmul.f32 %v9204_v12, %v14705_v55  ;;  %v14706_v32 = vld [vmem:[#allocation26_spill] sm:$0xff]  ;;  %v9208_v60 = vpop.eup %9207 }
 0x80e   : > { %v4325_v1 = vmul.f32 %v9200_v10, %v14701_v47  ;;  %v4523_v7 = vld [vmem:[%s14246_s10 + $0x50] sm:$0xff]  ;;  %v4326_v46 = vmul.f32 %v9202_v54, %v14703_v36  ;;  %v14704_v8 = vld [vmem:[#allocation21_spill] sm:$0xff]  ;;  %4773 = vmatprep.mubr.f32.mxu1 %v12880_v26  ;;  %4395 = vst [vmem:[#allocation2 + $0xe3] sm:$0xff] %v13060_v4  ;;  %v4609_v29 = vld [vmem:[#allocation2 + $0x64] sm:$0xff]  ;;  %8767 = vmatpush3.bf16.msra.mxu1 %v8764_v35  ;;  %v9210_v2 = vpop.eup %9209 }
 0x80f   : > { %v13073_v40 = vmul.f32 %v4324_v14, %v14704_v8  ;;  %7985 = vmatmul.mubr.f32.gmra.mrb[158].mxu0 %v4608_v42  ;;  %v4557_v48 = vld [vmem:[%s14246_s10 + $0x160] sm:$0xff]  ;;  %v4558_v26 = vld [vmem:[%s14246_s10 + $0x168] sm:$0xff]  ;;  %v14708_v16 = vld [vmem:[#allocation25_spill] sm:$0xff]  ;;  %v8716_v35 = vpack.c.bf16 %v4524_v5, %v4523_v7  ;;  %v9212_v14 = vpop.eup %9211  ;;  %8769 = vmatprep.subr.bf16.mxu1 %v8768_v23 }
 0x810   : > { %v13079_v61 = vmul.f32 %v4325_v1, %v14706_v32  ;;  %v14707_v39 = vld [vmem:[#allocation31_spill] sm:$0xff]  ;;  %v13090_v52 = vmul.f32 %v4326_v46, %v14708_v16  ;;  %7987 = vmatprep.mubr.f32.mxu0 %v4609_v29  ;;  %v13093_v9 = vld [vmem:[#allocation2 + $0x3a] sm:$0xff]  ;;  %8714 = vmatpush1.bf16.msra.mxu0 %v8713_v34  ;;  %v8772_v63 = vpack.c.bf16 %v4558_v26, %v4557_v48  ;;  %v9214_v7 = vpop.eup %9213  ;;  %v4559_v29 = vld [vmem:[%s14246_s10 + $0x170] sm:$0xff] }
 0x811   : > { %v4328_v27 = vmul.f32 %v9206_v19, %v14707_v39  ;;  %4396 = vst [vmem:[#allocation2 + $0xeb] sm:$0xff] %v13073_v40  ;;  %v14709_v22 = vld [vmem:[#allocation19_spill] sm:$0xff]  ;;  %v14710_v50 = vld [vmem:[#allocation30_spill] sm:$0xff]  ;;  %4774 = vmatmul.mubr.f32.gmra.mrb[192].mxu1 %v13093_v9  ;;  %8715 = vmatprep.subr.bf16.mxu0 %v14671_v56  ;;  %v14711_v15 = vld [vmem:[#allocation53_spill] sm:$0xff] }
 0x812   : > { %v4329_v51 = vmul.f32 %v9208_v60, %v14709_v22  ;;  %v13097_v24 = vmul.f32 %v4327_v31, %v14710_v50  ;;  %4397 = vst [vmem:[#allocation2 + $0xf3] sm:$0xff] %v13079_v61  ;;  %v4525_v10 = vld [vmem:[%s14246_s10 + $0x60] sm:$0xff]  ;;  %v4526_v25 = vld [vmem:[%s14246_s10 + $0x68] sm:$0xff]  ;;  %v4330_v34 = vmul.f32 %v9210_v2, %v14711_v15  ;;  %v14712_v54 = vld [vmem:[#allocation29_spill] sm:$0xff]  ;;  %4778 = vmatprep.mubr.f32.mxu1 %v12886_v17 }
 0x813   : > { %v13110_v47 = vmul.f32 %v4328_v27, %v14712_v54  ;;  %4398 = vst [vmem:[#allocation2 + $0xfb] sm:$0xff] %v13090_v52  ;;  %v4610_v1 = vld [vmem:[#allocation2 + $0x6c] sm:$0xff]  ;;  %v14714_v36 = vld [vmem:[#allocation34_spill] sm:$0xff]  ;;  %v4611_v8 = vld [vmem:[#allocation2 + $0x74] sm:$0xff]  ;;  %8771 = vmatpush3.bf16.msra.mxu1 %v8768_v23  ;;  %v8719_v32 = vpack.c.bf16 %v4526_v25, %v4525_v10 }
 0x814   : > { %v14713_v5 = vld [vmem:[#allocation27_spill] sm:$0xff]  ;;  %v13116_v46 = vmul.f32 %v4329_v51, %v14714_v36  ;;  %4399 = vst [vmem:[#allocation2 + $0x103] sm:$0xff] %v13097_v24  ;;  %7988 = vmatmul.mubr.f32.gmra.mrb[160].mxu0 %v4610_v1  ;;  %v14715_v42 = vld [vmem:[#allocation58_spill] sm:$0xff]  ;;  %v14716_v55 = vld [vmem:[#allocation33_spill] sm:$0xff]  ;;  %8773 = vmatprep.subr.bf16.mxu1 %v8772_v63 }
 0x815   : > { %v4331_v12 = vmul.f32 %v9212_v14, %v14713_v5  ;;  %v4332_v19 = vmul.f32 %v9214_v7, %v14715_v42  ;;  %v13121_v31 = vmul.f32 %v4330_v34, %v14716_v55  ;;  %4400 = vst [vmem:[#allocation2 + $0x10b] sm:$0xff] %v13110_v47  ;;  %7990 = vmatprep.mubr.f32.mxu0 %v4611_v8  ;;  %v13124_v17 = vld [vmem:[#allocation2 + $0x42] sm:$0xff]  ;;  %v14717_v48 = vld [vmem:[#allocation37_spill] sm:$0xff]  ;;  %v4527_v23 = vld [vmem:[%s14246_s10 + $0x70] sm:$0xff] }
 0x816   : > { %8717 = vmatpush1.bf16.msra.mxu0 %v8716_v35  ;;  %4401 = vst [vmem:[#allocation2 + $0x113] sm:$0xff] %v13116_v46  ;;  %4779 = vmatmul.mubr.f32.gmra.mrb[194].mxu1 %v13124_v17  ;;  %v4528_v60 = vld [vmem:[%s14246_s10 + $0x78] sm:$0xff]  ;;  %v14718_v27 = vld [vmem:[#allocation38_spill] sm:$0xff]  ;;  %v13151_v51 = vld [vmem:[#allocation2 + $0x4a] sm:$0xff] }
 0x817   : > { %v13130_v26 = vmul.f32 %v4331_v12, %v14717_v48  ;;  %8718 = vmatprep.subr.bf16.mxu0 %v14671_v56  ;;  %v4560_v39 = vld [vmem:[%s14246_s10 + $0x178] sm:$0xff]  ;;  %v13145_v16 = vmul.f32 %v4332_v19, %v14718_v27  ;;  %4402 = vst [vmem:[#allocation2 + $0x11b] sm:$0xff] %v13121_v31  ;;  %4783 = vmatprep.mubr.f32.mxu1 %v12892_v58  ;;  %v4613_v22 = vld [vmem:[#allocation2 + $0x84] sm:$0xff]  ;;  %v4614_v25 = vld [vmem:[#allocation2 + $0x8c] sm:$0xff] }
 0x818   : > { %v4612_v35 = vld [vmem:[#allocation2 + $0x7c] sm:$0xff]  ;;  %v8776_v2 = vpack.c.bf16 %v4560_v39, %v4559_v29  ;;  %8775 = vmatpush3.bf16.msra.mxu1 %v8772_v63  ;;  %v8722_v50 = vpack.c.bf16 %v4528_v60, %v4527_v23  ;;  %v4530_v10 = vld [vmem:[%s14246_s10 + $0x88] sm:$0xff]  ;;  %v4615_v14 = vld [vmem:[#allocation2 + $0x94] sm:$0xff] }
 0x819   : > { %4403 = vst [vmem:[#allocation2 + $0x123] sm:$0xff] %v13130_v26  ;;  %7991 = vmatmul.mubr.f32.gmra.mrb[162].mxu0 %v4612_v35  ;;  %4404 = vst [vmem:[#allocation2 + $0x12b] sm:$0xff] %v13145_v16  ;;  %v4529_v58 = vld [vmem:[%s14246_s10 + $0x80] sm:$0xff]  ;;  %v13162_v15 = vld [vmem:[#allocation2 + $0x52] sm:$0xff] }
 0x81a   : > { %7993 = vmatprep.mubr.f32.mxu0 %v4613_v22  ;;  %8720 = vmatpush1.bf16.msra.mxu0 %v8719_v32  ;;  %v8725_v34 = vpack.c.bf16 %v4530_v10, %v4529_v58  ;;  %v4531_v54 = vld [vmem:[%s14246_s10 + $0x90] sm:$0xff]  ;;  %v4616_v1 = vld [vmem:[#allocation2 + $0x9c] sm:$0xff]  ;;  %v4617_v63 = vld [vmem:[#allocation2 + $0xa4] sm:$0xff] }
 0x81b   : > { %4784 = vmatmul.mubr.f32.gmra.mrb[196].mxu1 %v13151_v51  ;;  %8721 = vmatprep.subr.bf16.mxu0 %v14671_v56  ;;  %v13174_v7 = vld [vmem:[#allocation2 + $0x5a] sm:$0xff]  ;;  %v4618_v36 = vld [vmem:[#allocation2 + $0xac] sm:$0xff]  ;;  %v13185_v42 = vld [vmem:[#allocation2 + $0x62] sm:$0xff] }
 0x81c   : > { %4788 = vmatprep.mubr.f32.mxu1 %v12898_v43  ;;  %8777 = vmatprep.subr.bf16.mxu1 %v8776_v2  ;;  %v4532_v43 = vld [vmem:[%s14246_s10 + $0x98] sm:$0xff]  ;;  %v4533_v12 = vld [vmem:[%s14246_s10 + $0xa0] sm:$0xff]  ;;  %v4535_v55 = vld [vmem:[%s14246_s10 + $0xb0] sm:$0xff] }
 0x81d   : > { %7994 = vmatmul.mubr.f32.gmra.mrb[164].mxu0 %v4614_v25  ;;  %8779 = vmatpush3.bf16.msra.mxu1 %v8776_v2  ;;  %v8728_v5 = vpack.c.bf16 %v4532_v43, %v4531_v54  ;;  %v4619_v8 = vld [vmem:[#allocation2 + $0xb4] sm:$0xff]  ;;  %v4621_v29 = vld [vmem:[#allocation2 + $0xc4] sm:$0xff] }
 0x81e   : > { %7996 = vmatprep.mubr.f32.mxu0 %v4615_v14  ;;  %8723 = vmatpush1.bf16.msra.mxu0 %v8722_v50  ;;  %v4536_v32 = vld [vmem:[%s14246_s10 + $0xb8] sm:$0xff]  ;;  %v13196_v48 = vld [vmem:[#allocation2 + $0x6a] sm:$0xff]  ;;  %v4537_v60 = vld [vmem:[%s14246_s10 + $0xc0] sm:$0xff] }
 0x81f   : > { %4789 = vmatmul.mubr.f32.gmra.mrb[198].mxu1 %v13162_v15  ;;  %8724 = vmatprep.subr.bf16.mxu0 %v14671_v56  ;;  %v8734_v23 = vpack.c.bf16 %v4536_v32, %v4535_v55  ;;  %v4538_v39 = vld [vmem:[%s14246_s10 + $0xc8] sm:$0xff]  ;;  %v4623_v27 = vld [vmem:[#allocation2 + $0xd4] sm:$0xff]  ;;  %v4541_v14 = vld [vmem:[%s14246_s10 + $0xe0] sm:$0xff] }
 0x820   : > { %4793 = vmatprep.mubr.f32.mxu1 %v12904_v33  ;;  %8780 = vmatprep.subr.bf16.mxu1 %v14671_v56  ;;  %v4534_v33 = vld [vmem:[%s14246_s10 + $0xa8] sm:$0xff]  ;;  %v13207_v35 = vld [vmem:[#allocation2 + $0x72] sm:$0xff]  ;;  %v8737_v2 = vpack.c.bf16 %v4538_v39, %v4537_v60  ;;  %v13218_v10 = vld [vmem:[#allocation2 + $0x7a] sm:$0xff] }
 0x821   : > { %7997 = vmatmul.mubr.f32.gmra.mrb[166].mxu0 %v4616_v1  ;;  %v8731_v19 = vpack.c.bf16 %v4534_v33, %v4533_v12  ;;  %v4539_v22 = vld [vmem:[%s14246_s10 + $0xd0] sm:$0xff]  ;;  %v4540_v50 = vld [vmem:[%s14246_s10 + $0xd8] sm:$0xff]  ;;  %v4625_v58 = vld [vmem:[#allocation2 + $0xe4] sm:$0xff] }
 0x822   : > { %7999 = vmatprep.mubr.f32.mxu0 %v4617_v63  ;;  %8726 = vmatpush1.bf16.msra.mxu0 %v8725_v34  ;;  %v8740_v25 = vpack.c.bf16 %v4540_v50, %v4539_v22  ;;  %v4542_v34 = vld [vmem:[%s14246_s10 + $0xe8] sm:$0xff]  ;;  %v4627_v54 = vld [vmem:[#allocation2 + $0xf4] sm:$0xff]  ;;  %v7090_v12 = vld [vmem:[%s14246_s10 + $0x400] sm:$0xff] }
 0x823   : > { %4794 = vmatmul.mubr.f32.gmra.mrb[200].mxu1 %v13174_v7  ;;  %8727 = vmatprep.subr.bf16.mxu0 %v14671_v56  ;;  %v13229_v43 = vld [vmem:[#allocation2 + $0x82] sm:$0xff]  ;;  %v8743_v1 = vpack.c.bf16 %v4542_v34, %v4541_v14  ;;  %v4543_v63 = vld [vmem:[%s14246_s10 + $0xf0] sm:$0xff]  ;;  %v13258_v60 = vld [vmem:[#allocation2 + $0x9a] sm:$0xff] }
 0x824   : > { %4798 = vmatprep.mubr.f32.mxu1 %v12910_v41  ;;  %v4620_v41 = vld [vmem:[#allocation2 + $0xbc] sm:$0xff]  ;;  %v7091_v33 = vld [vmem:[%s14246_s10 + $0x408] sm:$0xff]  ;;  %v4631_v32 = vld [vmem:[#allocation2 + $0x114] sm:$0xff] }
 0x825   : > { %8000 = vmatmul.mubr.f32.gmra.mrb[168].mxu0 %v4618_v36  ;;  %v4629_v36 = vld [vmem:[#allocation2 + $0x104] sm:$0xff]  ;;  %v4630_v55 = vld [vmem:[#allocation2 + $0x10c] sm:$0xff]  ;;  %v7097_v14 = vld [vmem:[%s14246_s10 + $0x438] sm:$0xff] }
 0x826   : > { %8002 = vmatprep.mubr.f32.mxu0 %v4619_v8  ;;  %8729 = vmatpush1.bf16.msra.mxu0 %v8728_v5  ;;  %v4544_v5 = vld [vmem:[%s14246_s10 + $0xf8] sm:$0xff]  ;;  %v13246_v8 = vld [vmem:[#allocation2 + $0x8a] sm:$0xff] }
 0x827   : > { %4799 = vmatmul.mubr.f32.gmra.mrb[202].mxu1 %v13185_v42  ;;  %8730 = vmatprep.subr.bf16.mxu0 %v14671_v56  ;;  %v4634_v39 = vld [vmem:[#allocation2 + $0x12c] sm:$0xff] }
 0x828   : > { %4803 = vmatprep.mubr.f32.mxu1 %v12916_v13  ;;  %v4622_v13 = vld [vmem:[#allocation2 + $0xcc] sm:$0xff] }
 0x829   : > { %8003 = vmatmul.mubr.f32.gmra.mrb[170].mxu0 %v4620_v41  ;;  %v13253_v41 = vld [vmem:[#allocation2 + $0x92] sm:$0xff]  ;;  %v7095_v50 = vld [vmem:[%s14246_s10 + $0x428] sm:$0xff] }
 0x82a   : > { %8005 = vmatprep.mubr.f32.mxu0 %v4621_v29  ;;  %8732 = vmatpush1.bf16.msra.mxu0 %v8731_v19  ;;  %v8746_v19 = vpack.c.bf16 %v4544_v5, %v4543_v63  ;;  %v4632_v29 = vld [vmem:[#allocation2 + $0x11c] sm:$0xff]  ;;  %v4443_v34 = vld [vmem:[#allocation2 + $0x11] sm:$0xff]  ;;  %v7099_v63 = vld [vmem:[%s14246_s10 + $0x448] sm:$0xff] }
 0x82b   : > { %4804 = vmatmul.mubr.f32.gmra.mrb[204].mxu1 %v13196_v48  ;;  %8733 = vmatprep.subr.bf16.mxu0 %v14671_v56  ;;  %v4444_v5 = vld [vmem:[#allocation2 + $0x19] sm:$0xff] }
 0x82c   : > { %4808 = vmatprep.mubr.f32.mxu1 %v12923_v38  ;;  %v4624_v38 = vld [vmem:[#allocation2 + $0xdc] sm:$0xff] }
 0x82d   : > { %8006 = vmatmul.mubr.f32.gmra.mrb[172].mxu0 %v4622_v13  ;;  %v7092_v13 = vld [vmem:[%s14246_s10 + $0x410] sm:$0xff] }
 0x82e   : > { %8008 = vmatprep.mubr.f32.mxu0 %v4623_v27  ;;  %8735 = vmatpush1.bf16.msra.mxu0 %v8734_v23  ;;  %v4633_v23 = vld [vmem:[#allocation2 + $0x124] sm:$0xff]  ;;  %v7093_v27 = vld [vmem:[%s14246_s10 + $0x418] sm:$0xff] }
 0x82f   : > { %4809 = vmatmul.mubr.f32.gmra.mrb[206].mxu1 %v13207_v35  ;;  %8736 = vmatprep.subr.bf16.mxu0 %v14671_v56  ;;  %v13271_v22 = vpack.c.bf16 %v7093_v27, %v7092_v13  ;;  %v4410_v13 = vld [vmem:[#allocation2 + $0x28] sm:$0xff]  ;;  %v7104_v27 = vld [vmem:[%s14246_s10 + $0x470] sm:$0xff] }
 0x830   : > { %4813 = vmatprep.mubr.f32.mxu1 %v12930_v6  ;;  %v4626_v6 = vld [vmem:[#allocation2 + $0xec] sm:$0xff] }
 0x831   : > { %8009 = vmatmul.mubr.f32.gmra.mrb[174].mxu0 %v4624_v38  ;;  %v9220_v38 = vld [vmem:[#allocation2] sm:$0xff] }
 0x832   : > { %8011 = vmatprep.mubr.f32.mxu0 %v4625_v58  ;;  %8738 = vmatpush1.bf16.msra.mxu0 %v8737_v2  ;;  %v4442_v2 = vld [vmem:[#allocation2 + $0x9] sm:$0xff] }
 0x833   : > { %4814 = vmatmul.mubr.f32.gmra.mrb[208].mxu1 %v13218_v10  ;;  %8739 = vmatprep.subr.bf16.mxu0 %v14671_v56  ;;  %v13280_v58 = vld [vmem:[#allocation2 + $0xaa] sm:$0xff] }
 0x834   : > { %4818 = vmatprep.mubr.f32.mxu1 %v12941_v57  ;;  %v4628_v57 = vld [vmem:[#allocation2 + $0xfc] sm:$0xff] }
 0x835   : > { %8012 = vmatmul.mubr.f32.gmra.mrb[176].mxu0 %v4626_v6  ;;  %v13294_v6 = vld [vmem:[#allocation2 + $0xb2] sm:$0xff] }
 0x836   : > { %8014 = vmatprep.mubr.f32.mxu0 %v4627_v54  ;;  %8741 = vmatpush1.bf16.msra.mxu0 %v8740_v25  ;;  %v7096_v25 = vld [vmem:[%s14246_s10 + $0x430] sm:$0xff] }
 0x837   : > { %4819 = vmatmul.mubr.f32.gmra.mrb[210].mxu1 %v13229_v43  ;;  %8742 = vmatprep.subr.bf16.mxu0 %v14671_v56  ;;  %v4407_v54 = vld [vmem:[#allocation2 + $0x10] sm:$0xff] }
 0x838   : > { %4823 = vmatprep.mubr.f32.mxu1 %v12949_v11  ;;  %v13250_v11 = vpack.c.bf16 %v7091_v33, %v7090_v12  ;;  %v4408_v12 = vld [vmem:[#allocation2 + $0x18] sm:$0xff]  ;;  %v7100_v33 = vld [vmem:[%s14246_s10 + $0x450] sm:$0xff] }
 0x839   : > { %8015 = vmatmul.mubr.f32.gmra.mrb[178].mxu0 %v4628_v57  ;;  %v13308_v57 = vld [vmem:[#allocation2 + $0xba] sm:$0xff] }
 0x83a   : > { %8017 = vmatprep.mubr.f32.mxu0 %v4629_v36  ;;  %8744 = vmatpush1.bf16.msra.mxu0 %v8743_v1  ;;  %v7098_v1 = vld [vmem:[%s14246_s10 + $0x440] sm:$0xff]  ;;  %v7101_v36 = vld [vmem:[%s14246_s10 + $0x458] sm:$0xff] }
 0x83b   : > { %4824 = vmatmul.mubr.f32.gmra.mrb[212].mxu1 %v13246_v8  ;;  %8745 = vmatprep.subr.bf16.mxu0 %v14671_v56 }
 0x83c   : > { %4828 = vmatprep.mubr.f32.mxu1 %v12957_v49  ;;  %v4441_v49 = vld [vmem:[#allocation2 + $0x1] sm:$0xff] }
 0x83d   : > { %8018 = vmatmul.mubr.f32.gmra.mrb[180].mxu0 %v4630_v55  ;;  %v13322_v55 = vld [vmem:[#allocation2 + $0xc2] sm:$0xff] }
 0x83e   : > { %8020 = vmatprep.mubr.f32.mxu0 %v4631_v32  ;;  %8747 = vmatpush1.bf16.msra.mxu0 %v8746_v19  ;;  %v4445_v19 = vld [vmem:[#allocation2 + $0x21] sm:$0xff] }
 0x83f   : > { %4829 = vmatmul.mubr.f32.gmra.mrb[214].mxu1 %v13253_v41  ;;  %8829 = vmatprep.subr.bf16.mxu0 %v13250_v11  ;;  %v4409_v32 = vld [vmem:[#allocation2 + $0x20] sm:$0xff] }
 0x840   : > { %4833 = vmatprep.mubr.f32.mxu1 %v12970_v44  ;;  %v13268_v44 = vld [vmem:[#allocation2 + $0xa2] sm:$0xff] }
 0x841   : > { %8021 = vmatmul.mubr.f32.gmra.mrb[182].mxu0 %v4632_v29  ;;  %v7102_v29 = vld [vmem:[%s14246_s10 + $0x460] sm:$0xff] }
 0x842   : > { %8023 = vmatprep.mubr.f32.mxu0 %v4633_v23  ;;  %v7103_v23 = vld [vmem:[%s14246_s10 + $0x468] sm:$0xff] }
 0x843   : > { %4834 = vmatmul.mubr.f32.gmra.mrb[216].mxu1 %v13258_v60 }
 0x844   : > { %4838 = vmatprep.mubr.f32.mxu1 %v12981_v53  ;;  %v7094_v53 = vld [vmem:[%s14246_s10 + $0x420] sm:$0xff] }
 0x845   : > { %8024 = vmatmul.mubr.f32.gmra.mrb[184].mxu0 %v4634_v39  ;;  %v13336_v39 = vld [vmem:[#allocation2 + $0xca] sm:$0xff] }
 0x846   : > { %5238 = vmatprep.mubr.f32.mxu0 %v4441_v49  ;;  %v4446_v49 = vld [vmem:[#allocation2 + $0x29] sm:$0xff] }
 0x847   : > { %4839 = vmatmul.mubr.f32.gmra.mrb[218].mxu1 %v13268_v44 }
 0x848   : > { %4843 = vmatprep.mubr.f32.mxu1 %v12994_v62  ;;  %v13285_v62 = vpack.c.bf16 %v7095_v50, %v7094_v53  ;;  %v4447_v53 = vld [vmem:[#allocation2 + $0x31] sm:$0xff] }
 0x849   : > { %5239 = vmatmul.mubr.f32.vlgmr.msra.gmra.mrb[186].mxu0 %v9220_v38  ;;  %v13350_v50 = vld [vmem:[#allocation2 + $0xd2] sm:$0xff] }
 0x84a   : > { %5243 = vmatprep.mubr.f32.mxu0 %v4442_v2  ;;  %8831 = vmatpush3.bf16.msra.mxu0 %v13250_v11  ;;  %v7105_v2 = vld [vmem:[%s14246_s10 + $0x478] sm:$0xff] }
 0x84b   : > { %4844 = vmatmul.mubr.f32.gmra.mrb[220].mxu1 %v13280_v58  ;;  %8833 = vmatprep.subr.bf16.mxu0 %v13271_v22 }
 0x84c   : > { %4848 = vmatprep.mubr.f32.mxu1 %v13001_v18  ;;  %v13299_v18 = vpack.c.bf16 %v7097_v14, %v7096_v25  ;;  %v4448_v25 = vld [vmem:[#allocation2 + $0x39] sm:$0xff] }
 0x84d   : > { %5244 = vmatmul.mubr.f32.gmra.mrb[188].mxu0 %v9220_v38  ;;  %v4411_v38 = vld [vmem:[#allocation2 + $0x30] sm:$0xff]  ;;  %v13358_v14 = vld [vmem:[#allocation2 + $0xda] sm:$0xff] }
 0x84e   : > { %5248 = vmatprep.mubr.f32.mxu0 %v4443_v34  ;;  %8835 = vmatpush3.bf16.msra.mxu0 %v13271_v22  ;;  %v4412_v34 = vld [vmem:[#allocation2 + $0x38] sm:$0xff] }
 0x84f   : > { %4849 = vmatmul.mubr.f32.gmra.mrb[222].mxu1 %v13294_v6  ;;  %8837 = vmatprep.subr.bf16.mxu0 %v13285_v62 }
 0x850   : > { %4853 = vmatprep.mubr.f32.mxu1 %v13013_v20  ;;  %v13313_v20 = vpack.c.bf16 %v7099_v63, %v7098_v1  ;;  %v13364_v1 = vld [vmem:[#allocation2 + $0xe2] sm:$0xff] }
 0x851   : > { %5249 = vmatmul.mubr.f32.gmra.mrb[190].mxu0 %v4407_v54  ;;  %v4449_v54 = vld [vmem:[#allocation2 + $0x41] sm:$0xff]  ;;  %v4450_v63 = vld [vmem:[#allocation2 + $0x49] sm:$0xff] }
 0x852   : > { %5253 = vmatprep.mubr.f32.mxu0 %v4444_v5  ;;  %8839 = vmatpush3.bf16.msra.mxu0 %v13285_v62  ;;  %v13369_v5 = vld [vmem:[#allocation2 + $0xea] sm:$0xff] }
 0x853   : > { %4854 = vmatmul.mubr.f32.gmra.mrb[224].mxu1 %v13308_v57  ;;  %8841 = vmatprep.subr.bf16.mxu0 %v13299_v18 }
 0x854   : > { %4858 = vmatprep.mubr.f32.mxu1 %v13023_v28  ;;  %v13327_v28 = vpack.c.bf16 %v7101_v36, %v7100_v33  ;;  %v13373_v33 = vld [vmem:[#allocation2 + $0xf2] sm:$0xff] }
 0x855   : > { %5254 = vmatmul.mubr.f32.gmra.mrb[192].mxu0 %v4408_v12  ;;  %v4451_v12 = vld [vmem:[#allocation2 + $0x51] sm:$0xff] }
 0x856   : > { %5258 = vmatprep.mubr.f32.mxu0 %v4445_v19  ;;  %8843 = vmatpush3.bf16.msra.mxu0 %v13299_v18  ;;  %v4415_v36 = vld [vmem:[#allocation2 + $0x50] sm:$0xff]  ;;  %v13377_v19 = vld [vmem:[#allocation2 + $0xfa] sm:$0xff] }
 0x857   : > { %4859 = vmatmul.mubr.f32.gmra.mrb[226].mxu1 %v13322_v55  ;;  %8845 = vmatprep.subr.bf16.mxu0 %v13313_v20 }
 0x858   : > { %4863 = vmatprep.mubr.f32.mxu1 %v13036_v59  ;;  %v13341_v59 = vpack.c.bf16 %v7103_v23, %v7102_v29  ;;  %v6427_v29 = vld [vmem:[%s14248_s12 + $0x8] sm:$0xff] }
 0x859   : > { %5259 = vmatmul.mubr.f32.gmra.mrb[194].mxu0 %v4409_v32  ;;  %v4416_v32 = vld [vmem:[#allocation2 + $0x58] sm:$0xff] }
 0x85a   : > { %5263 = vmatprep.mubr.f32.mxu0 %v4446_v49  ;;  %8847 = vmatpush3.bf16.msra.mxu0 %v13313_v20  ;;  %v13389_v49 = vld [vmem:[#allocation2 + $0x102] sm:$0xff] }
 0x85b   : > { %4864 = vmatmul.mubr.f32.gmra.mrb[228].mxu1 %v13336_v39  ;;  %8849 = vmatprep.subr.bf16.mxu0 %v13327_v28 }
 0x85c   : > { %4868 = vmatprep.mubr.f32.mxu1 %v13042_v37  ;;  %v13355_v37 = vpack.c.bf16 %v7105_v2, %v7104_v27  ;;  %v13394_v27 = vld [vmem:[#allocation2 + $0x10a] sm:$0xff] }
 0x85d   : > { %5264 = vmatmul.mubr.f32.gmra.mrb[196].mxu0 %v4410_v13  ;;  %v4454_v13 = vld [vmem:[#allocation2 + $0x69] sm:$0xff] }
 0x85e   : > { %5268 = vmatprep.mubr.f32.mxu0 %v4447_v53  ;;  %8851 = vmatpush3.bf16.msra.mxu0 %v13327_v28  ;;  %v4418_v2 = vld [vmem:[#allocation2 + $0x68] sm:$0xff]  ;;  %v4455_v53 = vld [vmem:[#allocation2 + $0x71] sm:$0xff] }
 0x85f   : > { %4869 = vmatmul.mubr.f32.gmra.mrb[230].mxu1 %v13350_v50  ;;  %8853 = vmatprep.subr.bf16.mxu0 %v13341_v59 }
 0x860   : > { %4873 = vmatprep.mubr.f32.mxu1 %v13053_v3  ;;  %v4413_v3 = vld [vmem:[#allocation2 + $0x40] sm:$0xff] }
 0x861   : > { %5269 = vmatmul.mubr.f32.gmra.mrb[198].mxu0 %v4411_v38  ;;  %v13398_v38 = vld [vmem:[#allocation2 + $0x112] sm:$0xff] }
 0x862   : > { %5273 = vmatprep.mubr.f32.mxu0 %v4448_v25  ;;  %8855 = vmatpush3.bf16.msra.mxu0 %v13341_v59  ;;  %v4419_v25 = vld [vmem:[#allocation2 + $0x70] sm:$0xff] }
 0x863   : > { %4874 = vmatmul.mubr.f32.gmra.mrb[232].mxu1 %v13358_v14  ;;  %8857 = vmatprep.subr.bf16.mxu0 %v13355_v37 }
 0x864   : > { %4878 = vmatprep.mubr.f32.mxu1 %v13060_v4  ;;  %v4414_v4 = vld [vmem:[#allocation2 + $0x48] sm:$0xff] }
 0x865   : > { %5274 = vmatmul.mubr.f32.gmra.mrb[200].mxu0 %v4412_v34  ;;  %v13402_v34 = vld [vmem:[#allocation2 + $0x11a] sm:$0xff] }
 0x866   : > { %5278 = vmatprep.mubr.f32.mxu0 %v4449_v54  ;;  %8859 = vmatpush3.bf16.msra.mxu0 %v13355_v37  ;;  %v4420_v54 = vld [vmem:[#allocation2 + $0x78] sm:$0xff] }
 0x867   : > { %4879 = vmatmul.mubr.f32.gmra.mrb[234].mxu1 %v13364_v1 }
 0x868   : > { %4883 = vmatprep.mubr.f32.mxu1 %v13073_v40  ;;  %v4452_v40 = vld [vmem:[#allocation2 + $0x59] sm:$0xff] }
 0x869   : > { %5279 = vmatmul.mubr.f32.gmra.mrb[202].mxu0 %v4413_v3  ;;  %v4561_v3 = vld [vmem:[#allocation2 + $0x122] sm:$0xff] }
 0x86a   : > { %5283 = vmatprep.mubr.f32.mxu0 %v4450_v63  ;;  %v4421_v63 = vld [vmem:[#allocation2 + $0x80] sm:$0xff] }
 0x86b   : > { %4884 = vmatmul.mubr.f32.gmra.mrb[236].mxu1 %v13369_v5 }
 0x86c   : > { %4888 = vmatprep.mubr.f32.mxu1 %v13079_v61  ;;  %v6426_v61 = vld [vmem:[%s14248_s12] sm:$0xff] }
 0x86d   : > { %5284 = vmatmul.mubr.f32.gmra.mrb[204].mxu0 %v4414_v4  ;;  %v13387_v23 = vpack.c.bf16 %v6427_v29, %v6426_v61  ;;  %v4458_v4 = vld [vmem:[#allocation2 + $0x89] sm:$0xff] }
 0x86e   : > { %5288 = vmatprep.mubr.f32.mxu0 %v4451_v12  ;;  %v7058_v12 = vld [vmem:[%s14246_s10 + $0x300] sm:$0xff]  ;;  %v7060_v29 = vld [vmem:[%s14246_s10 + $0x310] sm:$0xff] }
 0x86f   : > { %4889 = vmatmul.mubr.f32.gmra.mrb[238].mxu1 %v13373_v33  ;;  %8861 = vmatprep.subr.bf16.mxu0 %v13387_v23 }
 0x870   : > { %4893 = vmatprep.mubr.f32.mxu1 %v13090_v52  ;;  %v4453_v52 = vld [vmem:[#allocation2 + $0x61] sm:$0xff] }
 0x871   : > { %5289 = vmatmul.mubr.f32.gmra.mrb[206].mxu0 %v4415_v36  ;;  %v7059_v36 = vld [vmem:[%s14246_s10 + $0x308] sm:$0xff] }
 0x872   : > { %5293 = vmatprep.mubr.f32.mxu0 %v4452_v40  ;;  %v4422_v40 = vld [vmem:[#allocation2 + $0x88] sm:$0xff]  ;;  %v8781_v61 = vpack.c.bf16 %v7059_v36, %v7058_v12  ;;  %v7066_v12 = vld [vmem:[%s14246_s10 + $0x340] sm:$0xff] }
 0x873   : > { %4894 = vmatmul.mubr.f32.gmra.mrb[240].mxu1 %v13377_v19  ;;  %v7067_v36 = vld [vmem:[%s14246_s10 + $0x348] sm:$0xff] }
 0x874   : > { %4898 = vmatprep.mubr.f32.mxu1 %v13097_v24  ;;  %v4417_v24 = vld [vmem:[#allocation2 + $0x60] sm:$0xff] }
 0x875   : > { %5294 = vmatmul.mubr.f32.gmra.mrb[208].mxu0 %v4416_v32  ;;  %v4478_v32 = vld [vmem:[#allocation2 + $0xa] sm:$0xff] }
 0x876   : > { %5298 = vmatprep.mubr.f32.mxu0 %v4453_v52  ;;  %v7061_v52 = vld [vmem:[%s14246_s10 + $0x318] sm:$0xff] }
 0x877   : > { %4899 = vmatmul.mubr.f32.gmra.mrb[242].mxu1 %v13389_v49 }
 0x878   : > { %4903 = vmatprep.mubr.f32.mxu1 %v13110_v47  ;;  %v4456_v47 = vld [vmem:[#allocation2 + $0x79] sm:$0xff] }
 0x879   : > { %5299 = vmatmul.mubr.f32.gmra.mrb[210].mxu0 %v4417_v24  ;;  %v4423_v24 = vld [vmem:[#allocation2 + $0x90] sm:$0xff] }
 0x87a   : > { %5303 = vmatprep.mubr.f32.mxu0 %v4454_v13  ;;  %v9221_v13 = vld [vmem:[#allocation2 + $0x12] sm:$0xff] }
 0x87b   : > { %4904 = vmatmul.mubr.f32.gmra.mrb[244].mxu1 %v13394_v27 }
 0x87c   : > { %4908 = vmatprep.mubr.f32.mxu1 %v13116_v46  ;;  %v4457_v46 = vld [vmem:[#allocation2 + $0x81] sm:$0xff] }
 0x87d   : > { %5304 = vmatmul.mubr.f32.gmra.mrb[212].mxu0 %v4418_v2  ;;  %v8784_v2 = vpack.c.bf16 %v7061_v52, %v7060_v29  ;;  %v7071_v29 = vld [vmem:[%s14246_s10 + $0x368] sm:$0xff] }
 0x87e   : > { %5308 = vmatprep.mubr.f32.mxu0 %v4455_v53  ;;  %v4460_v53 = vld [vmem:[#allocation2 + $0x99] sm:$0xff]  ;;  %v4465_v52 = vld [vmem:[#allocation2 + $0xc1] sm:$0xff] }
 0x87f   : > { %4909 = vmatmul.mubr.f32.gmra.mrb[246].mxu1 %v13398_v38 }
 0x880   : > { %4913 = vmatprep.mubr.f32.mxu1 %v13121_v31  ;;  %v4477_v31 = vld [vmem:[#allocation2 + $0x2] sm:$0xff] }
 0x881   : > { %5309 = vmatmul.mubr.f32.gmra.mrb[214].mxu0 %v4419_v25  ;;  %v7062_v25 = vld [vmem:[%s14246_s10 + $0x320] sm:$0xff] }
 0x882   : > { %5313 = vmatprep.mubr.f32.mxu0 %v4456_v47  ;;  %v7063_v47 = vld [vmem:[%s14246_s10 + $0x328] sm:$0xff] }
 0x883   : > { %4914 = vmatmul.mubr.f32.gmra.mrb[248].mxu1 %v13402_v34 }
 0x884   : > { %4918 = vmatprep.mubr.f32.mxu1 %v13130_v26  ;;  %v4562_v26 = vld [vmem:[#allocation2 + $0x12a] sm:$0xff] }
 0x885   : > { %5314 = vmatmul.mubr.f32.gmra.mrb[216].mxu0 %v4420_v54  ;;  %v4424_v54 = vld [vmem:[#allocation2 + $0x98] sm:$0xff] }
 0x886   : > { %5318 = vmatprep.mubr.f32.mxu0 %v4457_v46  ;;  %v8787_v46 = vpack.c.bf16 %v7063_v47, %v7062_v25  ;;  %v7075_v25 = vld [vmem:[%s14246_s10 + $0x388] sm:$0xff]  ;;  %v4467_v47 = vld [vmem:[#allocation2 + $0xd1] sm:$0xff] }
 0x887   : > { %4919 = vmatmul.mubr.f32.gmra.mrb[250].mxu1 %v4561_v3  ;;  %v4461_v3 = vld [vmem:[#allocation2 + $0xa1] sm:$0xff] }
 0x888   : > { %4923 = vmatprep.mubr.f32.mxu1 %v13145_v16  ;;  %v4459_v16 = vld [vmem:[#allocation2 + $0x91] sm:$0xff] }
 0x889   : > { %5319 = vmatmul.mubr.f32.gmra.mrb[218].mxu0 %v4421_v63  ;;  %v7064_v63 = vld [vmem:[%s14246_s10 + $0x330] sm:$0xff] }
 0x88a   : > { %5323 = vmatprep.mubr.f32.mxu0 %v4458_v4  ;;  %v7065_v4 = vld [vmem:[%s14246_s10 + $0x338] sm:$0xff] }
 0x88b   : > { %4924 = vmatmul.mubr.f32.gmra.mrb[252].mxu1 %v4562_v26  ;;  %v4463_v26 = vld [vmem:[#allocation2 + $0xb1] sm:$0xff] }
 0x88c   : > { %8058 = vmatprep.mubr.f32.mxu1 %v4477_v31  ;;  %v4462_v31 = vld [vmem:[#allocation2 + $0xa9] sm:$0xff] }
 0x88d   : > { %5324 = vmatmul.mubr.f32.gmra.mrb[220].mxu0 %v4422_v40  ;;  %v7068_v40 = vld [vmem:[%s14246_s10 + $0x350] sm:$0xff] }
 0x88e   : > { %5328 = vmatprep.mubr.f32.mxu0 %v4459_v16  ;;  %v7070_v16 = vld [vmem:[%s14246_s10 + $0x360] sm:$0xff] }
 0x88f   : > { %8059 = vmatmul.mubr.f32.vlgmr.msra.gmra.mrb[254].mxu1 %v4478_v32  ;;  %v7069_v32 = vld [vmem:[%s14246_s10 + $0x358] sm:$0xff] }
 0x890   : > { %8782 = vmatpush1.bf16.msra.mxu1 %v8781_v61  ;;  %8061 = vmatprep.mubr.f32.mxu1 %v9221_v13  ;;  %v4464_v61 = vld [vmem:[#allocation2 + $0xb9] sm:$0xff] }
 0x891   : > { %5329 = vmatmul.mubr.f32.gmra.mrb[222].mxu0 %v4423_v24  ;;  %8783 = vmatprep.subr.bf16.mxu1 %v14671_v56  ;;  %v7072_v24 = vld [vmem:[%s14246_s10 + $0x370] sm:$0xff]  ;;  %v7073_v13 = vld [vmem:[%s14246_s10 + $0x378] sm:$0xff] }
 0x892   : > { %5333 = vmatprep.mubr.f32.mxu0 %v4460_v53  ;;  %v7074_v53 = vld [vmem:[%s14246_s10 + $0x380] sm:$0xff] }
 0x893   : > { %8062 = vmatmul.mubr.f32.gmra.mrb[0].mxu1 %v12933_v45  ;;  %v4425_v45 = vld [vmem:[#allocation2 + $0xa0] sm:$0xff] }
 0x894   : > { %8064 = vmatprep.mubr.f32.mxu1 %v12973_v21  ;;  %8785 = vmatpush1.bf16.msra.mxu1 %v8784_v2  ;;  %v8790_v21 = vpack.c.bf16 %v7065_v4, %v7064_v63  ;;  %v4466_v2 = vld [vmem:[#allocation2 + $0xc9] sm:$0xff]  ;;  %v7078_v63 = vld [vmem:[%s14246_s10 + $0x3a0] sm:$0xff] }
 0x895   : > { %5334 = vmatmul.mubr.f32.gmra.mrb[224].mxu0 %v4424_v54  ;;  %8786 = vmatprep.subr.bf16.mxu1 %v14671_v56  ;;  %v7076_v54 = vld [vmem:[%s14246_s10 + $0x390] sm:$0xff]  ;;  %v7079_v4 = vld [vmem:[%s14246_s10 + $0x3a8] sm:$0xff] }
 0x896   : > { %5338 = vmatprep.mubr.f32.mxu0 %v4461_v3  ;;  %v4468_v3 = vld [vmem:[#allocation2 + $0xd9] sm:$0xff] }
 0x897   : > { %8065 = vmatmul.mubr.f32.gmra.mrb[2].mxu1 %v13016_v30  ;;  %v4426_v30 = vld [vmem:[#allocation2 + $0xa8] sm:$0xff] }
 0x898   : > { %8067 = vmatprep.mubr.f32.mxu1 %v13056_v0  ;;  %8788 = vmatpush1.bf16.msra.mxu1 %v8787_v46  ;;  %v8793_v0 = vpack.c.bf16 %v7067_v36, %v7066_v12  ;;  %v7077_v46 = vld [vmem:[%s14246_s10 + $0x398] sm:$0xff]  ;;  %v4470_v12 = vld [vmem:[#allocation2 + $0xe9] sm:$0xff]  ;;  %v7082_v36 = vld [vmem:[%s14246_s10 + $0x3c0] sm:$0xff] }
 0x899   : > { %5339 = vmatmul.mubr.f32.gmra.mrb[226].mxu0 %v4425_v45  ;;  %8789 = vmatprep.subr.bf16.mxu1 %v14671_v56  ;;  %v4469_v45 = vld [vmem:[#allocation2 + $0xe1] sm:$0xff] }
 0x89a   : > { %5343 = vmatprep.mubr.f32.mxu0 %v4462_v31  ;;  %v7081_v31 = vld [vmem:[%s14246_s10 + $0x3b8] sm:$0xff] }
 0x89b   : > { %8068 = vmatmul.mubr.f32.gmra.mrb[4].mxu1 %v13093_v9  ;;  %v4427_v9 = vld [vmem:[#allocation2 + $0xb0] sm:$0xff] }
 0x89c   : > { %8070 = vmatprep.mubr.f32.mxu1 %v13124_v17  ;;  %8791 = vmatpush1.bf16.msra.mxu1 %v8790_v21  ;;  %v8796_v17 = vpack.c.bf16 %v7069_v32, %v7068_v40  ;;  %v7080_v21 = vld [vmem:[%s14246_s10 + $0x3b0] sm:$0xff]  ;;  %v7085_v40 = vld [vmem:[%s14246_s10 + $0x3d8] sm:$0xff] }
 0x89d   : > { %5344 = vmatmul.mubr.f32.gmra.mrb[228].mxu0 %v4426_v30  ;;  %8792 = vmatprep.subr.bf16.mxu1 %v14671_v56  ;;  %v7083_v30 = vld [vmem:[%s14246_s10 + $0x3c8] sm:$0xff]  ;;  %v4472_v32 = vld [vmem:[#allocation2 + $0xf9] sm:$0xff] }
 0x89e   : > { %5348 = vmatprep.mubr.f32.mxu0 %v4463_v26  ;;  %v7084_v26 = vld [vmem:[%s14246_s10 + $0x3d0] sm:$0xff] }
 0x89f   : > { %8071 = vmatmul.mubr.f32.gmra.mrb[6].mxu1 %v13151_v51  ;;  %v4428_v51 = vld [vmem:[#allocation2 + $0xb8] sm:$0xff] }
 0x8a0   : > { %8073 = vmatprep.mubr.f32.mxu1 %v13162_v15  ;;  %8794 = vmatpush1.bf16.msra.mxu1 %v8793_v0  ;;  %v8799_v15 = vpack.c.bf16 %v7071_v29, %v7070_v16  ;;  %v4471_v0 = vld [vmem:[#allocation2 + $0xf1] sm:$0xff] }
 0x8a1   : > { %5349 = vmatmul.mubr.f32.gmra.mrb[230].mxu0 %v4427_v9  ;;  %8795 = vmatprep.subr.bf16.mxu1 %v14671_v56  ;;  %v7086_v9 = vld [vmem:[%s14246_s10 + $0x3e0] sm:$0xff]  ;;  %v7088_v16 = vld [vmem:[%s14246_s10 + $0x3f0] sm:$0xff]  ;;  %v7089_v29 = vld [vmem:[%s14246_s10 + $0x3f8] sm:$0xff] }
 0x8a2   : > { %5353 = vmatprep.mubr.f32.mxu0 %v4464_v61  ;;  %v4473_v61 = vld [vmem:[#allocation2 + $0x101] sm:$0xff] }
 0x8a3   : > { %8074 = vmatmul.mubr.f32.gmra.mrb[8].mxu1 %v13174_v7  ;;  %v4429_v7 = vld [vmem:[#allocation2 + $0xc0] sm:$0xff] }
 0x8a4   : > { %8076 = vmatprep.mubr.f32.mxu1 %v13185_v42  ;;  %8797 = vmatpush1.bf16.msra.mxu1 %v8796_v17  ;;  %v8802_v42 = vpack.c.bf16 %v7073_v13, %v7072_v24  ;;  %v7087_v17 = vld [vmem:[%s14246_s10 + $0x3e8] sm:$0xff]  ;;  %v4440_v13 = vld [vmem:[#allocation2 + $0x118] sm:$0xff] }
 0x8a5   : > { %5354 = vmatmul.mubr.f32.gmra.mrb[232].mxu0 %v4428_v51  ;;  %8798 = vmatprep.subr.bf16.mxu1 %v14671_v56  ;;  %v4474_v51 = vld [vmem:[#allocation2 + $0x109] sm:$0xff] }
 0x8a6   : > { %5358 = vmatprep.mubr.f32.mxu0 %v4465_v52  ;;  %v4475_v52 = vld [vmem:[#allocation2 + $0x111] sm:$0xff] }
 0x8a7   : > { %8077 = vmatmul.mubr.f32.gmra.mrb[10].mxu1 %v13196_v48  ;;  %v4430_v48 = vld [vmem:[#allocation2 + $0xc8] sm:$0xff] }
 0x8a8   : > { %8079 = vmatprep.mubr.f32.mxu1 %v13207_v35  ;;  %8800 = vmatpush1.bf16.msra.mxu1 %v8799_v15  ;;  %v8805_v35 = vpack.c.bf16 %v7075_v25, %v7074_v53  ;;  %v4438_v15 = vld [vmem:[#allocation2 + $0x108] sm:$0xff] }
 0x8a9   : > { %5359 = vmatmul.mubr.f32.gmra.mrb[234].mxu0 %v4429_v7  ;;  %8801 = vmatprep.subr.bf16.mxu1 %v14671_v56  ;;  %v6428_v7 = vld [vmem:[%s14248_s12 + $0x10] sm:$0xff] }
 0x8aa   : > { %5363 = vmatprep.mubr.f32.mxu0 %v4466_v2 }
 0x8ab   : > { %8080 = vmatmul.mubr.f32.gmra.mrb[12].mxu1 %v13218_v10  ;;  %v4431_v10 = vld [vmem:[#allocation2 + $0xd0] sm:$0xff] }
 0x8ac   : > { %8082 = vmatprep.mubr.f32.mxu1 %v13229_v43  ;;  %8803 = vmatpush1.bf16.msra.mxu1 %v8802_v42  ;;  %v8808_v43 = vpack.c.bf16 %v7077_v46, %v7076_v54  ;;  %v5736_v42 = vld [vmem:[#allocation2 + $0x26] sm:$0xff]  ;;  %v5737_v46 = vld [vmem:[#allocation2 + $0x2e] sm:$0xff] }
 0x8ad   : > { %5364 = vmatmul.mubr.f32.gmra.mrb[236].mxu0 %v4430_v48  ;;  %8804 = vmatprep.subr.bf16.mxu1 %v14671_v56 }
 0x8ae   : > { %5368 = vmatprep.mubr.f32.mxu0 %v4467_v47 }
 0x8af   : > { %8083 = vmatmul.mubr.f32.gmra.mrb[14].mxu1 %v13246_v8  ;;  %v4432_v8 = vld [vmem:[#allocation2 + $0xd8] sm:$0xff] }
 0x8b0   : > { %8085 = vmatprep.mubr.f32.mxu1 %v13253_v41  ;;  %8806 = vmatpush1.bf16.msra.mxu1 %v8805_v35  ;;  %v8811_v41 = vpack.c.bf16 %v7079_v4, %v7078_v63  ;;  %v5701_v35 = vld [vmem:[#allocation2 + $0x2d] sm:$0xff]  ;;  %v5738_v63 = vld [vmem:[#allocation2 + $0x36] sm:$0xff] }
 0x8b1   : > { %5369 = vmatmul.mubr.f32.gmra.mrb[238].mxu0 %v4431_v10  ;;  %8807 = vmatprep.subr.bf16.mxu1 %v14671_v56  ;;  %v6430_v10 = vld [vmem:[%s14248_s12 + $0x20] sm:$0xff] }
 0x8b2   : > { %5373 = vmatprep.mubr.f32.mxu0 %v4468_v3 }
 0x8b3   : > { %8086 = vmatmul.mubr.f32.gmra.mrb[16].mxu1 %v13258_v60  ;;  %v4433_v60 = vld [vmem:[#allocation2 + $0xe0] sm:$0xff] }
 0x8b4   : > { %8088 = vmatprep.mubr.f32.mxu1 %v13268_v44  ;;  %8809 = vmatpush1.bf16.msra.mxu1 %v8808_v43  ;;  %v8814_v44 = vpack.c.bf16 %v7081_v31, %v7080_v21  ;;  %v6431_v43 = vld [vmem:[%s14248_s12 + $0x28] sm:$0xff] }
 0x8b5   : > { %5374 = vmatmul.mubr.f32.gmra.mrb[240].mxu0 %v4432_v8  ;;  %8810 = vmatprep.subr.bf16.mxu1 %v14671_v56  ;;  %v5665_v8 = vld [vmem:[#allocation2 + $0x2c] sm:$0xff]  ;;  %v8868_v21 = vpack.c.bf16 %v6431_v43, %v6430_v10 }
 0x8b6   : > { %5378 = vmatprep.mubr.f32.mxu0 %v4469_v45  ;;  %v5702_v45 = vld [vmem:[#allocation2 + $0x35] sm:$0xff] }
 0x8b7   : > { %8089 = vmatmul.mubr.f32.gmra.mrb[18].mxu1 %v13280_v58  ;;  %v4434_v58 = vld [vmem:[#allocation2 + $0xe8] sm:$0xff]  ;;  %v6440_v43 = vld [vmem:[%s14248_s12 + $0x70] sm:$0xff] }
 0x8b8   : > { %8091 = vmatprep.mubr.f32.mxu1 %v13294_v6  ;;  %8812 = vmatpush1.bf16.msra.mxu1 %v8811_v41  ;;  %v8817_v6 = vpack.c.bf16 %v7083_v30, %v7082_v36  ;;  %v5740_v36 = vld [vmem:[#allocation2 + $0x46] sm:$0xff] }
 0x8b9   : > { %5379 = vmatmul.mubr.f32.gmra.mrb[242].mxu0 %v4433_v60  ;;  %8813 = vmatprep.subr.bf16.mxu1 %v14671_v56  ;;  %v5739_v60 = vld [vmem:[#allocation2 + $0x3e] sm:$0xff] }
 0x8ba   : > { %5383 = vmatprep.mubr.f32.mxu0 %v4470_v12 }
 0x8bb   : > { %8092 = vmatmul.mubr.f32.gmra.mrb[20].mxu1 %v13308_v57  ;;  %v4435_v57 = vld [vmem:[#allocation2 + $0xf0] sm:$0xff] }
 0x8bc   : > { %8094 = vmatprep.mubr.f32.mxu1 %v13322_v55  ;;  %8815 = vmatpush1.bf16.msra.mxu1 %v8814_v44  ;;  %v8820_v55 = vpack.c.bf16 %v7085_v40, %v7084_v26  ;;  %v6432_v44 = vld [vmem:[%s14248_s12 + $0x30] sm:$0xff] }
 0x8bd   : > { %5384 = vmatmul.mubr.f32.gmra.mrb[244].mxu0 %v4434_v58  ;;  %8816 = vmatprep.subr.bf16.mxu1 %v14671_v56  ;;  %v5666_v58 = vld [vmem:[#allocation2 + $0x34] sm:$0xff] }
 0x8be   : > { %5388 = vmatprep.mubr.f32.mxu0 %v4471_v0  ;;  %v5703_v0 = vld [vmem:[#allocation2 + $0x3d] sm:$0xff] }
 0x8bf   : > { %8095 = vmatmul.mubr.f32.gmra.mrb[22].mxu1 %v13336_v39  ;;  %v4436_v39 = vld [vmem:[#allocation2 + $0xf8] sm:$0xff] }
 0x8c0   : > { %8097 = vmatprep.mubr.f32.mxu1 %v13350_v50  ;;  %8818 = vmatpush1.bf16.msra.mxu1 %v8817_v6  ;;  %v8823_v50 = vpack.c.bf16 %v7087_v17, %v7086_v9  ;;  %v5742_v17 = vld [vmem:[#allocation2 + $0x56] sm:$0xff] }
 0x8c1   : > { %5389 = vmatmul.mubr.f32.gmra.mrb[246].mxu0 %v4435_v57  ;;  %8819 = vmatprep.subr.bf16.mxu1 %v14671_v56  ;;  %v5741_v57 = vld [vmem:[#allocation2 + $0x4e] sm:$0xff] }
 0x8c2   : > { %5393 = vmatprep.mubr.f32.mxu0 %v4472_v32  ;;  %v6435_v32 = vld [vmem:[%s14248_s12 + $0x48] sm:$0xff] }
 0x8c3   : > { %8098 = vmatmul.mubr.f32.gmra.mrb[24].mxu1 %v13358_v14  ;;  %v4437_v14 = vld [vmem:[#allocation2 + $0x100] sm:$0xff] }
 0x8c4   : > { %8100 = vmatprep.mubr.f32.mxu1 %v13364_v1  ;;  %8821 = vmatpush1.bf16.msra.mxu1 %v8820_v55  ;;  %v8826_v1 = vpack.c.bf16 %v7089_v29, %v7088_v16  ;;  %v6434_v55 = vld [vmem:[%s14248_s12 + $0x40] sm:$0xff] }
 0x8c5   : > { %5394 = vmatmul.mubr.f32.gmra.mrb[248].mxu0 %v4436_v39  ;;  %8822 = vmatprep.subr.bf16.mxu1 %v14671_v56  ;;  %v5704_v16 = vld [vmem:[#allocation2 + $0x45] sm:$0xff]  ;;  %v8876_v29 = vpack.c.bf16 %v6435_v32, %v6434_v55 }
 0x8c6   : > { %5398 = vmatprep.mubr.f32.mxu0 %v4473_v61  ;;  %v5672_v32 = vld [vmem:[#allocation2 + $0x64] sm:$0xff] }
 0x8c7   : > { %8101 = vmatmul.mubr.f32.gmra.mrb[26].mxu1 %v13369_v5  ;;  %v4439_v5 = vld [vmem:[#allocation2 + $0x110] sm:$0xff] }
 0x8c8   : > { %8103 = vmatprep.mubr.f32.mxu1 %v13373_v33  ;;  %8824 = vmatpush1.bf16.msra.mxu1 %v8823_v50  ;;  %v4476_v33 = vld [vmem:[#allocation2 + $0x119] sm:$0xff] }
 0x8c9   : > { %5399 = vmatmul.mubr.f32.gmra.mrb[250].mxu0 %v4437_v14  ;;  %8825 = vmatprep.subr.bf16.mxu1 %v14671_v56  ;;  %v5667_v50 = vld [vmem:[#allocation2 + $0x3c] sm:$0xff] }
 0x8ca   : > { %5403 = vmatprep.mubr.f32.mxu0 %v4474_v51  ;;  %v6436_v51 = vld [vmem:[%s14248_s12 + $0x50] sm:$0xff] }
 0x8cb   : > { %8104 = vmatmul.mubr.f32.gmra.mrb[28].mxu1 %v13377_v19  ;;  %v5700_v19 = vld [vmem:[#allocation2 + $0x25] sm:$0xff] }
 0x8cc   : > { %8106 = vmatprep.mubr.f32.mxu1 %v13389_v49  ;;  %8827 = vmatpush1.bf16.msra.mxu1 %v8826_v1  ;;  %v5743_v1 = vld [vmem:[#allocation2 + $0x5e] sm:$0xff] }
 0x8cd   : > { %5404 = vmatmul.mubr.f32.gmra.mrb[252].mxu0 %v4438_v15  ;;  %8892 = vmatprep.subr.bf16.mxu1 %v13250_v11  ;;  %v4750_v56 = vpop.f32.mrb[182].mxu1  ;;  %v6437_v15 = vld [vmem:[%s14248_s12 + $0x58] sm:$0xff] }
 0x8ce   : > { %5408 = vmatprep.mubr.f32.mxu0 %v4475_v52  ;;  %v4752_v24 = vpop.f32.mrb[183].mxu1 }
 0x8cf   : > { %8107 = vmatmul.mubr.f32.gmra.mrb[30].mxu1 %v13394_v27  ;;  %v7974_v49 = vpop.f32.mrb[150].mxu0  ;;  %v6429_v27 = vld [vmem:[%s14248_s12 + $0x18] sm:$0xff] }
 0x8d0   : > { %8109 = vmatprep.mubr.f32.mxu1 %v13398_v38  ;;  %v4995_v38 = vpop.f32.mrb[151].mxu0  ;;  %v8864_v47 = vpack.c.bf16 %v6429_v27, %v6428_v7  ;;  %v6438_v27 = vld [vmem:[%s14248_s12 + $0x60] sm:$0xff] }
 0x8d1   : > { %5409 = vmatmul.mubr.f32.gmra.mrb[254].mxu0 %v4439_v5  ;;  %v13558_v2 = vadd.f32 %v4995_v38, %v4750_v56  ;;  %v4755_v53 = vpop.f32.mrb[184].mxu1  ;;  %v5744_v5 = vld [vmem:[#allocation2 + $0x66] sm:$0xff] }
 0x8d2   : > { %5413 = vmatprep.mubr.f32.mxu0 %v4476_v33  ;;  %v13560_v25 = vadd.f32 %v7974_v49, %v4755_v53  ;;  %v4757_v48 = vpop.f32.mrb[185].mxu1  ;;  %v5668_v56 = vld [vmem:[#allocation2 + $0x44] sm:$0xff]  ;;  %v5705_v49 = vld [vmem:[#allocation2 + $0x4d] sm:$0xff]  ;;  %v5746_v53 = vld [vmem:[#allocation2 + $0x76] sm:$0xff] }
 0x8d3   : > { %8110 = vmatmul.mubr.f32.gmra.mrb[32].mxu1 %v13402_v34  ;;  %v5664_v34 = vld [vmem:[#allocation2 + $0x24] sm:$0xff]  ;;  %v7977_v54 = vpop.f32.mrb[152].mxu0  ;;  %v5669_v48 = vld [vmem:[#allocation2 + $0x4c] sm:$0xff] }
 0x8d4   : > { %5885 = vmatprep.mubr.f32.mxu1 %v5700_v19  ;;  %v5005_v3 = vpop.f32.mrb[153].mxu0  ;;  %v6439_v38 = vld [vmem:[%s14248_s12 + $0x68] sm:$0xff] }
 0x8d5   : > { %5414 = vmatmul.mubr.f32.gmra.mrb[0].mxu0 %v4440_v13  ;;  %v4760_v4 = vpop.f32.mrb[186].mxu1  ;;  %v8880_v13 = vpack.c.bf16 %v6437_v15, %v6436_v51 }
 0x8d6   : > { %8144 = vmatprep.mubr.f32.mxu0 %v5736_v42  ;;  %v4762_v41 = vpop.f32.mrb[187].mxu1 }
 0x8d7   : > { %5886 = vmatmul.mubr.f32.vlgmr.msra.gmra.mrb[34].mxu1 %v5664_v34  ;;  %v5670_v41 = vld [vmem:[#allocation2 + $0x54] sm:$0xff] }
 0x8d8   : > { %8900 = vmatpush3.bf16.msra.mxu1 %v13250_v11  ;;  %5890 = vmatprep.mubr.f32.mxu1 %v5701_v35  ;;  %v13571_v11 = vadd.f32 %v5005_v3, %v4760_v4  ;;  %v7980_v31 = vpop.f32.mrb[154].mxu0  ;;  %v6441_v3 = vld [vmem:[%s14248_s12 + $0x78] sm:$0xff]  ;;  %v5748_v4 = vld [vmem:[#allocation2 + $0x86] sm:$0xff] }
 0x8d9   : > { %8145 = vmatmul.mubr.f32.vlgmr.msra.gmra.mrb[2].mxu0 %v5737_v46  ;;  %8893 = vmatprep.subr.bf16.mxu1 %v13271_v22  ;;  %v5015_v12 = vpop.f32.mrb[155].mxu0  ;;  %v8884_v46 = vpack.c.bf16 %v6439_v38, %v6438_v27  ;;  %v5711_v27 = vld [vmem:[#allocation2 + $0x7d] sm:$0xff] }
 0x8da   : > { %8147 = vmatprep.mubr.f32.mxu0 %v5738_v63  ;;  %8863 = vmatpush3.bf16.msra.mxu0 %v13387_v23  ;;  %v6433_v23 = vld [vmem:[%s14248_s12 + $0x38] sm:$0xff]  ;;  %v4765_v30 = vpop.f32.mrb[188].mxu1 }
 0x8db   : > { %5891 = vmatmul.mubr.f32.gmra.mrb[36].mxu1 %v5665_v8  ;;  %8865 = vmatprep.subr.bf16.mxu0 %v8864_v47  ;;  %v13581_v6 = vadd.f32 %v7977_v54, %v4765_v30  ;;  %v8872_v26 = vpack.c.bf16 %v6433_v23, %v6432_v44  ;;  %v5706_v54 = vld [vmem:[#allocation2 + $0x55] sm:$0xff] }
 0x8dc   : > { %5895 = vmatprep.mubr.f32.mxu1 %v5702_v45  ;;  %8901 = vmatpush3.bf16.msra.mxu1 %v13271_v22  ;;  %v4767_v22 = vpop.f32.mrb[189].mxu1  ;;  %v5671_v30 = vld [vmem:[#allocation2 + $0x5c] sm:$0xff] }
 0x8dd   : > { %8148 = vmatmul.mubr.f32.gmra.mrb[4].mxu0 %v5739_v60  ;;  %8894 = vmatprep.subr.bf16.mxu1 %v13285_v62  ;;  %v8888_v60 = vpack.c.bf16 %v6441_v3, %v6440_v43  ;;  %v5759_v43 = vld [vmem:[#allocation2 + $0xde] sm:$0xff] }
 0x8de   : > { %8150 = vmatprep.mubr.f32.mxu0 %v5740_v36  ;;  %8867 = vmatpush3.bf16.msra.mxu0 %v8864_v47  ;;  %v13583_v40 = vpop.f32.mrb[156].mxu0 }
 0x8df   : > { %5896 = vmatmul.mubr.f32.gmra.mrb[38].mxu1 %v5666_v58  ;;  %8869 = vmatprep.subr.bf16.mxu0 %v8868_v21  ;;  %v5025_v9 = vpop.f32.mrb[157].mxu0 }
 0x8e0   : > { %5900 = vmatprep.mubr.f32.mxu1 %v5703_v0  ;;  %8902 = vmatpush3.bf16.msra.mxu1 %v13285_v62  ;;  %v4770_v39 = vpop.f32.mrb[190].mxu1  ;;  %v5708_v0 = vld [vmem:[#allocation2 + $0x65] sm:$0xff] }
 0x8e1   : > { %8151 = vmatmul.mubr.f32.gmra.mrb[6].mxu0 %v5741_v57  ;;  %8895 = vmatprep.subr.bf16.mxu1 %v13299_v18  ;;  %v13593_v61 = vadd.f32 %v5015_v12, %v4770_v39  ;;  %v4772_v62 = vpop.f32.mrb[191].mxu1  ;;  %v5750_v12 = vld [vmem:[#allocation2 + $0x96] sm:$0xff]  ;;  %v5752_v57 = vld [vmem:[#allocation2 + $0xa6] sm:$0xff] }
 0x8e2   : > { %8153 = vmatprep.mubr.f32.mxu0 %v5742_v17  ;;  %8871 = vmatpush3.bf16.msra.mxu0 %v8868_v21  ;;  %v13595_v14 = vpop.f32.mrb[158].mxu0  ;;  %v5709_v39 = vld [vmem:[#allocation2 + $0x6d] sm:$0xff] }
 0x8e3   : > { %5901 = vmatmul.mubr.f32.gmra.mrb[40].mxu1 %v5667_v50  ;;  %8873 = vmatprep.subr.bf16.mxu0 %v8872_v26  ;;  %v13604_v52 = vpop.f32.mrb[159].mxu0  ;;  %v5753_v62 = vld [vmem:[#allocation2 + $0xae] sm:$0xff] }
 0x8e4   : > { %5905 = vmatprep.mubr.f32.mxu1 %v5704_v16  ;;  %8903 = vmatpush3.bf16.msra.mxu1 %v13299_v18  ;;  %v4775_v33 = vpop.f32.mrb[192].mxu1  ;;  %v5745_v18 = vld [vmem:[#allocation2 + $0x6e] sm:$0xff] }
 0x8e5   : > { %8154 = vmatmul.mubr.f32.gmra.mrb[8].mxu0 %v5743_v1  ;;  %8896 = vmatprep.subr.bf16.mxu1 %v13313_v20  ;;  %v13607_v24 = vadd.f32 %v7980_v31, %v4775_v33  ;;  %v4777_v19 = vpop.f32.mrb[193].mxu1  ;;  %v5707_v31 = vld [vmem:[#allocation2 + $0x5d] sm:$0xff]  ;;  %v5673_v1 = vld [vmem:[#allocation2 + $0x6c] sm:$0xff] }
 0x8e6   : > { %8156 = vmatprep.mubr.f32.mxu0 %v5744_v5  ;;  %8875 = vmatpush3.bf16.msra.mxu0 %v8872_v26  ;;  %v5755_v5 = vld [vmem:[#allocation2 + $0xbe] sm:$0xff] }
 0x8e7   : > { %5906 = vmatmul.mubr.f32.gmra.mrb[42].mxu1 %v5668_v56  ;;  %8877 = vmatprep.subr.bf16.mxu0 %v8876_v29  ;;  %v13609_v7 = vpop.f32.mrb[160].mxu0  ;;  %v5756_v56 = vld [vmem:[#allocation2 + $0xc6] sm:$0xff] }
 0x8e8   : > { %5910 = vmatprep.mubr.f32.mxu1 %v5705_v49  ;;  %8904 = vmatpush3.bf16.msra.mxu1 %v13313_v20  ;;  %v13618_v42 = vpop.f32.mrb[161].mxu0  ;;  %v5747_v20 = vld [vmem:[#allocation2 + $0x7e] sm:$0xff]  ;;  %v5674_v49 = vld [vmem:[#allocation2 + $0x74] sm:$0xff] }
 0x8e9   : > { %8157 = vmatmul.mubr.f32.gmra.mrb[10].mxu0 %v5745_v18  ;;  %8897 = vmatprep.subr.bf16.mxu1 %v13327_v28  ;;  %v4780_v34 = vpop.f32.mrb[194].mxu1 }
 0x8ea   : > { %8159 = vmatprep.mubr.f32.mxu0 %v5746_v53  ;;  %8879 = vmatpush3.bf16.msra.mxu0 %v8876_v29  ;;  %v13621_v35 = vadd.f32 %v5025_v9, %v4780_v34  ;;  %v4782_v47 = vpop.f32.mrb[195].mxu1  ;;  %v5758_v34 = vld [vmem:[#allocation2 + $0xd6] sm:$0xff] }
 0x8eb   : > { %5911 = vmatmul.mubr.f32.gmra.mrb[44].mxu1 %v5669_v48  ;;  %8881 = vmatprep.subr.bf16.mxu0 %v8880_v13  ;;  %v5675_v47 = vld [vmem:[#allocation2 + $0x7c] sm:$0xff] }
 0x8ec   : > { %v13623_v10 = vpop.f32.mrb[162].mxu0  ;;  %5915 = vmatprep.mubr.f32.mxu1 %v5706_v54  ;;  %8905 = vmatpush3.bf16.msra.mxu1 %v13327_v28  ;;  %v5749_v28 = vld [vmem:[#allocation2 + $0x8e] sm:$0xff] }
 0x8ed   : > { %v13632_v63 = vpop.f32.mrb[163].mxu0  ;;  %8160 = vmatmul.mubr.f32.gmra.mrb[12].mxu0 %v5747_v20  ;;  %8898 = vmatprep.subr.bf16.mxu1 %v13341_v59 }
 0x8ee   : > { %8162 = vmatprep.mubr.f32.mxu0 %v5748_v4  ;;  %v4785_v8 = vpop.f32.mrb[196].mxu1  ;;  %8883 = vmatpush3.bf16.msra.mxu0 %v8880_v13  ;;  %v5760_v4 = vld [vmem:[#allocation2 + $0xe6] sm:$0xff] }
 0x8ef   : > { %v13636_v45 = vadd.f32 %v13583_v40, %v4785_v8  ;;  %v4787_v21 = vpop.f32.mrb[197].mxu1  ;;  %5916 = vmatmul.mubr.f32.gmra.mrb[46].mxu1 %v5670_v41  ;;  %8885 = vmatprep.subr.bf16.mxu0 %v8884_v46  ;;  %v5676_v41 = vld [vmem:[#allocation2 + $0x84] sm:$0xff] }
 0x8f0   : > { %v13638_v44 = vpop.f32.mrb[164].mxu0  ;;  %5920 = vmatprep.mubr.f32.mxu1 %v5707_v31  ;;  %8906 = vmatpush3.bf16.msra.mxu1 %v13341_v59  ;;  %v5751_v59 = vld [vmem:[#allocation2 + $0x9e] sm:$0xff] }
 0x8f1   : > { %v13641_v23 = vpop.f32.mrb[165].mxu0  ;;  %8163 = vmatmul.mubr.f32.gmra.mrb[14].mxu0 %v5749_v28  ;;  %8899 = vmatprep.subr.bf16.mxu1 %v13355_v37  ;;  %v5761_v28 = vld [vmem:[#allocation2 + $0xee] sm:$0xff] }
 0x8f2   : > { %8165 = vmatprep.mubr.f32.mxu0 %v5750_v12  ;;  %v4790_v36 = vpop.f32.mrb[198].mxu1  ;;  %8887 = vmatpush3.bf16.msra.mxu0 %v8884_v46 }
 0x8f3   : > { %v13645_v58 = vadd.f32 %v13604_v52, %v4790_v36  ;;  %v4792_v22 = vpop.f32.mrb[199].mxu1  ;;  %5921 = vmatmul.mubr.f32.gmra.mrb[48].mxu1 %v5671_v30  ;;  %8889 = vmatprep.subr.bf16.mxu0 %v8888_v60  ;;  %v5762_v36 = vld [vmem:[#allocation2 + $0xf6] sm:$0xff] }
 0x8f4   : > { %v13647_v26 = vpop.f32.mrb[166].mxu0  ;;  %5925 = vmatprep.mubr.f32.mxu1 %v5708_v0  ;;  %8907 = vmatpush3.bf16.msra.mxu1 %v13355_v37  ;;  %v5754_v37 = vld [vmem:[#allocation2 + $0xb6] sm:$0xff]  ;;  %v5677_v22 = vld [vmem:[#allocation2 + $0x8c] sm:$0xff] }
 0x8f5   : > { %v13650_v40 = vpop.f32.mrb[167].mxu0  ;;  %8166 = vmatmul.mubr.f32.gmra.mrb[16].mxu0 %v5751_v59 }
 0x8f6   : > { %8168 = vmatprep.mubr.f32.mxu0 %v5752_v57  ;;  %v4795_v55 = vpop.f32.mrb[200].mxu1  ;;  %8891 = vmatpush3.bf16.msra.mxu0 %v8888_v60 }
 0x8f7   : > { %v13653_v9 = vadd.f32 %v13595_v14, %v4795_v55  ;;  %v4797_v17 = vpop.f32.mrb[201].mxu1  ;;  %5926 = vmatmul.mubr.f32.gmra.mrb[50].mxu1 %v5672_v32  ;;  %v5710_v14 = vld [vmem:[#allocation2 + $0x75] sm:$0xff]  ;;  %v5763_v55 = vld [vmem:[#allocation2 + $0xfe] sm:$0xff] }
 0x8f8   : > { %v13655_v50 = vpop.f32.mrb[168].mxu0  ;;  %5930 = vmatprep.mubr.f32.mxu1 %v5709_v39  ;;  %v5764_v17 = vld [vmem:[#allocation2 + $0x106] sm:$0xff] }
 0x8f9   : > { %v13657_v16 = vpop.f32.mrb[169].mxu0  ;;  %8169 = vmatmul.mubr.f32.gmra.mrb[18].mxu0 %v5753_v62  ;;  %v5678_v62 = vld [vmem:[#allocation2 + $0x94] sm:$0xff] }
 0x8fa   : > { %8171 = vmatprep.mubr.f32.mxu0 %v5754_v37  ;;  %v4800_v29 = vpop.f32.mrb[202].mxu1 }
 0x8fb   : > { %v13660_v51 = vadd.f32 %v13618_v42, %v4800_v29  ;;  %v4802_v15 = vpop.f32.mrb[203].mxu1  ;;  %5931 = vmatmul.mubr.f32.gmra.mrb[52].mxu1 %v5673_v1  ;;  %v5757_v42 = vld [vmem:[#allocation2 + $0xce] sm:$0xff]  ;;  %v5715_v29 = vld [vmem:[#allocation2 + $0x9d] sm:$0xff] }
 0x8fc   : > { %v13662_v52 = vpop.f32.mrb[170].mxu0  ;;  %5935 = vmatprep.mubr.f32.mxu1 %v5710_v14  ;;  %v6390_v1 = vld [vmem:[%s9504_s24] sm:$0xff]  ;;  %v5765_v14 = vld [vmem:[#allocation2 + $0x10e] sm:$0xff] }
 0x8fd   : > { %v13664_v33 = vpop.f32.mrb[171].mxu0  ;;  %8172 = vmatmul.mubr.f32.gmra.mrb[20].mxu0 %v5755_v5 }
 0x8fe   : > { %8174 = vmatprep.mubr.f32.mxu0 %v5756_v56  ;;  %v4805_v19 = vpop.f32.mrb[204].mxu1 }
 0x8ff   : > { %v13667_v13 = vadd.f32 %v13609_v7, %v4805_v19  ;;  %v4807_v18 = vpop.f32.mrb[205].mxu1  ;;  %5936 = vmatmul.mubr.f32.gmra.mrb[54].mxu1 %v5674_v49  ;;  %v5712_v7 = vld [vmem:[#allocation2 + $0x85] sm:$0xff]  ;;  %v5679_v19 = vld [vmem:[#allocation2 + $0x9c] sm:$0xff] }
 0x900   : > { %v13669_v38 = vpop.f32.mrb[172].mxu0  ;;  %5940 = vmatprep.mubr.f32.mxu1 %v5711_v27  ;;  %v6391_v49 = vld [vmem:[%s9504_s24 + $0x8] sm:$0xff] }
 0x901   : > { %v13671_v53 = vpop.f32.mrb[173].mxu0  ;;  %8175 = vmatmul.mubr.f32.gmra.mrb[22].mxu0 %v5757_v42  ;;  %v5716_v27 = vld [vmem:[#allocation2 + $0xa5] sm:$0xff]  ;;  %v6392_v42 = vld [vmem:[%s9504_s24 + $0x10] sm:$0xff] }
 0x902   : > { %8177 = vmatprep.mubr.f32.mxu0 %v5758_v34  ;;  %v4810_v48 = vpop.f32.mrb[206].mxu1 }
 0x903   : > { %v13674_v54 = vadd.f32 %v13632_v63, %v4810_v48  ;;  %v4812_v46 = vpop.f32.mrb[207].mxu1  ;;  %5941 = vmatmul.mubr.f32.gmra.mrb[56].mxu1 %v5675_v47  ;;  %v5713_v63 = vld [vmem:[#allocation2 + $0x8d] sm:$0xff] }
 0x904   : > { %v13676_v20 = vpop.f32.mrb[174].mxu0  ;;  %5945 = vmatprep.mubr.f32.mxu1 %v5712_v7  ;;  %v5680_v46 = vld [vmem:[#allocation2 + $0xa4] sm:$0xff]  ;;  %v6393_v7 = vld [vmem:[%s9504_s24 + $0x18] sm:$0xff] }
 0x905   : > { %v13678_v3 = vpop.f32.mrb[175].mxu0  ;;  %8178 = vmatmul.mubr.f32.gmra.mrb[24].mxu0 %v5759_v43 }
 0x906   : > { %8180 = vmatprep.mubr.f32.mxu0 %v5760_v4  ;;  %v4815_v8 = vpop.f32.mrb[208].mxu1  ;;  %v5717_v4 = vld [vmem:[#allocation2 + $0xad] sm:$0xff] }
 0x907   : > { %v13681_v21 = vadd.f32 %v13623_v10, %v4815_v8  ;;  %v4817_v31 = vpop.f32.mrb[209].mxu1  ;;  %5946 = vmatmul.mubr.f32.gmra.mrb[58].mxu1 %v5676_v41  ;;  %v5714_v10 = vld [vmem:[#allocation2 + $0x95] sm:$0xff]  ;;  %v6394_v8 = vld [vmem:[%s9504_s24 + $0x20] sm:$0xff] }
 0x908   : > { %v13683_v60 = vpop.f32.mrb[176].mxu0  ;;  %5950 = vmatprep.mubr.f32.mxu1 %v5713_v63 }
 0x909   : > { %v13685_v12 = vpop.f32.mrb[177].mxu0  ;;  %8181 = vmatmul.mubr.f32.gmra.mrb[26].mxu0 %v5761_v28  ;;  %v5681_v28 = vld [vmem:[#allocation2 + $0xac] sm:$0xff] }
 0x90a   : > { %8183 = vmatprep.mubr.f32.mxu0 %v5762_v36  ;;  %v4820_v30 = vpop.f32.mrb[210].mxu1  ;;  %v6395_v36 = vld [vmem:[%s9504_s24 + $0x28] sm:$0xff] }
 0x90b   : > { %v13688_v0 = vadd.f32 %v13641_v23, %v4820_v30  ;;  %v4822_v59 = vpop.f32.mrb[211].mxu1  ;;  %5951 = vmatmul.mubr.f32.gmra.mrb[60].mxu1 %v5677_v22  ;;  %v5718_v22 = vld [vmem:[#allocation2 + $0xb5] sm:$0xff] }
 0x90c   : > { %v13690_v57 = vpop.f32.mrb[178].mxu0  ;;  %5955 = vmatprep.mubr.f32.mxu1 %v5714_v10  ;;  %v6396_v59 = vld [vmem:[%s9504_s24 + $0x30] sm:$0xff] }
 0x90d   : > { %v13692_v32 = vpop.f32.mrb[179].mxu0  ;;  %8184 = vmatmul.mubr.f32.gmra.mrb[28].mxu0 %v5763_v55 }
 0x90e   : > { %8186 = vmatprep.mubr.f32.mxu0 %v5764_v17  ;;  %v4825_v39 = vpop.f32.mrb[212].mxu1 }
 0x90f   : > { %v13695_v37 = vadd.f32 %v13638_v44, %v4825_v39  ;;  %v4827_v23 = vpop.f32.mrb[213].mxu1  ;;  %5956 = vmatmul.mubr.f32.gmra.mrb[62].mxu1 %v5678_v62  ;;  %v5682_v62 = vld [vmem:[#allocation2 + $0xb4] sm:$0xff] }
 0x910   : > { %v13698_v15 = vpop.f32.mrb[180].mxu0  ;;  %5960 = vmatprep.mubr.f32.mxu1 %v5715_v29  ;;  %v6397_v23 = vld [vmem:[%s9504_s24 + $0x38] sm:$0xff] }
 0x911   : > { %v13700_v5 = vpop.f32.mrb[181].mxu0  ;;  %8187 = vmatmul.mubr.f32.gmra.mrb[30].mxu0 %v5765_v14  ;;  %v6398_v14 = vld [vmem:[%s9504_s24 + $0x40] sm:$0xff] }
 0x912   : > { %v4830_v56 = vpop.f32.mrb[214].mxu1  ;;  %8230 = vmatprep.mubr.f32.mxu0 %v6390_v1  ;;  %v5719_v1 = vld [vmem:[#allocation2 + $0xbd] sm:$0xff] }
 0x913   : > { %v13704_v44 = vadd.f32 %v13650_v40, %v4830_v56  ;;  %v4832_v18 = vpop.f32.mrb[215].mxu1  ;;  %5961 = vmatmul.mubr.f32.gmra.mrb[64].mxu1 %v5679_v19 }
 0x914   : > { %v13707_v34 = vpop.f32.mrb[182].mxu0  ;;  %5965 = vmatprep.mubr.f32.mxu1 %v5716_v27  ;;  %v5683_v18 = vld [vmem:[#allocation2 + $0xbc] sm:$0xff]  ;;  %v6399_v27 = vld [vmem:[%s9504_s24 + $0x48] sm:$0xff] }
 0x915   : > { %v13709_v48 = vpop.f32.mrb[183].mxu0  ;;  %8231 = vmatmul.mubr.f32.vlgmr.msra.gmra.mrb[32].mxu0 %v6391_v49 }
 0x916   : > { %v4835_v47 = vpop.f32.mrb[216].mxu1  ;;  %8233 = vmatprep.mubr.f32.mxu0 %v6392_v42 }
 0x917   : > { %v13713_v43 = vadd.f32 %v13647_v26, %v4835_v47  ;;  %v4837_v40 = vpop.f32.mrb[217].mxu1  ;;  %5966 = vmatmul.mubr.f32.gmra.mrb[66].mxu1 %v5680_v46  ;;  %v5720_v47 = vld [vmem:[#allocation2 + $0xc5] sm:$0xff]  ;;  %v6400_v46 = vld [vmem:[%s9504_s24 + $0x50] sm:$0xff] }
 0x918   : > { %v13716_v41 = vpop.f32.mrb[184].mxu0  ;;  %5970 = vmatprep.mubr.f32.mxu1 %v5717_v4 }
 0x919   : > { %v13718_v31 = vpop.f32.mrb[185].mxu0  ;;  %8234 = vmatmul.mubr.f32.gmra.mrb[34].mxu0 %v6393_v7 }
 0x91a   : > { %v4840_v63 = vpop.f32.mrb[218].mxu1  ;;  %8236 = vmatprep.mubr.f32.mxu0 %v6394_v8  ;;  %v5684_v8 = vld [vmem:[#allocation2 + $0xc4] sm:$0xff] }
 0x91b   : > { %v13722_v30 = vadd.f32 %v13657_v16, %v4840_v63  ;;  %v4842_v26 = vpop.f32.mrb[219].mxu1  ;;  %5971 = vmatmul.mubr.f32.gmra.mrb[68].mxu1 %v5681_v28  ;;  %v6401_v63 = vld [vmem:[%s9504_s24 + $0x58] sm:$0xff] }
 0x91c   : > { %v5240_v10 = vpop.f32.mrb[186].mxu0  ;;  %5975 = vmatprep.mubr.f32.mxu1 %v5718_v22  ;;  %v6402_v26 = vld [vmem:[%s9504_s24 + $0x60] sm:$0xff] }
 0x91d   : > { %v13726_v55 = vadd.f32 %v5240_v10, %v13558_v2  ;;  %8237 = vmatmul.mubr.f32.gmra.mrb[36].mxu0 %v6395_v36  ;;  %v5242_v17 = vpop.f32.mrb[187].mxu0  ;;  %v5721_v36 = vld [vmem:[#allocation2 + $0xcd] sm:$0xff] }
 0x91e   : > { %v4845_v39 = vpop.f32.mrb[220].mxu1  ;;  %8239 = vmatprep.mubr.f32.mxu0 %v6396_v59  ;;  %v5685_v17 = vld [vmem:[#allocation2 + $0xcc] sm:$0xff] }
 0x91f   : > { %v13730_v16 = vadd.f32 %v13655_v50, %v4845_v39  ;;  %v4847_v29 = vpop.f32.mrb[221].mxu1  ;;  %5976 = vmatmul.mubr.f32.gmra.mrb[70].mxu1 %v5682_v62  ;;  %v6403_v39 = vld [vmem:[%s9504_s24 + $0x68] sm:$0xff] }
 0x920   : > { %v5245_v56 = vpop.f32.mrb[188].mxu0  ;;  %5980 = vmatprep.mubr.f32.mxu1 %v5719_v1  ;;  %v6404_v29 = vld [vmem:[%s9504_s24 + $0x70] sm:$0xff] }
 0x921   : > { %v13734_v2 = vadd.f32 %v5245_v56, %v13560_v25  ;;  %8240 = vmatmul.mubr.f32.gmra.mrb[38].mxu0 %v6397_v23  ;;  %v5247_v19 = vpop.f32.mrb[189].mxu0  ;;  %v5722_v23 = vld [vmem:[#allocation2 + $0xd5] sm:$0xff] }
 0x922   : > { %v4850_v49 = vpop.f32.mrb[222].mxu1  ;;  %8242 = vmatprep.mubr.f32.mxu0 %v6398_v14  ;;  %v5686_v19 = vld [vmem:[#allocation2 + $0xd4] sm:$0xff] }
 0x923   : > { %v13738_v50 = vadd.f32 %v13664_v33, %v4850_v49  ;;  %v4852_v42 = vpop.f32.mrb[223].mxu1  ;;  %5981 = vmatmul.mubr.f32.gmra.mrb[72].mxu1 %v5683_v18  ;;  %v6405_v49 = vld [vmem:[%s9504_s24 + $0x78] sm:$0xff] }
 0x924   : > { %v5250_v7 = vpop.f32.mrb[190].mxu0  ;;  %5985 = vmatprep.mubr.f32.mxu1 %v5720_v47  ;;  %v6406_v42 = vld [vmem:[%s9504_s24 + $0x80] sm:$0xff] }
 0x925   : > { %v13742_v25 = vadd.f32 %v5250_v7, %v13571_v11  ;;  %v5252_v40 = vpop.f32.mrb[191].mxu0  ;;  %8243 = vmatmul.mubr.f32.gmra.mrb[40].mxu0 %v6399_v27  ;;  %v5723_v27 = vld [vmem:[#allocation2 + $0xdd] sm:$0xff] }
 0x926   : > { %v4855_v4 = vpop.f32.mrb[224].mxu1  ;;  %8245 = vmatprep.mubr.f32.mxu0 %v6400_v46  ;;  %v5687_v40 = vld [vmem:[#allocation2 + $0xdc] sm:$0xff] }
 0x927   : > { %v13746_v33 = vadd.f32 %v13662_v52, %v4855_v4  ;;  %v4857_v28 = vpop.f32.mrb[225].mxu1  ;;  %5986 = vmatmul.mubr.f32.gmra.mrb[74].mxu1 %v5684_v8  ;;  %v6407_v4 = vld [vmem:[%s9504_s24 + $0x88] sm:$0xff] }
 0x928   : > { %v5255_v22 = vpop.f32.mrb[192].mxu0  ;;  %5990 = vmatprep.mubr.f32.mxu1 %v5721_v36  ;;  %v6408_v28 = vld [vmem:[%s9504_s24 + $0x90] sm:$0xff] }
 0x929   : > { %v13750_v11 = vadd.f32 %v5255_v22, %v13581_v6  ;;  %v5257_v59 = vpop.f32.mrb[193].mxu0  ;;  %8246 = vmatmul.mubr.f32.gmra.mrb[42].mxu0 %v6401_v63  ;;  %v5724_v63 = vld [vmem:[#allocation2 + $0xe5] sm:$0xff] }
 0x92a   : > { %v4860_v10 = vpop.f32.mrb[226].mxu1  ;;  %8248 = vmatprep.mubr.f32.mxu0 %v6402_v26  ;;  %v5688_v59 = vld [vmem:[#allocation2 + $0xe4] sm:$0xff] }
 0x92b   : > { %v13754_v52 = vadd.f32 %v13671_v53, %v4860_v10  ;;  %v4862_v62 = vpop.f32.mrb[227].mxu1  ;;  %5991 = vmatmul.mubr.f32.gmra.mrb[76].mxu1 %v5685_v17  ;;  %v6409_v10 = vld [vmem:[%s9504_s24 + $0x98] sm:$0xff] }
 0x92c   : > { %v5260_v1 = vpop.f32.mrb[194].mxu0  ;;  %5995 = vmatprep.mubr.f32.mxu1 %v5722_v23  ;;  %v6410_v62 = vld [vmem:[%s9504_s24 + $0xa0] sm:$0xff] }
 0x92d   : > { %v13758_v6 = vadd.f32 %v5260_v1, %v13593_v61  ;;  %v5262_v14 = vpop.f32.mrb[195].mxu0  ;;  %8249 = vmatmul.mubr.f32.gmra.mrb[44].mxu0 %v6403_v39  ;;  %v5725_v39 = vld [vmem:[#allocation2 + $0xed] sm:$0xff] }
 0x92e   : > { %v4865_v56 = vpop.f32.mrb[228].mxu1  ;;  %8251 = vmatprep.mubr.f32.mxu0 %v6404_v29  ;;  %v5689_v14 = vld [vmem:[#allocation2 + $0xec] sm:$0xff] }
 0x92f   : > { %v13762_v53 = vadd.f32 %v13669_v38, %v4865_v56  ;;  %v4867_v18 = vpop.f32.mrb[229].mxu1  ;;  %5996 = vmatmul.mubr.f32.gmra.mrb[78].mxu1 %v5686_v19  ;;  %v6411_v56 = vld [vmem:[%s9504_s24 + $0xa8] sm:$0xff] }
 0x930   : > { %v5265_v47 = vpop.f32.mrb[196].mxu0  ;;  %6000 = vmatprep.mubr.f32.mxu1 %v5723_v27  ;;  %v6412_v18 = vld [vmem:[%s9504_s24 + $0xb0] sm:$0xff] }
 0x931   : > { %v13766_v61 = vadd.f32 %v5265_v47, %v13607_v24  ;;  %v5267_v46 = vpop.f32.mrb[197].mxu0  ;;  %8252 = vmatmul.mubr.f32.gmra.mrb[46].mxu0 %v6405_v49  ;;  %v5726_v49 = vld [vmem:[#allocation2 + $0xf5] sm:$0xff] }
 0x932   : > { %v4870_v7 = vpop.f32.mrb[230].mxu1  ;;  %8254 = vmatprep.mubr.f32.mxu0 %v6406_v42  ;;  %v5690_v46 = vld [vmem:[#allocation2 + $0xf4] sm:$0xff] }
 0x933   : > { %v13770_v38 = vadd.f32 %v13678_v3, %v4870_v7  ;;  %v4872_v8 = vpop.f32.mrb[231].mxu1  ;;  %6001 = vmatmul.mubr.f32.gmra.mrb[80].mxu1 %v5687_v40  ;;  %v6413_v7 = vld [vmem:[%s9504_s24 + $0xb8] sm:$0xff] }
 0x934   : > { %v5270_v36 = vpop.f32.mrb[198].mxu0  ;;  %6005 = vmatprep.mubr.f32.mxu1 %v5724_v63  ;;  %v6414_v8 = vld [vmem:[%s9504_s24 + $0xc0] sm:$0xff] }
 0x935   : > { %v13774_v24 = vadd.f32 %v5270_v36, %v13621_v35  ;;  %v5272_v26 = vpop.f32.mrb[199].mxu0  ;;  %8255 = vmatmul.mubr.f32.gmra.mrb[48].mxu0 %v6407_v4  ;;  %v5727_v4 = vld [vmem:[#allocation2 + $0xfd] sm:$0xff] }
 0x936   : > { %v4875_v22 = vpop.f32.mrb[232].mxu1  ;;  %8257 = vmatprep.mubr.f32.mxu0 %v6408_v28  ;;  %v5691_v26 = vld [vmem:[#allocation2 + $0xfc] sm:$0xff] }
 0x937   : > { %v13778_v3 = vadd.f32 %v13676_v20, %v4875_v22  ;;  %v4877_v17 = vpop.f32.mrb[233].mxu1  ;;  %6006 = vmatmul.mubr.f32.gmra.mrb[82].mxu1 %v5688_v59  ;;  %v6415_v22 = vld [vmem:[%s9504_s24 + $0xc8] sm:$0xff] }
 0x938   : > { %v5275_v23 = vpop.f32.mrb[200].mxu0  ;;  %6010 = vmatprep.mubr.f32.mxu1 %v5725_v39  ;;  %v6416_v17 = vld [vmem:[%s9504_s24 + $0xd0] sm:$0xff] }
 0x939   : > { %v13782_v35 = vadd.f32 %v5275_v23, %v13636_v45  ;;  %v5277_v29 = vpop.f32.mrb[201].mxu0  ;;  %8258 = vmatmul.mubr.f32.gmra.mrb[50].mxu0 %v6409_v10  ;;  %v5728_v10 = vld [vmem:[#allocation2 + $0x105] sm:$0xff] }
 0x93a   : > { %v4880_v1 = vpop.f32.mrb[234].mxu1  ;;  %8260 = vmatprep.mubr.f32.mxu0 %v6410_v62  ;;  %v5692_v29 = vld [vmem:[#allocation2 + $0x104] sm:$0xff] }
 0x93b   : > { %v13786_v20 = vadd.f32 %v13685_v12, %v4880_v1  ;;  %v4882_v19 = vpop.f32.mrb[235].mxu1  ;;  %6011 = vmatmul.mubr.f32.gmra.mrb[84].mxu1 %v5689_v14  ;;  %v6417_v1 = vld [vmem:[%s9504_s24 + $0xd8] sm:$0xff] }
 0x93c   : > { %v5280_v27 = vpop.f32.mrb[202].mxu0  ;;  %6015 = vmatprep.mubr.f32.mxu1 %v5726_v49  ;;  %v6418_v19 = vld [vmem:[%s9504_s24 + $0xe0] sm:$0xff] }
 0x93d   : > { %v13790_v45 = vadd.f32 %v5280_v27, %v13645_v58  ;;  %v5282_v42 = vpop.f32.mrb[203].mxu0  ;;  %8261 = vmatmul.mubr.f32.gmra.mrb[52].mxu0 %v6411_v56  ;;  %v5729_v56 = vld [vmem:[#allocation2 + $0x10d] sm:$0xff] }
 0x93e   : > { %v4885_v47 = vpop.f32.mrb[236].mxu1  ;;  %8263 = vmatprep.mubr.f32.mxu0 %v6412_v18  ;;  %v5693_v42 = vld [vmem:[#allocation2 + $0x10c] sm:$0xff] }
 0x93f   : > { %v13794_v12 = vadd.f32 %v13683_v60, %v4885_v47  ;;  %v4887_v40 = vpop.f32.mrb[237].mxu1  ;;  %6016 = vmatmul.mubr.f32.gmra.mrb[86].mxu1 %v5690_v46  ;;  %v6419_v47 = vld [vmem:[%s9504_s24 + $0xe8] sm:$0xff] }
 0x940   : > { %v5285_v63 = vpop.f32.mrb[204].mxu0  ;;  %6020 = vmatprep.mubr.f32.mxu1 %v5727_v4  ;;  %v6420_v40 = vld [vmem:[%s9504_s24 + $0xf0] sm:$0xff] }
 0x941   : > { %v13798_v58 = vadd.f32 %v5285_v63, %v13653_v9  ;;  %v5287_v28 = vpop.f32.mrb[205].mxu0  ;;  %8264 = vmatmul.mubr.f32.gmra.mrb[54].mxu0 %v6413_v7  ;;  %v5730_v7 = vld [vmem:[#allocation2 + $0x115] sm:$0xff] }
 0x942   : > { %v4890_v36 = vpop.f32.mrb[238].mxu1  ;;  %8266 = vmatprep.mubr.f32.mxu0 %v6414_v8  ;;  %v5694_v28 = vld [vmem:[#allocation2 + $0x114] sm:$0xff] }
 0x943   : > { %v13802_v60 = vadd.f32 %v13692_v32, %v4890_v36  ;;  %v4892_v59 = vpop.f32.mrb[239].mxu1  ;;  %6021 = vmatmul.mubr.f32.gmra.mrb[88].mxu1 %v5691_v26  ;;  %v6421_v36 = vld [vmem:[%s9504_s24 + $0xf8] sm:$0xff] }
 0x944   : > { %v5290_v39 = vpop.f32.mrb[206].mxu0  ;;  %6025 = vmatprep.mubr.f32.mxu1 %v5728_v10  ;;  %v6422_v59 = vld [vmem:[%s9504_s24 + $0x100] sm:$0xff] }
 0x945   : > { %v13806_v9 = vadd.f32 %v5290_v39, %v13660_v51  ;;  %v5292_v62 = vpop.f32.mrb[207].mxu0  ;;  %8267 = vmatmul.mubr.f32.gmra.mrb[56].mxu0 %v6415_v22  ;;  %v5731_v22 = vld [vmem:[#allocation2 + $0x11d] sm:$0xff] }
 0x946   : > { %v4895_v23 = vpop.f32.mrb[240].mxu1  ;;  %8269 = vmatprep.mubr.f32.mxu0 %v6416_v17  ;;  %v5695_v62 = vld [vmem:[#allocation2 + $0x11c] sm:$0xff] }
 0x947   : > { %v13810_v32 = vadd.f32 %v13690_v57, %v4895_v23  ;;  %v4897_v14 = vpop.f32.mrb[241].mxu1  ;;  %6026 = vmatmul.mubr.f32.gmra.mrb[90].mxu1 %v5692_v29  ;;  %v6423_v23 = vld [vmem:[%s9504_s24 + $0x108] sm:$0xff] }
 0x948   : > { %v5295_v49 = vpop.f32.mrb[208].mxu0  ;;  %6030 = vmatprep.mubr.f32.mxu1 %v5729_v56  ;;  %v6424_v14 = vld [vmem:[%s9504_s24 + $0x110] sm:$0xff] }
 0x949   : > { %v13814_v51 = vadd.f32 %v5295_v49, %v13667_v13  ;;  %v5297_v18 = vpop.f32.mrb[209].mxu0  ;;  %8270 = vmatmul.mubr.f32.gmra.mrb[58].mxu0 %v6417_v1  ;;  %v5732_v1 = vld [vmem:[#allocation2 + $0x125] sm:$0xff] }
 0x94a   : > { %v4900_v27 = vpop.f32.mrb[242].mxu1  ;;  %8272 = vmatprep.mubr.f32.mxu0 %v6418_v19  ;;  %v5696_v18 = vld [vmem:[#allocation2 + $0x124] sm:$0xff] }
 0x94b   : > { %v13818_v57 = vadd.f32 %v13700_v5, %v4900_v27  ;;  %v4902_v46 = vpop.f32.mrb[243].mxu1  ;;  %6031 = vmatmul.mubr.f32.gmra.mrb[92].mxu1 %v5693_v42  ;;  %v6425_v27 = vld [vmem:[%s9504_s24 + $0x118] sm:$0xff] }
 0x94c   : > { %v5300_v4 = vpop.f32.mrb[210].mxu0  ;;  %6035 = vmatprep.mubr.f32.mxu1 %v5730_v7 }
 0x94d   : > { %v13822_v13 = vadd.f32 %v5300_v4, %v13674_v54  ;;  %v5302_v8 = vpop.f32.mrb[211].mxu0  ;;  %8273 = vmatmul.mubr.f32.gmra.mrb[60].mxu0 %v6419_v47  ;;  %v5733_v47 = vld [vmem:[#allocation2 + $0x12d] sm:$0xff] }
 0x94e   : > { %v4905_v63 = vpop.f32.mrb[244].mxu1  ;;  %8275 = vmatprep.mubr.f32.mxu0 %v6420_v40  ;;  %v5697_v8 = vld [vmem:[#allocation2 + $0x12c] sm:$0xff] }
 0x94f   : > { %v13826_v5 = vadd.f32 %v13698_v15, %v4905_v63  ;;  %v4907_v26 = vpop.f32.mrb[245].mxu1  ;;  %6036 = vmatmul.mubr.f32.gmra.mrb[94].mxu1 %v5694_v28 }
 0x950   : > { %v5305_v10 = vpop.f32.mrb[212].mxu0  ;;  %6040 = vmatprep.mubr.f32.mxu1 %v5731_v22 }
 0x951   : > { %v13830_v54 = vadd.f32 %v5305_v10, %v13681_v21  ;;  %v5307_v17 = vpop.f32.mrb[213].mxu0  ;;  %8276 = vmatmul.mubr.f32.gmra.mrb[62].mxu0 %v6421_v36  ;;  %v5698_v36 = vld [vmem:[#allocation2 + $0x134] sm:$0xff] }
 0x952   : > { %v4910_v39 = vpop.f32.mrb[246].mxu1  ;;  %8278 = vmatprep.mubr.f32.mxu0 %v6422_v59  ;;  %v5735_v59 = vld [vmem:[#allocation2 + $0x13d] sm:$0xff] }
 0x953   : > { %v13834_v15 = vadd.f32 %v13709_v48, %v4910_v39  ;;  %v4912_v29 = vpop.f32.mrb[247].mxu1  ;;  %6041 = vmatmul.mubr.f32.gmra.mrb[96].mxu1 %v5695_v62 }
 0x954   : > { %v5310_v56 = vpop.f32.mrb[214].mxu0  ;;  %6045 = vmatprep.mubr.f32.mxu1 %v5732_v1 }
 0x955   : > { %v13838_v19 = vadd.f32 %v5310_v56, %v13688_v0  ;;  %v5312_v21 = vpop.f32.mrb[215].mxu0  ;;  %8279 = vmatmul.mubr.f32.gmra.mrb[64].mxu0 %v6423_v23  ;;  %v5734_v0 = vld [vmem:[#allocation2 + $0x135] sm:$0xff] }
 0x956   : > { %v4915_v49 = vpop.f32.mrb[248].mxu1  ;;  %8281 = vmatprep.mubr.f32.mxu0 %v6424_v14  ;;  %v5766_v14 = vld [vmem:[#allocation2 + $0x116] sm:$0xff] }
 0x957   : > { %v13842_v42 = vadd.f32 %v13707_v34, %v4915_v49  ;;  %v4917_v48 = vpop.f32.mrb[249].mxu1  ;;  %6046 = vmatmul.mubr.f32.gmra.mrb[98].mxu1 %v5696_v18 }
 0x958   : > { %v5315_v46 = vpop.f32.mrb[216].mxu0  ;;  %6050 = vmatprep.mubr.f32.mxu1 %v5733_v47 }
 0x959   : > { %v13845_v7 = vadd.f32 %v5315_v46, %v13695_v37  ;;  %v5317_v40 = vpop.f32.mrb[217].mxu0  ;;  %8282 = vmatmul.mubr.f32.gmra.mrb[66].mxu0 %v6425_v27 }
 0x95a   : > { %v4920_v4 = vpop.f32.mrb[250].mxu1 }
 0x95b   : > { %v13848_v63 = vadd.f32 %v13718_v31, %v4920_v4  ;;  %v4922_v28 = vpop.f32.mrb[251].mxu1  ;;  %6051 = vmatmul.mubr.f32.gmra.mrb[100].mxu1 %v5697_v8  ;;  %v5699_v31 = vld [vmem:[#allocation2 + $0x13c] sm:$0xff]  ;;  %v5769_v4 = vld [vmem:[#allocation2 + $0x12e] sm:$0xff] }
 0x95c   : > { %v5320_v34 = vpop.f32.mrb[218].mxu0  ;;  %6055 = vmatprep.mubr.f32.mxu1 %v5734_v0  ;;  %v5770_v0 = vld [vmem:[#allocation2 + $0x136] sm:$0xff] }
 0x95d   : > { %v13851_v26 = vadd.f32 %v5320_v34, %v13704_v44  ;;  %v5322_v22 = vpop.f32.mrb[219].mxu0 }
 0x95e   : > { %v4925_v37 = vpop.f32.mrb[252].mxu1 }
 0x95f   : > { %v13854_v10 = vadd.f32 %v13716_v41, %v4925_v37  ;;  %v4927_v17 = vpop.f32.mrb[253].mxu1  ;;  %6056 = vmatmul.mubr.f32.gmra.mrb[102].mxu1 %v5698_v36  ;;  %v5771_v36 = vld [vmem:[#allocation2 + $0x13e] sm:$0xff] }
 0x960   : > { %v5325_v39 = vpop.f32.mrb[220].mxu0  ;;  %6060 = vmatprep.mubr.f32.mxu1 %v5735_v59 }
 0x961   : > { %v13857_v62 = vadd.f32 %v5325_v39, %v13713_v43  ;;  %v5327_v23 = vpop.f32.mrb[221].mxu0  ;;  %v5767_v43 = vld [vmem:[#allocation2 + $0x11e] sm:$0xff] }
 0x962   : > { %v8060_v29 = vpop.f32.mrb[254].mxu1 }
 0x963   : > { %v13860_v1 = vadd.f32 %v8060_v29, %v13734_v2  ;;  %v5485_v44 = vpop.f32.mrb[255].mxu1  ;;  %6061 = vmatmul.mubr.f32.gmra.mrb[104].mxu1 %v5699_v31  ;;  %v5768_v2 = vld [vmem:[#allocation2 + $0x126] sm:$0xff] }
 0x964   : > { %v5330_v56 = vpop.f32.mrb[222].mxu0  ;;  %v13863_v41 = vadd.f32 %v5485_v44, %v13726_v55  ;;  %8189 = vmatprep.mubr.f32.mxu1 %v5766_v14 }
 0x965   : > { %v13866_v21 = vadd.f32 %v5330_v56, %v13722_v30  ;;  %v5332_v49 = vpop.f32.mrb[223].mxu0 }
 0x966   : > { %v8063_v18 = vpop.f32.mrb[0].mxu1 }
 0x967   : > { %v13869_v27 = vadd.f32 %v8063_v18, %v13750_v11  ;;  %v5495_v48 = vpop.f32.mrb[1].mxu1  ;;  %8190 = vmatmul.mubr.f32.vlgmr.msra.gmra.mrb[106].mxu1 %v5767_v43 }
 0x968   : > { %v5335_v47 = vpop.f32.mrb[224].mxu0  ;;  %v13872_v46 = vadd.f32 %v5495_v48, %v13742_v25  ;;  %8192 = vmatprep.mubr.f32.mxu1 %v5768_v2 }
 0x969   : > { %v5336_v55 = vadd.f32 %v5335_v47, %v13730_v16  ;;  %v5337_v40 = vpop.f32.mrb[225].mxu0 }
 0x96a   : > { %v8066_v30 = vpop.f32.mrb[2].mxu1 }
 0x96b   : > { %v13876_v8 = vadd.f32 %v8066_v30, %v13766_v61  ;;  %v5505_v28 = vpop.f32.mrb[3].mxu1  ;;  %8193 = vmatmul.mubr.f32.gmra.mrb[108].mxu1 %v5769_v4 }
 0x96c   : > { %v5340_v11 = vpop.f32.mrb[226].mxu0  ;;  %v13879_v34 = vadd.f32 %v5505_v28, %v13758_v6  ;;  %8195 = vmatprep.mubr.f32.mxu1 %v5770_v0 }
 0x96d   : > { %v5341_v25 = vadd.f32 %v5340_v11, %v13738_v50  ;;  %v5342_v22 = vpop.f32.mrb[227].mxu0 }
 0x96e   : > { %v8069_v59 = vpop.f32.mrb[4].mxu1 }
 0x96f   : > { %v13883_v16 = vadd.f32 %v8069_v59, %v13782_v35  ;;  %v5515_v37 = vpop.f32.mrb[5].mxu1  ;;  %8196 = vmatmul.mubr.f32.gmra.mrb[110].mxu1 %v5771_v36 }
 0x970   : > { %v5345_v17 = vpop.f32.mrb[228].mxu0  ;;  %v13886_v61 = vadd.f32 %v5515_v37, %v13774_v24 }
 0x971   : > { %v5346_v39 = vadd.f32 %v5345_v17, %v13746_v33  ;;  %v5347_v31 = vpop.f32.mrb[229].mxu0 }
 0x972   : > { %v8072_v6 = vpop.f32.mrb[6].mxu1 }
 0x973   : > { %v13890_v23 = vadd.f32 %v8072_v6, %v13798_v58  ;;  %v5525_v29 = vpop.f32.mrb[7].mxu1 }
 0x974   : > { %v5350_v50 = vpop.f32.mrb[230].mxu0  ;;  %v13893_v44 = vadd.f32 %v5525_v29, %v13790_v45 }
 0x975   : > { %v5351_v35 = vadd.f32 %v5350_v50, %v13754_v52  ;;  %v5352_v14 = vpop.f32.mrb[231].mxu0 }
 0x976   : > { %v8075_v56 = vpop.f32.mrb[8].mxu1 }
 0x977   : > { %v13897_v49 = vadd.f32 %v8075_v56, %v13814_v51  ;;  %v5535_v24 = vpop.f32.mrb[9].mxu1 }
 0x978   : > { %v5355_v18 = vpop.f32.mrb[232].mxu0  ;;  %v13900_v33 = vadd.f32 %v5535_v24, %v13806_v9 }
 0x979   : > { %v5356_v58 = vadd.f32 %v5355_v18, %v13762_v53  ;;  %v5357_v43 = vpop.f32.mrb[233].mxu0 }
 0x97a   : > { %v8078_v48 = vpop.f32.mrb[10].mxu1 }
 0x97b   : > { %v13904_v2 = vadd.f32 %v8078_v48, %v13830_v54  ;;  %v5545_v45 = vpop.f32.mrb[11].mxu1 }
 0x97c   : > { %v5360_v47 = vpop.f32.mrb[234].mxu0  ;;  %v13907_v52 = vadd.f32 %v5545_v45, %v13822_v13 }
 0x97d   : > { %v5361_v51 = vadd.f32 %v5360_v47, %v13770_v38  ;;  %v5362_v40 = vpop.f32.mrb[235].mxu0 }
 0x97e   : > { %v8081_v0 = vpop.f32.mrb[12].mxu1 }
 0x97f   : > { %v13911_v30 = vadd.f32 %v8081_v0, %v13845_v7  ;;  %v5555_v9 = vpop.f32.mrb[13].mxu1 }
 0x980   : > { %v5365_v4 = vpop.f32.mrb[236].mxu0  ;;  %v13914_v53 = vadd.f32 %v5555_v9, %v13838_v19 }
 0x981   : > { %v5366_v54 = vadd.f32 %v5365_v4, %v13778_v3  ;;  %v5367_v28 = vpop.f32.mrb[237].mxu0 }
 0x982   : > { %v8084_v11 = vpop.f32.mrb[14].mxu1 }
 0x983   : > { %v13918_v36 = vadd.f32 %v8084_v11, %v13857_v62  ;;  %v5565_v13 = vpop.f32.mrb[15].mxu1 }
 0x984   : > { %v5370_v22 = vpop.f32.mrb[238].mxu0  ;;  %v13921_v38 = vadd.f32 %v5565_v13, %v13851_v26 }
 0x985   : > { %v5371_v7 = vadd.f32 %v5370_v22, %v13786_v20  ;;  %v5372_v59 = vpop.f32.mrb[239].mxu0 }
 0x986   : > { %v8087_v37 = vpop.f32.mrb[16].mxu1 }
 0x987   : > { %v13924_v17 = vadd.f32 %v8087_v37, %v5336_v55  ;;  %v5575_v19 = vpop.f32.mrb[17].mxu1 }
 0x988   : > { %v5375_v31 = vpop.f32.mrb[240].mxu0  ;;  %v13927_v3 = vadd.f32 %v5575_v19, %v13866_v21 }
 0x989   : > { %v5376_v6 = vadd.f32 %v5375_v31, %v13794_v12  ;;  %v5377_v62 = vpop.f32.mrb[241].mxu0 }
 0x98a   : > { %v8090_v29 = vpop.f32.mrb[18].mxu1 }
 0x98b   : > { %v13930_v50 = vadd.f32 %v8090_v29, %v5346_v39  ;;  %v5585_v14 = vpop.f32.mrb[19].mxu1 }
 0x98c   : > { %v5380_v26 = vpop.f32.mrb[242].mxu0  ;;  %v13932_v56 = vadd.f32 %v5585_v14, %v5341_v25 }
 0x98d   : > { %v5381_v20 = vadd.f32 %v5380_v26, %v13802_v60  ;;  %v5382_v24 = vpop.f32.mrb[243].mxu0 }
 0x98e   : > { %v8093_v55 = vpop.f32.mrb[20].mxu1 }
 0x98f   : > { %v13935_v18 = vadd.f32 %v8093_v55, %v5356_v58  ;;  %v5595_v43 = vpop.f32.mrb[21].mxu1 }
 0x990   : > { %v5385_v48 = vpop.f32.mrb[244].mxu0  ;;  %v13937_v21 = vadd.f32 %v5595_v43, %v5351_v35 }
 0x991   : > { %v5386_v12 = vadd.f32 %v5385_v48, %v13810_v32  ;;  %v5387_v45 = vpop.f32.mrb[245].mxu0 }
 0x992   : > { %v8096_v47 = vpop.f32.mrb[22].mxu1 }
 0x993   : > { %v13940_v39 = vadd.f32 %v8096_v47, %v5366_v54  ;;  %v5605_v40 = vpop.f32.mrb[23].mxu1 }
 0x994   : > { %v5390_v0 = vpop.f32.mrb[246].mxu0  ;;  %v13942_v25 = vadd.f32 %v5605_v40, %v5361_v51 }
 0x995   : > { %v5391_v60 = vadd.f32 %v5390_v0, %v13818_v57  ;;  %v5392_v9 = vpop.f32.mrb[247].mxu0 }
 0x996   : > { %v8099_v4 = vpop.f32.mrb[24].mxu1 }
 0x997   : > { %v13945_v58 = vadd.f32 %v8099_v4, %v5376_v6  ;;  %v5615_v28 = vpop.f32.mrb[25].mxu1 }
 0x998   : > { %v5395_v11 = vpop.f32.mrb[248].mxu0  ;;  %v13947_v35 = vadd.f32 %v5615_v28, %v5371_v7 }
 0x999   : > { %v5396_v32 = vadd.f32 %v5395_v11, %v13826_v5  ;;  %v5397_v13 = vpop.f32.mrb[249].mxu0 }
 0x99a   : > { %v8102_v22 = vpop.f32.mrb[26].mxu1 }
 0x99b   : > { %v13950_v54 = vadd.f32 %v8102_v22, %v5386_v12  ;;  %v5625_v59 = vpop.f32.mrb[27].mxu1 }
 0x99c   : > { %v5400_v37 = vpop.f32.mrb[250].mxu0  ;;  %v13952_v51 = vadd.f32 %v5625_v59, %v5381_v20 }
 0x99d   : > { %v5401_v57 = vadd.f32 %v5400_v37, %v13834_v15  ;;  %v5402_v19 = vpop.f32.mrb[251].mxu0 }
 0x99e   : > { %v8105_v31 = vpop.f32.mrb[28].mxu1 }
 0x99f   : > { %v13955_v6 = vadd.f32 %v8105_v31, %v5396_v32  ;;  %v5635_v62 = vpop.f32.mrb[29].mxu1 }
 0x9a0   : > { %v5405_v29 = vpop.f32.mrb[252].mxu0  ;;  %v13957_v7 = vadd.f32 %v5635_v62, %v5391_v60 }
 0x9a1   : > { %v5406_v5 = vadd.f32 %v5405_v29, %v13842_v42  ;;  %v5407_v14 = vpop.f32.mrb[253].mxu0 }
 0x9a2   : > { %v8108_v26 = vpop.f32.mrb[30].mxu1 }
 0x9a3   : > { %v13960_v24 = vadd.f32 %v8108_v26, %v5406_v5  ;;  %v5645_v55 = vpop.f32.mrb[31].mxu1 }
 0x9a4   : > { %v5410_v43 = vpop.f32.mrb[254].mxu0  ;;  %v13962_v20 = vadd.f32 %v5645_v55, %v5401_v57 }
 0x9a5   : > { %v5411_v15 = vadd.f32 %v5410_v43, %v13848_v63  ;;  %v5412_v48 = vpop.f32.mrb[255].mxu0 }
 0x9a6   : > { %v8111_v12 = vpop.f32.mrb[32].mxu1 }
 0x9a7   : > { %v5655_v45 = vpop.f32.mrb[33].mxu1 }
 0x9a8   : > { %v5415_v47 = vpop.f32.mrb[0].mxu0  ;;  %v13965_v40 = vadd.f32 %v5655_v45, %v5411_v15 }
 0x9a9   : > { %v5416_v0 = vadd.f32 %v5415_v47, %v13854_v10  ;;  %v5417_v60 = vpop.f32.mrb[1].mxu0 }
 0x9aa   : > { %14719 = vst [vmem:[#allocation4_spill] sm:$0xff] %v13965_v40  ;;  %v5887_v42 = vpop.f32.mrb[34].mxu1 }
 0x9ab   : > { %v13968_v9 = vadd.f32 %v8111_v12, %v5416_v0  ;;  %v5889_v4 = vpop.f32.mrb[35].mxu1 }
 0x9ac   : > { %v8146_v28 = vpop.f32.mrb[2].mxu0 }
 0x9ad   : > { %v6132_v11 = vpop.f32.mrb[3].mxu0 }
 0x9ae   : > { %v6133_v32 = vadd.f32 %v6132_v11, %v5887_v42  ;;  %v5892_v13 = vpop.f32.mrb[36].mxu1 }
 0x9af   : > { %v6138_v22 = vadd.f32 %v8146_v28, %v5892_v13  ;;  %v5894_v59 = vpop.f32.mrb[37].mxu1 }
 0x9b0   : > { %v13971_v63 = vadd.f32 %v6133_v32, %v13863_v41  ;;  %v8149_v37 = vpop.f32.mrb[4].mxu0 }
 0x9b1   : > { %v13974_v57 = vadd.f32 %v6138_v22, %v13860_v1  ;;  %v6142_v19 = vpop.f32.mrb[5].mxu0 }
 0x9b2   : > { %v5897_v10 = vpop.f32.mrb[38].mxu1 }
 0x9b3   : > { %v6143_v31 = vadd.f32 %v6142_v19, %v5897_v10  ;;  %v5899_v62 = vpop.f32.mrb[39].mxu1 }
 0x9b4   : > { %v8152_v29 = vpop.f32.mrb[6].mxu0 }
 0x9b5   : > { %v13977_v5 = vadd.f32 %v6143_v31, %v13872_v46  ;;  %v6152_v14 = vpop.f32.mrb[7].mxu0 }
 0x9b6   : > { %v5902_v26 = vpop.f32.mrb[40].mxu1 }
 0x9b7   : > { %v6148_v55 = vadd.f32 %v8149_v37, %v5902_v26  ;;  %v5904_v43 = vpop.f32.mrb[41].mxu1 }
 0x9b8   : > { %v8155_v15 = vpop.f32.mrb[8].mxu0 }
 0x9b9   : > { %v13980_v41 = vadd.f32 %v6148_v55, %v13869_v27  ;;  %v6162_v48 = vpop.f32.mrb[9].mxu0 }
 0x9ba   : > { %v5907_v12 = vpop.f32.mrb[42].mxu1 }
 0x9bb   : > { %v6153_v1 = vadd.f32 %v6152_v14, %v5907_v12  ;;  %v5909_v45 = vpop.f32.mrb[43].mxu1 }
 0x9bc   : > { %v8158_v47 = vpop.f32.mrb[10].mxu0 }
 0x9bd   : > { %v13983_v0 = vadd.f32 %v6153_v1, %v13879_v34  ;;  %v6172_v60 = vpop.f32.mrb[11].mxu0 }
 0x9be   : > { %v5912_v42 = vpop.f32.mrb[44].mxu1 }
 0x9bf   : > { %v6158_v46 = vadd.f32 %v8152_v29, %v5912_v42  ;;  %v5914_v4 = vpop.f32.mrb[45].mxu1 }
 0x9c0   : > { %v8161_v28 = vpop.f32.mrb[12].mxu0 }
 0x9c1   : > { %v13986_v11 = vadd.f32 %v6158_v46, %v13876_v8  ;;  %v6182_v32 = vpop.f32.mrb[13].mxu0 }
 0x9c2   : > { %v5917_v13 = vpop.f32.mrb[46].mxu1 }
 0x9c3   : > { %v6163_v27 = vadd.f32 %v6162_v48, %v5917_v13  ;;  %v5919_v22 = vpop.f32.mrb[47].mxu1 }
 0x9c4   : > { %v8164_v59 = vpop.f32.mrb[14].mxu0 }
 0x9c5   : > { %v13989_v37 = vadd.f32 %v6163_v27, %v13886_v61  ;;  %v6192_v19 = vpop.f32.mrb[15].mxu0 }
 0x9c6   : > { %v5922_v10 = vpop.f32.mrb[48].mxu1 }
 0x9c7   : > { %v6168_v34 = vadd.f32 %v8155_v15, %v5922_v10  ;;  %v5924_v31 = vpop.f32.mrb[49].mxu1 }
 0x9c8   : > { %v8167_v62 = vpop.f32.mrb[16].mxu0 }
 0x9c9   : > { %v13992_v29 = vadd.f32 %v6168_v34, %v13883_v16  ;;  %v6202_v14 = vpop.f32.mrb[17].mxu0 }
 0x9ca   : > { %v5927_v26 = vpop.f32.mrb[50].mxu1 }
 0x9cb   : > { %v6173_v8 = vadd.f32 %v6172_v60, %v5927_v26  ;;  %v5929_v55 = vpop.f32.mrb[51].mxu1 }
 0x9cc   : > { %v13994_v43 = vpop.f32.mrb[18].mxu0 }
 0x9cd   : > { %v13997_v48 = vadd.f32 %v6173_v8, %v13893_v44  ;;  %v6212_v12 = vpop.f32.mrb[19].mxu0 }
 0x9ce   : > { %v5932_v61 = vpop.f32.mrb[52].mxu1 }
 0x9cf   : > { %v6178_v1 = vadd.f32 %v8158_v47, %v5932_v61  ;;  %v5934_v45 = vpop.f32.mrb[53].mxu1 }
 0x9d0   : > { %v13999_v42 = vpop.f32.mrb[20].mxu0 }
 0x9d1   : > { %v14002_v15 = vadd.f32 %v6178_v1, %v13890_v23  ;;  %v14004_v16 = vpop.f32.mrb[21].mxu0 }
 0x9d2   : > { %v5937_v46 = vpop.f32.mrb[54].mxu1 }
 0x9d3   : > { %v6183_v4 = vadd.f32 %v6182_v32, %v5937_v46  ;;  %v5939_v60 = vpop.f32.mrb[55].mxu1 }
 0x9d4   : > { %v14006_v13 = vpop.f32.mrb[22].mxu0 }
 0x9d5   : > { %v14009_v27 = vadd.f32 %v6183_v4, %v13900_v33  ;;  %v14011_v44 = vpop.f32.mrb[23].mxu0 }
 0x9d6   : > { %v5942_v22 = vpop.f32.mrb[56].mxu1 }
 0x9d7   : > { %v6188_v47 = vadd.f32 %v8161_v28, %v5942_v22  ;;  %v5944_v10 = vpop.f32.mrb[57].mxu1 }
 0x9d8   : > { %v14013_v34 = vpop.f32.mrb[24].mxu0 }
 0x9d9   : > { %v14016_v23 = vadd.f32 %v6188_v47, %v13897_v49  ;;  %v14018_v31 = vpop.f32.mrb[25].mxu0 }
 0x9da   : > { %v5947_v26 = vpop.f32.mrb[58].mxu1 }
 0x9db   : > { %v6193_v32 = vadd.f32 %v6192_v19, %v5947_v26  ;;  %v5949_v8 = vpop.f32.mrb[59].mxu1  ;;  %v14044_v26 = vld [vmem:[%s14249_s13] ss:$0 sm:$0xff] }
 0x9dc   : > { %v14020_v55 = vpop.f32.mrb[26].mxu0 }
 0x9dd   : > { %v14023_v33 = vadd.f32 %v6193_v32, %v13907_v52  ;;  %v14025_v61 = vpop.f32.mrb[27].mxu0  ;;  %v14049_v32 = vld [vmem:[%s14247_s11] ss:$0 sm:$0xff] }
 0x9de   : > { %v5952_v1 = vpop.f32.mrb[60].mxu1 }
 0x9df   : > { %v6198_v28 = vadd.f32 %v8164_v59, %v5952_v1  ;;  %v5954_v45 = vpop.f32.mrb[61].mxu1 }
 0x9e0   : > { %v14027_v46 = vpop.f32.mrb[28].mxu0 }
 0x9e1   : > { %v14030_v49 = vadd.f32 %v6198_v28, %v13904_v2  ;;  %v14032_v4 = vpop.f32.mrb[29].mxu0 }
 0x9e2   : > { %v5957_v60 = vpop.f32.mrb[62].mxu1 }
 0x9e3   : > { %v6203_v19 = vadd.f32 %v6202_v14, %v5957_v60  ;;  %v5959_v22 = vpop.f32.mrb[63].mxu1 }
 0x9e4   : > { %v14034_v47 = vpop.f32.mrb[30].mxu0 }
 0x9e5   : > { %v14037_v52 = vadd.f32 %v6203_v19, %v13914_v53  ;;  %v14039_v10 = vpop.f32.mrb[31].mxu0  ;;  %v6355_v53 = vadd.f32 %v14049_v32, %v13974_v57 }
 0x9e6   : > { %v5962_v59 = vpop.f32.mrb[64].mxu1 }
 0x9e7   : > { %v6208_v2 = vadd.f32 %v8167_v62, %v5962_v59  ;;  %v5964_v14 = vpop.f32.mrb[65].mxu1  ;;  %v6354_v62 = vadd.f32 %v14049_v32, %v13971_v63 }
 0x9e8   : > { %v8232_v8 = vpop.f32.mrb[32].mxu0 }
 0x9e9   : > { %v14052_v1 = vadd.f32 %v6208_v2, %v13911_v30  ;;  %v6521_v28 = vadd.f32 %v8232_v8, %v14044_v26  ;;  %v6515_v45 = vpop.f32.mrb[33].mxu0  ;;  %v6357_v8 = vadd.f32 %v14049_v32, %v13980_v41 }
 0x9ea   : > { %v6516_v30 = vadd.f32 %v14044_v26, %v6515_v45  ;;  %v5967_v60 = vpop.f32.mrb[66].mxu1 }
 0x9eb   : > { %v6695_v19 = vadd.f32 %v6521_v28, %v6355_v53  ;;  %v6213_v22 = vadd.f32 %v6212_v12, %v5967_v60  ;;  %v5969_v57 = vpop.f32.mrb[67].mxu1  ;;  %v6356_v53 = vadd.f32 %v14049_v32, %v13977_v5 }
 0x9ec   : > { %v6694_v59 = vadd.f32 %v6516_v30, %v6354_v62  ;;  %v8235_v2 = vpop.f32.mrb[34].mxu0 }
 0x9ed   : > { %6731 = vst [vmem:[%s14062_s19 + $0x8] sm:$0xff] %v6695_v19  ;;  %v14069_v14 = vadd.f32 %v6213_v22, %v13921_v38  ;;  %v6531_v40 = vadd.f32 %v8235_v2, %v14044_v26  ;;  %v6525_v63 = vpop.f32.mrb[35].mxu0  ;;  %v6359_v19 = vadd.f32 %v14049_v32, %v13986_v11 }
 0x9ee   : > { %6730 = vst [vmem:[%s14062_s19] sm:$0xff] %v6694_v59  ;;  %v6526_v12 = vadd.f32 %v14044_v26, %v6525_v63  ;;  %v5972_v28 = vpop.f32.mrb[68].mxu1 }
 0x9ef   : > { %v6697_v45 = vadd.f32 %v6531_v40, %v6357_v8  ;;  %v6218_v62 = vadd.f32 %v13994_v43, %v5972_v28  ;;  %v5974_v30 = vpop.f32.mrb[69].mxu1  ;;  %v6358_v40 = vadd.f32 %v14049_v32, %v13983_v0  ;;  %v6360_v28 = vadd.f32 %v14049_v32, %v13989_v37 }
 0x9f0   : > { %v6696_v38 = vadd.f32 %v6526_v12, %v6356_v53  ;;  %v8238_v60 = vpop.f32.mrb[36].mxu0  ;;  %v6361_v53 = vadd.f32 %v14049_v32, %v13992_v29 }
 0x9f1   : > { %6733 = vst [vmem:[%s14062_s19 + $0x18] sm:$0xff] %v6697_v45  ;;  %v14081_v41 = vadd.f32 %v6218_v62, %v13918_v36  ;;  %v6541_v22 = vadd.f32 %v8238_v60, %v14044_v26  ;;  %v6535_v5 = vpop.f32.mrb[37].mxu0 }
 0x9f2   : > { %6732 = vst [vmem:[%s14062_s19 + $0x10] sm:$0xff] %v6696_v38  ;;  %v6536_v43 = vadd.f32 %v14044_v26, %v6535_v5  ;;  %v5977_v57 = vpop.f32.mrb[70].mxu1  ;;  %v6362_v5 = vadd.f32 %v14049_v32, %v13997_v48 }
 0x9f3   : > { %v6699_v59 = vadd.f32 %v6541_v22, %v6359_v19  ;;  %v6223_v2 = vadd.f32 %v14004_v16, %v5977_v57  ;;  %v5979_v8 = vpop.f32.mrb[71].mxu1  ;;  %v6363_v19 = vadd.f32 %v14049_v32, %v14002_v15 }
 0x9f4   : > { %v6698_v36 = vadd.f32 %v6536_v43, %v6358_v40  ;;  %v8241_v63 = vpop.f32.mrb[38].mxu0  ;;  %v6365_v8 = vadd.f32 %v14049_v32, %v14016_v23 }
 0x9f5   : > { %6735 = vst [vmem:[%s14062_s19 + $0x28] sm:$0xff] %v6699_v59  ;;  %v14093_v11 = vadd.f32 %v6223_v2, %v13927_v3  ;;  %v6551_v12 = vadd.f32 %v8241_v63, %v14044_v26  ;;  %v6545_v0 = vpop.f32.mrb[39].mxu0  ;;  %v6364_v63 = vadd.f32 %v14049_v32, %v14009_v27 }
 0x9f6   : > { %6734 = vst [vmem:[%s14062_s19 + $0x20] sm:$0xff] %v6698_v36  ;;  %v6546_v16 = vadd.f32 %v14044_v26, %v6545_v0  ;;  %v5982_v45 = vpop.f32.mrb[72].mxu1 }
 0x9f7   : > { %v6701_v62 = vadd.f32 %v6551_v12, %v6361_v53  ;;  %v6228_v30 = vadd.f32 %v13999_v42, %v5982_v45  ;;  %v5984_v38 = vpop.f32.mrb[73].mxu1  ;;  %v6367_v45 = vadd.f32 %v14049_v32, %v14030_v49 }
 0x9f8   : > { %v6700_v3 = vadd.f32 %v6546_v16, %v6360_v28  ;;  %v8244_v60 = vpop.f32.mrb[40].mxu0 }
 0x9f9   : > { %6737 = vst [vmem:[%s14062_s19 + $0x38] sm:$0xff] %v6701_v62  ;;  %v14105_v29 = vadd.f32 %v6228_v30, %v13924_v17  ;;  %v6561_v22 = vadd.f32 %v8244_v60, %v14044_v26  ;;  %v6555_v37 = vpop.f32.mrb[41].mxu0  ;;  %v6366_v30 = vadd.f32 %v14049_v32, %v14023_v33 }
 0x9fa   : > { %6736 = vst [vmem:[%s14062_s19 + $0x30] sm:$0xff] %v6700_v3  ;;  %v6556_v42 = vadd.f32 %v14044_v26, %v6555_v37  ;;  %v5987_v40 = vpop.f32.mrb[74].mxu1  ;;  %v6369_v37 = vadd.f32 %v14049_v32, %v14052_v1 }
 0x9fb   : > { %v6703_v43 = vadd.f32 %v6561_v22, %v6363_v19  ;;  %v6233_v57 = vadd.f32 %v14011_v44, %v5987_v40  ;;  %v5989_v59 = vpop.f32.mrb[75].mxu1 }
 0x9fc   : > { %v6702_v17 = vadd.f32 %v6556_v42, %v6362_v5  ;;  %v8247_v2 = vpop.f32.mrb[42].mxu0  ;;  %v6368_v42 = vadd.f32 %v14049_v32, %v14037_v52 }
 0x9fd   : > { %6739 = vst [vmem:[%s14062_s19 + $0x48] sm:$0xff] %v6703_v43  ;;  %v14117_v15 = vadd.f32 %v6233_v57, %v13932_v56  ;;  %v6571_v36 = vadd.f32 %v8247_v2, %v14044_v26  ;;  %v6565_v48 = vpop.f32.mrb[43].mxu0  ;;  %v6371_v2 = vadd.f32 %v14049_v32, %v14081_v41 }
 0x9fe   : > { %6738 = vst [vmem:[%s14062_s19 + $0x40] sm:$0xff] %v6702_v17  ;;  %v6566_v44 = vadd.f32 %v14044_v26, %v6565_v48  ;;  %v5992_v53 = vpop.f32.mrb[76].mxu1 }
 0x9ff   : > { %v6705_v12 = vadd.f32 %v6571_v36, %v6365_v8  ;;  %v6238_v0 = vadd.f32 %v14006_v13, %v5992_v53  ;;  %v5994_v28 = vpop.f32.mrb[77].mxu1  ;;  %v6370_v36 = vadd.f32 %v14049_v32, %v14069_v14 }
 0xa00   : > { %v6704_v56 = vadd.f32 %v6566_v44, %v6364_v63  ;;  %v8250_v16 = vpop.f32.mrb[44].mxu0 }
 0xa01   : > { %6741 = vst [vmem:[%s14062_s19 + $0x58] sm:$0xff] %v6705_v12  ;;  %v6332_v23 = vadd.f32 %v6238_v0, %v13930_v50  ;;  %v6581_v62 = vadd.f32 %v8250_v16, %v14044_v26  ;;  %v6575_v27 = vpop.f32.mrb[45].mxu0  ;;  %v6373_v0 = vadd.f32 %v14049_v32, %v14105_v29 }
 0xa02   : > { %6740 = vst [vmem:[%s14062_s19 + $0x50] sm:$0xff] %v6704_v56  ;;  %v6576_v13 = vadd.f32 %v14044_v26, %v6575_v27  ;;  %v5997_v38 = vpop.f32.mrb[78].mxu1  ;;  %v6372_v56 = vadd.f32 %v14049_v32, %v14093_v11  ;;  %v6374_v11 = vadd.f32 %v14049_v32, %v14117_v15 }
 0xa03   : > { %v6707_v3 = vadd.f32 %v6581_v62, %v6367_v45  ;;  %v6243_v60 = vadd.f32 %v14018_v31, %v5997_v38  ;;  %v5999_v19 = vpop.f32.mrb[79].mxu1 }
 0xa04   : > { %v6706_v22 = vadd.f32 %v6576_v13, %v6366_v30  ;;  %v8253_v50 = vpop.f32.mrb[46].mxu0  ;;  %v6375_v13 = vadd.f32 %v14049_v32, %v6332_v23 }
 0xa05   : > { %6743 = vst [vmem:[%s14062_s19 + $0x68] sm:$0xff] %v6707_v3  ;;  %v6333_v49 = vadd.f32 %v6243_v60, %v13937_v21  ;;  %v6591_v5 = vadd.f32 %v8253_v50, %v14044_v26  ;;  %v6585_v33 = vpop.f32.mrb[47].mxu0 }
 0xa06   : > { %6742 = vst [vmem:[%s14062_s19 + $0x60] sm:$0xff] %v6706_v22  ;;  %v6586_v31 = vadd.f32 %v14044_v26, %v6585_v33  ;;  %v6002_v40 = vpop.f32.mrb[80].mxu1 }
 0xa07   : > { %v6709_v43 = vadd.f32 %v6591_v5, %v6369_v37  ;;  %v6248_v57 = vadd.f32 %v14013_v34, %v6002_v40  ;;  %v6004_v59 = vpop.f32.mrb[81].mxu1  ;;  %v6376_v15 = vadd.f32 %v14049_v32, %v6333_v49 }
 0xa08   : > { %v6708_v17 = vadd.f32 %v6586_v31, %v6368_v42  ;;  %v8256_v21 = vpop.f32.mrb[48].mxu0 }
 0xa09   : > { %6745 = vst [vmem:[%s14062_s19 + $0x78] sm:$0xff] %v6709_v43  ;;  %v6334_v1 = vadd.f32 %v6248_v57, %v13935_v18  ;;  %v6601_v8 = vadd.f32 %v8256_v21, %v14044_v26  ;;  %v6595_v52 = vpop.f32.mrb[49].mxu0 }
 0xa0a   : > { %6744 = vst [vmem:[%s14062_s19 + $0x70] sm:$0xff] %v6708_v17  ;;  %v6596_v34 = vadd.f32 %v14044_v26, %v6595_v52  ;;  %v6007_v48 = vpop.f32.mrb[82].mxu1 }
 0xa0b   : > { %v6711_v63 = vadd.f32 %v6601_v8, %v6371_v2  ;;  %v6253_v44 = vadd.f32 %v14025_v61, %v6007_v48  ;;  %v6009_v53 = vpop.f32.mrb[83].mxu1  ;;  %v6377_v5 = vadd.f32 %v14049_v32, %v6334_v1 }
 0xa0c   : > { %v6710_v12 = vadd.f32 %v6596_v34, %v6370_v36  ;;  %v8259_v18 = vpop.f32.mrb[50].mxu0 }
 0xa0d   : > { %6747 = vst [vmem:[%s14062_s19 + $0x88] sm:$0xff] %v6711_v63  ;;  %v6335_v41 = vadd.f32 %v6253_v44, %v13942_v25  ;;  %v6611_v28 = vadd.f32 %v8259_v18, %v14044_v26  ;;  %v6605_v14 = vpop.f32.mrb[51].mxu0 }
 0xa0e   : > { %6746 = vst [vmem:[%s14062_s19 + $0x80] sm:$0xff] %v6710_v12  ;;  %v6606_v61 = vadd.f32 %v14044_v26, %v6605_v14  ;;  %v6012_v16 = vpop.f32.mrb[84].mxu1 }
 0xa0f   : > { %v6713_v45 = vadd.f32 %v6611_v28, %v6373_v0  ;;  %v6258_v62 = vadd.f32 %v14020_v55, %v6012_v16  ;;  %v6014_v27 = vpop.f32.mrb[85].mxu1  ;;  %v6378_v49 = vadd.f32 %v14049_v32, %v6335_v41 }
 0xa10   : > { %v6712_v30 = vadd.f32 %v6606_v61, %v6372_v56  ;;  %v8262_v25 = vpop.f32.mrb[52].mxu0 }
 0xa11   : > { %6749 = vst [vmem:[%s14062_s19 + $0x98] sm:$0xff] %v6713_v45  ;;  %v6336_v29 = vadd.f32 %v6258_v62, %v13940_v39  ;;  %v6621_v38 = vadd.f32 %v8262_v25, %v14044_v26  ;;  %v6615_v3 = vpop.f32.mrb[53].mxu0 }
 0xa12   : > { %6748 = vst [vmem:[%s14062_s19 + $0x90] sm:$0xff] %v6712_v30  ;;  %v6616_v60 = vadd.f32 %v14044_v26, %v6615_v3  ;;  %v6017_v55 = vpop.f32.mrb[86].mxu1 }
 0xa13   : > { %v6715_v19 = vadd.f32 %v6621_v38, %v6375_v13  ;;  %v6263_v22 = vadd.f32 %v14032_v4, %v6017_v55  ;;  %v6019_v50 = vpop.f32.mrb[87].mxu1  ;;  %v6379_v21 = vadd.f32 %v14049_v32, %v6336_v29 }
 0xa14   : > { %v6714_v37 = vadd.f32 %v6616_v60, %v6374_v11  ;;  %v8265_v39 = vpop.f32.mrb[54].mxu0 }
 0xa15   : > { %6751 = vst [vmem:[%s14062_s19 + $0xa8] sm:$0xff] %v6715_v19  ;;  %v6337_v23 = vadd.f32 %v6263_v22, %v13947_v35  ;;  %v6631_v33 = vadd.f32 %v8265_v39, %v14044_v26  ;;  %v6625_v42 = vpop.f32.mrb[55].mxu0 }
 0xa16   : > { %6750 = vst [vmem:[%s14062_s19 + $0xa0] sm:$0xff] %v6714_v37  ;;  %v6626_v31 = vadd.f32 %v14044_v26, %v6625_v42  ;;  %v6022_v40 = vpop.f32.mrb[88].mxu1 }
 0xa17   : > { %v6717_v4 = vadd.f32 %v6631_v33, %v6377_v5  ;;  %v6268_v43 = vadd.f32 %v14027_v46, %v6022_v40  ;;  %v6024_v57 = vpop.f32.mrb[89].mxu1  ;;  %v6380_v18 = vadd.f32 %v14049_v32, %v6337_v23 }
 0xa18   : > { %v6716_v59 = vadd.f32 %v6626_v31, %v6376_v15  ;;  %v8268_v17 = vpop.f32.mrb[56].mxu0 }
 0xa19   : > { %6753 = vst [vmem:[%s14062_s19 + $0xb8] sm:$0xff] %v6717_v4  ;;  %v6338_v35 = vadd.f32 %v6268_v43, %v13945_v58  ;;  %v6641_v1 = vadd.f32 %v8268_v17, %v14044_v26  ;;  %v6635_v2 = vpop.f32.mrb[57].mxu0 }
 0xa1a   : > { %6752 = vst [vmem:[%s14062_s19 + $0xb0] sm:$0xff] %v6716_v59  ;;  %v6636_v8 = vadd.f32 %v14044_v26, %v6635_v2  ;;  %v6027_v52 = vpop.f32.mrb[90].mxu1 }
 0xa1b   : > { %v6719_v46 = vadd.f32 %v6641_v1, %v6379_v21  ;;  %v6273_v36 = vadd.f32 %v14039_v10, %v6027_v52  ;;  %v6381_v34 = vadd.f32 %v14049_v32, %v6338_v35  ;;  %v6029_v48 = vpop.f32.mrb[91].mxu1 }
 0xa1c   : > { %v6718_v58 = vadd.f32 %v6636_v8, %v6378_v49  ;;  %v8271_v63 = vpop.f32.mrb[58].mxu0 }
 0xa1d   : > { %6755 = vst [vmem:[%s14062_s19 + $0xc8] sm:$0xff] %v6719_v46  ;;  %v6339_v44 = vadd.f32 %v6273_v36, %v13952_v51  ;;  %v6651_v53 = vadd.f32 %v8271_v63, %v14044_v26  ;;  %v6645_v12 = vpop.f32.mrb[59].mxu0 }
 0xa1e   : > { %6754 = vst [vmem:[%s14062_s19 + $0xc0] sm:$0xff] %v6718_v58  ;;  %v6646_v41 = vadd.f32 %v14044_v26, %v6645_v12  ;;  %v6032_v0 = vpop.f32.mrb[92].mxu1 }
 0xa1f   : > { %v6721_v10 = vadd.f32 %v6651_v53, %v6381_v34  ;;  %v6278_v28 = vadd.f32 %v14034_v47, %v6032_v0  ;;  %v6034_v14 = vpop.f32.mrb[93].mxu1  ;;  %v6382_v62 = vadd.f32 %v14049_v32, %v6339_v44 }
 0xa20   : > { %v6720_v56 = vadd.f32 %v6646_v41, %v6380_v18  ;;  %v8274_v61 = vpop.f32.mrb[60].mxu0 }
 0xa21   : > { %6757 = vst [vmem:[%s14062_s19 + $0xd8] sm:$0xff] %v6721_v10  ;;  %v6340_v51 = vadd.f32 %v6278_v28, %v13950_v54  ;;  %v6661_v16 = vadd.f32 %v8274_v61, %v14044_v26  ;;  %v6655_v45 = vpop.f32.mrb[61].mxu0  ;;  %v14720_v10 = vld [vmem:[#allocation4_spill] sm:$0xff] }
 0xa22   : > { %6756 = vst [vmem:[%s14062_s19 + $0xd0] sm:$0xff] %v6720_v56  ;;  %v6656_v27 = vadd.f32 %v14044_v26, %v6655_v45  ;;  %v6037_v30 = vpop.f32.mrb[94].mxu1 }
 0xa23   : > { %v6383_v25 = vadd.f32 %v14049_v32, %v6340_v51  ;;  %v6039_v47 = vpop.f32.mrb[95].mxu1 }
 0xa24   : > { %v6722_v29 = vadd.f32 %v6656_v27, %v6382_v62  ;;  %v8277_v13 = vpop.f32.mrb[62].mxu0 }
 0xa25   : > { %v6723_v38 = vadd.f32 %v6661_v16, %v6383_v25  ;;  %v6665_v3 = vpop.f32.mrb[63].mxu0  ;;  %v6671_v59 = vadd.f32 %v8277_v13, %v14044_v26 }
 0xa26   : > { %6758 = vst [vmem:[%s14062_s19 + $0xe0] sm:$0xff] %v6722_v29  ;;  %v6042_v11 = vpop.f32.mrb[96].mxu1  ;;  %v6666_v21 = vadd.f32 %v14044_v26, %v6665_v3 }
 0xa27   : > { %6759 = vst [vmem:[%s14062_s19 + $0xe8] sm:$0xff] %v6723_v38  ;;  %v6044_v54 = vpop.f32.mrb[97].mxu1 }
 0xa28   : > { %v8280_v60 = vpop.f32.mrb[64].mxu0 }
 0xa29   : > { %v6675_v55 = vpop.f32.mrb[65].mxu0 }
 0xa2a   : > { %v6047_v19 = vpop.f32.mrb[98].mxu1  ;;  %v6676_v58 = vadd.f32 %v14044_v26, %v6675_v55 }
 0xa2b   : > { %v6049_v22 = vpop.f32.mrb[99].mxu1 }
 0xa2c   : > { %v8283_v50 = vpop.f32.mrb[66].mxu0 }
 0xa2d   : > { %v6685_v37 = vpop.f32.mrb[67].mxu0 }
 0xa2e   : > { %v6052_v39 = vpop.f32.mrb[100].mxu1  ;;  %v6686_v14 = vadd.f32 %v14044_v26, %v6685_v37 }
 0xa2f   : > { %v6054_v23 = vpop.f32.mrb[101].mxu1 }
 0xa32   : > { %v6057_v5 = vpop.f32.mrb[102].mxu1 }
 0xa33   : > { %v6059_v33 = vpop.f32.mrb[103].mxu1 }
 0xa36   : > { %v6062_v42 = vpop.f32.mrb[104].mxu1 }
 0xa37   : > { %v6064_v15 = vpop.f32.mrb[105].mxu1 }
 0xa3a   : > { %v8191_v31 = vpop.f32.mrb[106].mxu1 }
 0xa3b   : > { %v6288_v40 = vadd.f32 %v8191_v31, %v6042_v11  ;;  %v6282_v4 = vpop.f32.mrb[107].mxu1 }
 0xa3c   : > { %v6283_v43 = vadd.f32 %v6282_v4, %v6037_v30 }
 0xa3d   : > { %v6342_v57 = vadd.f32 %v6288_v40, %v13955_v6  ;;  %v6681_v6 = vadd.f32 %v8280_v60, %v14044_v26 }
 0xa3e   : > { %v6341_v17 = vadd.f32 %v6283_v43, %v13957_v7  ;;  %v8194_v35 = vpop.f32.mrb[108].mxu1 }
 0xa3f   : > { %v6385_v1 = vadd.f32 %v14049_v32, %v6342_v57  ;;  %v6298_v2 = vadd.f32 %v8194_v35, %v6052_v39  ;;  %v6292_v49 = vpop.f32.mrb[109].mxu1 }
 0xa40   : > { %v6384_v8 = vadd.f32 %v14049_v32, %v6341_v17  ;;  %v6293_v52 = vadd.f32 %v6292_v49, %v6047_v19 }
 0xa41   : > { %v6725_v46 = vadd.f32 %v6671_v59, %v6385_v1  ;;  %v6344_v36 = vadd.f32 %v6298_v2, %v13960_v24 }
 0xa42   : > { %v6724_v34 = vadd.f32 %v6666_v21, %v6384_v8  ;;  %v6343_v48 = vadd.f32 %v6293_v52, %v13962_v20  ;;  %v8197_v7 = vpop.f32.mrb[110].mxu1  ;;  %v6691_v20 = vadd.f32 %v8283_v50, %v14044_v26 }
 0xa43   : > { %6761 = vst [vmem:[%s14062_s19 + $0xf8] sm:$0xff] %v6725_v46  ;;  %v6387_v63 = vadd.f32 %v14049_v32, %v6344_v36  ;;  %v6308_v44 = vadd.f32 %v8197_v7, %v6062_v42  ;;  %v6302_v53 = vpop.f32.mrb[111].mxu1 }
 0xa44   : > { %6760 = vst [vmem:[%s14062_s19 + $0xf0] sm:$0xff] %v6724_v34  ;;  %v6386_v24 = vadd.f32 %v14049_v32, %v6343_v48  ;;  %v6303_v12 = vadd.f32 %v6302_v53, %v6057_v5 }
 0xa45   : > { %v6727_v18 = vadd.f32 %v6681_v6, %v6387_v63  ;;  %v6346_v41 = vadd.f32 %v6308_v44, %v13968_v9 }
 0xa46   : > { %v6726_v0 = vadd.f32 %v6676_v58, %v6386_v24  ;;  %v6345_v28 = vadd.f32 %v6303_v12, %v14720_v10 }
 0xa47   : > { %6763 = vst [vmem:[%s14062_s19 + $0x108] sm:$0xff] %v6727_v18  ;;  %v6389_v56 = vadd.f32 %v14049_v32, %v6346_v41 }
 0xa48   : > { %6762 = vst [vmem:[%s14062_s19 + $0x100] sm:$0xff] %v6726_v0  ;;  %v6388_v61 = vadd.f32 %v14049_v32, %v6345_v28 }
 0xa49   : > { %v6729_v51 = vadd.f32 %v6691_v20, %v6389_v56 }
 0xa4a   : > { %v6728_v16 = vadd.f32 %v6686_v14, %v6388_v61 }
 0xa4b   : > { %6765 = vst [vmem:[%s14062_s19 + $0x118] sm:$0xff] %v6729_v51 }
 0xa4c   : > { %6764 = vst [vmem:[%s14062_s19 + $0x110] sm:$0xff] %v6728_v16 }
 0xa4d PF: > { %s24_s29 = sadd.s32 1, %s9228_s29  }
 0xa4e   : > { %p21_p4 = scmp.ge.s32.totalorder %s24_s29, 4  }
 0xa50   :  { %23 = sbr.rel (!%p21_p4) target bundleno = 1 (0x1), region = 113 }

</bundles_post_ra>
